<compile_context>
chip_gen: v7x
topology: tpu7x:2x2x1
jax: 0.10.0
libtpu: 0.0.40
codegen_flags: <defaults>
</compile_context>

<pallas_src>
import functools
import numpy as np

import jax
import jax.numpy as jnp
from jax import lax
from jax.experimental import pallas as pl
from jax.experimental.pallas import tpu as pltpu

# ----------------------------- config (small but MXU/vreg friendly) ------------------
NUM_EXAMPLES = 4                                   # molecules per batch ("parallel" grid axis)
ATOMS_PER_EX = 32                                  # atoms per molecule (multiple of 8 sublanes)
N_ATOMS = NUM_EXAMPLES * ATOMS_PER_EX
EDGES_PER_EX = ATOMS_PER_EX * (ATOMS_PER_EX - 1)   # fully connected, no self interaction
N_EDGES = NUM_EXAMPLES * EDGES_PER_EX
HIDDEN = 128                                       # hidden_channels (multiple of 128 lanes)
HIDDEN_OUT = HIDDEN // 2                           # output-MLP hidden width
NUM_RBF = 32                                       # Gaussian radial basis functions
NUM_TYPES = 5                                      # atom/bead types
NUM_BLOCKS = 2                                     # interaction blocks
CUTOFF = 10.0                                      # CosineCutoff upper cutoff

_offsets = np.linspace(0.0, CUTOFF, NUM_RBF)
_delta = _offsets[1] - _offsets[0]
GAMMA = -0.5 / (_delta * _delta)                   # Gaussian RBF coefficient


# ----------------------------------- Pallas kernel -----------------------------------
def schnet_kernel(
    x0_ref,     # (A, H)        f32   embedded atom features of this molecule
    gsrc_ref,   # (E, A)        bf16  one-hot gather matrix for edge sources
    gdst_ref,   # (E, A)        bf16  one-hot gather matrix for edge targets
    rbf_ref,    # (E, R)        f32   RBF-expanded distances
    cut_ref,    # (E, 1)        f32   cosine-cutoff envelope
    wf1_ref,    # (R, nb*H)     bf16  filter net Linear1, lane-concatenated over blocks
    bf1_ref,    # (1, nb*H)     f32
    wf2_ref,    # (nb*H, nb*H)  bf16  filter net Linear2, block-diagonal over blocks
    bf2_ref,    # (1, nb*H)     f32
    w1_ref,     # (nb, H, H)    bf16  CFConv lin1 (no bias)
    w2_ref,     # (nb, H, H)    bf16  CFConv lin2
    b2_ref,     # (nb, 1, H)    f32
    wi_ref,     # (nb, H, H)    bf16  InteractionBlock lin
    bi_ref,     # (nb, 1, H)    f32
    wo1_ref,    # (H, H//2)     bf16  output net Linear1
    bo1_ref,    # (1, H//2)     f32
    wo2_ref,    # (H//2, 1)     bf16  output net Linear2
    bo2_ref,    # (1, 1)        f32
    out_ref,    # (8, 128)      f32   per-molecule energy broadcast into one lane-dense tile
    *, num_blocks, hidden,
):
    f32 = jnp.float32
    bf16 = jnp.bfloat16

    def mxu(a, b):
        # bf16 x bf16 matmul with f32 accumulation on the MXU.
        return jnp.dot(a.astype(bf16), b.astype(bf16), preferred_element_type=f32)

    x = x0_ref[...]                                   # (A, H) f32
    rbf = rbf_ref[...]                                # (E, R)
    cut = cut_ref[...]                                # (E, 1)
    gsrc = gsrc_ref[...]                              # (E, A) bf16
    gdst = gdst_ref[...]                              # (E, A) bf16

    # Filter network for ALL interaction blocks in one wide MXU pass
    # (depends only on rbf / cut, not on x).
    w_all = jnp.tanh(mxu(rbf, wf1_ref[...]) + bf1_ref[...])        # (E, nb*H)
    w_all = mxu(w_all, wf2_ref[...]) + bf2_ref[...]                # (E, nb*H)
    w_all = w_all * cut                                            # cosine cutoff envelope

    # Interaction blocks with residual:  x = x + lin(tanh(cfconv(x, ...)))
    for blk in range(num_blocks):
        w = w_all[:, blk * hidden:(blk + 1) * hidden]              # (E, H) static lane slice

        h = mxu(x, w1_ref[blk])                                    # (A, H)  CFConv lin1
        h_j = mxu(gsrc, h)                                         # (E, H)  gather x_j
        msg = h_j * w                                              # (E, H)  modulate (f32 VPU)
        # scatter-add at dst: contract the edge axis of the dst one-hot (no (A,E) matrix)
        agg = lax.dot_general(gdst, msg.astype(bf16),
                              dimension_numbers=(((0,), (0,)), ((), ())),
                              preferred_element_type=f32)          # (A, H)
        h = mxu(agg, w2_ref[blk]) + b2_ref[blk]                    # (A, H)  CFConv lin2

        h = jnp.tanh(h)                                            # InteractionBlock tail
        h = mxu(h, wi_ref[blk]) + bi_ref[blk]                      # (A, H)
        x = x + h                                                  # residual

    # Output network: Linear -> Tanh -> Linear, then per-molecule energy sum.
    e = jnp.tanh(mxu(x, wo1_ref[...]) + bo1_ref[...])              # (A, H//2)
    e = mxu(e, wo2_ref[...]) + bo2_ref[...]                        # (A, 1)
    e_sum = jnp.sum(e, axis=0, keepdims=True)                      # (1, 1)
    out_ref[...] = jnp.broadcast_to(e_sum, out_ref.shape).astype(f32)


# --------------------------------- wrapper / glue -------------------------------------
@jax.jit
def schnet_forward_pallas(params, atom_types, pos, edge_index):
    f32, bf16 = jnp.float32, jnp.bfloat16
    nb, H, R = NUM_BLOCKS, HIDDEN, NUM_RBF
    nbH = nb * H

    # ---- edge-static precompute in the XLA wrapper (frees kernel MXU/XLU slots) ------
    x0 = params["emb"][atom_types]                                 # (N, H) embedding gather
    src, dst = edge_index[0], edge_index[1]
    rel = pos[src] - pos[dst]
    d = jnp.sqrt(jnp.sum(rel * rel, axis=-1, keepdims=True))       # (E, 1)
    rbf = jnp.exp(GAMMA * (d - params["mus"]) ** 2)                # (E, R)
    cut = 0.5 * (jnp.cos(d * (jnp.pi / CUTOFF)) + 1.0)
    cut = jnp.where(d < CUTOFF, cut, 0.0)                          # (E, 1)

    # per-molecule local one-hot gather matrices (0/1 is exact in bf16)
    ex = dst // ATOMS_PER_EX
    gsrc = jax.nn.one_hot(src - ex * ATOMS_PER_EX, ATOMS_PER_EX, dtype=bf16)
    gdst = jax.nn.one_hot(dst - ex * ATOMS_PER_EX, ATOMS_PER_EX, dtype=bf16)

    x0 = x0.reshape(NUM_EXAMPLES, ATOMS_PER_EX, H).astype(f32)
    gsrc = gsrc.reshape(NUM_EXAMPLES, EDGES_PER_EX, ATOMS_PER_EX)
    gdst = gdst.reshape(NUM_EXAMPLES, EDGES_PER_EX, ATOMS_PER_EX)
    rbf = rbf.reshape(NUM_EXAMPLES, EDGES_PER_EX, R).astype(f32)
    cut = cut.reshape(NUM_EXAMPLES, EDGES_PER_EX, 1).astype(f32)

    # ---- batch the filter network across interaction blocks --------------------------
    wf1c = jnp.concatenate([params["wf1"][b] for b in range(nb)], axis=1).astype(bf16)  # (R, nb*H)
    bf1c = jnp.concatenate([params["bf1"][b] for b in range(nb)], axis=1)               # (1, nb*H)
    wf2d = jnp.zeros((nbH, nbH), f32)
    for b in range(nb):
        wf2d = wf2d.at[b * H:(b + 1) * H, b * H:(b + 1) * H].set(params["wf2"][b])
    wf2d = wf2d.astype(bf16)                                                            # (nb*H, nb*H)
    bf2c = jnp.concatenate([params["bf2"][b] for b in range(nb)], axis=1)               # (1, nb*H)

    w1 = params["w1"].astype(bf16)
    w2 = params["w2"].astype(bf16)
    wi = params["wi"].astype(bf16)
    wo1 = params["wo1"].astype(bf16)
    wo2 = params["wo2"].astype(bf16)
    b2, bi, bo1, bo2 = params["b2"], params["bi"], params["bo1"], params["bo2"]

    inputs = (x0, gsrc, gdst, rbf, cut,
              wf1c, bf1c, wf2d, bf2c,
              w1, w2, b2, wi, bi,
              wo1, bo1, wo2, bo2)

    def tile_spec(last2):      # per-molecule blocked input
        return pl.BlockSpec((None,) + last2, lambda i: (i, 0, 0))

    def full_spec(arr):        # weights: full-extent block, constant index map
        nd = arr.ndim
        return pl.BlockSpec(arr.shape, lambda i: (0,) * nd)

    in_specs = [
        tile_spec((ATOMS_PER_EX, H)),              # x0
        tile_spec((EDGES_PER_EX, ATOMS_PER_EX)),   # gsrc
        tile_spec((EDGES_PER_EX, ATOMS_PER_EX)),   # gdst
        tile_spec((EDGES_PER_EX, R)),              # rbf
        tile_spec((EDGES_PER_EX, 1)),              # cut
    ] + [full_spec(a) for a in inputs[5:]]

    out_specs = pl.BlockSpec((None, 8, 128), lambda i: (i, 0, 0))
    out_shape = jax.ShapeDtypeStruct((NUM_EXAMPLES, 8, 128), f32)

    # advisory cost estimate for the XLA scheduler
    flops_ex = (2 * EDGES_PER_EX * R * nbH + 2 * EDGES_PER_EX * nbH * nbH
                + nb * (3 * 2 * ATOMS_PER_EX * H * H
                        + 2 * 2 * EDGES_PER_EX * ATOMS_PER_EX * H)
                + 2 * ATOMS_PER_EX * H * HIDDEN_OUT + 2 * ATOMS_PER_EX * HIDDEN_OUT)
    transc_ex = EDGES_PER_EX * nbH + nb * ATOMS_PER_EX * H + ATOMS_PER_EX * HIDDEN_OUT
    bytes_acc = int(sum(int(np.prod(a.shape)) * a.dtype.itemsize for a in inputs)
                    + NUM_EXAMPLES * 8 * 128 * 4)

    kernel = functools.partial(schnet_kernel, num_blocks=nb, hidden=H)
    out = pl.pallas_call(
        kernel,
        grid=(NUM_EXAMPLES,),
        in_specs=in_specs,
        out_specs=out_specs,
        out_shape=out_shape,
        compiler_params=pltpu.CompilerParams(dimension_semantics=("parallel",)),
        cost_estimate=pl.CostEstimate(
            flops=NUM_EXAMPLES * flops_ex,
            transcendentals=NUM_EXAMPLES * transc_ex,
            bytes_accessed=bytes_acc),
    )(*inputs)

    return out[:, 0, 0]                               # (num_examples,)


# ------------------------------- pure-JAX f32 reference -------------------------------
def schnet_forward_ref(params, atom_types, pos, edge_index, batch):
    x = params["emb"][atom_types]
    src, dst = edge_index[0], edge_index[1]
    rel = pos[src] - pos[dst]
    d = jnp.sqrt(jnp.sum(rel * rel, axis=-1, keepdims=True))
    rbf = jnp.exp(GAMMA * (d - params["mus"]) ** 2)
    cut = 0.5 * (jnp.cos(d * jnp.pi / CUTOFF) + 1.0)
    cut = jnp.where(d < CUTOFF, cut, 0.0)
    for b in range(NUM_BLOCKS):
        w = jnp.tanh(rbf @ params["wf1"][b] + params["bf1"][b])
        w = w @ params["wf2"][b] + params["bf2"][b]
        w = w * cut
        h = x @ params["w1"][b]
        msg = h[src] * w
        agg = jax.ops.segment_sum(msg, dst, num_segments=N_ATOMS)
        h = agg @ params["w2"][b] + params["b2"][b]
        h = jnp.tanh(h)
        h = h @ params["wi"][b] + params["bi"][b]
        x = x + h
    e = jnp.tanh(x @ params["wo1"] + params["bo1"]) @ params["wo2"] + params["bo2"]
    energy = jax.ops.segment_sum(e, batch, num_segments=NUM_EXAMPLES)
    return energy[:, 0]


# -------------------------------- deterministic params --------------------------------
def xavier_uniform(key, fan_in, fan_out, shape=None):
    if shape is None:
        shape = (fan_in, fan_out)
    bound = float(np.sqrt(6.0 / (fan_in + fan_out)))
    w = jax.random.uniform(key, shape, jnp.float32, -bound, bound)
    # Keep weights bf16-representable: the kernel feeds them to the MXU as bf16, so the
    # kernel and the f32 reference differ only by activation-rounding at matmul inputs.
    return w.astype(jnp.bfloat16).astype(jnp.float32)


def make_params(key):
    ks = jax.random.split(key, 16)
    nb = NUM_BLOCKS
    return {
        "emb": jax.random.normal(ks[0], (NUM_TYPES, HIDDEN), jnp.float32),
        "mus": jnp.asarray(_offsets, jnp.float32).reshape(1, NUM_RBF),
        "wf1": xavier_uniform(ks[1], NUM_RBF, HIDDEN, (nb, NUM_RBF, HIDDEN)),
        "bf1": jnp.zeros((nb, 1, HIDDEN), jnp.float32),
        "wf2": xavier_uniform(ks[2], HIDDEN, HIDDEN, (nb, HIDDEN, HIDDEN)),
        "bf2": jnp.zeros((nb, 1, HIDDEN), jnp.float32),
        "w1": xavier_uniform(ks[3], HIDDEN, HIDDEN, (nb, HIDDEN, HIDDEN)),    # no bias
        "w2": xavier_uniform(ks[4], HIDDEN, HIDDEN, (nb, HIDDEN, HIDDEN)),
        "b2": jnp.zeros((nb, 1, HIDDEN), jnp.float32),
        "wi": xavier_uniform(ks[5], HIDDEN, HIDDEN, (nb, HIDDEN, HIDDEN)),
        "bi": jnp.zeros((nb, 1, HIDDEN), jnp.float32),
        "wo1": xavier_uniform(ks[6], HIDDEN, HIDDEN_OUT),
        "bo1": jnp.zeros((1, HIDDEN_OUT), jnp.float32),
        "wo2": xavier_uniform(ks[7], HIDDEN_OUT, 1),
        "bo2": jnp.zeros((1, 1), jnp.float32),
    }


# ------------------------------------ main ---------------------------------------------
if __name__ == "__main__":
    key = jax.random.PRNGKey(0)
    k_pos, k_types, k_par = jax.random.split(key, 3)

    params = make_params(k_par)

    # synthetic atomic data
    atom_types = jax.random.randint(k_types, (N_ATOMS,), 0, NUM_TYPES)
    pos = jax.random.uniform(k_pos, (N_ATOMS, 3), jnp.float32, 0.0, 3.0)
    batch = jnp.asarray(np.repeat(np.arange(NUM_EXAMPLES), ATOMS_PER_EX), jnp.int32)

    # host-side neighbor list: all ordered intra-molecule pairs, no self interaction
    # TODO(synk): real SchNet builds this with radius_graph (+ PBC cell shifts); no Pallas equivalent.
    edges = []
    for exi in range(NUM_EXAMPLES):
        base = exi * ATOMS_PER_EX
        for i in range(ATOMS_PER_EX):
            for j in range(ATOMS_PER_EX):
                if i != j:
                    edges.append((base + j, base + i))   # (source, target)
    edge_index = jnp.asarray(np.array(edges, dtype=np.int32).T)    # (2, E)
    assert edge_index.shape[1] == N_EDGES

    energy = schnet_forward_pallas(params, atom_types, pos, edge_index)
    energy = jax.block_until_ready(energy)

    energy_ref = jax.block_until_ready(
        schnet_forward_ref(params, atom_types, pos, edge_index, batch))

    assert energy.shape == (NUM_EXAMPLES,)
    # kernel uses bf16 MXU operands with f32 accumulation; reference is pure f32
    np.testing.assert_allclose(
        np.asarray(energy), np.asarray(energy_ref), rtol=5e-2, atol=5e-2)
    print("KERNEL_OK")
</pallas_src>

<mosaic_0001>
module attributes {stable_mosaic.version = 11 : i64} {
  func.func @schnet_kernel(%arg0: i32, %arg1: memref<1x32x128xf32, #tpu.memory_space<vmem>>, %arg2: memref<1x992x32xbf16, #tpu.memory_space<vmem>>, %arg3: memref<1x992x32xbf16, #tpu.memory_space<vmem>>, %arg4: memref<1x992x32xf32, #tpu.memory_space<vmem>>, %arg5: memref<1x992x1xf32, #tpu.memory_space<vmem>>, %arg6: memref<32x256xbf16, #tpu.memory_space<vmem>>, %arg7: memref<1x256xf32, #tpu.memory_space<vmem>>, %arg8: memref<256x256xbf16, #tpu.memory_space<vmem>>, %arg9: memref<1x256xf32, #tpu.memory_space<vmem>>, %arg10: memref<2x128x128xbf16, #tpu.memory_space<vmem>>, %arg11: memref<2x128x128xbf16, #tpu.memory_space<vmem>>, %arg12: memref<2x1x128xf32, #tpu.memory_space<vmem>>, %arg13: memref<2x128x128xbf16, #tpu.memory_space<vmem>>, %arg14: memref<2x1x128xf32, #tpu.memory_space<vmem>>, %arg15: memref<128x64xbf16, #tpu.memory_space<vmem>>, %arg16: memref<1x64xf32, #tpu.memory_space<vmem>>, %arg17: memref<64x1xbf16, #tpu.memory_space<vmem>>, %arg18: memref<1x1xf32, #tpu.memory_space<vmem>>, %arg19: memref<1x8x128xf32, #tpu.memory_space<vmem>>) attributes {dimension_semantics = [#tpu.dimension_semantics<parallel>], iteration_bounds = array<i64: 4>, scalar_prefetch = 0 : i64, scratch_operands = 0 : i64, tpu.core_type = #tpu.core_type<tc>, window_params = [{transform_indices = @transform_0, window_bounds = array<i64: 1, 32, 128>}, {transform_indices = @transform_1, window_bounds = array<i64: 1, 992, 32>}, {transform_indices = @transform_2, window_bounds = array<i64: 1, 992, 32>}, {transform_indices = @transform_3, window_bounds = array<i64: 1, 992, 32>}, {transform_indices = @transform_4, window_bounds = array<i64: 1, 992, 1>}, {pipeline_mode = #tpu.pipeline_mode<synchronous>, transform_indices = @transform_5, window_bounds = array<i64: 32, 256>}, {pipeline_mode = #tpu.pipeline_mode<synchronous>, transform_indices = @transform_6, window_bounds = array<i64: 1, 256>}, {pipeline_mode = #tpu.pipeline_mode<synchronous>, transform_indices = @transform_7, window_bounds = array<i64: 256, 256>}, {pipeline_mode = #tpu.pipeline_mode<synchronous>, transform_indices = @transform_8, window_bounds = array<i64: 1, 256>}, {pipeline_mode = #tpu.pipeline_mode<synchronous>, transform_indices = @transform_9, window_bounds = array<i64: 2, 128, 128>}, {pipeline_mode = #tpu.pipeline_mode<synchronous>, transform_indices = @transform_10, window_bounds = array<i64: 2, 128, 128>}, {pipeline_mode = #tpu.pipeline_mode<synchronous>, transform_indices = @transform_11, window_bounds = array<i64: 2, 1, 128>}, {pipeline_mode = #tpu.pipeline_mode<synchronous>, transform_indices = @transform_12, window_bounds = array<i64: 2, 128, 128>}, {pipeline_mode = #tpu.pipeline_mode<synchronous>, transform_indices = @transform_13, window_bounds = array<i64: 2, 1, 128>}, {pipeline_mode = #tpu.pipeline_mode<synchronous>, transform_indices = @transform_14, window_bounds = array<i64: 128, 64>}, {pipeline_mode = #tpu.pipeline_mode<synchronous>, transform_indices = @transform_15, window_bounds = array<i64: 1, 64>}, {pipeline_mode = #tpu.pipeline_mode<synchronous>, transform_indices = @transform_16, window_bounds = array<i64: 64, 1>}, {pipeline_mode = #tpu.pipeline_mode<synchronous>, transform_indices = @transform_17, window_bounds = array<i64: 1, 1>}, {transform_indices = @transform_18, window_bounds = array<i64: 1, 8, 128>}]} {
    %c0 = arith.constant 0 : index
    %c0_0 = arith.constant 0 : index
    %c0_1 = arith.constant 0 : index
    %0 = vector.load %arg1[%c0, %c0_0, %c0_1] : memref<1x32x128xf32, #tpu.memory_space<vmem>>, vector<1x32x128xf32>
    %1 = vector.shape_cast %0 : vector<1x32x128xf32> to vector<32x128xf32>
    %c0_2 = arith.constant 0 : index
    %c0_3 = arith.constant 0 : index
    %c0_4 = arith.constant 0 : index
    %2 = vector.load %arg4[%c0_2, %c0_3, %c0_4] : memref<1x992x32xf32, #tpu.memory_space<vmem>>, vector<1x992x32xf32>
    %3 = vector.shape_cast %2 : vector<1x992x32xf32> to vector<992x32xf32>
    %c0_5 = arith.constant 0 : index
    %c0_6 = arith.constant 0 : index
    %c0_7 = arith.constant 0 : index
    %4 = vector.load %arg5[%c0_5, %c0_6, %c0_7] : memref<1x992x1xf32, #tpu.memory_space<vmem>>, vector<1x992x1xf32>
    %5 = vector.shape_cast %4 : vector<1x992x1xf32> to vector<992x1xf32>
    %c0_8 = arith.constant 0 : index
    %c0_9 = arith.constant 0 : index
    %c0_10 = arith.constant 0 : index
    %6 = vector.load %arg2[%c0_8, %c0_9, %c0_10] : memref<1x992x32xbf16, #tpu.memory_space<vmem>>, vector<1x992x32xbf16>
    %7 = vector.shape_cast %6 : vector<1x992x32xbf16> to vector<992x32xbf16>
    %c0_11 = arith.constant 0 : index
    %c0_12 = arith.constant 0 : index
    %c0_13 = arith.constant 0 : index
    %8 = vector.load %arg3[%c0_11, %c0_12, %c0_13] : memref<1x992x32xbf16, #tpu.memory_space<vmem>>, vector<1x992x32xbf16>
    %9 = vector.shape_cast %8 : vector<1x992x32xbf16> to vector<992x32xbf16>
    %c0_14 = arith.constant 0 : index
    %c0_15 = arith.constant 0 : index
    %10 = vector.load %arg6[%c0_14, %c0_15] : memref<32x256xbf16, #tpu.memory_space<vmem>>, vector<32x256xbf16>
    %11 = arith.truncf %3 : vector<992x32xf32> to vector<992x32xbf16>
    %cst = arith.constant dense<0.000000e+00> : vector<992x256xf32>
    %12 = tpu.matmul %11, %10, %cst {dimension_numbers = #tpu.dot_dimension_numbers<[1], [0], [0], [1], [0, 0, 1, 1], [], []>} : vector<992x32xbf16>, vector<32x256xbf16>, vector<992x256xf32> -> vector<992x256xf32>
    %c0_16 = arith.constant 0 : index
    %c0_17 = arith.constant 0 : index
    %13 = vector.load %arg7[%c0_16, %c0_17] : memref<1x256xf32, #tpu.memory_space<vmem>>, vector<1x256xf32>
    %14 = vector.broadcast %13 : vector<1x256xf32> to vector<992x256xf32>
    %15 = arith.addf %12, %14 : vector<992x256xf32>
    %16 = math.tanh %15 : vector<992x256xf32>
    %c0_18 = arith.constant 0 : index
    %c0_19 = arith.constant 0 : index
    %17 = vector.load %arg8[%c0_18, %c0_19] : memref<256x256xbf16, #tpu.memory_space<vmem>>, vector<256x256xbf16>
    %18 = arith.truncf %16 : vector<992x256xf32> to vector<992x256xbf16>
    %cst_20 = arith.constant dense<0.000000e+00> : vector<992x256xf32>
    %19 = tpu.matmul %18, %17, %cst_20 {dimension_numbers = #tpu.dot_dimension_numbers<[1], [0], [0], [1], [0, 0, 1, 1], [], []>} : vector<992x256xbf16>, vector<256x256xbf16>, vector<992x256xf32> -> vector<992x256xf32>
    %c0_21 = arith.constant 0 : index
    %c0_22 = arith.constant 0 : index
    %20 = vector.load %arg9[%c0_21, %c0_22] : memref<1x256xf32, #tpu.memory_space<vmem>>, vector<1x256xf32>
    %21 = vector.broadcast %20 : vector<1x256xf32> to vector<992x256xf32>
    %22 = arith.addf %19, %21 : vector<992x256xf32>
    %23 = vector.broadcast %5 : vector<992x1xf32> to vector<992x256xf32>
    %24 = arith.mulf %22, %23 : vector<992x256xf32>
    %25 = vector.extract_strided_slice %24 {offsets = [0, 0], sizes = [992, 128], strides = [1, 1]} : vector<992x256xf32> to vector<992x128xf32>
    %c0_23 = arith.constant 0 : index
    %c0_24 = arith.constant 0 : index
    %c0_25 = arith.constant 0 : index
    %26 = vector.load %arg10[%c0_23, %c0_24, %c0_25] : memref<2x128x128xbf16, #tpu.memory_space<vmem>>, vector<1x128x128xbf16>
    %27 = vector.shape_cast %26 : vector<1x128x128xbf16> to vector<128x128xbf16>
    %28 = arith.truncf %1 : vector<32x128xf32> to vector<32x128xbf16>
    %cst_26 = arith.constant dense<0.000000e+00> : vector<32x128xf32>
    %29 = tpu.matmul %28, %27, %cst_26 {dimension_numbers = #tpu.dot_dimension_numbers<[1], [0], [0], [1], [0, 0, 1, 1], [], []>} : vector<32x128xbf16>, vector<128x128xbf16>, vector<32x128xf32> -> vector<32x128xf32>
    %30 = arith.truncf %29 : vector<32x128xf32> to vector<32x128xbf16>
    %cst_27 = arith.constant dense<0.000000e+00> : vector<992x128xf32>
    %31 = tpu.matmul %7, %30, %cst_27 {dimension_numbers = #tpu.dot_dimension_numbers<[1], [0], [0], [1], [0, 0, 1, 1], [], []>} : vector<992x32xbf16>, vector<32x128xbf16>, vector<992x128xf32> -> vector<992x128xf32>
    %32 = arith.mulf %31, %25 : vector<992x128xf32>
    %33 = arith.truncf %32 : vector<992x128xf32> to vector<992x128xbf16>
    %cst_28 = arith.constant dense<0.000000e+00> : vector<32x128xf32>
    %34 = tpu.matmul %9, %33, %cst_28 {dimension_numbers = #tpu.dot_dimension_numbers<[0], [0], [1], [1], [0, 1, 1, 1], [], []>} : vector<992x32xbf16>, vector<992x128xbf16>, vector<32x128xf32> -> vector<32x128xf32>
    %c0_29 = arith.constant 0 : index
    %c0_30 = arith.constant 0 : index
    %c0_31 = arith.constant 0 : index
    %35 = vector.load %arg11[%c0_29, %c0_30, %c0_31] : memref<2x128x128xbf16, #tpu.memory_space<vmem>>, vector<1x128x128xbf16>
    %36 = vector.shape_cast %35 : vector<1x128x128xbf16> to vector<128x128xbf16>
    %37 = arith.truncf %34 : vector<32x128xf32> to vector<32x128xbf16>
    %cst_32 = arith.constant dense<0.000000e+00> : vector<32x128xf32>
    %38 = tpu.matmul %37, %36, %cst_32 {dimension_numbers = #tpu.dot_dimension_numbers<[1], [0], [0], [1], [0, 0, 1, 1], [], []>} : vector<32x128xbf16>, vector<128x128xbf16>, vector<32x128xf32> -> vector<32x128xf32>
    %c0_33 = arith.constant 0 : index
    %c0_34 = arith.constant 0 : index
    %c0_35 = arith.constant 0 : index
    %39 = vector.load %arg12[%c0_33, %c0_34, %c0_35] : memref<2x1x128xf32, #tpu.memory_space<vmem>>, vector<1x1x128xf32>
    %40 = vector.shape_cast %39 : vector<1x1x128xf32> to vector<1x128xf32>
    %41 = vector.broadcast %40 : vector<1x128xf32> to vector<32x128xf32>
    %42 = arith.addf %38, %41 : vector<32x128xf32>
    %43 = math.tanh %42 : vector<32x128xf32>
    %c0_36 = arith.constant 0 : index
    %c0_37 = arith.constant 0 : index
    %c0_38 = arith.constant 0 : index
    %44 = vector.load %arg13[%c0_36, %c0_37, %c0_38] : memref<2x128x128xbf16, #tpu.memory_space<vmem>>, vector<1x128x128xbf16>
    %45 = vector.shape_cast %44 : vector<1x128x128xbf16> to vector<128x128xbf16>
    %46 = arith.truncf %43 : vector<32x128xf32> to vector<32x128xbf16>
    %cst_39 = arith.constant dense<0.000000e+00> : vector<32x128xf32>
    %47 = tpu.matmul %46, %45, %cst_39 {dimension_numbers = #tpu.dot_dimension_numbers<[1], [0], [0], [1], [0, 0, 1, 1], [], []>} : vector<32x128xbf16>, vector<128x128xbf16>, vector<32x128xf32> -> vector<32x128xf32>
    %c0_40 = arith.constant 0 : index
    %c0_41 = arith.constant 0 : index
    %c0_42 = arith.constant 0 : index
    %48 = vector.load %arg14[%c0_40, %c0_41, %c0_42] : memref<2x1x128xf32, #tpu.memory_space<vmem>>, vector<1x1x128xf32>
    %49 = vector.shape_cast %48 : vector<1x1x128xf32> to vector<1x128xf32>
    %50 = vector.broadcast %49 : vector<1x128xf32> to vector<32x128xf32>
    %51 = arith.addf %47, %50 : vector<32x128xf32>
    %52 = arith.addf %1, %51 : vector<32x128xf32>
    %53 = vector.extract_strided_slice %24 {offsets = [0, 128], sizes = [992, 128], strides = [1, 1]} : vector<992x256xf32> to vector<992x128xf32>
    %c1 = arith.constant 1 : index
    %c0_43 = arith.constant 0 : index
    %c0_44 = arith.constant 0 : index
    %54 = vector.load %arg10[%c1, %c0_43, %c0_44] : memref<2x128x128xbf16, #tpu.memory_space<vmem>>, vector<1x128x128xbf16>
    %55 = vector.shape_cast %54 : vector<1x128x128xbf16> to vector<128x128xbf16>
    %56 = arith.truncf %52 : vector<32x128xf32> to vector<32x128xbf16>
    %cst_45 = arith.constant dense<0.000000e+00> : vector<32x128xf32>
    %57 = tpu.matmul %56, %55, %cst_45 {dimension_numbers = #tpu.dot_dimension_numbers<[1], [0], [0], [1], [0, 0, 1, 1], [], []>} : vector<32x128xbf16>, vector<128x128xbf16>, vector<32x128xf32> -> vector<32x128xf32>
    %58 = arith.truncf %57 : vector<32x128xf32> to vector<32x128xbf16>
    %cst_46 = arith.constant dense<0.000000e+00> : vector<992x128xf32>
    %59 = tpu.matmul %7, %58, %cst_46 {dimension_numbers = #tpu.dot_dimension_numbers<[1], [0], [0], [1], [0, 0, 1, 1], [], []>} : vector<992x32xbf16>, vector<32x128xbf16>, vector<992x128xf32> -> vector<992x128xf32>
    %60 = arith.mulf %59, %53 : vector<992x128xf32>
    %61 = arith.truncf %60 : vector<992x128xf32> to vector<992x128xbf16>
    %cst_47 = arith.constant dense<0.000000e+00> : vector<32x128xf32>
    %62 = tpu.matmul %9, %61, %cst_47 {dimension_numbers = #tpu.dot_dimension_numbers<[0], [0], [1], [1], [0, 1, 1, 1], [], []>} : vector<992x32xbf16>, vector<992x128xbf16>, vector<32x128xf32> -> vector<32x128xf32>
    %c1_48 = arith.constant 1 : index
    %c0_49 = arith.constant 0 : index
    %c0_50 = arith.constant 0 : index
    %63 = vector.load %arg11[%c1_48, %c0_49, %c0_50] : memref<2x128x128xbf16, #tpu.memory_space<vmem>>, vector<1x128x128xbf16>
    %64 = vector.shape_cast %63 : vector<1x128x128xbf16> to vector<128x128xbf16>
    %65 = arith.truncf %62 : vector<32x128xf32> to vector<32x128xbf16>
    %cst_51 = arith.constant dense<0.000000e+00> : vector<32x128xf32>
    %66 = tpu.matmul %65, %64, %cst_51 {dimension_numbers = #tpu.dot_dimension_numbers<[1], [0], [0], [1], [0, 0, 1, 1], [], []>} : vector<32x128xbf16>, vector<128x128xbf16>, vector<32x128xf32> -> vector<32x128xf32>
    %c1_52 = arith.constant 1 : index
    %c0_53 = arith.constant 0 : index
    %c0_54 = arith.constant 0 : index
    %67 = vector.load %arg12[%c1_52, %c0_53, %c0_54] : memref<2x1x128xf32, #tpu.memory_space<vmem>>, vector<1x1x128xf32>
    %68 = vector.shape_cast %67 : vector<1x1x128xf32> to vector<1x128xf32>
    %69 = vector.broadcast %68 : vector<1x128xf32> to vector<32x128xf32>
    %70 = arith.addf %66, %69 : vector<32x128xf32>
    %71 = math.tanh %70 : vector<32x128xf32>
    %c1_55 = arith.constant 1 : index
    %c0_56 = arith.constant 0 : index
    %c0_57 = arith.constant 0 : index
    %72 = vector.load %arg13[%c1_55, %c0_56, %c0_57] : memref<2x128x128xbf16, #tpu.memory_space<vmem>>, vector<1x128x128xbf16>
    %73 = vector.shape_cast %72 : vector<1x128x128xbf16> to vector<128x128xbf16>
    %74 = arith.truncf %71 : vector<32x128xf32> to vector<32x128xbf16>
    %cst_58 = arith.constant dense<0.000000e+00> : vector<32x128xf32>
    %75 = tpu.matmul %74, %73, %cst_58 {dimension_numbers = #tpu.dot_dimension_numbers<[1], [0], [0], [1], [0, 0, 1, 1], [], []>} : vector<32x128xbf16>, vector<128x128xbf16>, vector<32x128xf32> -> vector<32x128xf32>
    %c1_59 = arith.constant 1 : index
    %c0_60 = arith.constant 0 : index
    %c0_61 = arith.constant 0 : index
    %76 = vector.load %arg14[%c1_59, %c0_60, %c0_61] : memref<2x1x128xf32, #tpu.memory_space<vmem>>, vector<1x1x128xf32>
    %77 = vector.shape_cast %76 : vector<1x1x128xf32> to vector<1x128xf32>
    %78 = vector.broadcast %77 : vector<1x128xf32> to vector<32x128xf32>
    %79 = arith.addf %75, %78 : vector<32x128xf32>
    %80 = arith.addf %52, %79 : vector<32x128xf32>
    %c0_62 = arith.constant 0 : index
    %c0_63 = arith.constant 0 : index
    %81 = vector.load %arg15[%c0_62, %c0_63] : memref<128x64xbf16, #tpu.memory_space<vmem>>, vector<128x64xbf16>
    %82 = arith.truncf %80 : vector<32x128xf32> to vector<32x128xbf16>
    %cst_64 = arith.constant dense<0.000000e+00> : vector<32x64xf32>
    %83 = tpu.matmul %82, %81, %cst_64 {dimension_numbers = #tpu.dot_dimension_numbers<[1], [0], [0], [1], [0, 0, 1, 1], [], []>} : vector<32x128xbf16>, vector<128x64xbf16>, vector<32x64xf32> -> vector<32x64xf32>
    %c0_65 = arith.constant 0 : index
    %c0_66 = arith.constant 0 : index
    %84 = vector.load %arg16[%c0_65, %c0_66] : memref<1x64xf32, #tpu.memory_space<vmem>>, vector<1x64xf32>
    %85 = vector.broadcast %84 : vector<1x64xf32> to vector<32x64xf32>
    %86 = arith.addf %83, %85 : vector<32x64xf32>
    %87 = math.tanh %86 : vector<32x64xf32>
    %c0_67 = arith.constant 0 : index
    %c0_68 = arith.constant 0 : index
    %88 = vector.load %arg17[%c0_67, %c0_68] : memref<64x1xbf16, #tpu.memory_space<vmem>>, vector<64x1xbf16>
    %89 = arith.truncf %87 : vector<32x64xf32> to vector<32x64xbf16>
    %cst_69 = arith.constant dense<0.000000e+00> : vector<32x1xf32>
    %90 = tpu.matmul %89, %88, %cst_69 {dimension_numbers = #tpu.dot_dimension_numbers<[1], [0], [0], [1], [0, 0, 1, 1], [], []>} : vector<32x64xbf16>, vector<64x1xbf16>, vector<32x1xf32> -> vector<32x1xf32>
    %c0_70 = arith.constant 0 : index
    %c0_71 = arith.constant 0 : index
    %91 = vector.load %arg18[%c0_70, %c0_71] : memref<1x1xf32, #tpu.memory_space<vmem>>, vector<1x1xf32>
    %92 = vector.broadcast %91 : vector<1x1xf32> to vector<32x1xf32>
    %93 = arith.addf %90, %92 : vector<32x1xf32>
    %cst_72 = arith.constant dense<0.000000e+00> : vector<1xf32>
    %94 = vector.multi_reduction <add>, %93, %cst_72 [0] : vector<32x1xf32> to vector<1xf32>
    %95 = vector.shape_cast %94 : vector<1xf32> to vector<1x1xf32>
    %96 = vector.shape_cast %95 : vector<1x1xf32> to vector<1x1xf32>
    %97 = vector.broadcast %96 : vector<1x1xf32> to vector<8x128xf32>
    %c0_73 = arith.constant 0 : index
    %c0_74 = arith.constant 0 : index
    %c0_75 = arith.constant 0 : index
    %98 = vector.load %arg19[%c0_73, %c0_74, %c0_75] : memref<1x8x128xf32, #tpu.memory_space<vmem>>, vector<1x8x128xf32>
    %99 = vector.shape_cast %98 : vector<1x8x128xf32> to vector<8x128xf32>
    %100 = vector.shape_cast %97 : vector<8x128xf32> to vector<1x8x128xf32>
    tpu.vector_store %arg19[%c0_73, %c0_74, %c0_75], %100 {strides = array<i32>} : memref<1x8x128xf32, #tpu.memory_space<vmem>>, vector<1x8x128xf32>,
    return
  }
  func.func @transform_0(%arg0: i32) -> (i32, i32, i32) {
    %c0_i32 = arith.constant 0 : i32
    %c0_i32_0 = arith.constant 0 : i32
    %c0_i32_1 = arith.constant 0 : i32
    return %arg0, %c0_i32, %c0_i32_0 : i32, i32, i32
  }
  func.func @transform_1(%arg0: i32) -> (i32, i32, i32) {
    %c0_i32 = arith.constant 0 : i32
    %c0_i32_0 = arith.constant 0 : i32
    %c0_i32_1 = arith.constant 0 : i32
    return %arg0, %c0_i32, %c0_i32_0 : i32, i32, i32
  }
  func.func @transform_2(%arg0: i32) -> (i32, i32, i32) {
    %c0_i32 = arith.constant 0 : i32
    %c0_i32_0 = arith.constant 0 : i32
    %c0_i32_1 = arith.constant 0 : i32
    return %arg0, %c0_i32, %c0_i32_0 : i32, i32, i32
  }
  func.func @transform_3(%arg0: i32) -> (i32, i32, i32) {
    %c0_i32 = arith.constant 0 : i32
    %c0_i32_0 = arith.constant 0 : i32
    %c0_i32_1 = arith.constant 0 : i32
    return %arg0, %c0_i32, %c0_i32_0 : i32, i32, i32
  }
  func.func @transform_4(%arg0: i32) -> (i32, i32, i32) {
    %c0_i32 = arith.constant 0 : i32
    %c0_i32_0 = arith.constant 0 : i32
    %c0_i32_1 = arith.constant 0 : i32
    return %arg0, %c0_i32, %c0_i32_0 : i32, i32, i32
  }
  func.func @transform_5(%arg0: i32) -> (i32, i32) {
    %c0_i32 = arith.constant 0 : i32
    %c0_i32_0 = arith.constant 0 : i32
    %c0_i32_1 = arith.constant 0 : i32
    return %c0_i32, %c0_i32_0 : i32, i32
  }
  func.func @transform_6(%arg0: i32) -> (i32, i32) {
    %c0_i32 = arith.constant 0 : i32
    %c0_i32_0 = arith.constant 0 : i32
    %c0_i32_1 = arith.constant 0 : i32
    return %c0_i32, %c0_i32_0 : i32, i32
  }
  func.func @transform_7(%arg0: i32) -> (i32, i32) {
    %c0_i32 = arith.constant 0 : i32
    %c0_i32_0 = arith.constant 0 : i32
    %c0_i32_1 = arith.constant 0 : i32
    return %c0_i32, %c0_i32_0 : i32, i32
  }
  func.func @transform_8(%arg0: i32) -> (i32, i32) {
    %c0_i32 = arith.constant 0 : i32
    %c0_i32_0 = arith.constant 0 : i32
    %c0_i32_1 = arith.constant 0 : i32
    return %c0_i32, %c0_i32_0 : i32, i32
  }
  func.func @transform_9(%arg0: i32) -> (i32, i32, i32) {
    %c0_i32 = arith.constant 0 : i32
    %c0_i32_0 = arith.constant 0 : i32
    %c0_i32_1 = arith.constant 0 : i32
    %c0_i32_2 = arith.constant 0 : i32
    return %c0_i32, %c0_i32_0, %c0_i32_1 : i32, i32, i32
  }
  func.func @transform_10(%arg0: i32) -> (i32, i32, i32) {
    %c0_i32 = arith.constant 0 : i32
    %c0_i32_0 = arith.constant 0 : i32
    %c0_i32_1 = arith.constant 0 : i32
    %c0_i32_2 = arith.constant 0 : i32
    return %c0_i32, %c0_i32_0, %c0_i32_1 : i32, i32, i32
  }
  func.func @transform_11(%arg0: i32) -> (i32, i32, i32) {
    %c0_i32 = arith.constant 0 : i32
    %c0_i32_0 = arith.constant 0 : i32
    %c0_i32_1 = arith.constant 0 : i32
    %c0_i32_2 = arith.constant 0 : i32
    return %c0_i32, %c0_i32_0, %c0_i32_1 : i32, i32, i32
  }
  func.func @transform_12(%arg0: i32) -> (i32, i32, i32) {
    %c0_i32 = arith.constant 0 : i32
    %c0_i32_0 = arith.constant 0 : i32
    %c0_i32_1 = arith.constant 0 : i32
    %c0_i32_2 = arith.constant 0 : i32
    return %c0_i32, %c0_i32_0, %c0_i32_1 : i32, i32, i32
  }
  func.func @transform_13(%arg0: i32) -> (i32, i32, i32) {
    %c0_i32 = arith.constant 0 : i32
    %c0_i32_0 = arith.constant 0 : i32
    %c0_i32_1 = arith.constant 0 : i32
    %c0_i32_2 = arith.constant 0 : i32
    return %c0_i32, %c0_i32_0, %c0_i32_1 : i32, i32, i32
  }
  func.func @transform_14(%arg0: i32) -> (i32, i32) {
    %c0_i32 = arith.constant 0 : i32
    %c0_i32_0 = arith.constant 0 : i32
    %c0_i32_1 = arith.constant 0 : i32
    return %c0_i32, %c0_i32_0 : i32, i32
  }
  func.func @transform_15(%arg0: i32) -> (i32, i32) {
    %c0_i32 = arith.constant 0 : i32
    %c0_i32_0 = arith.constant 0 : i32
    %c0_i32_1 = arith.constant 0 : i32
    return %c0_i32, %c0_i32_0 : i32, i32
  }
  func.func @transform_16(%arg0: i32) -> (i32, i32) {
    %c0_i32 = arith.constant 0 : i32
    %c0_i32_0 = arith.constant 0 : i32
    %c0_i32_1 = arith.constant 0 : i32
    return %c0_i32, %c0_i32_0 : i32, i32
  }
  func.func @transform_17(%arg0: i32) -> (i32, i32) {
    %c0_i32 = arith.constant 0 : i32
    %c0_i32_0 = arith.constant 0 : i32
    %c0_i32_1 = arith.constant 0 : i32
    return %c0_i32, %c0_i32_0 : i32, i32
  }
  func.func @transform_18(%arg0: i32) -> (i32, i32, i32) {
    %c0_i32 = arith.constant 0 : i32
    %c0_i32_0 = arith.constant 0 : i32
    %c0_i32_1 = arith.constant 0 : i32
    return %arg0, %c0_i32, %c0_i32_0 : i32, i32, i32
  }
}

</mosaic_0001>

<bundles_post_ra>
// kernel: schnet_forward_pallas.1
= control target key start
LH: loop header
LB: loop body
LE: loop exit
PB: predicated region body
PF: predicated region fallthrough
CT: control target
= control target key end

     0   :  { %s10312_s29 = smov 0   ;;  %s13669_s0 = inlined_call_operand.vmem [shape: f32[4,32,128], index: 0, kind: input, shape index: {}]   ;;  %s13670_s1 = inlined_call_operand.vmem [shape: bf16[4,992,32], index: 1, kind: input, shape index: {}]   ;;  %s13671_s2 = inlined_call_operand.vmem [shape: bf16[4,992,32], index: 2, kind: input, shape index: {}]   ;;  %s13672_s3 = inlined_call_operand.vmem [shape: f32[4,992,32], index: 3, kind: input, shape index: {}]   ;;  %s13673_s4 = inlined_call_operand.vmem [shape: f32[4,992,1], index: 4, kind: input, shape index: {}]   ;;  %s13674_s5 = inlined_call_operand.vmem [shape: bf16[32,256], index: 5, kind: input, shape index: {}]   ;;  %s13675_s6 = inlined_call_operand.vmem [shape: f32[1,256], index: 6, kind: input, shape index: {}]   ;;  %s13676_s7 = inlined_call_operand.vmem [shape: bf16[256,256], index: 7, kind: input, shape index: {}]   ;;  %s13677_s8 = inlined_call_operand.vmem [shape: f32[1,256], index: 8, kind: input, shape index: {}]   ;;  %s13678_s9 = inlined_call_operand.vmem [shape: bf16[2,128,128], index: 9, kind: input, shape index: {}]   ;;  %s13679_s10 = inlined_call_operand.vmem [shape: bf16[2,128,128], index: 10, kind: input, shape index: {}]   ;;  %s13680_s11 = inlined_call_operand.vmem [shape: f32[2,1,128], index: 11, kind: input, shape index: {}]   ;;  %s13681_s12 = inlined_call_operand.vmem [shape: bf16[2,128,128], index: 12, kind: input, shape index: {}]   ;;  %s13682_s13 = inlined_call_operand.vmem [shape: f32[2,1,128], index: 13, kind: input, shape index: {}]   ;;  %s13683_s14 = inlined_call_operand.vmem [shape: bf16[128,64], index: 14, kind: input, shape index: {}]   ;;  %s13684_s15 = inlined_call_operand.vmem [shape: f32[1,64], index: 15, kind: input, shape index: {}]   ;;  %s13685_s16 = inlined_call_operand.vmem [shape: bf16[64,1], index: 16, kind: input, shape index: {}]   ;;  %s13686_s17 = inlined_call_operand.<no memory space> [shape: f32[1,1], index: 17, kind: input, shape index: {}]   ;;  %s13687_s18 = inlined_call_operand.vmem [shape: f32[4,8,128], index: 18, kind: output, shape index: {}]  }
   0x1   :  { %13814 = sst [smem:[#allocation315_spill]] %s13669_s0  ;;  %v23_v0 = vstv %s13686_s17 }
   0x2   :  { %13815 = sst [smem:[#allocation316_spill]] %s13670_s1  ;;  %24 = vst [vmem:[#allocation2] sm:$0x1] %v23_v0 }
   0x3   :  { %13816 = sst [smem:[#allocation317_spill]] %s13671_s2 }
   0x4 LB: > { %s8104_s30 = sadd.s32 4294967295, %s10211_s29   ;;  %p8108_p0 = scmp.ge.s32.totalorder %s10211_s29, 1  ;;  %s10211_s29 = sphi %s10312_s29, %s30_s29  }
   0x5   : > { %p554_p1 = scmp.lt.s32.totalorder %s10211_s29, 5 }
   0x7   : > { %p555_p2 = pnand %p8108_p0, %p554_p1 }
   0x9   : > { %558 = sbr.rel (%p555_p2) target bundleno = 3860 (0xf14), region = 92 }
  0x10   : > { %v9380_v1 = vld [vmem:[%s13674_s5 + $0x4] ss:$8 sps:$4 sm:$0xff]   ;;  %p627_p3 = scmp.lt.s32.totalorder %s8104_s30, 3  ;;  %v9382_v2 = vld [vmem:[%s13674_s5] ss:$8 sps:$4 sm:$0xff]   ;;  %v13690_v3 = vmov 0  }
  0x11   : > { %1474 = vmatprep.mubr.bf16.mxu0 %v13690_v3  ;;  %1442 = vmatprep.subr.bf16.mxu0 %v9380_v1  ;;  %v9383_v4 = vld [vmem:[%s13674_s5 + $0x14] ss:$8 sps:$4 sm:$0xff]   ;;  %v9385_v5 = vld [vmem:[%s13674_s5 + $0x10] ss:$8 sps:$4 sm:$0xff]   ;;  %vm1255_vm0 = vcmask 261120   ;;  %s13817_s25 = sld [smem:[#allocation317_spill]] }
  0x12   : > { %s14610_s30 = smov (!%p627_p3, %s8104_s30), 3  ;;  %1443 = vmatpush1.bf16.msra.mxu0 %v9382_v2  ;;  %v9386_v23 = vld [vmem:[%s13676_s7 + $0x4] ss:$8 sps:$4 sm:$0xff]   ;;  %v9388_v25 = vld [vmem:[%s13676_s7] ss:$8 sps:$4 sm:$0xff]   ;;  %s13818_s19 = sld [smem:[#allocation316_spill]] }
  0x13   : > { %1444 = vmatprep.subr.bf16.mxu0 %v9383_v4  ;;  %s9368_s23 = smul.u32 992, %s14610_s30  ;;  %2671 = vmatprep.subr.bf16.mxu1 %v9386_v23  ;;  %v9389_v26 = vld [vmem:[%s13676_s7 + $0x14] ss:$8 sps:$4 sm:$0xff]   ;;  %v9391_v27 = vld [vmem:[%s13676_s7 + $0x10] ss:$8 sps:$4 sm:$0xff]   ;;  %s13857_s21 = sld [smem:[#allocation315_spill]] }
  0x14   : > { %2672 = vmatpush1.bf16.msra.mxu1 %v9388_v25  ;;  %v9392_v30 = vld [vmem:[%s13676_s7 + $0x24] ss:$8 sps:$4 sm:$0xff]   ;;  %v9394_v32 = vld [vmem:[%s13676_s7 + $0x20] ss:$8 sps:$4 sm:$0xff]   ;;  %v9395_v33 = vld [vmem:[%s13676_s7 + $0x34] ss:$8 sps:$4 sm:$0xff]  }
  0x15   : > { %s10341_s26 = scalar_lea.vmem %s13672_s3, %s9368_s23  ;;  %2673 = vmatprep.subr.bf16.mxu1 %v9389_v26  ;;  %v9397_v34 = vld [vmem:[%s13676_s7 + $0x30] ss:$8 sps:$4 sm:$0xff]   ;;  %v9398_v37 = vld [vmem:[%s13676_s7 + $0x44] ss:$8 sps:$4 sm:$0xff]   ;;  %v9400_v39 = vld [vmem:[%s13676_s7 + $0x40] ss:$8 sps:$4 sm:$0xff]   ;;  %s10603_s20 = scalar_lea.vmem %s13673_s4, %s9368_s23 }
  0x16   : > { %1445 = vmatpush1.bf16.msra.mxu0 %v9385_v5  ;;  %v661_v6 = vld [vmem:[%s10341_s26] sm:$0xff]  ;;  %v662_v7 = vld [vmem:[%s10341_s26 + $0x8] sm:$0xff]  ;;  %v663_v9 = vld [vmem:[%s10341_s26 + $0x10] sm:$0xff]  ;;  %s9367_s22 = smul.u32 496, %s14610_s30  ;;  %vm6020_vm1 = vcmask 785408   ;;  %vm7927_vm2 = vcmask 523264  }
  0x17   : > { %v1161_v8 = vpack.c.bf16 %v662_v7, %v661_v6  ;;  %v664_v10 = vld [vmem:[%s10341_s26 + $0x18] sm:$0xff]  ;;  %v665_v12 = vld [vmem:[%s10341_s26 + $0x20] sm:$0xff]  ;;  %v666_v13 = vld [vmem:[%s10341_s26 + $0x28] sm:$0xff]  ;;  %vm7983_vm3 = vcmask 7168  }
  0x18   : > { %v1162_v11 = vpack.c.bf16 %v664_v10, %v663_v9  ;;  %v1163_v14 = vpack.c.bf16 %v666_v13, %v665_v12  ;;  %v667_v15 = vld [vmem:[%s10341_s26 + $0x30] sm:$0xff]  ;;  %v668_v16 = vld [vmem:[%s10341_s26 + $0x38] sm:$0xff]  ;;  %v669_v18 = vld [vmem:[%s10341_s26 + $0x40] sm:$0xff]  ;;  %2674 = vmatpush1.bf16.msra.mxu1 %v9391_v27  ;;  %s10460_s27 = scalar_lea.vmem %s13817_s25, %s9367_s22  ;;  %s10546_s17 = scalar_lea.vmem %s13818_s19, %s9367_s22 }
  0x19   : > { %8120 = vmatmul.mubr.msk.bf16.vlgmr.msra.gmra.mrb[0].mxu0 %vm1255_vm0, %v1161_v8  ;;  %v1164_v17 = vpack.c.bf16 %v668_v16, %v667_v15  ;;  %v670_v19 = vld [vmem:[%s10341_s26 + $0x48] sm:$0xff]  ;;  %v671_v21 = vld [vmem:[%s10341_s26 + $0x50] sm:$0xff]  ;;  %v672_v22 = vld [vmem:[%s10341_s26 + $0x58] sm:$0xff]  ;;  %2675 = vmatprep.subr.bf16.mxu1 %v9392_v30  ;;  %s8586_s22 = sshll.u32 %s14610_s30, 5 }
  0x1a   : > { %1484 = vmatprep.mubr.bf16.mxu0 %v13690_v3  ;;  %v1165_v20 = vpack.c.bf16 %v670_v19, %v669_v18  ;;  %v1166_v24 = vpack.c.bf16 %v672_v22, %v671_v21  ;;  %v673_v28 = vld [vmem:[%s10341_s26 + $0x60] sm:$0xff]  ;;  %v674_v29 = vld [vmem:[%s10341_s26 + $0x68] sm:$0xff]  ;;  %v675_v35 = vld [vmem:[%s10341_s26 + $0x70] sm:$0xff]  ;;  %s11132_s2 = scalar_lea.vmem %s13857_s21, %s8586_s22 }
  0x1b   : > { %v1167_v31 = vpack.c.bf16 %v674_v29, %v673_v28  ;;  %v676_v36 = vld [vmem:[%s10341_s26 + $0x78] sm:$0xff]  ;;  %v677_v42 = vld [vmem:[%s10341_s26 + $0x80] sm:$0xff]  ;;  %v678_v43 = vld [vmem:[%s10341_s26 + $0x88] sm:$0xff] }
  0x1c   : > { %2676 = vmatpush1.bf16.msra.mxu1 %v9394_v32  ;;  %v1168_v38 = vpack.c.bf16 %v676_v36, %v675_v35  ;;  %v9401_v40 = vld [vmem:[%s13676_s7 + $0x54] ss:$8 sps:$4 sm:$0xff]   ;;  %v9403_v41 = vld [vmem:[%s13676_s7 + $0x50] ss:$8 sps:$4 sm:$0xff]   ;;  %v9404_v44 = vld [vmem:[%s13676_s7 + $0x64] ss:$8 sps:$4 sm:$0xff]   ;;  %v1169_v45 = vpack.c.bf16 %v678_v43, %v677_v42 }
  0x1d   : > { %2677 = vmatprep.subr.bf16.mxu1 %v9395_v33  ;;  %v9406_v46 = vld [vmem:[%s13676_s7 + $0x60] ss:$8 sps:$4 sm:$0xff]   ;;  %v9407_v47 = vld [vmem:[%s13676_s7 + $0x74] ss:$8 sps:$4 sm:$0xff]   ;;  %v9409_v48 = vld [vmem:[%s13676_s7 + $0x70] ss:$8 sps:$4 sm:$0xff]  }
  0x1e   : > { %v679_v49 = vld [vmem:[%s10341_s26 + $0x90] sm:$0xff]  ;;  %v680_v50 = vld [vmem:[%s10341_s26 + $0x98] sm:$0xff]  ;;  %v9410_v51 = vld [vmem:[%s13676_s7 + $0x84] ss:$8 sps:$4 sm:$0xff]  }
  0x1f   : > { %v1170_v52 = vpack.c.bf16 %v680_v50, %v679_v49  ;;  %v9412_v53 = vld [vmem:[%s13676_s7 + $0x80] ss:$8 sps:$4 sm:$0xff]   ;;  %v9413_v54 = vld [vmem:[%s13676_s7 + $0x94] ss:$8 sps:$4 sm:$0xff]   ;;  %v9415_v55 = vld [vmem:[%s13676_s7 + $0x90] ss:$8 sps:$4 sm:$0xff]  }
  0x20   : > { %2678 = vmatpush1.bf16.msra.mxu1 %v9397_v34  ;;  %v681_v56 = vld [vmem:[%s10341_s26 + $0xa0] sm:$0xff]  ;;  %v682_v57 = vld [vmem:[%s10341_s26 + $0xa8] sm:$0xff]  ;;  %v683_v61 = vld [vmem:[%s10341_s26 + $0xb0] sm:$0xff] }
  0x21   : > { %8121 = vmatmul.mubr.msk.bf16.gmra.mrb[4].mxu0 %vm1255_vm0, %v1162_v11  ;;  %2679 = vmatprep.subr.bf16.mxu1 %v9398_v37  ;;  %v9416_v58 = vld [vmem:[%s13676_s7 + $0xa4] ss:$8 sps:$4 sm:$0xff]   ;;  %v1171_v59 = vpack.c.bf16 %v682_v57, %v681_v56  ;;  %v9418_v60 = vld [vmem:[%s13676_s7 + $0xa0] ss:$8 sps:$4 sm:$0xff]   ;;  %v684_v62 = vld [vmem:[%s10341_s26 + $0xb8] sm:$0xff] }
  0x22   : > { %1494 = vmatprep.mubr.bf16.mxu0 %v13690_v3  ;;  %v9419_v63 = vld [vmem:[%s13676_s7 + $0xb4] ss:$8 sps:$4 sm:$0xff]   ;;  %v9421_v0 = vld [vmem:[%s10460_s27 + $0x40] sm:$0xff]   ;;  %v9422_v1 = vld [vmem:[%s13676_s7 + $0xb0] ss:$8 sps:$4 sm:$0xff]   ;;  %v1172_v2 = vpack.c.bf16 %v684_v62, %v683_v61 }
  0x23   : > { %5908 = vxpose.xlu0.c.b16.start [1/8] (narrow) %v9421_v0, 32  ;;  %v9423_v4 = vld [vmem:[%s13676_s7 + $0xc4] ss:$8 sps:$4 sm:$0xff]   ;;  %v9426_v6 = vld [vmem:[%s13676_s7 + $0xc0] ss:$8 sps:$4 sm:$0xff]   ;;  %v9430_v11 = vld [vmem:[%s10460_s27 + $0x50] sm:$0xff]  }
  0x24   : > { %2680 = vmatpush1.bf16.msra.mxu1 %v9400_v39  ;;  %v9425_v5 = vld [vmem:[%s10460_s27 + $0x48] sm:$0xff]   ;;  %v685_v7 = vld [vmem:[%s10341_s26 + $0xc0] sm:$0xff]  ;;  %v9428_v10 = vld [vmem:[%s13676_s7 + $0xd4] ss:$8 sps:$4 sm:$0xff]  }
  0x25   : > { %2681 = vmatprep.subr.bf16.mxu1 %v9401_v40  ;;  %v686_v8 = vld [vmem:[%s10341_s26 + $0xc8] sm:$0xff]  ;;  %v9427_v9 = vld [vmem:[%s10460_s27] sm:$0xff]   ;;  %v9431_v12 = vld [vmem:[%s13676_s7 + $0xd0] ss:$8 sps:$4 sm:$0xff]  }
  0x26   : > { %5892 = vxpose.xlu1.c.b16.start [1/8] (narrow) %v9427_v9, 32  ;;  %v1173_v13 = vpack.c.bf16 %v686_v8, %v685_v7  ;;  %v9433_v15 = vld [vmem:[%s13676_s7 + $0xe4] ss:$8 sps:$4 sm:$0xff]   ;;  %v9435_v16 = vld [vmem:[%s10460_s27 + $0x58] sm:$0xff]   ;;  %v687_v18 = vld [vmem:[%s10341_s26 + $0xd0] sm:$0xff] }
  0x27   : > { %5909 = vxpose.xlu0.c.b16.cont [2/8] (narrow) %v9425_v5, 32  ;;  %v688_v19 = vld [vmem:[%s10341_s26 + $0xd8] sm:$0xff]  ;;  %v9440_v22 = vld [vmem:[%s10460_s27 + $0x60] sm:$0xff]   ;;  %v9443_v26 = vld [vmem:[%s10460_s27 + $0x68] sm:$0xff]  }
  0x28   : > { %2682 = vmatpush1.bf16.msra.mxu1 %v9403_v41  ;;  %v9438_v21 = vld [vmem:[%s13676_s7 + $0xf4] ss:$8 sps:$4 sm:$0xff]   ;;  %v9441_v23 = vld [vmem:[%s13676_s7 + $0xf0] ss:$8 sps:$4 sm:$0xff]   ;;  %v689_v27 = vld [vmem:[%s10341_s26 + $0xe0] sm:$0xff] }
  0x29   : > { %8122 = vmatmul.mubr.msk.bf16.gmra.mrb[8].mxu0 %vm1255_vm0, %v1163_v14  ;;  %2683 = vmatprep.subr.bf16.mxu1 %v9404_v44  ;;  %v9432_v14 = vld [vmem:[%s10460_s27 + $0x8] sm:$0xff]   ;;  %v9442_v25 = vld [vmem:[%s10460_s27 + $0x18] sm:$0xff]   ;;  %v9444_v29 = vld [vmem:[%s10460_s27 + $0x20] sm:$0xff]  }
  0x2a   : > { %1504 = vmatprep.mubr.bf16.mxu0 %v13690_v3  ;;  %5893 = vxpose.xlu1.c.b16.cont [2/8] (narrow) %v9432_v14, 32  ;;  %v690_v28 = vld [vmem:[%s10341_s26 + $0xe8] sm:$0xff]  ;;  %v9445_v30 = vld [vmem:[%s10460_s27 + $0x70] sm:$0xff]   ;;  %v9447_v33 = vld [vmem:[%s10460_s27 + $0x78] sm:$0xff]  }
  0x2b   : > { %5910 = vxpose.xlu0.c.b16.cont [3/8] (narrow) %v9430_v11, 32  ;;  %v9446_v32 = vld [vmem:[%s10460_s27 + $0x28] sm:$0xff]   ;;  %v691_v34 = vld [vmem:[%s10341_s26 + $0xf0] sm:$0xff]  ;;  %v692_v35 = vld [vmem:[%s10341_s26 + $0xf8] sm:$0xff] }
  0x2c   : > { %2684 = vmatpush1.bf16.msra.mxu1 %v9406_v46  ;;  %v9448_v36 = vld [vmem:[%s10460_s27 + $0x30] sm:$0xff]   ;;  %v9449_v37 = vld [vmem:[%s10460_s27 + $0xc0] sm:$0xff]   ;;  %v9450_v39 = vld [vmem:[%s10460_s27 + $0x38] sm:$0xff]  }
  0x2d   : > { %2685 = vmatprep.subr.bf16.mxu1 %v9407_v47  ;;  %v9451_v40 = vld [vmem:[%s10460_s27 + $0xc8] sm:$0xff]   ;;  %v693_v41 = vld [vmem:[%s10341_s26 + $0x100] sm:$0xff]  ;;  %v9453_v44 = vld [vmem:[%s10460_s27 + $0xd0] sm:$0xff]  }
  0x2e   : > { %v694_v42 = vld [vmem:[%s10341_s26 + $0x108] sm:$0xff]  ;;  %v9452_v43 = vld [vmem:[%s10460_s27 + $0x80] sm:$0xff]   ;;  %v9455_v47 = vld [vmem:[%s10460_s27 + $0xd8] sm:$0xff]  }
  0x2f   : > { %5911 = vxpose.xlu0.c.b16.cont [4/8] (narrow) %v9435_v16, 32  ;;  %v9454_v46 = vld [vmem:[%s10460_s27 + $0x88] sm:$0xff]   ;;  %v696_v49 = vld [vmem:[%s10341_s26 + $0x118] sm:$0xff]  ;;  %v9456_v50 = vld [vmem:[%s10460_s27 + $0x90] sm:$0xff]  }
  0x30   : > { %2686 = vmatpush1.bf16.msra.mxu1 %v9409_v48  ;;  %v695_v48 = vld [vmem:[%s10341_s26 + $0x110] sm:$0xff]  ;;  %v698_v56 = vld [vmem:[%s10341_s26 + $0x128] sm:$0xff]  ;;  %v9460_v57 = vld [vmem:[%s10460_s27 + $0xa0] sm:$0xff]  }
  0x31   : > { %8123 = vmatmul.mubr.msk.bf16.gmra.mrb[12].mxu0 %vm1255_vm0, %v1164_v17  ;;  %2687 = vmatprep.subr.bf16.mxu1 %v9410_v51  ;;  %v9436_v17 = vld [vmem:[%s13676_s7 + $0xe0] ss:$8 sps:$4 sm:$0xff]   ;;  %v9463_v61 = vld [vmem:[%s10460_s27 + $0xf8] sm:$0xff]   ;;  %v699_v62 = vld [vmem:[%s10341_s26 + $0x130] sm:$0xff] }
  0x32   : > { %1514 = vmatprep.mubr.bf16.mxu0 %v13690_v3  ;;  %v9457_v51 = vld [vmem:[%s10460_s27 + $0xe0] sm:$0xff]   ;;  %v9464_v0 = vld [vmem:[%s10460_s27 + $0xb0] sm:$0xff]   ;;  %v9467_v5 = vld [vmem:[%s10460_s27 + $0x148] sm:$0xff]  }
  0x33   : > { %5912 = vxpose.xlu0.c.b16.cont [5/8] (narrow) %v9440_v22, 32  ;;  %v702_v7 = vld [vmem:[%s10341_s26 + $0x148] sm:$0xff]  ;;  %v9468_v8 = vld [vmem:[%s10460_s27 + $0x100] sm:$0xff]   ;;  %v9469_v9 = vld [vmem:[%s10460_s27 + $0x150] sm:$0xff]  }
  0x34   : > { %2688 = vmatpush1.bf16.msra.mxu1 %v9412_v53  ;;  %v9458_v53 = vld [vmem:[%s10460_s27 + $0x98] sm:$0xff]   ;;  %v9470_v11 = vld [vmem:[%s10460_s27 + $0x108] sm:$0xff]   ;;  %v9473_v16 = vld [vmem:[%s10460_s27 + $0x160] sm:$0xff]  }
  0x35   : > { %2689 = vmatprep.subr.bf16.mxu1 %v9413_v54  ;;  %v9459_v54 = vld [vmem:[%s10460_s27 + $0xe8] sm:$0xff]   ;;  %v704_v14 = vld [vmem:[%s10341_s26 + $0x158] sm:$0xff]  ;;  %v9476_v22 = vld [vmem:[%s10460_s27 + $0x120] sm:$0xff]  }
  0x37   : > { %5913 = vxpose.xlu0.c.b16.cont [6/8] (narrow) %v9443_v26, 32  ;;  %v9479_v26 = vld [vmem:[%s10460_s27 + $0x178] sm:$0xff]  }
  0x38   : > { %2690 = vmatpush1.bf16.msra.mxu1 %v9415_v55  ;;  %v697_v55 = vld [vmem:[%s10341_s26 + $0x120] sm:$0xff] }
  0x39   : > { %8124 = vmatmul.mubr.msk.bf16.gmra.mrb[16].mxu0 %vm1255_vm0, %v1165_v20  ;;  %2691 = vmatprep.subr.bf16.mxu1 %v9416_v58  ;;  %v9437_v20 = vld [vmem:[%s10460_s27 + $0x10] sm:$0xff]  }
  0x3a   : > { %1524 = vmatprep.mubr.bf16.mxu0 %v13690_v3  ;;  %5894 = vxpose.xlu1.c.b16.cont [3/8] (narrow) %v9437_v20, 32  ;;  %v9461_v58 = vld [vmem:[%s10460_s27 + $0xf0] sm:$0xff]   ;;  %v705_v20 = vld [vmem:[%s10341_s26 + $0x160] sm:$0xff] }
  0x3b   : > { %5914 = vxpose.xlu0.c.b16.cont [7/8] (narrow) %v9445_v30, 32 }
  0x3c   : > { %2692 = vmatpush1.bf16.msra.mxu1 %v9418_v60  ;;  %v9462_v60 = vld [vmem:[%s10460_s27 + $0xa8] sm:$0xff]  }
  0x3d   : > { %2693 = vmatprep.subr.bf16.mxu1 %v9419_v63  ;;  %v700_v63 = vld [vmem:[%s10341_s26 + $0x138] sm:$0xff] }
  0x3e   : > { %5895 = vxpose.xlu1.c.b16.cont [4/8] (narrow) %v9442_v25, 32  ;;  %v9478_v25 = vld [vmem:[%s10460_s27 + $0x128] sm:$0xff]  }
  0x3f   : > { %5915 = vxpose.xlu0.c.b16.end [8/8] (narrow) %v9447_v33, 32  ;;  %v710_v33 = vld [vmem:[%s10341_s26 + $0x188] sm:$0xff] }
  0x40   : > { %2694 = vmatpush1.bf16.msra.mxu1 %v9422_v1  ;;  %v9465_v1 = vld [vmem:[%s10460_s27 + $0x140] sm:$0xff]  }
  0x41   : > { %8125 = vmatmul.mubr.msk.bf16.gmra.mrb[20].mxu0 %vm1255_vm0, %v1166_v24  ;;  %2695 = vmatprep.subr.bf16.mxu1 %v9423_v4  ;;  %v1174_v24 = vpack.c.bf16 %v688_v19, %v687_v18  ;;  %v9466_v4 = vld [vmem:[%s10460_s27 + $0xb8] sm:$0xff]   ;;  %v9475_v19 = vld [vmem:[%s10460_s27 + $0x168] sm:$0xff]  }
  0x42   : > { %1534 = vmatprep.mubr.bf16.mxu0 %v13690_v3  ;;  %5896 = vxpose.xlu1.c.b16.cont [5/8] (narrow) %v9444_v29, 32  ;;  %v9474_v18 = vld [vmem:[%s10460_s27 + $0x118] sm:$0xff]   ;;  %v9480_v29 = vld [vmem:[%s10460_s27 + $0x130] sm:$0xff]  }
  0x43   : > { %5940 = vxpose.xlu0.c.b16.start [1/8] (narrow) %v9449_v37, 32  ;;  %v802_v37 = vld [vmem:[%s10603_s20 + $0x88] sm:$0xff] }
  0x44   : > { %2696 = vmatpush1.bf16.msra.mxu1 %v9426_v6  ;;  %v701_v6 = vld [vmem:[%s10341_s26 + $0x140] sm:$0xff] }
  0x45   : > { %2697 = vmatprep.subr.bf16.mxu1 %v9428_v10  ;;  %v1181_v10 = vpack.c.bf16 %v702_v7, %v701_v6 }
  0x46   : > { %5897 = vxpose.xlu1.c.b16.cont [6/8] (narrow) %v9446_v32, 32  ;;  %v709_v32 = vld [vmem:[%s10341_s26 + $0x180] sm:$0xff] }
  0x47   : > { %5941 = vxpose.xlu0.c.b16.cont [2/8] (narrow) %v9451_v40, 32  ;;  %v712_v40 = vld [vmem:[%s10341_s26 + $0x198] sm:$0xff] }
  0x48   : > { %2698 = vmatpush1.bf16.msra.mxu1 %v9431_v12  ;;  %v9471_v12 = vld [vmem:[%s10460_s27 + $0x158] sm:$0xff]  }
  0x49   : > { %8126 = vmatmul.mubr.msk.bf16.gmra.mrb[24].mxu0 %vm1255_vm0, %v1167_v31  ;;  %2699 = vmatprep.subr.bf16.mxu1 %v9433_v15  ;;  %v1175_v31 = vpack.c.bf16 %v690_v28, %v689_v27  ;;  %v9472_v15 = vld [vmem:[%s10460_s27 + $0x110] sm:$0xff]   ;;  %v708_v28 = vld [vmem:[%s10341_s26 + $0x178] sm:$0xff] }
  0x4a   : > { %1544 = vmatprep.mubr.bf16.mxu0 %v13690_v3  ;;  %5898 = vxpose.xlu1.c.b16.cont [7/8] (narrow) %v9448_v36, 32  ;;  %v707_v27 = vld [vmem:[%s10341_s26 + $0x170] sm:$0xff]  ;;  %v1185_v36 = vpack.c.bf16 %v710_v33, %v709_v32  ;;  %v812_v33 = vld [vmem:[%s10603_s20 + $0xd8] sm:$0xff] }
  0x4b   : > { %5942 = vxpose.xlu0.c.b16.cont [3/8] (narrow) %v9453_v44, 32  ;;  %v1184_v30 = vpack.c.bf16 %v708_v28, %v707_v27  ;;  %v1225_v44 = vlaneseq  ;;  %v811_v28 = vld [vmem:[%s10603_s20 + $0xd0] sm:$0xff] }
  0x4c   : > { %2700 = vmatpush1.bf16.msra.mxu1 %v9436_v17 }
  0x4d   : > { %2701 = vmatprep.subr.bf16.mxu1 %v9438_v21  ;;  %v706_v21 = vld [vmem:[%s10341_s26 + $0x168] sm:$0xff] }
  0x4e   : > { %5899 = vxpose.xlu1.c.b16.end [8/8] (narrow) %v9450_v39, 32  ;;  %v711_v39 = vld [vmem:[%s10341_s26 + $0x190] sm:$0xff] }
  0x4f   : > { %5943 = vxpose.xlu0.c.b16.cont [4/8] (narrow) %v9455_v47, 32  ;;  %v713_v47 = vld [vmem:[%s10341_s26 + $0x1a0] sm:$0xff] }
  0x50   : > { %2702 = vmatpush1.bf16.msra.mxu1 %v9441_v23  ;;  %v9477_v23 = vld [vmem:[%s10460_s27 + $0x170] sm:$0xff]  }
  0x51   : > { %8127 = vmatmul.mubr.msk.bf16.gmra.mrb[28].mxu0 %vm1255_vm0, %v1168_v38  ;;  %v1176_v38 = vpack.c.bf16 %v692_v35, %v691_v34  ;;  %v801_v34 = vld [vmem:[%s10603_s20 + $0x80] sm:$0xff] }
  0x52   : > { %1554 = vmatprep.mubr.bf16.mxu0 %v13690_v3  ;;  %5924 = vxpose.xlu1.c.b16.start [1/8] (narrow) %v9452_v43, 32  ;;  %v785_v35 = vld [vmem:[%s10603_s20] sm:$0xff]  ;;  %v1186_v43 = vpack.c.bf16 %v712_v40, %v711_v39 }
  0x53   : > { %5944 = vxpose.xlu0.c.b16.cont [5/8] (narrow) %v9457_v51, 32  ;;  %v806_v51 = vld [vmem:[%s10603_s20 + $0xa8] sm:$0xff] }
  0x56   : > { %5925 = vxpose.xlu1.c.b16.cont [2/8] (narrow) %v9454_v46, 32  ;;  %v788_v46 = vld [vmem:[%s10603_s20 + $0x18] sm:$0xff] }
  0x57   : > { %5945 = vxpose.xlu0.c.b16.cont [6/8] (narrow) %v9459_v54, 32  ;;  %v789_v54 = vld [vmem:[%s10603_s20 + $0x20] sm:$0xff] }
  0x59   : > { %8128 = vmatmul.mubr.msk.bf16.gmra.mrb[32].mxu0 %vm1255_vm0, %v1169_v45  ;;  %v1177_v45 = vpack.c.bf16 %v694_v42, %v693_v41  ;;  %v803_v41 = vld [vmem:[%s10603_s20 + $0x90] sm:$0xff]  ;;  %v804_v42 = vld [vmem:[%s10603_s20 + $0x98] sm:$0xff] }
  0x5a   : > { %1564 = vmatprep.mubr.bf16.mxu0 %v13690_v3  ;;  %5926 = vxpose.xlu1.c.b16.cont [3/8] (narrow) %v9456_v50, 32  ;;  %v805_v50 = vld [vmem:[%s10603_s20 + $0xa0] sm:$0xff] }
  0x5b   : > { %5946 = vxpose.xlu0.c.b16.cont [7/8] (narrow) %v9461_v58, 32 }
  0x5e   : > { %5927 = vxpose.xlu1.c.b16.cont [4/8] (narrow) %v9458_v53, 32 }
  0x5f   : > { %5947 = vxpose.xlu0.c.b16.end [8/8] (narrow) %v9463_v61, 32  ;;  %v715_v61 = vld [vmem:[%s10341_s26 + $0x1b0] sm:$0xff] }
  0x61   : > { %8129 = vmatmul.mubr.msk.bf16.gmra.mrb[36].mxu0 %vm1255_vm0, %v1170_v52  ;;  %v1178_v52 = vpack.c.bf16 %v696_v49, %v695_v48  ;;  %v714_v48 = vld [vmem:[%s10341_s26 + $0x1a8] sm:$0xff]  ;;  %v10624_v49 = vshrl.u32 %v1225_v44, 7 }
  0x62   : > { %1574 = vmatprep.mubr.bf16.mxu0 %v13690_v3  ;;  %5928 = vxpose.xlu1.c.b16.cont [5/8] (narrow) %v9460_v57, 32  ;;  %v790_v57 = vld [vmem:[%s10603_s20 + $0x28] sm:$0xff] }
  0x63   : > { %5972 = vxpose.xlu0.c.b16.start [1/8] (narrow) %v9465_v1, 32  ;;  %v13688_v53 = vsub.s32 0, %v10624_v49 }
  0x66   : > { %5929 = vxpose.xlu1.c.b16.cont [6/8] (narrow) %v9462_v60, 32 }
  0x67   : > { %5973 = vxpose.xlu0.c.b16.cont [2/8] (narrow) %v9467_v5, 32  ;;  %v791_v5 = vld [vmem:[%s10603_s20 + $0x30] sm:$0xff] }
  0x69   : > { %8130 = vmatmul.mubr.msk.bf16.gmra.mrb[40].mxu0 %vm1255_vm0, %v1171_v59  ;;  %v1179_v59 = vpack.c.bf16 %v698_v56, %v697_v55  ;;  %v1223_v55 = vld [vmem:[%s13675_s6] sm:$0x3]  ;;  %v13689_v56 = vsub.s32 1, %v10624_v49 }
  0x6a   : > { %1584 = vmatprep.mubr.bf16.mxu0 %v13690_v3  ;;  %5930 = vxpose.xlu1.c.b16.cont [7/8] (narrow) %v9464_v0, 32  ;;  %v10639_v58 = vrot.slane %v1223_v55, %v13688_v53  ;;  %v853_v53 = vld [vmem:[%s10603_s20 + $0x220] sm:$0xff] }
  0x6b   : > { %5974 = vxpose.xlu0.c.b16.cont [3/8] (narrow) %v9469_v9, 32  ;;  %v10644_v60 = vrot.slane %v1223_v55, %v13689_v56 }
  0x6e   : > { %5931 = vxpose.xlu1.c.b16.end [8/8] (narrow) %v9466_v4, 32 }
  0x6f   : > { %5975 = vxpose.xlu0.c.b16.cont [4/8] (narrow) %v9471_v12, 32  ;;  %v809_v12 = vld [vmem:[%s10603_s20 + $0xc0] sm:$0xff] }
  0x71   : > { %8131 = vmatmul.mubr.msk.bf16.gmra.mrb[44].mxu0 %vm1255_vm0, %v1172_v2  ;;  %v1180_v2 = vpack.c.bf16 %v700_v63, %v699_v62  ;;  %v716_v62 = vld [vmem:[%s10341_s26 + $0x1b8] sm:$0xff] }
  0x72   : > { %1594 = vmatprep.mubr.bf16.mxu0 %v13690_v3  ;;  %5956 = vxpose.xlu1.c.b16.start [1/8] (narrow) %v9468_v8, 32  ;;  %v808_v63 = vld [vmem:[%s10603_s20 + $0xb8] sm:$0xff]  ;;  %v1188_v4 = vpack.c.bf16 %v716_v62, %v715_v61 }
  0x73   : > { %5976 = vxpose.xlu0.c.b16.cont [5/8] (narrow) %v9473_v16, 32 }
  0x76   : > { %5957 = vxpose.xlu1.c.b16.cont [2/8] (narrow) %v9470_v11, 32 }
  0x77   : > { %5977 = vxpose.xlu0.c.b16.cont [6/8] (narrow) %v9475_v19, 32 }
  0x79   : > { %8132 = vmatmul.mubr.msk.bf16.gmra.mrb[48].mxu0 %vm1255_vm0, %v1173_v13  ;;  %v703_v13 = vld [vmem:[%s10341_s26 + $0x150] sm:$0xff] }
  0x7a   : > { %1604 = vmatprep.mubr.bf16.mxu0 %v13690_v3  ;;  %5958 = vxpose.xlu1.c.b16.cont [3/8] (narrow) %v9472_v15, 32  ;;  %v1182_v17 = vpack.c.bf16 %v704_v14, %v703_v13  ;;  %v717_v13 = vld [vmem:[%s10341_s26 + $0x1c0] sm:$0xff]  ;;  %v718_v14 = vld [vmem:[%s10341_s26 + $0x1c8] sm:$0xff] }
  0x7b   : > { %5978 = vxpose.xlu0.c.b16.cont [7/8] (narrow) %v9477_v23, 32  ;;  %v810_v15 = vld [vmem:[%s10603_s20 + $0xc8] sm:$0xff]  ;;  %v1189_v19 = vpack.c.bf16 %v718_v14, %v717_v13  ;;  %v723_v14 = vld [vmem:[%s10341_s26 + $0x1f0] sm:$0xff] }
  0x7e   : > { %5959 = vxpose.xlu1.c.b16.cont [4/8] (narrow) %v9474_v18, 32 }
  0x7f   : > { %5979 = vxpose.xlu0.c.b16.end [8/8] (narrow) %v9479_v26, 32 }
  0x81   : > { %8133 = vmatmul.mubr.msk.bf16.gmra.mrb[52].mxu0 %vm1255_vm0, %v1174_v24  ;;  %v1183_v24 = vpack.c.bf16 %v706_v21, %v705_v20  ;;  %v793_v20 = vld [vmem:[%s10603_s20 + $0x40] sm:$0xff] }
  0x82   : > { %1614 = vmatprep.mubr.bf16.mxu0 %v13690_v3  ;;  %5960 = vxpose.xlu1.c.b16.cont [5/8] (narrow) %v9476_v22, 32 }
  0x86   : > { %5961 = vxpose.xlu1.c.b16.cont [6/8] (narrow) %v9478_v25, 32  ;;  %v794_v25 = vld [vmem:[%s10603_s20 + $0x48] sm:$0xff] }
  0x88   : > { %9378 = vset.pattern.permute.xlu0 %v13690_v3 }
  0x89   : > { %8134 = vmatmul.mubr.msk.bf16.gmra.mrb[56].mxu0 %vm1255_vm0, %v1175_v31  ;;  %v9481_v31 = vld [vmem:[%s10460_s27 + $0x138] sm:$0xff]   ;;  %3406 = vperm.xlu0 %9378, %v801_v34  }
  0x8a   : > { %1624 = vmatprep.mubr.bf16.mxu0 %v13690_v3  ;;  %5962 = vxpose.xlu1.c.b16.cont [7/8] (narrow) %v9480_v29, 32 }
  0x8d   : > { %3411 = vperm.xlu0 %9378, %v802_v37  }
  0x8e   : > { %5963 = vxpose.xlu1.c.b16.end [8/8] (narrow) %v9481_v31, 32  ;;  %v720_v31 = vld [vmem:[%s10341_s26 + $0x1d8] sm:$0xff] }
  0x91   : > { %8135 = vmatmul.mubr.msk.bf16.gmra.mrb[60].mxu0 %vm1255_vm0, %v1176_v38  ;;  %v786_v38 = vld [vmem:[%s10603_s20 + $0x8] sm:$0xff]  ;;  %3416 = vperm.xlu0 %9378, %v803_v41   ;;  %v795_v41 = vld [vmem:[%s10603_s20 + $0x50] sm:$0xff] }
  0x92   : > { %1634 = vmatprep.mubr.bf16.mxu0 %v13690_v3  ;;  %9379 = vset.pattern.permute.xlu1 %v13690_v3 }
  0x93   : > { %3326 = vperm.xlu1 %9379, %v785_v35  }
  0x97   : > { %3331 = vperm.xlu1 %9379, %v786_v38  }
  0x99   : > { %8136 = vmatmul.mubr.msk.bf16.gmra.mrb[64].mxu0 %vm1255_vm0, %v1177_v45  ;;  %v787_v45 = vld [vmem:[%s10603_s20 + $0x10] sm:$0xff] }
  0x9a   : > { %1644 = vmatprep.mubr.bf16.mxu0 %v13690_v3  ;;  %3336 = vperm.xlu0 %9378, %v787_v45  }
  0x9b   : > { %3421 = vperm.xlu1 %9379, %v804_v42  }
  0x9e   : > { %3426 = vperm.xlu0 %9378, %v805_v50   ;;  %v813_v50 = vld [vmem:[%s10603_s20 + $0xe0] sm:$0xff] }
  0x9f   : > { %3341 = vperm.xlu1 %9379, %v788_v46   ;;  %v796_v46 = vld [vmem:[%s10603_s20 + $0x58] sm:$0xff] }
  0xa1   : > { %8137 = vmatmul.mubr.msk.bf16.gmra.mrb[68].mxu0 %vm1255_vm0, %v1178_v52  ;;  %v1187_v52 = vpack.c.bf16 %v714_v48, %v713_v47 }
  0xa2   : > { %1654 = vmatprep.mubr.bf16.mxu0 %v13690_v3  ;;  %3346 = vperm.xlu0 %9378, %v789_v54   ;;  %v722_v54 = vld [vmem:[%s10341_s26 + $0x1e8] sm:$0xff] }
  0xa3   : > { %3431 = vperm.xlu1 %9379, %v806_v51  }
  0xa7   : > { %3351 = vperm.xlu1 %9379, %v790_v57   ;;  %v814_v57 = vld [vmem:[%s10603_s20 + $0xe8] sm:$0xff] }
  0xa9   : > { %8138 = vmatmul.mubr.msk.bf16.gmra.mrb[72].mxu0 %vm1255_vm0, %v1179_v59  ;;  %v807_v59 = vld [vmem:[%s10603_s20 + $0xb0] sm:$0xff] }
  0xaa   : > { %1664 = vmatprep.mubr.bf16.mxu0 %v13690_v3  ;;  %3436 = vperm.xlu0 %9378, %v807_v59  }
  0xab   : > { %3441 = vperm.xlu1 %9379, %v808_v63  }
  0xae   : > { %3356 = vperm.xlu0 %9378, %v791_v5  }
  0xb1   : > { %8139 = vmatmul.mubr.msk.bf16.gmra.mrb[76].mxu0 %vm1255_vm0, %v1180_v2 }
  0xb2   : > { %1674 = vmatprep.mubr.bf16.mxu0 %v13690_v3  ;;  %3446 = vperm.xlu0 %9378, %v809_v12   ;;  %v815_v12 = vld [vmem:[%s10603_s20 + $0xf0] sm:$0xff] }
  0xb6   : > { %3366 = vperm.xlu0 %9378, %v793_v20  }
  0xb9   : > { %8140 = vmatmul.mubr.msk.bf16.gmra.mrb[80].mxu0 %vm1255_vm0, %v1181_v10  ;;  %v792_v10 = vld [vmem:[%s10603_s20 + $0x38] sm:$0xff] }
  0xba   : > { %1684 = vmatprep.mubr.bf16.mxu0 %v13690_v3  ;;  %3361 = vperm.xlu1 %9379, %v792_v10  }
  0xbb   : > { %3456 = vperm.xlu0 %9378, %v811_v28  }
  0xbe   : > { %3451 = vperm.xlu1 %9379, %v810_v15   ;;  %v724_v15 = vld [vmem:[%s10341_s26 + $0x1f8] sm:$0xff] }
  0xbf   : > { %3376 = vperm.xlu0 %9378, %v795_v41  }
  0xc1   : > { %8141 = vmatmul.mubr.msk.bf16.gmra.mrb[84].mxu0 %vm1255_vm0, %v1182_v17 }
  0xc2   : > { %1694 = vmatprep.mubr.bf16.mxu0 %v13690_v3  ;;  %3371 = vperm.xlu1 %9379, %v794_v25   ;;  %v799_v25 = vld [vmem:[%s10603_s20 + $0x70] sm:$0xff] }
  0xc3   : > { %3466 = vperm.xlu0 %9378, %v813_v50  }
  0xc6   : > { %3461 = vperm.xlu1 %9379, %v812_v33  }
  0xc9   : > { %8142 = vmatmul.mubr.msk.bf16.gmra.mrb[88].mxu0 %vm1255_vm0, %v1183_v24 }
  0xca   : > { %1704 = vmatprep.mubr.bf16.mxu0 %v13690_v3  ;;  %3381 = vperm.xlu1 %9379, %v796_v46  }
  0xce   : > { %3471 = vperm.xlu1 %9379, %v814_v57  }
  0xd1   : > { %8143 = vmatmul.mubr.msk.bf16.gmra.mrb[92].mxu0 %vm1255_vm0, %v1184_v30  ;;  %v719_v30 = vld [vmem:[%s10341_s26 + $0x1d0] sm:$0xff] }
  0xd2   : > { %1714 = vmatprep.mubr.bf16.mxu0 %v13690_v3  ;;  %v1190_v40 = vpack.c.bf16 %v720_v31, %v719_v30  ;;  %v800_v30 = vld [vmem:[%s10603_s20 + $0x78] sm:$0xff] }
  0xd9   : > { %8144 = vmatmul.mubr.msk.bf16.gmra.mrb[96].mxu0 %vm1255_vm0, %v1185_v36 }
  0xda   : > { %1724 = vmatprep.mubr.bf16.mxu0 %v13690_v3 }
  0xe1   : > { %8145 = vmatmul.mubr.msk.bf16.gmra.mrb[100].mxu0 %vm1255_vm0, %v1186_v43 }
  0xe2   : > { %1734 = vmatprep.mubr.bf16.mxu0 %v13690_v3 }
  0xe9   : > { %8146 = vmatmul.mubr.msk.bf16.gmra.mrb[104].mxu0 %vm1255_vm0, %v1187_v52  ;;  %v721_v52 = vld [vmem:[%s10341_s26 + $0x1e0] sm:$0xff] }
  0xea   : > { %1744 = vmatprep.mubr.bf16.mxu0 %v13690_v3 }
  0xec   : > { %v1476_v0 = vpop.f32.mrb[0].mxu0 }
  0xed   : > { %v1477_v1 = vadd.f32 %v1476_v0, %v10639_v58  ;;  %v1478_v2 = vpop.f32.mrb[1].mxu0 }
  0xee   : > { %v1479_v6 = vadd.f32 %v1478_v2, %v10644_v60  ;;  %v1480_v7 = vpop.f32.mrb[2].mxu0  ;;  %v1191_v2 = vpack.c.bf16 %v722_v54, %v721_v52  ;;  %v727_v52 = vld [vmem:[%s10341_s26 + $0x210] sm:$0xff]  ;;  %v728_v54 = vld [vmem:[%s10341_s26 + $0x218] sm:$0xff] }
  0xef   : > { %9618 = vtanh.f32 %v1477_v1  ;;  %v1481_v8 = vadd.f32 %v1480_v7, %v10639_v58  ;;  %v1482_v9 = vpop.f32.mrb[3].mxu0 }
  0xf0   : > { %9620 = vtanh.f32 %v1479_v6  ;;  %v1483_v11 = vadd.f32 %v1482_v9, %v10644_v60  ;;  %v798_v9 = vld [vmem:[%s10603_s20 + $0x68] sm:$0xff] }
  0xf1   : > { %9622 = vtanh.f32 %v1481_v8  ;;  %8147 = vmatmul.mubr.msk.bf16.gmra.mrb[108].mxu0 %vm1255_vm0, %v1188_v4  ;;  %v797_v4 = vld [vmem:[%s10603_s20 + $0x60] sm:$0xff]  ;;  %3391 = vperm.xlu1 %9379, %v798_v9  }
  0xf2   : > { %9624 = vtanh.f32 %v1483_v11  ;;  %1754 = vmatprep.mubr.bf16.mxu0 %v13690_v3  ;;  %3386 = vperm.xlu0 %9378, %v797_v4  }
  0xf4   : > { %v1486_v16 = vpop.f32.mrb[4].mxu0 }
  0xf5   : > { %v1487_v17 = vadd.f32 %v1486_v16, %v10639_v58  ;;  %v1488_v18 = vpop.f32.mrb[5].mxu0 }
  0xf6   : > { %v1489_v21 = vadd.f32 %v1488_v18, %v10644_v60  ;;  %v1490_v22 = vpop.f32.mrb[6].mxu0  ;;  %3476 = vperm.xlu0 %9378, %v815_v12  }
  0xf7   : > { %9626 = vtanh.f32 %v1487_v17  ;;  %v1491_v23 = vadd.f32 %v1490_v22, %v10639_v58  ;;  %v1492_v24 = vpop.f32.mrb[7].mxu0  ;;  %v816_v17 = vld [vmem:[%s10603_s20 + $0xf8] sm:$0xff] }
  0xf8   : > { %9628 = vtanh.f32 %v1489_v21  ;;  %v1493_v26 = vadd.f32 %v1492_v24, %v10644_v60  ;;  %3481 = vperm.xlu1 %9379, %v816_v17   ;;  %v1192_v24 = vpack.c.bf16 %v724_v15, %v723_v14 }
  0xf9   : > { %v9619_v27 = vpop.eup %9618  ;;  %9630 = vtanh.f32 %v1491_v23  ;;  %8148 = vmatmul.mubr.msk.bf16.gmra.mrb[112].mxu0 %vm1255_vm0, %v1189_v19 }
  0xfa   : > { %v9621_v29 = vpop.eup %9620  ;;  %9632 = vtanh.f32 %v1493_v26  ;;  %1764 = vmatprep.mubr.bf16.mxu0 %v13690_v3  ;;  %3396 = vperm.xlu0 %9378, %v799_v25  }
  0xfb   : > { %v9623_v32 = vpop.eup %9622 }
  0xfc   : > { %v9625_v34 = vpop.eup %9624  ;;  %v1496_v35 = vpop.f32.mrb[8].mxu0  ;;  %v2375_v36 = vpack.c.bf16 %v9623_v32, %v9619_v27  ;;  %3401 = vperm.xlu1 %9379, %v800_v30  }
  0xfd   : > { %v1497_v37 = vadd.f32 %v1496_v35, %v10639_v58  ;;  %v1498_v38 = vpop.f32.mrb[9].mxu0  ;;  %v2376_v39 = vpack.c.bf16 %v9625_v34, %v9621_v29  ;;  %v725_v34 = vld [vmem:[%s10341_s26 + $0x200] sm:$0xff]  ;;  %v726_v35 = vld [vmem:[%s10341_s26 + $0x208] sm:$0xff] }
  0xfe   : > { %v1499_v42 = vadd.f32 %v1498_v38, %v10644_v60  ;;  %v1500_v43 = vpop.f32.mrb[10].mxu0 }
  0xff   : > { %9634 = vtanh.f32 %v1497_v37  ;;  %v1501_v44 = vadd.f32 %v1500_v43, %v10639_v58  ;;  %v1502_v45 = vpop.f32.mrb[11].mxu0  ;;  %2703 = vmatprep.mubr.bf16.mxu1 %v2376_v39  ;;  %v1193_v43 = vpack.c.bf16 %v726_v35, %v725_v34 }
 0x100   : > { %9636 = vtanh.f32 %v1499_v42  ;;  %v1503_v47 = vadd.f32 %v1502_v45, %v10644_v60  ;;  %2704 = vmatmul.mubr.bf16.vlgmr.msra.gmra.mrb[0].mxu1 %v2375_v36 }
 0x101   : > { %v9627_v48 = vpop.eup %9626  ;;  %9638 = vtanh.f32 %v1501_v44  ;;  %8149 = vmatmul.mubr.msk.bf16.gmra.mrb[116].mxu0 %vm1255_vm0, %v1190_v40 }
 0x102   : > { %v9629_v51 = vpop.eup %9628  ;;  %9640 = vtanh.f32 %v1503_v47  ;;  %1774 = vmatprep.mubr.bf16.mxu0 %v13690_v3 }
 0x103   : > { %v9631_v55 = vpop.eup %9630 }
 0x104   : > { %v9633_v59 = vpop.eup %9632  ;;  %v1506_v61 = vpop.f32.mrb[12].mxu0  ;;  %v2377_v62 = vpack.c.bf16 %v9631_v55, %v9627_v48 }
 0x105   : > { %v1507_v63 = vadd.f32 %v1506_v61, %v10639_v58  ;;  %v1508_v0 = vpop.f32.mrb[13].mxu0  ;;  %v2378_v1 = vpack.c.bf16 %v9633_v59, %v9629_v51 }
 0x106   : > { %v1509_v5 = vadd.f32 %v1508_v0, %v10644_v60  ;;  %v1510_v6 = vpop.f32.mrb[14].mxu0 }
 0x107   : > { %9642 = vtanh.f32 %v1507_v63  ;;  %v1511_v7 = vadd.f32 %v1510_v6, %v10639_v58  ;;  %v1512_v8 = vpop.f32.mrb[15].mxu0  ;;  %2713 = vmatprep.mubr.bf16.mxu1 %v2378_v1  ;;  %v1194_v1 = vpack.c.bf16 %v728_v54, %v727_v52 }
 0x108   : > { %9644 = vtanh.f32 %v1509_v5  ;;  %v1513_v10 = vadd.f32 %v1512_v8, %v10644_v60  ;;  %2714 = vmatmul.mubr.bf16.gmra.mrb[4].mxu1 %v2377_v62 }
 0x109   : > { %v9635_v11 = vpop.eup %9634  ;;  %9646 = vtanh.f32 %v1511_v7  ;;  %8150 = vmatmul.mubr.msk.bf16.gmra.mrb[120].mxu0 %vm1255_vm0, %v1191_v2 }
 0x10a   : > { %v9637_v13 = vpop.eup %9636  ;;  %9648 = vtanh.f32 %v1513_v10  ;;  %1784 = vmatprep.mubr.bf16.mxu0 %v13690_v3  ;;  %v729_v10 = vld [vmem:[%s10341_s26 + $0x220] sm:$0xff] }
 0x10b   : > { %v9639_v16 = vpop.eup %9638 }
 0x10c   : > { %v9641_v18 = vpop.eup %9640  ;;  %v1516_v19 = vpop.f32.mrb[16].mxu0  ;;  %v2379_v20 = vpack.c.bf16 %v9639_v16, %v9635_v11  ;;  %v730_v11 = vld [vmem:[%s10341_s26 + $0x228] sm:$0xff] }
 0x10d   : > { %v1517_v21 = vadd.f32 %v1516_v19, %v10639_v58  ;;  %v1518_v22 = vpop.f32.mrb[17].mxu0  ;;  %v2380_v23 = vpack.c.bf16 %v9641_v18, %v9637_v13  ;;  %v1195_v19 = vpack.c.bf16 %v730_v11, %v729_v10 }
 0x10e   : > { %v1519_v26 = vadd.f32 %v1518_v22, %v10644_v60  ;;  %v1520_v27 = vpop.f32.mrb[18].mxu0 }
 0x10f   : > { %9650 = vtanh.f32 %v1517_v21  ;;  %v1521_v28 = vadd.f32 %v1520_v27, %v10639_v58  ;;  %v1522_v29 = vpop.f32.mrb[19].mxu0  ;;  %2723 = vmatprep.mubr.bf16.mxu1 %v2380_v23  ;;  %v731_v27 = vld [vmem:[%s10341_s26 + $0x230] sm:$0xff] }
 0x110   : > { %9652 = vtanh.f32 %v1519_v26  ;;  %v1523_v31 = vadd.f32 %v1522_v29, %v10644_v60  ;;  %2724 = vmatmul.mubr.bf16.gmra.mrb[8].mxu1 %v2379_v20  ;;  %v9482_v29 = vld [vmem:[%s13678_s9] sm:$0xff]  }
 0x111   : > { %v9643_v32 = vpop.eup %9642  ;;  %9654 = vtanh.f32 %v1521_v28  ;;  %8151 = vmatmul.mubr.msk.bf16.gmra.mrb[124].mxu0 %vm1255_vm0, %v1192_v24  ;;  %v732_v28 = vld [vmem:[%s10341_s26 + $0x238] sm:$0xff]  ;;  %8959 = vmatprep.subr.bf16.mxu0 %v9482_v29 }
 0x112   : > { %v9645_v33 = vpop.eup %9644  ;;  %9656 = vtanh.f32 %v1523_v31  ;;  %1794 = vmatprep.mubr.bf16.mxu0 %v13690_v3  ;;  %8960 = vmatpush3.bf16.msra.mxu0 %v9482_v29 }
 0x113   : > { %v9647_v36 = vpop.eup %9646 }
 0x114   : > { %v9649_v37 = vpop.eup %9648  ;;  %v1526_v38 = vpop.f32.mrb[20].mxu0  ;;  %v2381_v39 = vpack.c.bf16 %v9647_v36, %v9643_v32 }
 0x115   : > { %v1527_v40 = vadd.f32 %v1526_v38, %v10639_v58  ;;  %v1528_v41 = vpop.f32.mrb[21].mxu0  ;;  %v2382_v42 = vpack.c.bf16 %v9649_v37, %v9645_v33  ;;  %v1196_v37 = vpack.c.bf16 %v732_v28, %v731_v27 }
 0x116   : > { %v1529_v44 = vadd.f32 %v1528_v41, %v10644_v60  ;;  %v1530_v45 = vpop.f32.mrb[22].mxu0 }
 0x117   : > { %9658 = vtanh.f32 %v1527_v40  ;;  %v1531_v46 = vadd.f32 %v1530_v45, %v10639_v58  ;;  %v1532_v47 = vpop.f32.mrb[23].mxu0  ;;  %2733 = vmatprep.mubr.bf16.mxu1 %v2382_v42  ;;  %v733_v45 = vld [vmem:[%s10341_s26 + $0x240] sm:$0xff] }
 0x118   : > { %9660 = vtanh.f32 %v1529_v44  ;;  %v1533_v48 = vadd.f32 %v1532_v47, %v10644_v60  ;;  %2734 = vmatmul.mubr.bf16.gmra.mrb[12].mxu1 %v2381_v39 }
 0x119   : > { %v9651_v50 = vpop.eup %9650  ;;  %9662 = vtanh.f32 %v1531_v46  ;;  %8152 = vmatmul.mubr.msk.bf16.gmra.mrb[128].mxu0 %vm1255_vm0, %v1193_v43  ;;  %v734_v46 = vld [vmem:[%s10341_s26 + $0x248] sm:$0xff] }
 0x11a   : > { %v9653_v51 = vpop.eup %9652  ;;  %9664 = vtanh.f32 %v1533_v48  ;;  %1804 = vmatprep.mubr.bf16.mxu0 %v13690_v3 }
 0x11b   : > { %v9655_v55 = vpop.eup %9654 }
 0x11c   : > { %v9657_v57 = vpop.eup %9656  ;;  %v1536_v59 = vpop.f32.mrb[24].mxu0  ;;  %v2383_v61 = vpack.c.bf16 %v9655_v55, %v9651_v50 }
 0x11d   : > { %v1537_v62 = vadd.f32 %v1536_v59, %v10639_v58  ;;  %v1538_v63 = vpop.f32.mrb[25].mxu0  ;;  %v2384_v0 = vpack.c.bf16 %v9657_v57, %v9653_v51  ;;  %v1197_v57 = vpack.c.bf16 %v734_v46, %v733_v45 }
 0x11e   : > { %v1539_v2 = vadd.f32 %v1538_v63, %v10644_v60  ;;  %v1540_v4 = vpop.f32.mrb[26].mxu0 }
 0x11f   : > { %9666 = vtanh.f32 %v1537_v62  ;;  %v1541_v5 = vadd.f32 %v1540_v4, %v10639_v58  ;;  %v1542_v6 = vpop.f32.mrb[27].mxu0  ;;  %2743 = vmatprep.mubr.bf16.mxu1 %v2384_v0  ;;  %v735_v4 = vld [vmem:[%s10341_s26 + $0x250] sm:$0xff] }
 0x120   : > { %9668 = vtanh.f32 %v1539_v2  ;;  %v1543_v7 = vadd.f32 %v1542_v6, %v10644_v60  ;;  %2744 = vmatmul.mubr.bf16.gmra.mrb[16].mxu1 %v2383_v61 }
 0x121   : > { %v9659_v8 = vpop.eup %9658  ;;  %9670 = vtanh.f32 %v1541_v5  ;;  %8153 = vmatmul.mubr.msk.bf16.gmra.mrb[132].mxu0 %vm1255_vm0, %v1194_v1  ;;  %v736_v5 = vld [vmem:[%s10341_s26 + $0x258] sm:$0xff] }
 0x122   : > { %v9661_v9 = vpop.eup %9660  ;;  %9672 = vtanh.f32 %v1543_v7  ;;  %1814 = vmatprep.mubr.bf16.mxu0 %v13690_v3 }
 0x123   : > { %v9663_v12 = vpop.eup %9662 }
 0x124   : > { %v9665_v13 = vpop.eup %9664  ;;  %v1546_v14 = vpop.f32.mrb[28].mxu0  ;;  %v2385_v15 = vpack.c.bf16 %v9663_v12, %v9659_v8 }
 0x125   : > { %v1547_v16 = vadd.f32 %v1546_v14, %v10639_v58  ;;  %v1548_v17 = vpop.f32.mrb[29].mxu0  ;;  %v2386_v18 = vpack.c.bf16 %v9665_v13, %v9661_v9  ;;  %v1198_v13 = vpack.c.bf16 %v736_v5, %v735_v4 }
 0x126   : > { %v1549_v20 = vadd.f32 %v1548_v17, %v10644_v60  ;;  %v1550_v21 = vpop.f32.mrb[30].mxu0 }
 0x127   : > { %9674 = vtanh.f32 %v1547_v16  ;;  %v1551_v22 = vadd.f32 %v1550_v21, %v10639_v58  ;;  %v1552_v23 = vpop.f32.mrb[31].mxu0  ;;  %2753 = vmatprep.mubr.bf16.mxu1 %v2386_v18  ;;  %v737_v21 = vld [vmem:[%s10341_s26 + $0x260] sm:$0xff] }
 0x128   : > { %9676 = vtanh.f32 %v1549_v20  ;;  %v1553_v24 = vadd.f32 %v1552_v23, %v10644_v60  ;;  %2754 = vmatmul.mubr.bf16.gmra.mrb[20].mxu1 %v2385_v15 }
 0x129   : > { %v9667_v25 = vpop.eup %9666  ;;  %9678 = vtanh.f32 %v1551_v22  ;;  %8154 = vmatmul.mubr.msk.bf16.gmra.mrb[136].mxu0 %vm1255_vm0, %v1195_v19  ;;  %v738_v22 = vld [vmem:[%s10341_s26 + $0x268] sm:$0xff] }
 0x12a   : > { %v9669_v26 = vpop.eup %9668  ;;  %9680 = vtanh.f32 %v1553_v24  ;;  %1824 = vmatprep.mubr.bf16.mxu0 %v13690_v3 }
 0x12b   : > { %v9671_v30 = vpop.eup %9670 }
 0x12c   : > { %v9673_v31 = vpop.eup %9672  ;;  %v1556_v32 = vpop.f32.mrb[32].mxu0  ;;  %v2387_v33 = vpack.c.bf16 %v9671_v30, %v9667_v25  ;;  %v1199_v30 = vpack.c.bf16 %v738_v22, %v737_v21  ;;  %v836_v22 = vld [vmem:[%s10603_s20 + $0x198] sm:$0xff] }
 0x12d   : > { %v1557_v34 = vadd.f32 %v1556_v32, %v10639_v58  ;;  %v1558_v35 = vpop.f32.mrb[33].mxu0  ;;  %v2388_v36 = vpack.c.bf16 %v9673_v31, %v9669_v26 }
 0x12e   : > { %v1559_v38 = vadd.f32 %v1558_v35, %v10644_v60  ;;  %v1560_v39 = vpop.f32.mrb[34].mxu0 }
 0x12f   : > { %9682 = vtanh.f32 %v1557_v34  ;;  %v1561_v40 = vadd.f32 %v1560_v39, %v10639_v58  ;;  %v1562_v41 = vpop.f32.mrb[35].mxu0  ;;  %2763 = vmatprep.mubr.bf16.mxu1 %v2388_v36  ;;  %v740_v39 = vld [vmem:[%s10341_s26 + $0x278] sm:$0xff] }
 0x130   : > { %9684 = vtanh.f32 %v1559_v38  ;;  %v1563_v42 = vadd.f32 %v1562_v41, %v10644_v60  ;;  %2764 = vmatmul.mubr.bf16.gmra.mrb[24].mxu1 %v2387_v33  ;;  %v739_v38 = vld [vmem:[%s10341_s26 + $0x270] sm:$0xff] }
 0x131   : > { %v9675_v43 = vpop.eup %9674  ;;  %9686 = vtanh.f32 %v1561_v40  ;;  %8155 = vmatmul.mubr.msk.bf16.gmra.mrb[140].mxu0 %vm1255_vm0, %v1196_v37 }
 0x132   : > { %v9677_v44 = vpop.eup %9676  ;;  %9688 = vtanh.f32 %v1563_v42  ;;  %1834 = vmatprep.mubr.bf16.mxu0 %v13690_v3 }
 0x133   : > { %v9679_v47 = vpop.eup %9678 }
 0x134   : > { %v9681_v48 = vpop.eup %9680  ;;  %v1566_v50 = vpop.f32.mrb[36].mxu0  ;;  %v2389_v51 = vpack.c.bf16 %v9679_v47, %v9675_v43  ;;  %v1200_v47 = vpack.c.bf16 %v740_v39, %v739_v38  ;;  %v837_v38 = vld [vmem:[%s10603_s20 + $0x1a0] sm:$0xff] }
 0x135   : > { %v1567_v52 = vadd.f32 %v1566_v50, %v10639_v58  ;;  %v1568_v54 = vpop.f32.mrb[37].mxu0  ;;  %v2390_v55 = vpack.c.bf16 %v9681_v48, %v9677_v44 }
 0x136   : > { %v1569_v59 = vadd.f32 %v1568_v54, %v10644_v60  ;;  %v1570_v61 = vpop.f32.mrb[38].mxu0 }
 0x137   : > { %9690 = vtanh.f32 %v1567_v52  ;;  %v1571_v62 = vadd.f32 %v1570_v61, %v10639_v58  ;;  %v1572_v63 = vpop.f32.mrb[39].mxu0  ;;  %2773 = vmatprep.mubr.bf16.mxu1 %v2390_v55  ;;  %v741_v61 = vld [vmem:[%s10341_s26 + $0x280] sm:$0xff] }
 0x138   : > { %9692 = vtanh.f32 %v1569_v59  ;;  %v1573_v0 = vadd.f32 %v1572_v63, %v10644_v60  ;;  %2774 = vmatmul.mubr.bf16.gmra.mrb[28].mxu1 %v2389_v51 }
 0x139   : > { %v9683_v1 = vpop.eup %9682  ;;  %9694 = vtanh.f32 %v1571_v62  ;;  %8156 = vmatmul.mubr.msk.bf16.gmra.mrb[144].mxu0 %vm1255_vm0, %v1197_v57  ;;  %v833_v57 = vld [vmem:[%s10603_s20 + $0x180] sm:$0xff]  ;;  %v742_v62 = vld [vmem:[%s10341_s26 + $0x288] sm:$0xff] }
 0x13a   : > { %v9685_v2 = vpop.eup %9684  ;;  %9696 = vtanh.f32 %v1573_v0  ;;  %1844 = vmatprep.mubr.bf16.mxu0 %v13690_v3  ;;  %3566 = vperm.xlu0 %9378, %v833_v57   ;;  %v834_v0 = vld [vmem:[%s10603_s20 + $0x188] sm:$0xff] }
 0x13b   : > { %v9687_v6 = vpop.eup %9686  ;;  %3571 = vperm.xlu1 %9379, %v834_v0   ;;  %v9483_v0 = vld [vmem:[%s13678_s9 + $0x8] sm:$0xff]  }
 0x13c   : > { %v9689_v7 = vpop.eup %9688  ;;  %v1576_v8 = vpop.f32.mrb[40].mxu0  ;;  %v2391_v9 = vpack.c.bf16 %v9687_v6, %v9683_v1  ;;  %8961 = vmatprep.subr.bf16.mxu0 %v9483_v0 }
 0x13d   : > { %v1577_v10 = vadd.f32 %v1576_v8, %v10639_v58  ;;  %v1578_v11 = vpop.f32.mrb[41].mxu0  ;;  %v2392_v12 = vpack.c.bf16 %v9689_v7, %v9685_v2  ;;  %v1201_v8 = vpack.c.bf16 %v742_v62, %v741_v61  ;;  %v822_v61 = vld [vmem:[%s10603_s20 + $0x128] sm:$0xff]  ;;  %8962 = vmatpush3.bf16.msra.mxu0 %v9483_v0 }
 0x13e   : > { %v1579_v14 = vadd.f32 %v1578_v11, %v10644_v60  ;;  %v1580_v15 = vpop.f32.mrb[42].mxu0 }
 0x13f   : > { %9698 = vtanh.f32 %v1577_v10  ;;  %v1581_v16 = vadd.f32 %v1580_v15, %v10639_v58  ;;  %v1582_v17 = vpop.f32.mrb[43].mxu0  ;;  %2783 = vmatprep.mubr.bf16.mxu1 %v2392_v12 }
 0x140   : > { %9700 = vtanh.f32 %v1579_v14  ;;  %v1583_v18 = vadd.f32 %v1582_v17, %v10644_v60  ;;  %2784 = vmatmul.mubr.bf16.gmra.mrb[32].mxu1 %v2391_v9  ;;  %v817_v9 = vld [vmem:[%s10603_s20 + $0x100] sm:$0xff]  ;;  %v818_v14 = vld [vmem:[%s10603_s20 + $0x108] sm:$0xff]  ;;  %v835_v17 = vld [vmem:[%s10603_s20 + $0x190] sm:$0xff] }
 0x141   : > { %v9691_v19 = vpop.eup %9690  ;;  %9702 = vtanh.f32 %v1581_v16  ;;  %8157 = vmatmul.mubr.msk.bf16.gmra.mrb[148].mxu0 %vm1255_vm0, %v1198_v13  ;;  %3486 = vperm.xlu0 %9378, %v817_v9  }
 0x142   : > { %v9693_v20 = vpop.eup %9692  ;;  %9704 = vtanh.f32 %v1583_v18  ;;  %1854 = vmatprep.mubr.bf16.mxu0 %v13690_v3  ;;  %3491 = vperm.xlu1 %9379, %v818_v14  }
 0x143   : > { %v9695_v23 = vpop.eup %9694 }
 0x144   : > { %v9697_v24 = vpop.eup %9696  ;;  %v1586_v25 = vpop.f32.mrb[44].mxu0  ;;  %v2393_v26 = vpack.c.bf16 %v9695_v23, %v9691_v19  ;;  %v743_v19 = vld [vmem:[%s10341_s26 + $0x290] sm:$0xff] }
 0x145   : > { %v1587_v27 = vadd.f32 %v1586_v25, %v10639_v58  ;;  %v1588_v28 = vpop.f32.mrb[45].mxu0  ;;  %v2394_v29 = vpack.c.bf16 %v9697_v24, %v9693_v20  ;;  %v744_v20 = vld [vmem:[%s10341_s26 + $0x298] sm:$0xff]  ;;  %3576 = vperm.xlu0 %9378, %v835_v17  }
 0x146   : > { %v1589_v31 = vadd.f32 %v1588_v28, %v10644_v60  ;;  %v1590_v32 = vpop.f32.mrb[46].mxu0  ;;  %3581 = vperm.xlu1 %9379, %v836_v22  }
 0x147   : > { %9706 = vtanh.f32 %v1587_v27  ;;  %v1591_v33 = vadd.f32 %v1590_v32, %v10639_v58  ;;  %v1592_v34 = vpop.f32.mrb[47].mxu0  ;;  %2793 = vmatprep.mubr.bf16.mxu1 %v2394_v29  ;;  %v1202_v29 = vpack.c.bf16 %v744_v20, %v743_v19  ;;  %v824_v20 = vld [vmem:[%s10603_s20 + $0x138] sm:$0xff] }
 0x148   : > { %9708 = vtanh.f32 %v1589_v31  ;;  %v1593_v35 = vadd.f32 %v1592_v34, %v10644_v60  ;;  %2794 = vmatmul.mubr.bf16.gmra.mrb[36].mxu1 %v2393_v26 }
 0x149   : > { %v9699_v36 = vpop.eup %9698  ;;  %9710 = vtanh.f32 %v1591_v33  ;;  %8158 = vmatmul.mubr.msk.bf16.gmra.mrb[152].mxu0 %vm1255_vm0, %v1199_v30  ;;  %v819_v30 = vld [vmem:[%s10603_s20 + $0x110] sm:$0xff] }
 0x14a   : > { %v9701_v37 = vpop.eup %9700  ;;  %9712 = vtanh.f32 %v1593_v35  ;;  %1864 = vmatprep.mubr.bf16.mxu0 %v13690_v3  ;;  %3496 = vperm.xlu0 %9378, %v819_v30   ;;  %v820_v35 = vld [vmem:[%s10603_s20 + $0x118] sm:$0xff] }
 0x14b   : > { %v9703_v40 = vpop.eup %9702  ;;  %3501 = vperm.xlu1 %9379, %v820_v35   ;;  %v9485_v30 = vld [vmem:[%s13678_s9 + $0x18] sm:$0xff]  }
 0x14c   : > { %v9705_v41 = vpop.eup %9704  ;;  %v1596_v42 = vpop.f32.mrb[48].mxu0  ;;  %v2395_v43 = vpack.c.bf16 %v9703_v40, %v9699_v36  ;;  %v745_v40 = vld [vmem:[%s10341_s26 + $0x2a0] sm:$0xff] }
 0x14d   : > { %v1597_v44 = vadd.f32 %v1596_v42, %v10639_v58  ;;  %v1598_v45 = vpop.f32.mrb[49].mxu0  ;;  %v2396_v46 = vpack.c.bf16 %v9705_v41, %v9701_v37  ;;  %v746_v41 = vld [vmem:[%s10341_s26 + $0x2a8] sm:$0xff] }
 0x14e   : > { %v1599_v48 = vadd.f32 %v1598_v45, %v10644_v60  ;;  %v1600_v50 = vpop.f32.mrb[50].mxu0  ;;  %3586 = vperm.xlu0 %9378, %v837_v38   ;;  %v825_v38 = vld [vmem:[%s10603_s20 + $0x140] sm:$0xff] }
 0x14f   : > { %9714 = vtanh.f32 %v1597_v44  ;;  %v1601_v51 = vadd.f32 %v1600_v50, %v10639_v58  ;;  %v1602_v52 = vpop.f32.mrb[51].mxu0  ;;  %2803 = vmatprep.mubr.bf16.mxu1 %v2396_v46 }
 0x150   : > { %9716 = vtanh.f32 %v1599_v48  ;;  %v1603_v54 = vadd.f32 %v1602_v52, %v10644_v60  ;;  %2804 = vmatmul.mubr.bf16.gmra.mrb[40].mxu1 %v2395_v43  ;;  %v838_v43 = vld [vmem:[%s10603_s20 + $0x1a8] sm:$0xff]  ;;  %v821_v52 = vld [vmem:[%s10603_s20 + $0x120] sm:$0xff] }
 0x151   : > { %v9707_v55 = vpop.eup %9706  ;;  %9718 = vtanh.f32 %v1601_v51  ;;  %8159 = vmatmul.mubr.msk.bf16.gmra.mrb[156].mxu0 %vm1255_vm0, %v1200_v47  ;;  %3591 = vperm.xlu1 %9379, %v838_v43   ;;  %v1203_v51 = vpack.c.bf16 %v746_v41, %v745_v40  ;;  %v826_v43 = vld [vmem:[%s10603_s20 + $0x148] sm:$0xff] }
 0x152   : > { %v9709_v59 = vpop.eup %9708  ;;  %9720 = vtanh.f32 %v1603_v54  ;;  %1874 = vmatprep.mubr.bf16.mxu0 %v13690_v3  ;;  %3506 = vperm.xlu0 %9378, %v821_v52  }
 0x153   : > { %v9711_v63 = vpop.eup %9710 }
 0x154   : > { %v9713_v1 = vpop.eup %9712  ;;  %v1606_v2 = vpop.f32.mrb[52].mxu0  ;;  %v2397_v4 = vpack.c.bf16 %v9711_v63, %v9707_v55 }
 0x155   : > { %v1607_v5 = vadd.f32 %v1606_v2, %v10639_v58  ;;  %v1608_v6 = vpop.f32.mrb[53].mxu0  ;;  %v2398_v7 = vpack.c.bf16 %v9713_v1, %v9709_v59  ;;  %3511 = vperm.xlu1 %9379, %v822_v61   ;;  %v839_v1 = vld [vmem:[%s10603_s20 + $0x1b0] sm:$0xff] }
 0x156   : > { %v1609_v10 = vadd.f32 %v1608_v6, %v10644_v60  ;;  %v1610_v11 = vpop.f32.mrb[54].mxu0  ;;  %3596 = vperm.xlu0 %9378, %v839_v1  }
 0x157   : > { %9722 = vtanh.f32 %v1607_v5  ;;  %v1611_v12 = vadd.f32 %v1610_v11, %v10639_v58  ;;  %v1612_v13 = vpop.f32.mrb[55].mxu0  ;;  %2813 = vmatprep.mubr.bf16.mxu1 %v2398_v7  ;;  %v748_v5 = vld [vmem:[%s10341_s26 + $0x2b8] sm:$0xff] }
 0x158   : > { %9724 = vtanh.f32 %v1609_v10  ;;  %v1613_v15 = vadd.f32 %v1612_v13, %v10644_v60  ;;  %2814 = vmatmul.mubr.bf16.gmra.mrb[44].mxu1 %v2397_v4  ;;  %v747_v4 = vld [vmem:[%s10341_s26 + $0x2b0] sm:$0xff]  ;;  %v840_v7 = vld [vmem:[%s10603_s20 + $0x1b8] sm:$0xff] }
 0x159   : > { %v9715_v16 = vpop.eup %9714  ;;  %9726 = vtanh.f32 %v1611_v12  ;;  %8160 = vmatmul.mubr.msk.bf16.gmra.mrb[160].mxu0 %vm1255_vm0, %v1201_v8  ;;  %3601 = vperm.xlu1 %9379, %v840_v7   ;;  %v1204_v14 = vpack.c.bf16 %v748_v5, %v747_v4 }
 0x15a   : > { %v9717_v18 = vpop.eup %9716  ;;  %9728 = vtanh.f32 %v1613_v15  ;;  %1884 = vmatprep.mubr.bf16.mxu0 %v13690_v3  ;;  %v823_v15 = vld [vmem:[%s10603_s20 + $0x130] sm:$0xff] }
 0x15b   : > { %v9719_v21 = vpop.eup %9718  ;;  %3516 = vperm.xlu0 %9378, %v823_v15  }
 0x15c   : > { %v9721_v23 = vpop.eup %9720  ;;  %v1616_v24 = vpop.f32.mrb[56].mxu0  ;;  %v2399_v25 = vpack.c.bf16 %v9719_v21, %v9715_v16  ;;  %v9484_v21 = vld [vmem:[%s13678_s9 + $0x10] sm:$0xff]  }
 0x15d   : > { %v1617_v26 = vadd.f32 %v1616_v24, %v10639_v58  ;;  %v1618_v27 = vpop.f32.mrb[57].mxu0  ;;  %v2400_v28 = vpack.c.bf16 %v9721_v23, %v9717_v18  ;;  %3521 = vperm.xlu1 %9379, %v824_v20   ;;  %8963 = vmatprep.subr.bf16.mxu0 %v9484_v21  ;;  %v841_v24 = vld [vmem:[%s10603_s20 + $0x1c0] sm:$0xff]  ;;  %v9489_v20 = vld [vmem:[%s13678_s9 + $0x38] sm:$0xff]  }
 0x15e   : > { %v1619_v31 = vadd.f32 %v1618_v27, %v10644_v60  ;;  %v1620_v32 = vpop.f32.mrb[58].mxu0  ;;  %v750_v27 = vld [vmem:[%s10341_s26 + $0x2c8] sm:$0xff]  ;;  %8964 = vmatpush3.bf16.msra.mxu0 %v9484_v21 }
 0x15f   : > { %9730 = vtanh.f32 %v1617_v26  ;;  %v1621_v33 = vadd.f32 %v1620_v32, %v10639_v58  ;;  %v1622_v34 = vpop.f32.mrb[59].mxu0  ;;  %2823 = vmatprep.mubr.bf16.mxu1 %v2400_v28  ;;  %v749_v26 = vld [vmem:[%s10341_s26 + $0x2c0] sm:$0xff]  ;;  %3606 = vperm.xlu0 %9378, %v841_v24  }
 0x160   : > { %9732 = vtanh.f32 %v1619_v31  ;;  %v1623_v36 = vadd.f32 %v1622_v34, %v10644_v60  ;;  %2824 = vmatmul.mubr.bf16.gmra.mrb[48].mxu1 %v2399_v25  ;;  %8965 = vmatprep.subr.bf16.mxu0 %v9485_v30 }
 0x161   : > { %v9723_v37 = vpop.eup %9722  ;;  %9734 = vtanh.f32 %v1621_v33  ;;  %8161 = vmatmul.mubr.msk.bf16.gmra.mrb[164].mxu0 %vm1255_vm0, %v1202_v29  ;;  %v842_v29 = vld [vmem:[%s10603_s20 + $0x1c8] sm:$0xff] }
 0x162   : > { %v9725_v39 = vpop.eup %9724  ;;  %9736 = vtanh.f32 %v1623_v36  ;;  %1894 = vmatprep.mubr.bf16.mxu0 %v13690_v3  ;;  %3611 = vperm.xlu1 %9379, %v842_v29  }
 0x163   : > { %v9727_v42 = vpop.eup %9726  ;;  %8966 = vmatpush3.bf16.msra.mxu0 %v9485_v30  ;;  %3526 = vperm.xlu0 %9378, %v825_v38   ;;  %v829_v30 = vld [vmem:[%s10603_s20 + $0x160] sm:$0xff]  ;;  %v847_v38 = vld [vmem:[%s10603_s20 + $0x1f0] sm:$0xff] }
 0x164   : > { %v9729_v44 = vpop.eup %9728  ;;  %v1626_v45 = vpop.f32.mrb[60].mxu0  ;;  %v2401_v46 = vpack.c.bf16 %v9727_v42, %v9723_v37  ;;  %v1205_v37 = vpack.c.bf16 %v750_v27, %v749_v26 }
 0x165   : > { %v1627_v47 = vadd.f32 %v1626_v45, %v10639_v58  ;;  %v1628_v48 = vpop.f32.mrb[61].mxu0  ;;  %v2402_v50 = vpack.c.bf16 %v9729_v44, %v9725_v39  ;;  %v9486_v44 = vld [vmem:[%s13678_s9 + $0x20] sm:$0xff]  }
 0x166   : > { %v1629_v54 = vadd.f32 %v1628_v48, %v10644_v60  ;;  %v1630_v55 = vpop.f32.mrb[62].mxu0  ;;  %3531 = vperm.xlu1 %9379, %v826_v43   ;;  %8967 = vmatprep.subr.bf16.mxu0 %v9486_v44 }
 0x167   : > { %9738 = vtanh.f32 %v1627_v47  ;;  %v1631_v57 = vadd.f32 %v1630_v55, %v10639_v58  ;;  %v1632_v59 = vpop.f32.mrb[63].mxu0  ;;  %2833 = vmatprep.mubr.bf16.mxu1 %v2402_v50  ;;  %v843_v47 = vld [vmem:[%s10603_s20 + $0x1d0] sm:$0xff]  ;;  %8968 = vmatpush3.bf16.msra.mxu0 %v9486_v44  ;;  %v9487_v55 = vld [vmem:[%s13678_s9 + $0x28] sm:$0xff]  }
 0x168   : > { %9740 = vtanh.f32 %v1629_v54  ;;  %v1633_v62 = vadd.f32 %v1632_v59, %v10644_v60  ;;  %2834 = vmatmul.mubr.bf16.gmra.mrb[52].mxu1 %v2401_v46  ;;  %v751_v50 = vld [vmem:[%s10341_s26 + $0x2d0] sm:$0xff]  ;;  %3616 = vperm.xlu0 %9378, %v843_v47   ;;  %v844_v54 = vld [vmem:[%s10603_s20 + $0x1d8] sm:$0xff] }
 0x169   : > { %v9731_v63 = vpop.eup %9730  ;;  %9742 = vtanh.f32 %v1631_v57  ;;  %8162 = vmatmul.mubr.msk.bf16.gmra.mrb[168].mxu0 %vm1255_vm0, %v1203_v51  ;;  %v752_v51 = vld [vmem:[%s10341_s26 + $0x2d8] sm:$0xff]  ;;  %8969 = vmatprep.subr.bf16.mxu0 %v9487_v55 }
 0x16a   : > { %v9733_v2 = vpop.eup %9732  ;;  %9744 = vtanh.f32 %v1633_v62  ;;  %1904 = vmatprep.mubr.bf16.mxu0 %v13690_v3  ;;  %3621 = vperm.xlu1 %9379, %v844_v54   ;;  %v1206_v1 = vpack.c.bf16 %v752_v51, %v751_v50 }
 0x16b   : > { %v9735_v6 = vpop.eup %9734  ;;  %8970 = vmatpush3.bf16.msra.mxu0 %v9487_v55  ;;  %v831_v55 = vld [vmem:[%s10603_s20 + $0x170] sm:$0xff] }
 0x16c   : > { %v9737_v8 = vpop.eup %9736  ;;  %v1636_v9 = vpop.f32.mrb[64].mxu0  ;;  %v2403_v10 = vpack.c.bf16 %v9735_v6, %v9731_v63 }
 0x16d   : > { %v1637_v11 = vadd.f32 %v1636_v9, %v10639_v58  ;;  %v1638_v12 = vpop.f32.mrb[65].mxu0  ;;  %v2404_v13 = vpack.c.bf16 %v9737_v8, %v9733_v2  ;;  %v827_v2 = vld [vmem:[%s10603_s20 + $0x150] sm:$0xff]  ;;  %v10855_v6 = vpop.trf.xlu0 }
 0x16e   : > { %v1639_v16 = vadd.f32 %v1638_v12, %v10644_v60  ;;  %v1640_v17 = vpop.f32.mrb[66].mxu0  ;;  %13819 = vst [vmem:[#allocation3_spill] sm:$0xff] %v10855_v6  ;;  %v10858_v9 = vpop.trf.xlu1  ;;  %3536 = vperm.xlu0 %9378, %v827_v2  }
 0x16f   : > { %9746 = vtanh.f32 %v1637_v11  ;;  %v1641_v18 = vadd.f32 %v1640_v17, %v10639_v58  ;;  %v1642_v19 = vpop.f32.mrb[67].mxu0  ;;  %2843 = vmatprep.mubr.bf16.mxu1 %v2404_v13  ;;  %13820 = vst [vmem:[#allocation4_spill] sm:$0xff] %v10858_v9  ;;  %v9488_v11 = vld [vmem:[%s13678_s9 + $0x30] sm:$0xff]   ;;  %v754_v17 = vld [vmem:[%s10341_s26 + $0x2e8] sm:$0xff] }
 0x170   : > { %9748 = vtanh.f32 %v1639_v16  ;;  %v1643_v22 = vadd.f32 %v1642_v19, %v10644_v60  ;;  %2844 = vmatmul.mubr.bf16.gmra.mrb[56].mxu1 %v2403_v10  ;;  %v828_v10 = vld [vmem:[%s10603_s20 + $0x158] sm:$0xff]  ;;  %8971 = vmatprep.subr.bf16.mxu0 %v9488_v11  ;;  %v753_v16 = vld [vmem:[%s10341_s26 + $0x2e0] sm:$0xff]  ;;  %v846_v19 = vld [vmem:[%s10603_s20 + $0x1e8] sm:$0xff] }
 0x171   : > { %v9739_v23 = vpop.eup %9738  ;;  %9750 = vtanh.f32 %v1641_v18  ;;  %8163 = vmatmul.mubr.msk.bf16.gmra.mrb[172].mxu0 %vm1255_vm0, %v1204_v14  ;;  %3541 = vperm.xlu1 %9379, %v828_v10   ;;  %v845_v14 = vld [vmem:[%s10603_s20 + $0x1e0] sm:$0xff]  ;;  %v10874_v24 = vpop.trf.xlu0 }
 0x172   : > { %v9741_v25 = vpop.eup %9740  ;;  %9752 = vtanh.f32 %v1643_v22  ;;  %1914 = vmatprep.mubr.bf16.mxu0 %v13690_v3  ;;  %8972 = vmatpush3.bf16.msra.mxu0 %v9488_v11  ;;  %13821 = vst [vmem:[#allocation5_spill] sm:$0xff] %v10874_v24  ;;  %v10877_v29 = vpop.trf.xlu1 }
 0x173   : > { %v9743_v28 = vpop.eup %9742  ;;  %3626 = vperm.xlu0 %9378, %v845_v14   ;;  %13822 = vst [vmem:[#allocation6_spill] sm:$0xff] %v10877_v29  ;;  %8973 = vmatprep.subr.bf16.mxu0 %v9489_v20 }
 0x174   : > { %v9745_v31 = vpop.eup %9744  ;;  %v1646_v32 = vpop.f32.mrb[68].mxu0  ;;  %v2405_v33 = vpack.c.bf16 %v9743_v28, %v9739_v23  ;;  %v1207_v28 = vpack.c.bf16 %v754_v17, %v753_v16 }
 0x175   : > { %v1647_v34 = vadd.f32 %v1646_v32, %v10639_v58  ;;  %v1648_v35 = vpop.f32.mrb[69].mxu0  ;;  %v2406_v36 = vpack.c.bf16 %v9745_v31, %v9741_v25  ;;  %3631 = vperm.xlu1 %9379, %v846_v19  }
 0x176   : > { %v1649_v39 = vadd.f32 %v1648_v35, %v10644_v60  ;;  %v1650_v40 = vpop.f32.mrb[70].mxu0  ;;  %8974 = vmatpush3.bf16.msra.mxu0 %v9489_v20  ;;  %v830_v35 = vld [vmem:[%s10603_s20 + $0x168] sm:$0xff]  ;;  %v10891_v44 = vpop.trf.xlu1 }
 0x177   : > { %9754 = vtanh.f32 %v1647_v34  ;;  %v1651_v41 = vadd.f32 %v1650_v40, %v10639_v58  ;;  %v1652_v42 = vpop.f32.mrb[71].mxu0  ;;  %2853 = vmatprep.mubr.bf16.mxu1 %v2406_v36  ;;  %3546 = vperm.xlu0 %9378, %v829_v30   ;;  %v755_v40 = vld [vmem:[%s10341_s26 + $0x2f0] sm:$0xff]  ;;  %13824 = vst [vmem:[#allocation8_spill] sm:$0xff] %v10891_v44  ;;  %v760_v30 = vld [vmem:[%s10341_s26 + $0x318] sm:$0xff] }
 0x178   : > { %9756 = vtanh.f32 %v1649_v39  ;;  %v1653_v45 = vadd.f32 %v1652_v42, %v10644_v60  ;;  %2854 = vmatmul.mubr.bf16.gmra.mrb[60].mxu1 %v2405_v33  ;;  %v10889_v42 = vpop.trf.xlu0 }
 0x179   : > { %v9747_v46 = vpop.eup %9746  ;;  %9758 = vtanh.f32 %v1651_v41  ;;  %8164 = vmatmul.mubr.msk.bf16.gmra.mrb[176].mxu0 %vm1255_vm0, %v1205_v37  ;;  %3551 = vperm.xlu1 %9379, %v830_v35   ;;  %v756_v41 = vld [vmem:[%s10341_s26 + $0x2f8] sm:$0xff]  ;;  %13823 = vst [vmem:[#allocation7_spill] sm:$0xff] %v10889_v42  ;;  %v859_v42 = vld [vmem:[%s10603_s20 + $0x250] sm:$0xff] }
 0x17a   : > { %v9749_v48 = vpop.eup %9748  ;;  %9760 = vtanh.f32 %v1653_v45  ;;  %1924 = vmatprep.mubr.bf16.mxu0 %v13690_v3  ;;  %v848_v45 = vld [vmem:[%s10603_s20 + $0x1f8] sm:$0xff]  ;;  %v1208_v54 = vpack.c.bf16 %v756_v41, %v755_v40 }
 0x17b   : > { %v9751_v52 = vpop.eup %9750  ;;  %3636 = vperm.xlu0 %9378, %v847_v38  }
 0x17c   : > { %v9753_v57 = vpop.eup %9752  ;;  %v1656_v59 = vpop.f32.mrb[72].mxu0  ;;  %v2407_v61 = vpack.c.bf16 %v9751_v52, %v9747_v46 }
 0x17d   : > { %v1657_v62 = vadd.f32 %v1656_v59, %v10639_v58  ;;  %v1658_v63 = vpop.f32.mrb[73].mxu0  ;;  %v2408_v0 = vpack.c.bf16 %v9753_v57, %v9749_v48  ;;  %3641 = vperm.xlu1 %9379, %v848_v45  }
 0x17e   : > { %v1659_v4 = vadd.f32 %v1658_v63, %v10644_v60  ;;  %v1660_v5 = vpop.f32.mrb[74].mxu0  ;;  %v832_v63 = vld [vmem:[%s10603_s20 + $0x178] sm:$0xff] }
 0x17f   : > { %9762 = vtanh.f32 %v1657_v62  ;;  %v1661_v7 = vadd.f32 %v1660_v5, %v10639_v58  ;;  %v1662_v8 = vpop.f32.mrb[75].mxu0  ;;  %2863 = vmatprep.mubr.bf16.mxu1 %v2408_v0  ;;  %3556 = vperm.xlu0 %9378, %v831_v55  }
 0x180   : > { %9764 = vtanh.f32 %v1659_v4  ;;  %v1663_v12 = vadd.f32 %v1662_v8, %v10644_v60  ;;  %2864 = vmatmul.mubr.bf16.gmra.mrb[64].mxu1 %v2407_v61  ;;  %v10903_v4 = vpop.trf.xlu1  ;;  %v758_v8 = vld [vmem:[%s10341_s26 + $0x308] sm:$0xff] }
 0x181   : > { %v9755_v13 = vpop.eup %9754  ;;  %9766 = vtanh.f32 %v1661_v7  ;;  %8165 = vmatmul.mubr.msk.bf16.gmra.mrb[180].mxu0 %vm1255_vm0, %v1206_v1  ;;  %v10900_v1 = vpop.trf.xlu0  ;;  %3561 = vperm.xlu1 %9379, %v832_v63   ;;  %13826 = vst [vmem:[#allocation10_spill] sm:$0xff] %v10903_v4  ;;  %v757_v7 = vld [vmem:[%s10341_s26 + $0x300] sm:$0xff] }
 0x182   : > { %v9757_v15 = vpop.eup %9756  ;;  %9768 = vtanh.f32 %v1663_v12  ;;  %1934 = vmatprep.mubr.bf16.mxu0 %v13690_v3  ;;  %13825 = vst [vmem:[#allocation9_spill] sm:$0xff] %v10900_v1  ;;  %v1209_v17 = vpack.c.bf16 %v758_v8, %v757_v7 }
 0x183   : > { %v9759_v18 = vpop.eup %9758 }
 0x184   : > { %v9761_v21 = vpop.eup %9760  ;;  %v1666_v22 = vpop.f32.mrb[76].mxu0  ;;  %v2409_v23 = vpack.c.bf16 %v9759_v18, %v9755_v13 }
 0x185   : > { %v1667_v25 = vadd.f32 %v1666_v22, %v10639_v58  ;;  %v1668_v26 = vpop.f32.mrb[77].mxu0  ;;  %v2410_v27 = vpack.c.bf16 %v9761_v21, %v9757_v15  ;;  %v10910_v20 = vpop.trf.xlu0 }
 0x186   : > { %v1669_v31 = vadd.f32 %v1668_v26, %v10644_v60  ;;  %v1670_v32 = vpop.f32.mrb[78].mxu0  ;;  %13827 = vst [vmem:[#allocation11_spill] sm:$0xff] %v10910_v20 }
 0x187   : > { %9770 = vtanh.f32 %v1667_v25  ;;  %v1671_v33 = vadd.f32 %v1670_v32, %v10639_v58  ;;  %v1672_v34 = vpop.f32.mrb[79].mxu0  ;;  %2873 = vmatprep.mubr.bf16.mxu1 %v2410_v27 }
 0x188   : > { %9772 = vtanh.f32 %v1669_v31  ;;  %v1673_v36 = vadd.f32 %v1672_v34, %v10644_v60  ;;  %2874 = vmatmul.mubr.bf16.gmra.mrb[68].mxu1 %v2409_v23  ;;  %v10913_v23 = vpop.trf.xlu1 }
 0x189   : > { %v9763_v37 = vpop.eup %9762  ;;  %9774 = vtanh.f32 %v1671_v33  ;;  %8166 = vmatmul.mubr.msk.bf16.gmra.mrb[184].mxu0 %vm1255_vm0, %v1207_v28  ;;  %13828 = vst [vmem:[#allocation12_spill] sm:$0xff] %v10913_v23  ;;  %v759_v28 = vld [vmem:[%s10341_s26 + $0x310] sm:$0xff]  ;;  %v10920_v35 = vpop.trf.xlu0  ;;  %v857_v23 = vld [vmem:[%s10603_s20 + $0x240] sm:$0xff] }
 0x18a   : > { %v9765_v39 = vpop.eup %9764  ;;  %9776 = vtanh.f32 %v1673_v36  ;;  %1944 = vmatprep.mubr.bf16.mxu0 %v13690_v3  ;;  %13829 = vst [vmem:[#allocation13_spill] sm:$0xff] %v10920_v35 }
 0x18b   : > { %v9767_v43 = vpop.eup %9766 }
 0x18c   : > { %v9769_v46 = vpop.eup %9768  ;;  %v1676_v47 = vpop.f32.mrb[80].mxu0  ;;  %v2411_v48 = vpack.c.bf16 %v9767_v43, %v9763_v37 }
 0x18d   : > { %v1677_v50 = vadd.f32 %v1676_v47, %v10639_v58  ;;  %v1678_v51 = vpop.f32.mrb[81].mxu0  ;;  %v2412_v52 = vpack.c.bf16 %v9769_v46, %v9765_v39  ;;  %v1210_v39 = vpack.c.bf16 %v760_v30, %v759_v28  ;;  %v10923_v40 = vpop.trf.xlu1 }
 0x18e   : > { %v1679_v57 = vadd.f32 %v1678_v51, %v10644_v60  ;;  %v1680_v59 = vpop.f32.mrb[82].mxu0  ;;  %13830 = vst [vmem:[#allocation14_spill] sm:$0xff] %v10923_v40  ;;  %v761_v51 = vld [vmem:[%s10341_s26 + $0x320] sm:$0xff] }
 0x18f   : > { %9778 = vtanh.f32 %v1677_v50  ;;  %v1681_v61 = vadd.f32 %v1680_v59, %v10639_v58  ;;  %v1682_v62 = vpop.f32.mrb[83].mxu0  ;;  %2883 = vmatprep.mubr.bf16.mxu1 %v2412_v52  ;;  %v762_v52 = vld [vmem:[%s10341_s26 + $0x328] sm:$0xff] }
 0x190   : > { %9780 = vtanh.f32 %v1679_v57  ;;  %v1683_v0 = vadd.f32 %v1682_v62, %v10644_v60  ;;  %2884 = vmatmul.mubr.bf16.gmra.mrb[72].mxu1 %v2411_v48 }
 0x191   : > { %v9771_v2 = vpop.eup %9770  ;;  %9782 = vtanh.f32 %v1681_v61  ;;  %8167 = vmatmul.mubr.msk.bf16.gmra.mrb[188].mxu0 %vm1255_vm0, %v1208_v54  ;;  %v10932_v54 = vpop.permute.xlu0 %3406 }
 0x192   : > { %v9773_v5 = vpop.eup %9772  ;;  %9784 = vtanh.f32 %v1683_v0  ;;  %1954 = vmatprep.mubr.bf16.mxu0 %v13690_v3  ;;  %13831 = vst [vmem:[#allocation15_spill] sm:$0xff] %v10932_v54  ;;  %v10934_v57 = vpop.permute.xlu1 %3326 }
 0x193   : > { %v9775_v10 = vpop.eup %9774 }
 0x194   : > { %v9777_v11 = vpop.eup %9776  ;;  %v1686_v12 = vpop.f32.mrb[84].mxu0  ;;  %v2413_v13 = vpack.c.bf16 %v9775_v10, %v9771_v2 }
 0x195   : > { %v1687_v14 = vadd.f32 %v1686_v12, %v10639_v58  ;;  %v1688_v15 = vpop.f32.mrb[85].mxu0  ;;  %v2414_v16 = vpack.c.bf16 %v9777_v11, %v9773_v5  ;;  %v1211_v5 = vpack.c.bf16 %v762_v52, %v761_v51 }
 0x196   : > { %v1689_v18 = vadd.f32 %v1688_v15, %v10644_v60  ;;  %v1690_v19 = vpop.f32.mrb[86].mxu0  ;;  %v10943_v15 = vpop.permute.xlu1 %3331 }
 0x197   : > { %9786 = vtanh.f32 %v1687_v14  ;;  %v1691_v21 = vadd.f32 %v1690_v19, %v10639_v58  ;;  %v1692_v22 = vpop.f32.mrb[87].mxu0  ;;  %2893 = vmatprep.mubr.bf16.mxu1 %v2414_v16 }
 0x198   : > { %9788 = vtanh.f32 %v1689_v18  ;;  %v1693_v25 = vadd.f32 %v1692_v22, %v10644_v60  ;;  %2894 = vmatmul.mubr.bf16.gmra.mrb[76].mxu1 %v2413_v13  ;;  %v10940_v13 = vpop.permute.xlu0 %3411  ;;  %v764_v18 = vld [vmem:[%s10341_s26 + $0x338] sm:$0xff] }
 0x199   : > { %v9779_v26 = vpop.eup %9778  ;;  %9790 = vtanh.f32 %v1691_v21  ;;  %8168 = vmatmul.mubr.msk.bf16.gmra.mrb[192].mxu0 %vm1255_vm0, %v1209_v17  ;;  %13832 = vst [vmem:[#allocation16_spill] sm:$0xff] %v10940_v13  ;;  %v763_v17 = vld [vmem:[%s10341_s26 + $0x330] sm:$0xff] }
 0x19a   : > { %v9781_v27 = vpop.eup %9780  ;;  %9792 = vtanh.f32 %v1693_v25  ;;  %1964 = vmatprep.mubr.bf16.mxu0 %v13690_v3  ;;  %v1212_v30 = vpack.c.bf16 %v764_v18, %v763_v17 }
 0x19b   : > { %v9783_v31 = vpop.eup %9782 }
 0x19c   : > { %v9785_v32 = vpop.eup %9784  ;;  %v1696_v33 = vpop.f32.mrb[88].mxu0  ;;  %v2415_v34 = vpack.c.bf16 %v9783_v31, %v9779_v26 }
 0x19d   : > { %v1697_v36 = vadd.f32 %v1696_v33, %v10639_v58  ;;  %v1698_v37 = vpop.f32.mrb[89].mxu0  ;;  %v2416_v38 = vpack.c.bf16 %v9785_v32, %v9781_v27  ;;  %v10950_v33 = vpop.permute.xlu0 %3416 }
 0x19e   : > { %v1699_v41 = vadd.f32 %v1698_v37, %v10644_v60  ;;  %v1700_v43 = vpop.f32.mrb[90].mxu0  ;;  %13833 = vst [vmem:[#allocation17_spill] sm:$0xff] %v10950_v33  ;;  %v10953_v37 = vpop.permute.xlu1 %3421 }
 0x19f   : > { %9794 = vtanh.f32 %v1697_v36  ;;  %v1701_v45 = vadd.f32 %v1700_v43, %v10639_v58  ;;  %v1702_v46 = vpop.f32.mrb[91].mxu0  ;;  %2903 = vmatprep.mubr.bf16.mxu1 %v2416_v38  ;;  %13834 = vst [vmem:[#allocation18_spill] sm:$0xff] %v10953_v37  ;;  %v765_v43 = vld [vmem:[%s10341_s26 + $0x340] sm:$0xff] }
 0x1a0   : > { %9796 = vtanh.f32 %v1699_v41  ;;  %v1703_v47 = vadd.f32 %v1702_v46, %v10644_v60  ;;  %2904 = vmatmul.mubr.bf16.gmra.mrb[80].mxu1 %v2415_v34 }
 0x1a1   : > { %v9787_v48 = vpop.eup %9786  ;;  %9798 = vtanh.f32 %v1701_v45  ;;  %8169 = vmatmul.mubr.msk.bf16.gmra.mrb[196].mxu0 %vm1255_vm0, %v1210_v39  ;;  %v766_v45 = vld [vmem:[%s10341_s26 + $0x348] sm:$0xff]  ;;  %v10960_v51 = vpop.permute.xlu0 %3336 }
 0x1a2   : > { %v9789_v50 = vpop.eup %9788  ;;  %9800 = vtanh.f32 %v1703_v47  ;;  %1974 = vmatprep.mubr.bf16.mxu0 %v13690_v3  ;;  %13835 = vst [vmem:[#allocation19_spill] sm:$0xff] %v10960_v51 }
 0x1a3   : > { %v9791_v55 = vpop.eup %9790 }
 0x1a4   : > { %v9793_v59 = vpop.eup %9792  ;;  %v1706_v61 = vpop.f32.mrb[92].mxu0  ;;  %v2417_v62 = vpack.c.bf16 %v9791_v55, %v9787_v48 }
 0x1a5   : > { %v1707_v63 = vadd.f32 %v1706_v61, %v10639_v58  ;;  %v1708_v0 = vpop.f32.mrb[93].mxu0  ;;  %v2418_v2 = vpack.c.bf16 %v9793_v59, %v9789_v50  ;;  %v1213_v61 = vpack.c.bf16 %v766_v45, %v765_v43  ;;  %v769_v43 = vld [vmem:[%s10341_s26 + $0x360] sm:$0xff]  ;;  %v770_v45 = vld [vmem:[%s10341_s26 + $0x368] sm:$0xff] }
 0x1a6   : > { %v1709_v7 = vadd.f32 %v1708_v0, %v10644_v60  ;;  %v1710_v8 = vpop.f32.mrb[94].mxu0 }
 0x1a7   : > { %9802 = vtanh.f32 %v1707_v63  ;;  %v1711_v10 = vadd.f32 %v1710_v8, %v10639_v58  ;;  %v1712_v11 = vpop.f32.mrb[95].mxu0  ;;  %2913 = vmatprep.mubr.bf16.mxu1 %v2418_v2 }
 0x1a8   : > { %9804 = vtanh.f32 %v1709_v7  ;;  %v1713_v12 = vadd.f32 %v1712_v11, %v10644_v60  ;;  %2914 = vmatmul.mubr.bf16.gmra.mrb[84].mxu1 %v2417_v62  ;;  %v10963_v62 = vpop.permute.xlu1 %3341  ;;  %v767_v11 = vld [vmem:[%s10341_s26 + $0x350] sm:$0xff] }
 0x1a9   : > { %v9795_v14 = vpop.eup %9794  ;;  %9806 = vtanh.f32 %v1711_v10  ;;  %8170 = vmatmul.mubr.msk.bf16.gmra.mrb[200].mxu0 %vm1255_vm0, %v1211_v5 }
 0x1aa   : > { %v9797_v16 = vpop.eup %9796  ;;  %9808 = vtanh.f32 %v1713_v12  ;;  %1984 = vmatprep.mubr.bf16.mxu0 %v13690_v3  ;;  %v768_v12 = vld [vmem:[%s10341_s26 + $0x358] sm:$0xff] }
 0x1ab   : > { %v9799_v19 = vpop.eup %9798 }
 0x1ac   : > { %v9801_v21 = vpop.eup %9800  ;;  %v1716_v22 = vpop.f32.mrb[96].mxu0  ;;  %v2419_v25 = vpack.c.bf16 %v9799_v19, %v9795_v14 }
 0x1ad   : > { %v1717_v26 = vadd.f32 %v1716_v22, %v10639_v58  ;;  %v1718_v27 = vpop.f32.mrb[97].mxu0  ;;  %v2420_v28 = vpack.c.bf16 %v9801_v21, %v9797_v16  ;;  %v10972_v14 = vpop.permute.xlu0 %3426 }
 0x1ae   : > { %v1719_v31 = vadd.f32 %v1718_v27, %v10644_v60  ;;  %v1720_v32 = vpop.f32.mrb[98].mxu0  ;;  %13836 = vst [vmem:[#allocation20_spill] sm:$0xff] %v10972_v14  ;;  %v10974_v17 = vpop.permute.xlu1 %3431  ;;  %v1214_v27 = vpack.c.bf16 %v768_v12, %v767_v11 }
 0x1af   : > { %9810 = vtanh.f32 %v1717_v26  ;;  %v1721_v34 = vadd.f32 %v1720_v32, %v10639_v58  ;;  %v1722_v36 = vpop.f32.mrb[99].mxu0  ;;  %2923 = vmatprep.mubr.bf16.mxu1 %v2420_v28  ;;  %13837 = vst [vmem:[#allocation21_spill] sm:$0xff] %v10974_v17 }
 0x1b0   : > { %9812 = vtanh.f32 %v1719_v31  ;;  %v1723_v38 = vadd.f32 %v1722_v36, %v10644_v60  ;;  %2924 = vmatmul.mubr.bf16.gmra.mrb[88].mxu1 %v2419_v25 }
 0x1b1   : > { %v9803_v39 = vpop.eup %9802  ;;  %9814 = vtanh.f32 %v1721_v34  ;;  %8171 = vmatmul.mubr.msk.bf16.gmra.mrb[204].mxu0 %vm1255_vm0, %v1212_v30  ;;  %v10980_v36 = vpop.permute.xlu0 %3346 }
 0x1b2   : > { %v9805_v41 = vpop.eup %9804  ;;  %9816 = vtanh.f32 %v1723_v38  ;;  %1994 = vmatprep.mubr.bf16.mxu0 %v13690_v3 }
 0x1b3   : > { %v9807_v46 = vpop.eup %9806 }
 0x1b4   : > { %v9809_v47 = vpop.eup %9808  ;;  %v1726_v48 = vpop.f32.mrb[100].mxu0  ;;  %v2421_v50 = vpack.c.bf16 %v9807_v46, %v9803_v39 }
 0x1b5   : > { %v1727_v52 = vadd.f32 %v1726_v48, %v10639_v58  ;;  %v1728_v55 = vpop.f32.mrb[101].mxu0  ;;  %v2422_v59 = vpack.c.bf16 %v9809_v47, %v9805_v41  ;;  %v10983_v39 = vpop.permute.xlu1 %3351 }
 0x1b6   : > { %v1729_v63 = vadd.f32 %v1728_v55, %v10644_v60  ;;  %v1730_v0 = vpop.f32.mrb[102].mxu0 }
 0x1b7   : > { %9818 = vtanh.f32 %v1727_v52  ;;  %v1731_v2 = vadd.f32 %v1730_v0, %v10639_v58  ;;  %v1732_v5 = vpop.f32.mrb[103].mxu0  ;;  %2933 = vmatprep.mubr.bf16.mxu1 %v2422_v59 }
 0x1b8   : > { %9820 = vtanh.f32 %v1729_v63  ;;  %v1733_v7 = vadd.f32 %v1732_v5, %v10644_v60  ;;  %2934 = vmatmul.mubr.bf16.gmra.mrb[92].mxu1 %v2421_v50 }
 0x1b9   : > { %v9811_v8 = vpop.eup %9810  ;;  %9822 = vtanh.f32 %v1731_v2  ;;  %8172 = vmatmul.mubr.msk.bf16.gmra.mrb[208].mxu0 %vm1255_vm0, %v1213_v61  ;;  %v1215_v61 = vpack.c.bf16 %v770_v45, %v769_v43  ;;  %v10990_v2 = vpop.permute.xlu0 %3436 }
 0x1ba   : > { %v9813_v10 = vpop.eup %9812  ;;  %9824 = vtanh.f32 %v1733_v7  ;;  %2004 = vmatprep.mubr.bf16.mxu0 %v13690_v3  ;;  %13838 = vst [vmem:[#allocation22_spill] sm:$0xff] %v10990_v2 }
 0x1bb   : > { %v9815_v16 = vpop.eup %9814 }
 0x1bc   : > { %v9817_v18 = vpop.eup %9816  ;;  %v1736_v19 = vpop.f32.mrb[104].mxu0  ;;  %v2423_v21 = vpack.c.bf16 %v9815_v16, %v9811_v8  ;;  %v771_v16 = vld [vmem:[%s10341_s26 + $0x370] sm:$0xff] }
 0x1bd   : > { %v1737_v22 = vadd.f32 %v1736_v19, %v10639_v58  ;;  %v1738_v25 = vpop.f32.mrb[105].mxu0  ;;  %v2424_v26 = vpack.c.bf16 %v9817_v18, %v9813_v10  ;;  %v10993_v8 = vpop.permute.xlu1 %3441  ;;  %v772_v18 = vld [vmem:[%s10341_s26 + $0x378] sm:$0xff] }
 0x1be   : > { %v1739_v28 = vadd.f32 %v1738_v25, %v10644_v60  ;;  %v1740_v30 = vpop.f32.mrb[106].mxu0  ;;  %13839 = vst [vmem:[#allocation23_spill] sm:$0xff] %v10993_v8 }
 0x1bf   : > { %9826 = vtanh.f32 %v1737_v22  ;;  %v1741_v31 = vadd.f32 %v1740_v30, %v10639_v58  ;;  %v1742_v32 = vpop.f32.mrb[107].mxu0  ;;  %2943 = vmatprep.mubr.bf16.mxu1 %v2424_v26  ;;  %v11000_v26 = vpop.permute.xlu0 %3356 }
 0x1c0   : > { %9828 = vtanh.f32 %v1739_v28  ;;  %v1743_v34 = vadd.f32 %v1742_v32, %v10644_v60  ;;  %2944 = vmatmul.mubr.bf16.gmra.mrb[96].mxu1 %v2423_v21 }
 0x1c1   : > { %v9819_v38 = vpop.eup %9818  ;;  %9830 = vtanh.f32 %v1741_v31  ;;  %8173 = vmatmul.mubr.msk.bf16.gmra.mrb[212].mxu0 %vm1255_vm0, %v1214_v27  ;;  %v1216_v31 = vpack.c.bf16 %v772_v18, %v771_v16  ;;  %v11003_v32 = vpop.permute.xlu1 %3361 }
 0x1c2   : > { %v9821_v41 = vpop.eup %9820  ;;  %9832 = vtanh.f32 %v1743_v34  ;;  %2014 = vmatprep.mubr.bf16.mxu0 %v13690_v3 }
 0x1c3   : > { %v9823_v46 = vpop.eup %9822 }
 0x1c4   : > { %v9825_v47 = vpop.eup %9824  ;;  %v1746_v48 = vpop.f32.mrb[108].mxu0  ;;  %v2425_v50 = vpack.c.bf16 %v9823_v46, %v9819_v38 }
 0x1c5   : > { %v1747_v52 = vadd.f32 %v1746_v48, %v10639_v58  ;;  %v1748_v55 = vpop.f32.mrb[109].mxu0  ;;  %v2426_v59 = vpack.c.bf16 %v9825_v47, %v9821_v41  ;;  %v865_v47 = vld [vmem:[%s10603_s20 + $0x280] sm:$0xff] }
 0x1c6   : > { %v1749_v63 = vadd.f32 %v1748_v55, %v10644_v60  ;;  %v1750_v0 = vpop.f32.mrb[110].mxu0  ;;  %v11013_v55 = vpop.permute.xlu0 %3446  ;;  %3726 = vperm.xlu0 %9378, %v865_v47   ;;  %v776_v47 = vld [vmem:[%s10341_s26 + $0x398] sm:$0xff] }
 0x1c7   : > { %9834 = vtanh.f32 %v1747_v52  ;;  %v1751_v5 = vadd.f32 %v1750_v0, %v10639_v58  ;;  %v1752_v7 = vpop.f32.mrb[111].mxu0  ;;  %2953 = vmatprep.mubr.bf16.mxu1 %v2426_v59  ;;  %v774_v52 = vld [vmem:[%s10341_s26 + $0x388] sm:$0xff]  ;;  %13840 = vst [vmem:[#allocation24_spill] sm:$0xff] %v11013_v55 }
 0x1c8   : > { %9836 = vtanh.f32 %v1749_v63  ;;  %v1753_v10 = vadd.f32 %v1752_v7, %v10644_v60  ;;  %2954 = vmatmul.mubr.bf16.gmra.mrb[100].mxu1 %v2425_v50  ;;  %v773_v50 = vld [vmem:[%s10341_s26 + $0x380] sm:$0xff]  ;;  %v11017_v63 = vpop.permute.xlu1 %3451  ;;  %v866_v0 = vld [vmem:[%s10603_s20 + $0x288] sm:$0xff] }
 0x1c9   : > { %v9827_v11 = vpop.eup %9826  ;;  %9838 = vtanh.f32 %v1751_v5  ;;  %8174 = vmatmul.mubr.msk.bf16.gmra.mrb[216].mxu0 %vm1255_vm0, %v1215_v61  ;;  %13841 = vst [vmem:[#allocation25_spill] sm:$0xff] %v11017_v63  ;;  %3731 = vperm.xlu1 %9379, %v866_v0   ;;  %v868_v0 = vld [vmem:[%s10603_s20 + $0x298] sm:$0xff] }
 0x1ca   : > { %v9829_v12 = vpop.eup %9828  ;;  %9840 = vtanh.f32 %v1753_v10  ;;  %2024 = vmatprep.mubr.bf16.mxu0 %v13690_v3 }
 0x1cb   : > { %v9831_v19 = vpop.eup %9830 }
 0x1cc   : > { %v9833_v21 = vpop.eup %9832  ;;  %v1756_v22 = vpop.f32.mrb[112].mxu0  ;;  %v2427_v25 = vpack.c.bf16 %v9831_v19, %v9827_v11 }
 0x1cd   : > { %v1757_v27 = vadd.f32 %v1756_v22, %v10639_v58  ;;  %v1758_v28 = vpop.f32.mrb[113].mxu0  ;;  %v2428_v30 = vpack.c.bf16 %v9833_v21, %v9829_v12  ;;  %v1217_v21 = vpack.c.bf16 %v774_v52, %v773_v50  ;;  %v849_v22 = vld [vmem:[%s10603_s20 + $0x200] sm:$0xff] }
 0x1ce   : > { %v1759_v34 = vadd.f32 %v1758_v28, %v10644_v60  ;;  %v1760_v38 = vpop.f32.mrb[114].mxu0  ;;  %3646 = vperm.xlu0 %9378, %v849_v22  }
 0x1cf   : > { %9842 = vtanh.f32 %v1757_v27  ;;  %v1761_v41 = vadd.f32 %v1760_v38, %v10639_v58  ;;  %v1762_v43 = vpop.f32.mrb[115].mxu0  ;;  %2963 = vmatprep.mubr.bf16.mxu1 %v2428_v30 }
 0x1d0   : > { %9844 = vtanh.f32 %v1759_v34  ;;  %v1763_v45 = vadd.f32 %v1762_v43, %v10644_v60  ;;  %2964 = vmatmul.mubr.bf16.gmra.mrb[104].mxu1 %v2427_v25  ;;  %v850_v34 = vld [vmem:[%s10603_s20 + $0x208] sm:$0xff]  ;;  %v867_v43 = vld [vmem:[%s10603_s20 + $0x290] sm:$0xff] }
 0x1d1   : > { %v9835_v46 = vpop.eup %9834  ;;  %9846 = vtanh.f32 %v1761_v41  ;;  %8175 = vmatmul.mubr.msk.bf16.gmra.mrb[220].mxu0 %vm1255_vm0, %v1216_v31  ;;  %3651 = vperm.xlu1 %9379, %v850_v34  }
 0x1d2   : > { %v9837_v48 = vpop.eup %9836  ;;  %9848 = vtanh.f32 %v1763_v45  ;;  %2034 = vmatprep.mubr.bf16.mxu0 %v13690_v3  ;;  %3736 = vperm.xlu0 %9378, %v867_v43   ;;  %v852_v43 = vld [vmem:[%s10603_s20 + $0x218] sm:$0xff] }
 0x1d3   : > { %v9839_v59 = vpop.eup %9838  ;;  %v11015_v61 = vpop.f32.mrb[0].mxu1 }
 0x1d4   : > { %v9841_v5 = vpop.eup %9840  ;;  %v1766_v7 = vpop.f32.mrb[116].mxu0  ;;  %v2429_v11 = vpack.c.bf16 %v9839_v59, %v9835_v46  ;;  %v775_v46 = vld [vmem:[%s10341_s26 + $0x390] sm:$0xff] }
 0x1d5   : > { %v11020_v10 = vpop.f32.mrb[1].mxu1  ;;  %v1767_v12 = vadd.f32 %v1766_v7, %v10639_v58  ;;  %v1768_v16 = vpop.f32.mrb[117].mxu0  ;;  %v2430_v19 = vpack.c.bf16 %v9841_v5, %v9837_v48  ;;  %3741 = vperm.xlu1 %9379, %v868_v0   ;;  %v777_v0 = vld [vmem:[%s10341_s26 + $0x3a0] sm:$0xff] }
 0x1d6   : > { %13842 = vst [vmem:[#allocation26_spill] sm:$0xff] %v11020_v10  ;;  %v11023_v18 = vpop.f32.mrb[2].mxu1  ;;  %v1769_v25 = vadd.f32 %v1768_v16, %v10644_v60  ;;  %v1770_v27 = vpop.f32.mrb[118].mxu0  ;;  %v855_v10 = vld [vmem:[%s10603_s20 + $0x230] sm:$0xff] }
 0x1d7   : > { %v11027_v28 = vpop.f32.mrb[3].mxu1  ;;  %9850 = vtanh.f32 %v1767_v12  ;;  %v1771_v30 = vadd.f32 %v1770_v27, %v10639_v58  ;;  %v1772_v31 = vpop.f32.mrb[119].mxu0  ;;  %2973 = vmatprep.mubr.bf16.mxu1 %v2430_v19  ;;  %v851_v27 = vld [vmem:[%s10603_s20 + $0x210] sm:$0xff] }
 0x1d8   : > { %13843 = vst [vmem:[#allocation27_spill] sm:$0xff] %v11027_v28  ;;  %9852 = vtanh.f32 %v1769_v25  ;;  %v1773_v38 = vadd.f32 %v1772_v31, %v10644_v60  ;;  %2974 = vmatmul.mubr.bf16.gmra.mrb[108].mxu1 %v2429_v11  ;;  %v11037_v48 = vpop.permute.xlu0 %3366  ;;  %v11041_v59 = vpop.permute.xlu1 %3371  ;;  %v1218_v25 = vpack.c.bf16 %v776_v47, %v775_v46  ;;  %3656 = vperm.xlu0 %9378, %v851_v27   ;;  %v869_v47 = vld [vmem:[%s10603_s20 + $0x2a0] sm:$0xff] }
 0x1d9   : > { %v9843_v41 = vpop.eup %9842  ;;  %9854 = vtanh.f32 %v1771_v30  ;;  %8176 = vmatmul.mubr.msk.bf16.gmra.mrb[224].mxu0 %vm1255_vm0, %v1217_v21  ;;  %3661 = vperm.xlu1 %9379, %v852_v43  }
 0x1da   : > { %v9845_v45 = vpop.eup %9844  ;;  %9856 = vtanh.f32 %v1773_v38  ;;  %2044 = vmatprep.mubr.bf16.mxu0 %v13690_v3 }
 0x1db   : > { %v9847_v50 = vpop.eup %9846  ;;  %v11039_v52 = vpop.f32.mrb[4].mxu1 }
 0x1dc   : > { %v9849_v5 = vpop.eup %9848  ;;  %v1776_v7 = vpop.f32.mrb[120].mxu0  ;;  %v2431_v12 = vpack.c.bf16 %v9847_v50, %v9843_v41  ;;  %3746 = vperm.xlu0 %9378, %v869_v47  }
 0x1dd   : > { %v11044_v11 = vpop.f32.mrb[5].mxu1  ;;  %v1777_v16 = vadd.f32 %v1776_v7, %v10639_v58  ;;  %v1778_v19 = vpop.f32.mrb[121].mxu0  ;;  %v2432_v22 = vpack.c.bf16 %v9849_v5, %v9845_v45  ;;  %v778_v5 = vld [vmem:[%s10341_s26 + $0x3a8] sm:$0xff] }
 0x1de   : > { %13844 = vst [vmem:[#allocation28_spill] sm:$0xff] %v11044_v11  ;;  %v11047_v21 = vpop.f32.mrb[6].mxu1  ;;  %v1779_v30 = vadd.f32 %v1778_v19, %v10644_v60  ;;  %v1780_v31 = vpop.f32.mrb[122].mxu0  ;;  %v1219_v47 = vpack.c.bf16 %v778_v5, %v777_v0  ;;  %v871_v5 = vld [vmem:[%s10603_s20 + $0x2b0] sm:$0xff] }
 0x1df   : > { %v11051_v34 = vpop.f32.mrb[7].mxu1  ;;  %9858 = vtanh.f32 %v1777_v16  ;;  %v1781_v38 = vadd.f32 %v1780_v31, %v10639_v58  ;;  %v1782_v41 = vpop.f32.mrb[123].mxu0  ;;  %2983 = vmatprep.mubr.bf16.mxu1 %v2432_v22  ;;  %v870_v22 = vld [vmem:[%s10603_s20 + $0x2a8] sm:$0xff] }
 0x1e0   : > { %13845 = vst [vmem:[#allocation29_spill] sm:$0xff] %v11051_v34  ;;  %9860 = vtanh.f32 %v1779_v30  ;;  %v1783_v45 = vadd.f32 %v1782_v41, %v10644_v60  ;;  %2984 = vmatmul.mubr.bf16.gmra.mrb[112].mxu1 %v2431_v12  ;;  %v11061_v7 = vpop.permute.xlu0 %3456  ;;  %v11065_v12 = vpop.permute.xlu1 %3461  ;;  %3751 = vperm.xlu1 %9379, %v870_v22   ;;  %v854_v22 = vld [vmem:[%s10603_s20 + $0x228] sm:$0xff] }
 0x1e1   : > { %v9851_v46 = vpop.eup %9850  ;;  %9862 = vtanh.f32 %v1781_v38  ;;  %8177 = vmatmul.mubr.msk.bf16.gmra.mrb[228].mxu0 %vm1255_vm0, %v1218_v25  ;;  %13846 = vst [vmem:[#allocation30_spill] sm:$0xff] %v11061_v7  ;;  %13847 = vst [vmem:[#allocation31_spill] sm:$0xff] %v11065_v12  ;;  %3666 = vperm.xlu0 %9378, %v853_v53  }
 0x1e2   : > { %v9853_v50 = vpop.eup %9852  ;;  %9864 = vtanh.f32 %v1783_v45  ;;  %2054 = vmatprep.mubr.bf16.mxu0 %v13690_v3 }
 0x1e3   : > { %v9855_v16 = vpop.eup %9854  ;;  %v11063_v19 = vpop.f32.mrb[8].mxu1 }
 0x1e4   : > { %v9857_v27 = vpop.eup %9856  ;;  %v1786_v30 = vpop.f32.mrb[124].mxu0  ;;  %v2433_v31 = vpack.c.bf16 %v9855_v16, %v9851_v46  ;;  %3671 = vperm.xlu1 %9379, %v854_v22  }
 0x1e5   : > { %v11068_v25 = vpop.f32.mrb[9].mxu1  ;;  %v1787_v38 = vadd.f32 %v1786_v30, %v10639_v58  ;;  %v1788_v41 = vpop.f32.mrb[125].mxu0  ;;  %v2434_v45 = vpack.c.bf16 %v9857_v27, %v9853_v50  ;;  %v13850_v27 = vmov 0   ;;  %v780_v30 = vld [vmem:[%s10341_s26 + $0x3b8] sm:$0xff]  ;;  %3756 = vperm.xlu0 %9378, %v871_v5  }
 0x1e6   : > { %13848 = vst [vmem:[#allocation32_spill] sm:$0xff] %v11068_v25  ;;  %v11071_v43 = vpop.f32.mrb[10].mxu1  ;;  %v1789_v56 = vadd.f32 %v1788_v41, %v10644_v60  ;;  %v1790_v3 = vpop.f32.mrb[126].mxu0 }
 0x1e7   : > { %v11075_v28 = vpop.f32.mrb[11].mxu1  ;;  %9866 = vtanh.f32 %v1787_v38  ;;  %v1791_v46 = vadd.f32 %v1790_v3, %v10639_v58  ;;  %v1792_v16 = vpop.f32.mrb[127].mxu0  ;;  %2993 = vmatprep.mubr.bf16.mxu1 %v2434_v45  ;;  %v779_v3 = vld [vmem:[%s10341_s26 + $0x3b0] sm:$0xff]  ;;  %v872_v45 = vld [vmem:[%s10603_s20 + $0x2b8] sm:$0xff] }
 0x1e8   : > { %13849 = vst [vmem:[#allocation33_spill] sm:$0xff] %v11075_v28  ;;  %9868 = vtanh.f32 %v1789_v56  ;;  %v1793_v50 = vadd.f32 %v1792_v16, %v10644_v60  ;;  %2994 = vmatmul.mubr.bf16.gmra.mrb[116].mxu1 %v2433_v31  ;;  %v11085_v38 = vpop.permute.xlu0 %3376  ;;  %v11089_v31 = vpop.permute.xlu1 %3381  ;;  %3761 = vperm.xlu1 %9379, %v872_v45   ;;  %v1220_v5 = vpack.c.bf16 %v780_v30, %v779_v3  ;;  %v856_v45 = vld [vmem:[%s10603_s20 + $0x238] sm:$0xff]  ;;  %v873_v3 = vld [vmem:[%s10603_s20 + $0x2c0] sm:$0xff]  ;;  %v782_v30 = vld [vmem:[%s10341_s26 + $0x3c8] sm:$0xff] }
 0x1e9   : > { %v9859_v0 = vpop.eup %9858  ;;  %9870 = vtanh.f32 %v1791_v46  ;;  %8178 = vmatmul.mubr.msk.bf16.gmra.mrb[232].mxu0 %vm1255_vm0, %v1219_v47  ;;  %3676 = vperm.xlu0 %9378, %v855_v10  }
 0x1ea   : > { %v9861_v53 = vpop.eup %9860  ;;  %9872 = vtanh.f32 %v1793_v50  ;;  %2064 = vmatprep.mubr.bf16.mxu0 %v13850_v27 }
 0x1eb   : > { %v9863_v56 = vpop.eup %9862  ;;  %v11087_v41 = vpop.f32.mrb[12].mxu1 }
 0x1ec   : > { %v9865_v46 = vpop.eup %9864  ;;  %v1796_v16 = vpop.f32.mrb[128].mxu0  ;;  %v2435_v22 = vpack.c.bf16 %v9863_v56, %v9859_v0  ;;  %3681 = vperm.xlu1 %9379, %v856_v45  }
 0x1ed   : > { %v11092_v47 = vpop.f32.mrb[13].mxu1  ;;  %v1797_v50 = vadd.f32 %v1796_v16, %v10639_v58  ;;  %v1798_v28 = vpop.f32.mrb[129].mxu0  ;;  %v2436_v34 = vpack.c.bf16 %v9865_v46, %v9861_v53  ;;  %3766 = vperm.xlu0 %9378, %v873_v3  }
 0x1ee   : > { %13851 = vst [vmem:[#allocation34_spill] sm:$0xff] %v11092_v47  ;;  %v11095_v25 = vpop.f32.mrb[14].mxu1  ;;  %v1799_v11 = vadd.f32 %v1798_v28, %v10644_v60  ;;  %v1800_v40 = vpop.f32.mrb[130].mxu0 }
 0x1ef   : > { %v11099_v35 = vpop.f32.mrb[15].mxu1  ;;  %9874 = vtanh.f32 %v1797_v50  ;;  %v1801_v0 = vadd.f32 %v1800_v40, %v10639_v58  ;;  %v1802_v56 = vpop.f32.mrb[131].mxu0  ;;  %3003 = vmatprep.mubr.bf16.mxu1 %v2436_v34  ;;  %v781_v40 = vld [vmem:[%s10341_s26 + $0x3c0] sm:$0xff] }
 0x1f0   : > { %13852 = vst [vmem:[#allocation35_spill] sm:$0xff] %v11099_v35  ;;  %9876 = vtanh.f32 %v1799_v11  ;;  %v1803_v53 = vadd.f32 %v1802_v56, %v10644_v60  ;;  %3004 = vmatmul.mubr.bf16.gmra.mrb[120].mxu1 %v2435_v22  ;;  %v11109_v46 = vpop.permute.xlu0 %3466  ;;  %v11113_v16 = vpop.permute.xlu1 %3471  ;;  %v874_v22 = vld [vmem:[%s10603_s20 + $0x2c8] sm:$0xff]  ;;  %v1221_v47 = vpack.c.bf16 %v782_v30, %v781_v40  ;;  %v784_v30 = vld [vmem:[%s10341_s26 + $0x3d8] sm:$0xff] }
 0x1f1   : > { %v9867_v28 = vpop.eup %9866  ;;  %9878 = vtanh.f32 %v1801_v0  ;;  %8179 = vmatmul.mubr.msk.bf16.gmra.mrb[236].mxu0 %vm1255_vm0, %v1220_v5  ;;  %13853 = vst [vmem:[#allocation36_spill] sm:$0xff] %v11109_v46  ;;  %13854 = vst [vmem:[#allocation37_spill] sm:$0xff] %v11113_v16  ;;  %3771 = vperm.xlu1 %9379, %v874_v22   ;;  %v858_v22 = vld [vmem:[%s10603_s20 + $0x248] sm:$0xff]  ;;  %v863_v46 = vld [vmem:[%s10603_s20 + $0x270] sm:$0xff] }
 0x1f2   : > { %v9869_v10 = vpop.eup %9868  ;;  %9880 = vtanh.f32 %v1803_v53  ;;  %2074 = vmatprep.mubr.bf16.mxu0 %v13850_v27  ;;  %3686 = vperm.xlu0 %9378, %v857_v23  }
 0x1f3   : > { %v9871_v11 = vpop.eup %9870  ;;  %v11111_v34 = vpop.f32.mrb[16].mxu1 }
 0x1f4   : > { %v9873_v50 = vpop.eup %9872  ;;  %v1806_v5 = vpop.f32.mrb[132].mxu0  ;;  %v2437_v56 = vpack.c.bf16 %v9871_v11, %v9867_v28 }
 0x1f5   : > { %v11116_v0 = vpop.f32.mrb[17].mxu1  ;;  %v1807_v45 = vadd.f32 %v1806_v5, %v10639_v58  ;;  %v1808_v53 = vpop.f32.mrb[133].mxu0  ;;  %v2438_v3 = vpack.c.bf16 %v9873_v50, %v9869_v10  ;;  %3691 = vperm.xlu1 %9379, %v858_v22  }
 0x1f6   : > { %13855 = vst [vmem:[#allocation38_spill] sm:$0xff] %v11116_v0  ;;  %v11119_v35 = vpop.f32.mrb[18].mxu1  ;;  %v1809_v20 = vadd.f32 %v1808_v53, %v10644_v60  ;;  %v1810_v4 = vpop.f32.mrb[134].mxu0  ;;  %v657_v53 = vld [vmem:[%s11132_s2] sm:$0xff] }
 0x1f7   : > { %v11124_v1 = vpop.f32.mrb[19].mxu1  ;;  %9882 = vtanh.f32 %v1807_v45  ;;  %v1811_v28 = vadd.f32 %v1810_v4, %v10639_v58  ;;  %v1812_v11 = vpop.f32.mrb[135].mxu0  ;;  %3013 = vmatprep.mubr.bf16.mxu1 %v2438_v3  ;;  %v875_v4 = vld [vmem:[%s10603_s20 + $0x2d0] sm:$0xff]  ;;  %v658_v3 = vld [vmem:[%s11132_s2 + $0x8] sm:$0xff] }
 0x1f8   : > { %13856 = vst [vmem:[#allocation39_spill] sm:$0xff] %v11124_v1  ;;  %9884 = vtanh.f32 %v1809_v20  ;;  %v1813_v10 = vadd.f32 %v1812_v11, %v10644_v60  ;;  %3014 = vmatmul.mubr.bf16.gmra.mrb[124].mxu1 %v2437_v56  ;;  %v783_v20 = vld [vmem:[%s10341_s26 + $0x3d0] sm:$0xff]  ;;  %v11139_v50 = vpop.permute.xlu0 %3386  ;;  %3776 = vperm.xlu0 %9378, %v875_v4   ;;  %v11143_v45 = vpop.permute.xlu1 %3391  ;;  %v4208_v16 = vpack.c.bf16 %v658_v3, %v657_v53  ;;  %v878_v3 = vld [vmem:[%s10603_s20 + $0x2e8] sm:$0xff]  ;;  %s8115_s26 = sshll.u32 %s14610_s30, 3 }
 0x1f9   : > { %v9875_v23 = vpop.eup %9874  ;;  %9886 = vtanh.f32 %v1811_v28  ;;  %8180 = vmatmul.mubr.msk.bf16.gmra.mrb[240].mxu0 %vm1255_vm0, %v1221_v47  ;;  %13858 = vst [vmem:[#allocation40_spill] sm:$0xff] %v11143_v45  ;;  %v876_v28 = vld [vmem:[%s10603_s20 + $0x2d8] sm:$0xff]  ;;  %v1222_v44 = vpack.c.bf16 %v784_v30, %v783_v20  ;;  %v877_v20 = vld [vmem:[%s10603_s20 + $0x2e0] sm:$0xff]  ;;  %s655_s25 = scalar_lea.vmem %s13687_s18, %s8115_s26 }
 0x1fa   : > { %v9877_v40 = vpop.eup %9876  ;;  %9888 = vtanh.f32 %v1813_v10  ;;  %2084 = vmatprep.mubr.bf16.mxu0 %v13850_v27  ;;  %3781 = vperm.xlu1 %9379, %v876_v28   ;;  %v860_v28 = vld [vmem:[%s10603_s20 + $0x258] sm:$0xff] }
 0x1fb   : > { %v9879_v5 = vpop.eup %9878  ;;  %v11141_v56 = vpop.f32.mrb[20].mxu1  ;;  %v660_v30 = vld [vmem:[%s11132_s2 + $0x18] sm:$0xff] }
 0x1fc   : > { %v9881_v47 = vpop.eup %9880  ;;  %v1816_v11 = vpop.f32.mrb[136].mxu0  ;;  %v2439_v10 = vpack.c.bf16 %v9879_v5, %v9875_v23  ;;  %3696 = vperm.xlu0 %9378, %v859_v42  }
 0x1fd   : > { %v11148_v22 = vpop.f32.mrb[21].mxu1  ;;  %v1817_v1 = vadd.f32 %v1816_v11, %v10639_v58  ;;  %v1818_v0 = vpop.f32.mrb[137].mxu0  ;;  %v2440_v27 = vpack.c.bf16 %v9881_v47, %v9877_v40 }
 0x1fe   : > { %13859 = vst [vmem:[#allocation41_spill] sm:$0xff] %v11148_v22  ;;  %v11151_v4 = vpop.f32.mrb[22].mxu1  ;;  %v1819_v29 = vadd.f32 %v1818_v0, %v10644_v60  ;;  %v1820_v24 = vpop.f32.mrb[138].mxu0  ;;  %3701 = vperm.xlu1 %9379, %v860_v28  }
 0x1ff   : > { %v11155_v9 = vpop.f32.mrb[23].mxu1  ;;  %9890 = vtanh.f32 %v1817_v1  ;;  %v1821_v23 = vadd.f32 %v1820_v24, %v10639_v58  ;;  %v1822_v5 = vpop.f32.mrb[139].mxu0  ;;  %3023 = vmatprep.mubr.bf16.mxu1 %v2440_v27  ;;  %v659_v1 = vld [vmem:[%s11132_s2 + $0x10] sm:$0xff] }
 0x200   : > { %13860 = vst [vmem:[#allocation42_spill] sm:$0xff] %v11155_v9  ;;  %9892 = vtanh.f32 %v1819_v29  ;;  %v1823_v40 = vadd.f32 %v1822_v5, %v10644_v60  ;;  %3024 = vmatmul.mubr.bf16.gmra.mrb[128].mxu1 %v2439_v10  ;;  %v11162_v24 = vpop.permute.xlu0 %3476  ;;  %3786 = vperm.xlu0 %9378, %v877_v20   ;;  %v11168_v53 = vpop.permute.xlu1 %3481  ;;  %v861_v20 = vld [vmem:[%s10603_s20 + $0x260] sm:$0xff] }
 0x201   : > { %v9883_v0 = vpop.eup %9882  ;;  %9894 = vtanh.f32 %v1821_v23  ;;  %8181 = vmatmul.mubr.msk.bf16.gmra.mrb[244].mxu0 %vm1255_vm0, %v1222_v44  ;;  %13861 = vst [vmem:[#allocation43_spill] sm:$0xff] %v11162_v24  ;;  %13862 = vst [vmem:[#allocation44_spill] sm:$0xff] %v11168_v53 }
 0x202   : > { %v9885_v42 = vpop.eup %9884  ;;  %9896 = vtanh.f32 %v1823_v40  ;;  %8975 = vmatprep.mubr.bf16.mxu0 %v4208_v16  ;;  %3791 = vperm.xlu1 %9379, %v878_v3   ;;  %v4209_v40 = vpack.c.bf16 %v660_v30, %v659_v1  ;;  %v862_v3 = vld [vmem:[%s10603_s20 + $0x268] sm:$0xff]  ;;  %v879_v1 = vld [vmem:[%s10603_s20 + $0x2f0] sm:$0xff] }
 0x203   : > { %v9887_v29 = vpop.eup %9886  ;;  %v11166_v27 = vpop.f32.mrb[24].mxu1 }
 0x204   : > { %v9889_v47 = vpop.eup %9888  ;;  %v1826_v11 = vpop.f32.mrb[140].mxu0  ;;  %v2441_v44 = vpack.c.bf16 %v9887_v29, %v9883_v0  ;;  %3706 = vperm.xlu0 %9378, %v861_v20  }
 0x205   : > { %v11171_v10 = vpop.f32.mrb[25].mxu1  ;;  %v1827_v16 = vadd.f32 %v1826_v11, %v10639_v58  ;;  %v1828_v23 = vpop.f32.mrb[141].mxu0  ;;  %v2442_v28 = vpack.c.bf16 %v9889_v47, %v9885_v42  ;;  %v2499_v47 = vld [vmem:[%s13677_s8] sm:$0x3] }
 0x206   : > { %13863 = vst [vmem:[#allocation45_spill] sm:$0xff] %v11171_v10  ;;  %v11174_v5 = vpop.f32.mrb[26].mxu1  ;;  %v1829_v9 = vadd.f32 %v1828_v23, %v10644_v60  ;;  %v1830_v22 = vpop.f32.mrb[142].mxu0  ;;  %3711 = vperm.xlu1 %9379, %v862_v3  }
 0x207   : > { %v11178_v53 = vpop.f32.mrb[27].mxu1  ;;  %9898 = vtanh.f32 %v1827_v16  ;;  %v1831_v0 = vadd.f32 %v1830_v22, %v10639_v58  ;;  %v1832_v29 = vpop.f32.mrb[143].mxu0  ;;  %3033 = vmatprep.mubr.bf16.mxu1 %v2442_v28 }
 0x208   : > { %13864 = vst [vmem:[#allocation46_spill] sm:$0xff] %v11178_v53  ;;  %9900 = vtanh.f32 %v1829_v9  ;;  %v1833_v11 = vadd.f32 %v1832_v29, %v10644_v60  ;;  %3034 = vmatmul.mubr.bf16.gmra.mrb[132].mxu1 %v2441_v44  ;;  %v11187_v22 = vpop.permute.xlu0 %3396  ;;  %3796 = vperm.xlu0 %9378, %v879_v1   ;;  %v11191_v23 = vpop.permute.xlu1 %3401  ;;  %v880_v44 = vld [vmem:[%s10603_s20 + $0x2f8] sm:$0xff]  ;;  %v13866_v29 = vsub.s32 1, %v10624_v49 }
 0x209   : > { %v9891_v42 = vpop.eup %9890  ;;  %9902 = vtanh.f32 %v1831_v0  ;;  %8976 = vmatmul.mubr.bf16.vlgmr.msra.gmra.mrb[248].mxu0 %v4209_v40 }
 0x20a   : > { %v9893_v30 = vpop.eup %9892  ;;  %9904 = vtanh.f32 %v1833_v11  ;;  %3801 = vperm.xlu1 %9379, %v880_v44   ;;  %v11198_v3 = vrot.slane %v2499_v47, %v13866_v29  ;;  %v864_v47 = vld [vmem:[%s10603_s20 + $0x278] sm:$0xff] }
 0x20b   : > { %v9895_v9 = vpop.eup %9894  ;;  %v11189_v16 = vpop.f32.mrb[28].mxu1 }
 0x20c   : > { %v9897_v28 = vpop.eup %9896  ;;  %v1836_v20 = vpop.f32.mrb[144].mxu0  ;;  %v2443_v0 = vpack.c.bf16 %v9895_v9, %v9891_v42  ;;  %13867 = vst [vmem:[#allocation48_spill] sm:$0xff] %v11198_v3  ;;  %3716 = vperm.xlu0 %9378, %v863_v46  }
 0x20d   : > { %v11194_v40 = vpop.f32.mrb[29].mxu1  ;;  %v1837_v11 = vadd.f32 %v1836_v20, %v10639_v58  ;;  %v1838_v1 = vpop.f32.mrb[145].mxu0  ;;  %v2444_v10 = vpack.c.bf16 %v9897_v28, %v9893_v30 }
 0x20e   : > { %13865 = vst [vmem:[#allocation47_spill] sm:$0xff] %v11194_v40  ;;  %v11201_v53 = vpop.f32.mrb[30].mxu1  ;;  %v1839_v24 = vadd.f32 %v1838_v1, %v10644_v60  ;;  %v1840_v63 = vpop.f32.mrb[146].mxu0  ;;  %3721 = vperm.xlu1 %9379, %v864_v47  }
 0x20f   : > { %v2781_v12 = vpop.f32.mrb[31].mxu1  ;;  %9906 = vtanh.f32 %v1837_v11  ;;  %v1841_v42 = vadd.f32 %v1840_v63, %v10639_v58  ;;  %v1842_v44 = vpop.f32.mrb[147].mxu0  ;;  %3043 = vmatprep.mubr.bf16.mxu1 %v2444_v10 }
 0x210   : > { %v2782_v9 = vadd.f32 %v2781_v12, %v11198_v3  ;;  %9908 = vtanh.f32 %v1839_v24  ;;  %v1843_v20 = vadd.f32 %v1842_v44, %v10644_v60  ;;  %3044 = vmatmul.mubr.bf16.gmra.mrb[136].mxu1 %v2443_v0  ;;  %v11212_v46 = vpop.permute.xlu0 %3566  ;;  %v11216_v12 = vpop.permute.xlu1 %3571 }
 0x211   : > { %v9899_v30 = vpop.eup %9898  ;;  %9910 = vtanh.f32 %v1841_v42  ;;  %13869 = vst [vmem:[#allocation50_spill] sm:$0xff] %v11212_v46  ;;  %13870 = vst [vmem:[#allocation51_spill] sm:$0xff] %v11216_v12 }
 0x212   : > { %v11210_v28 = vmul.f32 %v11191_v23, %v2782_v9  ;;  %v9901_v29 = vpop.eup %9900  ;;  %9912 = vtanh.f32 %v1843_v20 }
 0x213   : > { %v9903_v63 = vpop.eup %9902  ;;  %v11214_v11 = vpop.f32.mrb[32].mxu1 }
 0x214   : > { %13868 = vst [vmem:[#allocation49_spill] sm:$0xff] %v11210_v28  ;;  %v9905_v10 = vpop.eup %9904  ;;  %v1846_v24 = vpop.f32.mrb[148].mxu0  ;;  %v2445_v0 = vpack.c.bf16 %v9903_v63, %v9899_v30 }
 0x215   : > { %v11218_v1 = vpop.f32.mrb[33].mxu1  ;;  %v1847_v44 = vadd.f32 %v1846_v24, %v10639_v58  ;;  %v1848_v42 = vpop.f32.mrb[149].mxu0  ;;  %v2446_v9 = vpack.c.bf16 %v9905_v10, %v9901_v29 }
 0x216   : > { %13871 = vst [vmem:[#allocation52_spill] sm:$0xff] %v11218_v1  ;;  %v11221_v47 = vpop.f32.mrb[34].mxu1  ;;  %v1849_v20 = vadd.f32 %v1848_v42, %v10644_v60  ;;  %v1850_v28 = vpop.f32.mrb[150].mxu0 }
 0x217   : > { %v11224_v40 = vpop.f32.mrb[35].mxu1  ;;  %9914 = vtanh.f32 %v1847_v44  ;;  %v1851_v46 = vadd.f32 %v1850_v28, %v10639_v58  ;;  %v1852_v12 = vpop.f32.mrb[151].mxu0  ;;  %3053 = vmatprep.mubr.bf16.mxu1 %v2446_v9 }
 0x218   : > { %13872 = vst [vmem:[#allocation53_spill] sm:$0xff] %v11224_v40  ;;  %9916 = vtanh.f32 %v1849_v20  ;;  %v1853_v1 = vadd.f32 %v1852_v12, %v10644_v60  ;;  %3054 = vmatmul.mubr.bf16.gmra.mrb[140].mxu1 %v2445_v0  ;;  %v11228_v24 = vpop.permute.xlu0 %3486  ;;  %v11232_v42 = vpop.permute.xlu1 %3491 }
 0x219   : > { %v9907_v30 = vpop.eup %9906  ;;  %9918 = vtanh.f32 %v1851_v46  ;;  %13873 = vst [vmem:[#allocation54_spill] sm:$0xff] %v11228_v24  ;;  %13874 = vst [vmem:[#allocation55_spill] sm:$0xff] %v11232_v42 }
 0x21a   : > { %v9909_v63 = vpop.eup %9908  ;;  %9920 = vtanh.f32 %v1853_v1 }
 0x21b   : > { %v9911_v29 = vpop.eup %9910  ;;  %v11230_v10 = vpop.f32.mrb[36].mxu1 }
 0x21c   : > { %v9913_v44 = vpop.eup %9912  ;;  %v1856_v40 = vpop.f32.mrb[152].mxu0  ;;  %v2447_v9 = vpack.c.bf16 %v9911_v29, %v9907_v30 }
 0x21d   : > { %v11234_v28 = vpop.f32.mrb[37].mxu1  ;;  %v1857_v20 = vadd.f32 %v1856_v40, %v10639_v58  ;;  %v1858_v12 = vpop.f32.mrb[153].mxu0  ;;  %v2448_v46 = vpack.c.bf16 %v9913_v44, %v9909_v63 }
 0x21e   : > { %13875 = vst [vmem:[#allocation56_spill] sm:$0xff] %v11234_v28  ;;  %v11237_v0 = vpop.f32.mrb[38].mxu1  ;;  %v1859_v1 = vadd.f32 %v1858_v12, %v10644_v60  ;;  %v1860_v55 = vpop.f32.mrb[154].mxu0 }
 0x21f   : > { %v11240_v24 = vpop.f32.mrb[39].mxu1  ;;  %9922 = vtanh.f32 %v1857_v20  ;;  %v1861_v7 = vadd.f32 %v1860_v55, %v10639_v58  ;;  %v1862_v42 = vpop.f32.mrb[155].mxu0  ;;  %3063 = vmatprep.mubr.bf16.mxu1 %v2448_v46 }
 0x220   : > { %13876 = vst [vmem:[#allocation57_spill] sm:$0xff] %v11240_v24  ;;  %9924 = vtanh.f32 %v1859_v1  ;;  %v1863_v28 = vadd.f32 %v1862_v42, %v10644_v60  ;;  %3064 = vmatmul.mubr.bf16.gmra.mrb[144].mxu1 %v2447_v9  ;;  %v11244_v29 = vpop.permute.xlu0 %3576  ;;  %v11248_v12 = vpop.permute.xlu1 %3581 }
 0x221   : > { %v9915_v30 = vpop.eup %9914  ;;  %9926 = vtanh.f32 %v1861_v7  ;;  %13877 = vst [vmem:[#allocation58_spill] sm:$0xff] %v11244_v29  ;;  %13879 = vst [vmem:[#allocation60_spill] sm:$0xff] %v11248_v12 }
 0x222   : > { %v9917_v40 = vpop.eup %9916  ;;  %9928 = vtanh.f32 %v1863_v28 }
 0x223   : > { %v9919_v63 = vpop.eup %9918  ;;  %v11246_v44 = vpop.f32.mrb[40].mxu1 }
 0x224   : > { %13878 = vst [vmem:[#allocation59_spill] sm:$0xff] %v11246_v44  ;;  %v9921_v20 = vpop.eup %9920  ;;  %v1866_v24 = vpop.f32.mrb[156].mxu0  ;;  %v2449_v46 = vpack.c.bf16 %v9919_v63, %v9915_v30 }
 0x225   : > { %v11250_v55 = vpop.f32.mrb[41].mxu1  ;;  %v1867_v1 = vadd.f32 %v1866_v24, %v10639_v58  ;;  %v1868_v42 = vpop.f32.mrb[157].mxu0  ;;  %v2450_v7 = vpack.c.bf16 %v9921_v20, %v9917_v40 }
 0x226   : > { %13880 = vst [vmem:[#allocation61_spill] sm:$0xff] %v11250_v55  ;;  %v11253_v9 = vpop.f32.mrb[42].mxu1  ;;  %v1869_v28 = vadd.f32 %v1868_v42, %v10644_v60  ;;  %v1870_v17 = vpop.f32.mrb[158].mxu0 }
 0x227   : > { %13881 = vst [vmem:[#allocation62_spill] sm:$0xff] %v11253_v9  ;;  %v11256_v29 = vpop.f32.mrb[43].mxu1  ;;  %9930 = vtanh.f32 %v1867_v1  ;;  %v1871_v8 = vadd.f32 %v1870_v17, %v10639_v58  ;;  %v1872_v12 = vpop.f32.mrb[159].mxu0  ;;  %3073 = vmatprep.mubr.bf16.mxu1 %v2450_v7 }
 0x228   : > { %13882 = vst [vmem:[#allocation63_spill] sm:$0xff] %v11256_v29  ;;  %9932 = vtanh.f32 %v1869_v28  ;;  %v1873_v55 = vadd.f32 %v1872_v12, %v10644_v60  ;;  %3074 = vmatmul.mubr.bf16.gmra.mrb[148].mxu1 %v2449_v46  ;;  %v11260_v63 = vpop.permute.xlu0 %3496  ;;  %v11264_v42 = vpop.permute.xlu1 %3501 }
 0x229   : > { %v9923_v30 = vpop.eup %9922  ;;  %9934 = vtanh.f32 %v1871_v8  ;;  %13883 = vst [vmem:[#allocation64_spill] sm:$0xff] %v11260_v63  ;;  %13885 = vst [vmem:[#allocation66_spill] sm:$0xff] %v11264_v42 }
 0x22a   : > { %v9925_v24 = vpop.eup %9924  ;;  %9936 = vtanh.f32 %v1873_v55 }
 0x22b   : > { %v9927_v40 = vpop.eup %9926  ;;  %v11262_v20 = vpop.f32.mrb[44].mxu1 }
 0x22c   : > { %13884 = vst [vmem:[#allocation65_spill] sm:$0xff] %v11262_v20  ;;  %v9929_v1 = vpop.eup %9928  ;;  %v1876_v29 = vpop.f32.mrb[160].mxu0  ;;  %v2451_v7 = vpack.c.bf16 %v9927_v40, %v9923_v30 }
 0x22d   : > { %v11266_v17 = vpop.f32.mrb[45].mxu1  ;;  %v1877_v28 = vadd.f32 %v1876_v29, %v10639_v58  ;;  %v1878_v12 = vpop.f32.mrb[161].mxu0  ;;  %v2452_v8 = vpack.c.bf16 %v9929_v1, %v9925_v24 }
 0x22e   : > { %13886 = vst [vmem:[#allocation67_spill] sm:$0xff] %v11266_v17  ;;  %v11269_v46 = vpop.f32.mrb[46].mxu1  ;;  %v1879_v55 = vadd.f32 %v1878_v12, %v10644_v60  ;;  %v1880_v14 = vpop.f32.mrb[162].mxu0 }
 0x22f   : > { %13887 = vst [vmem:[#allocation68_spill] sm:$0xff] %v11269_v46  ;;  %v11272_v63 = vpop.f32.mrb[47].mxu1  ;;  %9938 = vtanh.f32 %v1877_v28  ;;  %v1881_v2 = vadd.f32 %v1880_v14, %v10639_v58  ;;  %v1882_v42 = vpop.f32.mrb[163].mxu0  ;;  %3083 = vmatprep.mubr.bf16.mxu1 %v2452_v8 }
 0x230   : > { %13888 = vst [vmem:[#allocation69_spill] sm:$0xff] %v11272_v63  ;;  %9940 = vtanh.f32 %v1879_v55  ;;  %v1883_v17 = vadd.f32 %v1882_v42, %v10644_v60  ;;  %3084 = vmatmul.mubr.bf16.gmra.mrb[152].mxu1 %v2451_v7  ;;  %v11276_v40 = vpop.permute.xlu0 %3586  ;;  %v11280_v12 = vpop.permute.xlu1 %3591 }
 0x231   : > { %v9931_v30 = vpop.eup %9930  ;;  %9942 = vtanh.f32 %v1881_v2  ;;  %13889 = vst [vmem:[#allocation70_spill] sm:$0xff] %v11276_v40  ;;  %13891 = vst [vmem:[#allocation72_spill] sm:$0xff] %v11280_v12 }
 0x232   : > { %v9933_v29 = vpop.eup %9932  ;;  %9944 = vtanh.f32 %v1883_v17 }
 0x233   : > { %v9935_v24 = vpop.eup %9934  ;;  %v11278_v1 = vpop.f32.mrb[48].mxu1 }
 0x234   : > { %13890 = vst [vmem:[#allocation71_spill] sm:$0xff] %v11278_v1  ;;  %v9937_v28 = vpop.eup %9936  ;;  %v1886_v63 = vpop.f32.mrb[164].mxu0  ;;  %v2453_v8 = vpack.c.bf16 %v9935_v24, %v9931_v30 }
 0x235   : > { %v11282_v14 = vpop.f32.mrb[49].mxu1  ;;  %v1887_v55 = vadd.f32 %v1886_v63, %v10639_v58  ;;  %v1888_v42 = vpop.f32.mrb[165].mxu0  ;;  %v2454_v2 = vpack.c.bf16 %v9937_v28, %v9933_v29 }
 0x236   : > { %13892 = vst [vmem:[#allocation73_spill] sm:$0xff] %v11282_v14  ;;  %v11285_v7 = vpop.f32.mrb[50].mxu1  ;;  %v1889_v17 = vadd.f32 %v1888_v42, %v10644_v60  ;;  %v1890_v9 = vpop.f32.mrb[166].mxu0 }
 0x237   : > { %13893 = vst [vmem:[#allocation74_spill] sm:$0xff] %v11285_v7  ;;  %v11288_v40 = vpop.f32.mrb[51].mxu1  ;;  %9946 = vtanh.f32 %v1887_v55  ;;  %v1891_v1 = vadd.f32 %v1890_v9, %v10639_v58  ;;  %v1892_v12 = vpop.f32.mrb[167].mxu0  ;;  %3093 = vmatprep.mubr.bf16.mxu1 %v2454_v2 }
 0x238   : > { %13894 = vst [vmem:[#allocation75_spill] sm:$0xff] %v11288_v40  ;;  %9948 = vtanh.f32 %v1889_v17  ;;  %v1893_v14 = vadd.f32 %v1892_v12, %v10644_v60  ;;  %3094 = vmatmul.mubr.bf16.gmra.mrb[156].mxu1 %v2453_v8  ;;  %v11292_v24 = vpop.permute.xlu0 %3506  ;;  %v11296_v42 = vpop.permute.xlu1 %3511 }
 0x239   : > { %v9939_v30 = vpop.eup %9938  ;;  %9950 = vtanh.f32 %v1891_v1  ;;  %13895 = vst [vmem:[#allocation76_spill] sm:$0xff] %v11292_v24  ;;  %13897 = vst [vmem:[#allocation78_spill] sm:$0xff] %v11296_v42 }
 0x23a   : > { %v9941_v63 = vpop.eup %9940  ;;  %9952 = vtanh.f32 %v1893_v14 }
 0x23b   : > { %v9943_v29 = vpop.eup %9942  ;;  %v11294_v28 = vpop.f32.mrb[52].mxu1 }
 0x23c   : > { %13896 = vst [vmem:[#allocation77_spill] sm:$0xff] %v11294_v28  ;;  %v9945_v55 = vpop.eup %9944  ;;  %v1896_v40 = vpop.f32.mrb[168].mxu0  ;;  %v2455_v2 = vpack.c.bf16 %v9943_v29, %v9939_v30 }
 0x23d   : > { %v11298_v9 = vpop.f32.mrb[53].mxu1  ;;  %v1897_v17 = vadd.f32 %v1896_v40, %v10639_v58  ;;  %v1898_v12 = vpop.f32.mrb[169].mxu0  ;;  %v2456_v1 = vpack.c.bf16 %v9945_v55, %v9941_v63 }
 0x23e   : > { %13898 = vst [vmem:[#allocation79_spill] sm:$0xff] %v11298_v9  ;;  %v11301_v8 = vpop.f32.mrb[54].mxu1  ;;  %v1899_v14 = vadd.f32 %v1898_v12, %v10644_v60  ;;  %v1900_v7 = vpop.f32.mrb[170].mxu0 }
 0x23f   : > { %13899 = vst [vmem:[#allocation80_spill] sm:$0xff] %v11301_v8  ;;  %v11304_v24 = vpop.f32.mrb[55].mxu1  ;;  %9954 = vtanh.f32 %v1897_v17  ;;  %v1901_v28 = vadd.f32 %v1900_v7, %v10639_v58  ;;  %v1902_v42 = vpop.f32.mrb[171].mxu0  ;;  %3103 = vmatprep.mubr.bf16.mxu1 %v2456_v1 }
 0x240   : > { %13900 = vst [vmem:[#allocation81_spill] sm:$0xff] %v11304_v24  ;;  %9956 = vtanh.f32 %v1899_v14  ;;  %v1903_v9 = vadd.f32 %v1902_v42, %v10644_v60  ;;  %3104 = vmatmul.mubr.bf16.gmra.mrb[160].mxu1 %v2455_v2  ;;  %v11308_v29 = vpop.permute.xlu0 %3596  ;;  %v11312_v12 = vpop.permute.xlu1 %3601 }
 0x241   : > { %v9947_v30 = vpop.eup %9946  ;;  %9958 = vtanh.f32 %v1901_v28  ;;  %13901 = vst [vmem:[#allocation82_spill] sm:$0xff] %v11308_v29  ;;  %13903 = vst [vmem:[#allocation84_spill] sm:$0xff] %v11312_v12 }
 0x242   : > { %v9949_v40 = vpop.eup %9948  ;;  %9960 = vtanh.f32 %v1903_v9 }
 0x243   : > { %v9951_v63 = vpop.eup %9950  ;;  %v11310_v55 = vpop.f32.mrb[56].mxu1 }
 0x244   : > { %13902 = vst [vmem:[#allocation83_spill] sm:$0xff] %v11310_v55  ;;  %v9953_v17 = vpop.eup %9952  ;;  %v1906_v24 = vpop.f32.mrb[172].mxu0  ;;  %v2457_v1 = vpack.c.bf16 %v9951_v63, %v9947_v30 }
 0x245   : > { %v11314_v7 = vpop.f32.mrb[57].mxu1  ;;  %v1907_v14 = vadd.f32 %v1906_v24, %v10639_v58  ;;  %v1908_v42 = vpop.f32.mrb[173].mxu0  ;;  %v2458_v28 = vpack.c.bf16 %v9953_v17, %v9949_v40 }
 0x246   : > { %13904 = vst [vmem:[#allocation85_spill] sm:$0xff] %v11314_v7  ;;  %v11317_v2 = vpop.f32.mrb[58].mxu1  ;;  %v1909_v9 = vadd.f32 %v1908_v42, %v10644_v60  ;;  %v1910_v8 = vpop.f32.mrb[174].mxu0 }
 0x247   : > { %13905 = vst [vmem:[#allocation86_spill] sm:$0xff] %v11317_v2  ;;  %v11320_v29 = vpop.f32.mrb[59].mxu1  ;;  %9962 = vtanh.f32 %v1907_v14  ;;  %v1911_v55 = vadd.f32 %v1910_v8, %v10639_v58  ;;  %v1912_v12 = vpop.f32.mrb[175].mxu0  ;;  %3113 = vmatprep.mubr.bf16.mxu1 %v2458_v28 }
 0x248   : > { %13906 = vst [vmem:[#allocation87_spill] sm:$0xff] %v11320_v29  ;;  %9964 = vtanh.f32 %v1909_v9  ;;  %v1913_v7 = vadd.f32 %v1912_v12, %v10644_v60  ;;  %3114 = vmatmul.mubr.bf16.gmra.mrb[164].mxu1 %v2457_v1  ;;  %v11324_v63 = vpop.permute.xlu0 %3516  ;;  %v11328_v42 = vpop.permute.xlu1 %3521 }
 0x249   : > { %v9955_v30 = vpop.eup %9954  ;;  %9966 = vtanh.f32 %v1911_v55  ;;  %13907 = vst [vmem:[#allocation88_spill] sm:$0xff] %v11324_v63  ;;  %13909 = vst [vmem:[#allocation90_spill] sm:$0xff] %v11328_v42 }
 0x24a   : > { %v9957_v24 = vpop.eup %9956  ;;  %9968 = vtanh.f32 %v1913_v7 }
 0x24b   : > { %v9959_v40 = vpop.eup %9958  ;;  %v11326_v17 = vpop.f32.mrb[60].mxu1 }
 0x24c   : > { %13908 = vst [vmem:[#allocation89_spill] sm:$0xff] %v11326_v17  ;;  %v9961_v14 = vpop.eup %9960  ;;  %v1916_v29 = vpop.f32.mrb[176].mxu0  ;;  %v2459_v28 = vpack.c.bf16 %v9959_v40, %v9955_v30 }
 0x24d   : > { %v11330_v8 = vpop.f32.mrb[61].mxu1  ;;  %v1917_v9 = vadd.f32 %v1916_v29, %v10639_v58  ;;  %v1918_v12 = vpop.f32.mrb[177].mxu0  ;;  %v2460_v55 = vpack.c.bf16 %v9961_v14, %v9957_v24 }
 0x24e   : > { %13910 = vst [vmem:[#allocation91_spill] sm:$0xff] %v11330_v8  ;;  %v11333_v1 = vpop.f32.mrb[62].mxu1  ;;  %v1919_v7 = vadd.f32 %v1918_v12, %v10644_v60  ;;  %v1920_v2 = vpop.f32.mrb[178].mxu0 }
 0x24f   : > { %13911 = vst [vmem:[#allocation92_spill] sm:$0xff] %v11333_v1  ;;  %v11336_v63 = vpop.f32.mrb[63].mxu1  ;;  %9970 = vtanh.f32 %v1917_v9  ;;  %v1921_v17 = vadd.f32 %v1920_v2, %v10639_v58  ;;  %v1922_v42 = vpop.f32.mrb[179].mxu0  ;;  %3123 = vmatprep.mubr.bf16.mxu1 %v2460_v55 }
 0x250   : > { %13912 = vst [vmem:[#allocation93_spill] sm:$0xff] %v11336_v63  ;;  %9972 = vtanh.f32 %v1919_v7  ;;  %v1923_v8 = vadd.f32 %v1922_v42, %v10644_v60  ;;  %3124 = vmatmul.mubr.bf16.gmra.mrb[168].mxu1 %v2459_v28  ;;  %v11340_v24 = vpop.permute.xlu0 %3606  ;;  %v11344_v12 = vpop.permute.xlu1 %3611 }
 0x251   : > { %v9963_v30 = vpop.eup %9962  ;;  %9974 = vtanh.f32 %v1921_v17  ;;  %13913 = vst [vmem:[#allocation94_spill] sm:$0xff] %v11340_v24  ;;  %13915 = vst [vmem:[#allocation96_spill] sm:$0xff] %v11344_v12 }
 0x252   : > { %v9965_v29 = vpop.eup %9964  ;;  %9976 = vtanh.f32 %v1923_v8  ;;  %v881_v8 = vld [vmem:[%s10603_s20 + $0x300] sm:$0xff] }
 0x253   : > { %v9967_v40 = vpop.eup %9966  ;;  %v11342_v14 = vpop.f32.mrb[64].mxu1  ;;  %3806 = vperm.xlu0 %9378, %v881_v8  }
 0x254   : > { %13914 = vst [vmem:[#allocation95_spill] sm:$0xff] %v11342_v14  ;;  %v9969_v9 = vpop.eup %9968  ;;  %v1926_v2 = vpop.f32.mrb[180].mxu0  ;;  %v2461_v7 = vpack.c.bf16 %v9967_v40, %v9963_v30 }
 0x255   : > { %v11346_v55 = vpop.f32.mrb[65].mxu1  ;;  %v1927_v42 = vadd.f32 %v1926_v2, %v10639_v58  ;;  %v1928_v28 = vpop.f32.mrb[181].mxu0  ;;  %v2462_v17 = vpack.c.bf16 %v9969_v9, %v9965_v29 }
 0x256   : > { %13916 = vst [vmem:[#allocation97_spill] sm:$0xff] %v11346_v55  ;;  %v11349_v63 = vpop.f32.mrb[66].mxu1  ;;  %v1929_v24 = vadd.f32 %v1928_v28, %v10644_v60  ;;  %v1930_v1 = vpop.f32.mrb[182].mxu0  ;;  %v882_v55 = vld [vmem:[%s10603_s20 + $0x308] sm:$0xff] }
 0x257   : > { %13917 = vst [vmem:[#allocation98_spill] sm:$0xff] %v11349_v63  ;;  %v11353_v46 = vpop.f32.mrb[67].mxu1  ;;  %9978 = vtanh.f32 %v1927_v42  ;;  %v1931_v12 = vadd.f32 %v1930_v1, %v10639_v58  ;;  %v1932_v14 = vpop.f32.mrb[183].mxu0  ;;  %3133 = vmatprep.mubr.bf16.mxu1 %v2462_v17  ;;  %3811 = vperm.xlu1 %9379, %v882_v55  }
 0x258   : > { %13918 = vst [vmem:[#allocation99_spill] sm:$0xff] %v11353_v46  ;;  %9980 = vtanh.f32 %v1929_v24  ;;  %v1933_v30 = vadd.f32 %v1932_v14, %v10644_v60  ;;  %3134 = vmatmul.mubr.bf16.gmra.mrb[172].mxu1 %v2461_v7  ;;  %v11358_v9 = vpop.permute.xlu0 %3526  ;;  %v11362_v42 = vpop.permute.xlu1 %3531 }
 0x259   : > { %v9971_v40 = vpop.eup %9970  ;;  %9982 = vtanh.f32 %v1931_v12  ;;  %13919 = vst [vmem:[#allocation100_spill] sm:$0xff] %v11358_v9  ;;  %13921 = vst [vmem:[#allocation102_spill] sm:$0xff] %v11362_v42 }
 0x25a   : > { %v9973_v29 = vpop.eup %9972  ;;  %9984 = vtanh.f32 %v1933_v30  ;;  %v883_v30 = vld [vmem:[%s10603_s20 + $0x310] sm:$0xff] }
 0x25b   : > { %v9975_v2 = vpop.eup %9974  ;;  %v11360_v28 = vpop.f32.mrb[68].mxu1  ;;  %3816 = vperm.xlu0 %9378, %v883_v30  }
 0x25c   : > { %13920 = vst [vmem:[#allocation101_spill] sm:$0xff] %v11360_v28  ;;  %v9977_v1 = vpop.eup %9976  ;;  %v1936_v17 = vpop.f32.mrb[184].mxu0  ;;  %v2463_v14 = vpack.c.bf16 %v9975_v2, %v9971_v40 }
 0x25d   : > { %v11364_v24 = vpop.f32.mrb[69].mxu1  ;;  %v1937_v55 = vadd.f32 %v1936_v17, %v10639_v58  ;;  %v1938_v7 = vpop.f32.mrb[185].mxu0  ;;  %v2464_v12 = vpack.c.bf16 %v9977_v1, %v9973_v29 }
 0x25e   : > { %13922 = vst [vmem:[#allocation103_spill] sm:$0xff] %v11364_v24  ;;  %v11367_v8 = vpop.f32.mrb[70].mxu1  ;;  %v1939_v46 = vadd.f32 %v1938_v7, %v10644_v60  ;;  %v1940_v9 = vpop.f32.mrb[186].mxu0  ;;  %v884_v24 = vld [vmem:[%s10603_s20 + $0x318] sm:$0xff] }
 0x25f   : > { %13923 = vst [vmem:[#allocation104_spill] sm:$0xff] %v11367_v8  ;;  %v11371_v63 = vpop.f32.mrb[71].mxu1  ;;  %9986 = vtanh.f32 %v1937_v55  ;;  %v1941_v42 = vadd.f32 %v1940_v9, %v10639_v58  ;;  %v1942_v28 = vpop.f32.mrb[187].mxu0  ;;  %3143 = vmatprep.mubr.bf16.mxu1 %v2464_v12  ;;  %3821 = vperm.xlu1 %9379, %v884_v24  }
 0x260   : > { %13924 = vst [vmem:[#allocation105_spill] sm:$0xff] %v11371_v63  ;;  %9988 = vtanh.f32 %v1939_v46  ;;  %v1943_v40 = vadd.f32 %v1942_v28, %v10644_v60  ;;  %3144 = vmatmul.mubr.bf16.gmra.mrb[176].mxu1 %v2463_v14  ;;  %v11376_v1 = vpop.permute.xlu0 %3616  ;;  %v11380_v55 = vpop.permute.xlu1 %3621 }
 0x261   : > { %v9979_v2 = vpop.eup %9978  ;;  %9990 = vtanh.f32 %v1941_v42  ;;  %13925 = vst [vmem:[#allocation106_spill] sm:$0xff] %v11376_v1  ;;  %13927 = vst [vmem:[#allocation108_spill] sm:$0xff] %v11380_v55 }
 0x262   : > { %v9981_v29 = vpop.eup %9980  ;;  %9992 = vtanh.f32 %v1943_v40  ;;  %v885_v40 = vld [vmem:[%s10603_s20 + $0x320] sm:$0xff] }
 0x263   : > { %v9983_v17 = vpop.eup %9982  ;;  %v11378_v7 = vpop.f32.mrb[72].mxu1  ;;  %3826 = vperm.xlu0 %9378, %v885_v40  }
 0x264   : > { %13926 = vst [vmem:[#allocation107_spill] sm:$0xff] %v11378_v7  ;;  %v9985_v9 = vpop.eup %9984  ;;  %v1946_v12 = vpop.f32.mrb[188].mxu0  ;;  %v2465_v28 = vpack.c.bf16 %v9983_v17, %v9979_v2  ;;  %v9490_v2 = vld [vmem:[%s10546_s17] sm:$0xff]  }
 0x265   : > { %v11382_v46 = vpop.f32.mrb[73].mxu1  ;;  %v1947_v24 = vadd.f32 %v1946_v12, %v10639_v58  ;;  %v1948_v14 = vpop.f32.mrb[189].mxu0  ;;  %v2466_v30 = vpack.c.bf16 %v9985_v9, %v9981_v29  ;;  %8983 = vmatprep.mubr.msk.bf16.mxu0 %vm1255_vm0, %v9490_v2 }
 0x266   : > { %13928 = vst [vmem:[#allocation109_spill] sm:$0xff] %v11382_v46  ;;  %v11385_v42 = vpop.f32.mrb[74].mxu1  ;;  %v1949_v63 = vadd.f32 %v1948_v14, %v10644_v60  ;;  %v1950_v1 = vpop.f32.mrb[190].mxu0  ;;  %v886_v46 = vld [vmem:[%s10603_s20 + $0x328] sm:$0xff] }
 0x267   : > { %13929 = vst [vmem:[#allocation110_spill] sm:$0xff] %v11385_v42  ;;  %v11389_v7 = vpop.f32.mrb[75].mxu1  ;;  %9994 = vtanh.f32 %v1947_v24  ;;  %v1951_v55 = vadd.f32 %v1950_v1, %v10639_v58  ;;  %v1952_v8 = vpop.f32.mrb[191].mxu0  ;;  %3153 = vmatprep.mubr.bf16.mxu1 %v2466_v30  ;;  %3831 = vperm.xlu1 %9379, %v886_v46  }
 0x268   : > { %13930 = vst [vmem:[#allocation111_spill] sm:$0xff] %v11389_v7  ;;  %9996 = vtanh.f32 %v1949_v63  ;;  %v1953_v17 = vadd.f32 %v1952_v8, %v10644_v60  ;;  %3154 = vmatmul.mubr.bf16.gmra.mrb[180].mxu1 %v2465_v28  ;;  %v11396_v12 = vpop.permute.xlu0 %3536  ;;  %v11400_v14 = vpop.permute.xlu1 %3541 }
 0x269   : > { %v9987_v29 = vpop.eup %9986  ;;  %9998 = vtanh.f32 %v1951_v55  ;;  %13931 = vst [vmem:[#allocation112_spill] sm:$0xff] %v11396_v12  ;;  %13933 = vst [vmem:[#allocation114_spill] sm:$0xff] %v11400_v14 }
 0x26a   : > { %v9989_v9 = vpop.eup %9988  ;;  %10000 = vtanh.f32 %v1953_v17  ;;  %v887_v17 = vld [vmem:[%s10603_s20 + $0x330] sm:$0xff] }
 0x26b   : > { %v9991_v24 = vpop.eup %9990  ;;  %v11398_v1 = vpop.f32.mrb[76].mxu1  ;;  %3836 = vperm.xlu0 %9378, %v887_v17  }
 0x26c   : > { %13932 = vst [vmem:[#allocation113_spill] sm:$0xff] %v11398_v1  ;;  %v9993_v30 = vpop.eup %9992  ;;  %v1956_v63 = vpop.f32.mrb[192].mxu0  ;;  %v2467_v46 = vpack.c.bf16 %v9991_v24, %v9987_v29 }
 0x26d   : > { %v11402_v8 = vpop.f32.mrb[77].mxu1  ;;  %v1957_v55 = vadd.f32 %v1956_v63, %v10639_v58  ;;  %v1958_v28 = vpop.f32.mrb[193].mxu0  ;;  %v2468_v2 = vpack.c.bf16 %v9993_v30, %v9989_v9 }
 0x26e   : > { %13934 = vst [vmem:[#allocation115_spill] sm:$0xff] %v11402_v8  ;;  %v11405_v40 = vpop.f32.mrb[78].mxu1  ;;  %v1959_v7 = vadd.f32 %v1958_v28, %v10644_v60  ;;  %v1960_v12 = vpop.f32.mrb[194].mxu0  ;;  %v888_v8 = vld [vmem:[%s10603_s20 + $0x338] sm:$0xff] }
 0x26f   : > { %13935 = vst [vmem:[#allocation116_spill] sm:$0xff] %v11405_v40  ;;  %v11409_v42 = vpop.f32.mrb[79].mxu1  ;;  %10002 = vtanh.f32 %v1957_v55  ;;  %v1961_v14 = vadd.f32 %v1960_v12, %v10639_v58  ;;  %v1962_v1 = vpop.f32.mrb[195].mxu0  ;;  %3163 = vmatprep.mubr.bf16.mxu1 %v2468_v2  ;;  %3841 = vperm.xlu1 %9379, %v888_v8  }
 0x270   : > { %13936 = vst [vmem:[#allocation117_spill] sm:$0xff] %v11409_v42  ;;  %10004 = vtanh.f32 %v1959_v7  ;;  %v1963_v29 = vadd.f32 %v1962_v1, %v10644_v60  ;;  %3164 = vmatmul.mubr.bf16.gmra.mrb[184].mxu1 %v2467_v46  ;;  %v11414_v30 = vpop.permute.xlu0 %3626  ;;  %v11418_v55 = vpop.permute.xlu1 %3631 }
 0x271   : > { %v9995_v24 = vpop.eup %9994  ;;  %10006 = vtanh.f32 %v1961_v14  ;;  %13937 = vst [vmem:[#allocation118_spill] sm:$0xff] %v11414_v30  ;;  %13939 = vst [vmem:[#allocation120_spill] sm:$0xff] %v11418_v55 }
 0x272   : > { %v9997_v9 = vpop.eup %9996  ;;  %10008 = vtanh.f32 %v1963_v29  ;;  %v889_v29 = vld [vmem:[%s10603_s20 + $0x340] sm:$0xff] }
 0x273   : > { %v9999_v63 = vpop.eup %9998  ;;  %v11416_v28 = vpop.f32.mrb[80].mxu1  ;;  %3846 = vperm.xlu0 %9378, %v889_v29  }
 0x274   : > { %13938 = vst [vmem:[#allocation119_spill] sm:$0xff] %v11416_v28  ;;  %v10001_v12 = vpop.eup %10000  ;;  %v1966_v2 = vpop.f32.mrb[196].mxu0  ;;  %v2469_v1 = vpack.c.bf16 %v9999_v63, %v9995_v24 }
 0x275   : > { %v11420_v7 = vpop.f32.mrb[81].mxu1  ;;  %v1967_v8 = vadd.f32 %v1966_v2, %v10639_v58  ;;  %v1968_v46 = vpop.f32.mrb[197].mxu0  ;;  %v2470_v14 = vpack.c.bf16 %v10001_v12, %v9997_v9 }
 0x276   : > { %13940 = vst [vmem:[#allocation121_spill] sm:$0xff] %v11420_v7  ;;  %v11423_v17 = vpop.f32.mrb[82].mxu1  ;;  %v1969_v42 = vadd.f32 %v1968_v46, %v10644_v60  ;;  %v1970_v30 = vpop.f32.mrb[198].mxu0  ;;  %v890_v7 = vld [vmem:[%s10603_s20 + $0x348] sm:$0xff] }
 0x277   : > { %13941 = vst [vmem:[#allocation122_spill] sm:$0xff] %v11423_v17  ;;  %v11427_v40 = vpop.f32.mrb[83].mxu1  ;;  %10010 = vtanh.f32 %v1967_v8  ;;  %v1971_v55 = vadd.f32 %v1970_v30, %v10639_v58  ;;  %v1972_v28 = vpop.f32.mrb[199].mxu0  ;;  %3173 = vmatprep.mubr.bf16.mxu1 %v2470_v14  ;;  %3851 = vperm.xlu1 %9379, %v890_v7  }
 0x278   : > { %13942 = vst [vmem:[#allocation123_spill] sm:$0xff] %v11427_v40  ;;  %10012 = vtanh.f32 %v1969_v42  ;;  %v1973_v24 = vadd.f32 %v1972_v28, %v10644_v60  ;;  %3174 = vmatmul.mubr.bf16.gmra.mrb[188].mxu1 %v2469_v1  ;;  %v11432_v12 = vpop.permute.xlu0 %3546  ;;  %v11436_v8 = vpop.permute.xlu1 %3551 }
 0x279   : > { %v10003_v63 = vpop.eup %10002  ;;  %10014 = vtanh.f32 %v1971_v55  ;;  %13943 = vst [vmem:[#allocation124_spill] sm:$0xff] %v11432_v12  ;;  %13945 = vst [vmem:[#allocation126_spill] sm:$0xff] %v11436_v8 }
 0x27a   : > { %v10005_v9 = vpop.eup %10004  ;;  %10016 = vtanh.f32 %v1973_v24  ;;  %v891_v24 = vld [vmem:[%s10603_s20 + $0x350] sm:$0xff] }
 0x27b   : > { %v10007_v2 = vpop.eup %10006  ;;  %v11434_v46 = vpop.f32.mrb[84].mxu1  ;;  %3856 = vperm.xlu0 %9378, %v891_v24  }
 0x27c   : > { %13944 = vst [vmem:[#allocation125_spill] sm:$0xff] %v11434_v46  ;;  %v10009_v30 = vpop.eup %10008  ;;  %v1976_v14 = vpop.f32.mrb[200].mxu0  ;;  %v2471_v28 = vpack.c.bf16 %v10007_v2, %v10003_v63 }
 0x27d   : > { %v11438_v42 = vpop.f32.mrb[85].mxu1  ;;  %v1977_v7 = vadd.f32 %v1976_v14, %v10639_v58  ;;  %v1978_v1 = vpop.f32.mrb[201].mxu0  ;;  %v2472_v55 = vpack.c.bf16 %v10009_v30, %v10005_v9 }
 0x27e   : > { %13946 = vst [vmem:[#allocation127_spill] sm:$0xff] %v11438_v42  ;;  %v11441_v29 = vpop.f32.mrb[86].mxu1  ;;  %v1979_v40 = vadd.f32 %v1978_v1, %v10644_v60  ;;  %v1980_v12 = vpop.f32.mrb[202].mxu0  ;;  %v892_v42 = vld [vmem:[%s10603_s20 + $0x358] sm:$0xff] }
 0x27f   : > { %13947 = vst [vmem:[#allocation128_spill] sm:$0xff] %v11441_v29  ;;  %v11445_v17 = vpop.f32.mrb[87].mxu1  ;;  %10018 = vtanh.f32 %v1977_v7  ;;  %v1981_v8 = vadd.f32 %v1980_v12, %v10639_v58  ;;  %v1982_v46 = vpop.f32.mrb[203].mxu0  ;;  %3183 = vmatprep.mubr.bf16.mxu1 %v2472_v55  ;;  %3861 = vperm.xlu1 %9379, %v892_v42  }
 0x280   : > { %13948 = vst [vmem:[#allocation129_spill] sm:$0xff] %v11445_v17  ;;  %10020 = vtanh.f32 %v1979_v40  ;;  %v1983_v63 = vadd.f32 %v1982_v46, %v10644_v60  ;;  %3184 = vmatmul.mubr.bf16.gmra.mrb[192].mxu1 %v2471_v28  ;;  %v11450_v30 = vpop.permute.xlu0 %3636  ;;  %v11454_v7 = vpop.permute.xlu1 %3641 }
 0x281   : > { %v10011_v2 = vpop.eup %10010  ;;  %10022 = vtanh.f32 %v1981_v8  ;;  %13949 = vst [vmem:[#allocation130_spill] sm:$0xff] %v11450_v30  ;;  %13951 = vst [vmem:[#allocation132_spill] sm:$0xff] %v11454_v7 }
 0x282   : > { %v10013_v9 = vpop.eup %10012  ;;  %10024 = vtanh.f32 %v1983_v63  ;;  %v893_v63 = vld [vmem:[%s10603_s20 + $0x360] sm:$0xff] }
 0x283   : > { %v10015_v14 = vpop.eup %10014  ;;  %v11452_v1 = vpop.f32.mrb[88].mxu1  ;;  %3866 = vperm.xlu0 %9378, %v893_v63  }
 0x284   : > { %13950 = vst [vmem:[#allocation131_spill] sm:$0xff] %v11452_v1  ;;  %v10017_v12 = vpop.eup %10016  ;;  %v1986_v55 = vpop.f32.mrb[204].mxu0  ;;  %v2473_v46 = vpack.c.bf16 %v10015_v14, %v10011_v2 }
 0x285   : > { %v11456_v40 = vpop.f32.mrb[89].mxu1  ;;  %v1987_v42 = vadd.f32 %v1986_v55, %v10639_v58  ;;  %v1988_v28 = vpop.f32.mrb[205].mxu0  ;;  %v2474_v8 = vpack.c.bf16 %v10017_v12, %v10013_v9 }
 0x286   : > { %13952 = vst [vmem:[#allocation133_spill] sm:$0xff] %v11456_v40  ;;  %v11459_v24 = vpop.f32.mrb[90].mxu1  ;;  %v1989_v17 = vadd.f32 %v1988_v28, %v10644_v60  ;;  %v1990_v30 = vpop.f32.mrb[206].mxu0  ;;  %v894_v40 = vld [vmem:[%s10603_s20 + $0x368] sm:$0xff] }
 0x287   : > { %13953 = vst [vmem:[#allocation134_spill] sm:$0xff] %v11459_v24  ;;  %v11463_v29 = vpop.f32.mrb[91].mxu1  ;;  %10026 = vtanh.f32 %v1987_v42  ;;  %v1991_v7 = vadd.f32 %v1990_v30, %v10639_v58  ;;  %v1992_v1 = vpop.f32.mrb[207].mxu0  ;;  %3193 = vmatprep.mubr.bf16.mxu1 %v2474_v8  ;;  %3871 = vperm.xlu1 %9379, %v894_v40  }
 0x288   : > { %13954 = vst [vmem:[#allocation135_spill] sm:$0xff] %v11463_v29  ;;  %10028 = vtanh.f32 %v1989_v17  ;;  %v1993_v2 = vadd.f32 %v1992_v1, %v10644_v60  ;;  %3194 = vmatmul.mubr.bf16.gmra.mrb[196].mxu1 %v2473_v46  ;;  %v11468_v12 = vpop.permute.xlu0 %3556  ;;  %v11472_v42 = vpop.permute.xlu1 %3561  ;;  %v895_v29 = vld [vmem:[%s10603_s20 + $0x370] sm:$0xff] }
 0x289   : > { %v10019_v14 = vpop.eup %10018  ;;  %10030 = vtanh.f32 %v1991_v7  ;;  %13955 = vst [vmem:[#allocation136_spill] sm:$0xff] %v11468_v12  ;;  %13957 = vst [vmem:[#allocation138_spill] sm:$0xff] %v11472_v42  ;;  %3876 = vperm.xlu0 %9378, %v895_v29  }
 0x28a   : > { %v10021_v9 = vpop.eup %10020  ;;  %10032 = vtanh.f32 %v1993_v2 }
 0x28b   : > { %v10023_v55 = vpop.eup %10022  ;;  %v11470_v28 = vpop.f32.mrb[92].mxu1 }
 0x28c   : > { %13956 = vst [vmem:[#allocation137_spill] sm:$0xff] %v11470_v28  ;;  %v10025_v30 = vpop.eup %10024  ;;  %v1996_v8 = vpop.f32.mrb[208].mxu0  ;;  %v2475_v17 = vpack.c.bf16 %v10023_v55, %v10019_v14 }
 0x28d   : > { %v2937_v63 = vpop.f32.mrb[93].mxu1  ;;  %v1997_v1 = vadd.f32 %v1996_v8, %v10639_v58  ;;  %v1998_v7 = vpop.f32.mrb[209].mxu0  ;;  %v2476_v2 = vpack.c.bf16 %v10025_v30, %v10021_v9 }
 0x28e   : > { %v2938_v40 = vadd.f32 %v2937_v63, %v11198_v3  ;;  %v11476_v46 = vpop.f32.mrb[94].mxu1  ;;  %v1999_v24 = vadd.f32 %v1998_v7, %v10644_v60  ;;  %v2000_v44 = vpop.f32.mrb[210].mxu0  ;;  %v896_v63 = vld [vmem:[%s10603_s20 + $0x378] sm:$0xff] }
 0x28f   : > { %v2941_v28 = vpop.f32.mrb[95].mxu1  ;;  %10034 = vtanh.f32 %v1997_v1  ;;  %v2001_v14 = vadd.f32 %v2000_v44, %v10639_v58  ;;  %v2002_v8 = vpop.f32.mrb[211].mxu0  ;;  %3203 = vmatprep.mubr.bf16.mxu1 %v2476_v2  ;;  %3881 = vperm.xlu1 %9379, %v896_v63  }
 0x290   : > { %v11481_v20 = vmul.f32 %v11468_v12, %v2938_v40  ;;  %v2942_v55 = vadd.f32 %v2941_v28, %v11198_v3  ;;  %10036 = vtanh.f32 %v1999_v24  ;;  %v2003_v9 = vadd.f32 %v2002_v8, %v10644_v60  ;;  %3204 = vmatmul.mubr.bf16.gmra.mrb[200].mxu1 %v2475_v17 }
 0x291   : > { %v10027_v30 = vpop.eup %10026  ;;  %10038 = vtanh.f32 %v2001_v14 }
 0x292   : > { %13958 = vst [vmem:[#allocation139_spill] sm:$0xff] %v11481_v20  ;;  %v11488_v29 = vmul.f32 %v11472_v42, %v2942_v55  ;;  %v10029_v1 = vpop.eup %10028  ;;  %10040 = vtanh.f32 %v2003_v9  ;;  %v897_v20 = vld [vmem:[%s10603_s20 + $0x380] sm:$0xff] }
 0x293   : > { %v10031_v40 = vpop.eup %10030  ;;  %v11490_v44 = vpop.f32.mrb[96].mxu1  ;;  %3886 = vperm.xlu0 %9378, %v897_v20  }
 0x294   : > { %13959 = vst [vmem:[#allocation140_spill] sm:$0xff] %v11488_v29  ;;  %13960 = vst [vmem:[#allocation141_spill] sm:$0xff] %v11490_v44  ;;  %v10033_v28 = vpop.eup %10032  ;;  %v2006_v7 = vpop.f32.mrb[212].mxu0  ;;  %v2477_v24 = vpack.c.bf16 %v10031_v40, %v10027_v30 }
 0x295   : > { %v11492_v2 = vpop.f32.mrb[97].mxu1  ;;  %v2007_v17 = vadd.f32 %v2006_v7, %v10639_v58  ;;  %v2008_v8 = vpop.f32.mrb[213].mxu0  ;;  %v2478_v14 = vpack.c.bf16 %v10033_v28, %v10029_v1 }
 0x296   : > { %13961 = vst [vmem:[#allocation142_spill] sm:$0xff] %v11492_v2  ;;  %v11495_v63 = vpop.f32.mrb[98].mxu1  ;;  %v2009_v55 = vadd.f32 %v2008_v8, %v10644_v60  ;;  %v2010_v29 = vpop.f32.mrb[214].mxu0  ;;  %v898_v2 = vld [vmem:[%s10603_s20 + $0x388] sm:$0xff] }
 0x297   : > { %13962 = vst [vmem:[#allocation143_spill] sm:$0xff] %v11495_v63  ;;  %v11499_v9 = vpop.f32.mrb[99].mxu1  ;;  %10042 = vtanh.f32 %v2007_v17  ;;  %v2011_v44 = vadd.f32 %v2010_v29, %v10639_v58  ;;  %v2012_v42 = vpop.f32.mrb[215].mxu0  ;;  %3213 = vmatprep.mubr.bf16.mxu1 %v2478_v14  ;;  %3891 = vperm.xlu1 %9379, %v898_v2   ;;  %v899_v2 = vld [vmem:[%s10603_s20 + $0x390] sm:$0xff] }
 0x298   : > { %13963 = vst [vmem:[#allocation144_spill] sm:$0xff] %v11499_v9  ;;  %10044 = vtanh.f32 %v2009_v55  ;;  %v2013_v30 = vadd.f32 %v2012_v42, %v10644_v60  ;;  %3214 = vmatmul.mubr.bf16.gmra.mrb[204].mxu1 %v2477_v24  ;;  %3896 = vperm.xlu0 %9378, %v899_v2  }
 0x299   : > { %v10035_v1 = vpop.eup %10034  ;;  %10046 = vtanh.f32 %v2011_v44 }
 0x29a   : > { %v10037_v40 = vpop.eup %10036  ;;  %10048 = vtanh.f32 %v2013_v30 }
 0x29b   : > { %v10039_v28 = vpop.eup %10038  ;;  %v11504_v7 = vpop.f32.mrb[100].mxu1 }
 0x29c   : > { %13964 = vst [vmem:[#allocation145_spill] sm:$0xff] %v11504_v7  ;;  %v10041_v20 = vpop.eup %10040  ;;  %v2016_v17 = vpop.f32.mrb[216].mxu0  ;;  %v2479_v8 = vpack.c.bf16 %v10039_v28, %v10035_v1 }
 0x29d   : > { %v11506_v29 = vpop.f32.mrb[101].mxu1  ;;  %v2017_v14 = vadd.f32 %v2016_v17, %v10639_v58  ;;  %v2018_v55 = vpop.f32.mrb[217].mxu0  ;;  %v2480_v24 = vpack.c.bf16 %v10041_v20, %v10037_v40 }
 0x29e   : > { %13965 = vst [vmem:[#allocation146_spill] sm:$0xff] %v11506_v29  ;;  %v11509_v42 = vpop.f32.mrb[102].mxu1  ;;  %v2019_v44 = vadd.f32 %v2018_v55, %v10644_v60  ;;  %v2020_v9 = vpop.f32.mrb[218].mxu0  ;;  %v900_v29 = vld [vmem:[%s10603_s20 + $0x398] sm:$0xff] }
 0x29f   : > { %13966 = vst [vmem:[#allocation147_spill] sm:$0xff] %v11509_v42  ;;  %v11513_v30 = vpop.f32.mrb[103].mxu1  ;;  %10050 = vtanh.f32 %v2017_v14  ;;  %v2021_v63 = vadd.f32 %v2020_v9, %v10639_v58  ;;  %v2022_v7 = vpop.f32.mrb[219].mxu0  ;;  %3223 = vmatprep.mubr.bf16.mxu1 %v2480_v24  ;;  %3901 = vperm.xlu1 %9379, %v900_v29  }
 0x2a0   : > { %13967 = vst [vmem:[#allocation148_spill] sm:$0xff] %v11513_v30  ;;  %10052 = vtanh.f32 %v2019_v44  ;;  %v2023_v1 = vadd.f32 %v2022_v7, %v10644_v60  ;;  %3224 = vmatmul.mubr.bf16.gmra.mrb[208].mxu1 %v2479_v8  ;;  %v11518_v20 = vpop.permute.xlu0 %3726  ;;  %v11522_v14 = vpop.permute.xlu1 %3731 }
 0x2a1   : > { %v10043_v28 = vpop.eup %10042  ;;  %10054 = vtanh.f32 %v2021_v63  ;;  %13968 = vst [vmem:[#allocation149_spill] sm:$0xff] %v11518_v20  ;;  %13970 = vst [vmem:[#allocation151_spill] sm:$0xff] %v11522_v14 }
 0x2a2   : > { %v10045_v40 = vpop.eup %10044  ;;  %10056 = vtanh.f32 %v2023_v1  ;;  %v901_v1 = vld [vmem:[%s10603_s20 + $0x3a0] sm:$0xff] }
 0x2a3   : > { %v10047_v17 = vpop.eup %10046  ;;  %v11520_v55 = vpop.f32.mrb[104].mxu1  ;;  %3906 = vperm.xlu0 %9378, %v901_v1  }
 0x2a4   : > { %13969 = vst [vmem:[#allocation150_spill] sm:$0xff] %v11520_v55  ;;  %v10049_v9 = vpop.eup %10048  ;;  %v2026_v24 = vpop.f32.mrb[220].mxu0  ;;  %v2481_v7 = vpack.c.bf16 %v10047_v17, %v10043_v28 }
 0x2a5   : > { %v11524_v2 = vpop.f32.mrb[105].mxu1  ;;  %v2027_v29 = vadd.f32 %v2026_v24, %v10639_v58  ;;  %v2028_v8 = vpop.f32.mrb[221].mxu0  ;;  %v2482_v63 = vpack.c.bf16 %v10049_v9, %v10045_v40 }
 0x2a6   : > { %13971 = vst [vmem:[#allocation152_spill] sm:$0xff] %v11524_v2  ;;  %v11527_v44 = vpop.f32.mrb[106].mxu1  ;;  %v2029_v30 = vadd.f32 %v2028_v8, %v10644_v60  ;;  %v2030_v20 = vpop.f32.mrb[222].mxu0  ;;  %v902_v2 = vld [vmem:[%s10603_s20 + $0x3a8] sm:$0xff] }
 0x2a7   : > { %13972 = vst [vmem:[#allocation153_spill] sm:$0xff] %v11527_v44  ;;  %v11531_v42 = vpop.f32.mrb[107].mxu1  ;;  %10058 = vtanh.f32 %v2027_v29  ;;  %v2031_v14 = vadd.f32 %v2030_v20, %v10639_v58  ;;  %v2032_v55 = vpop.f32.mrb[223].mxu0  ;;  %3233 = vmatprep.mubr.bf16.mxu1 %v2482_v63  ;;  %3911 = vperm.xlu1 %9379, %v902_v2  }
 0x2a8   : > { %13973 = vst [vmem:[#allocation154_spill] sm:$0xff] %v11531_v42  ;;  %10060 = vtanh.f32 %v2029_v30  ;;  %v2033_v28 = vadd.f32 %v2032_v55, %v10644_v60  ;;  %3234 = vmatmul.mubr.bf16.gmra.mrb[212].mxu1 %v2481_v7  ;;  %v11536_v9 = vpop.permute.xlu0 %3646  ;;  %v11540_v29 = vpop.permute.xlu1 %3651 }
 0x2a9   : > { %v10051_v17 = vpop.eup %10050  ;;  %10062 = vtanh.f32 %v2031_v14  ;;  %13974 = vst [vmem:[#allocation155_spill] sm:$0xff] %v11536_v9  ;;  %13976 = vst [vmem:[#allocation157_spill] sm:$0xff] %v11540_v29 }
 0x2aa   : > { %v10053_v40 = vpop.eup %10052  ;;  %10064 = vtanh.f32 %v2033_v28  ;;  %v903_v28 = vld [vmem:[%s10603_s20 + $0x3b0] sm:$0xff] }
 0x2ab   : > { %v10055_v24 = vpop.eup %10054  ;;  %v11538_v8 = vpop.f32.mrb[108].mxu1  ;;  %3916 = vperm.xlu0 %9378, %v903_v28  }
 0x2ac   : > { %13975 = vst [vmem:[#allocation156_spill] sm:$0xff] %v11538_v8  ;;  %v10057_v20 = vpop.eup %10056  ;;  %v2036_v63 = vpop.f32.mrb[224].mxu0  ;;  %v2483_v55 = vpack.c.bf16 %v10055_v24, %v10051_v17 }
 0x2ad   : > { %v11542_v30 = vpop.f32.mrb[109].mxu1  ;;  %v2037_v2 = vadd.f32 %v2036_v63, %v10639_v58  ;;  %v2038_v7 = vpop.f32.mrb[225].mxu0  ;;  %v2484_v14 = vpack.c.bf16 %v10057_v20, %v10053_v40 }
 0x2ae   : > { %13977 = vst [vmem:[#allocation158_spill] sm:$0xff] %v11542_v30  ;;  %v11545_v1 = vpop.f32.mrb[110].mxu1  ;;  %v2039_v42 = vadd.f32 %v2038_v7, %v10644_v60  ;;  %v2040_v9 = vpop.f32.mrb[226].mxu0  ;;  %v904_v30 = vld [vmem:[%s10603_s20 + $0x3b8] sm:$0xff] }
 0x2af   : > { %13978 = vst [vmem:[#allocation159_spill] sm:$0xff] %v11545_v1  ;;  %v11549_v44 = vpop.f32.mrb[111].mxu1  ;;  %10066 = vtanh.f32 %v2037_v2  ;;  %v2041_v29 = vadd.f32 %v2040_v9, %v10639_v58  ;;  %v2042_v8 = vpop.f32.mrb[227].mxu0  ;;  %3243 = vmatprep.mubr.bf16.mxu1 %v2484_v14  ;;  %3921 = vperm.xlu1 %9379, %v904_v30  }
 0x2b0   : > { %13979 = vst [vmem:[#allocation160_spill] sm:$0xff] %v11549_v44  ;;  %10068 = vtanh.f32 %v2039_v42  ;;  %v2043_v17 = vadd.f32 %v2042_v8, %v10644_v60  ;;  %3244 = vmatmul.mubr.bf16.gmra.mrb[216].mxu1 %v2483_v55  ;;  %v11554_v20 = vpop.permute.xlu0 %3736  ;;  %v11558_v2 = vpop.permute.xlu1 %3741 }
 0x2b1   : > { %v10059_v24 = vpop.eup %10058  ;;  %10070 = vtanh.f32 %v2041_v29  ;;  %13980 = vst [vmem:[#allocation161_spill] sm:$0xff] %v11554_v20  ;;  %13982 = vst [vmem:[#allocation163_spill] sm:$0xff] %v11558_v2 }
 0x2b2   : > { %v10061_v40 = vpop.eup %10060  ;;  %10072 = vtanh.f32 %v2043_v17  ;;  %v905_v17 = vld [vmem:[%s10603_s20 + $0x3c0] sm:$0xff] }
 0x2b3   : > { %v10063_v63 = vpop.eup %10062  ;;  %v11556_v7 = vpop.f32.mrb[112].mxu1  ;;  %3926 = vperm.xlu0 %9378, %v905_v17  }
 0x2b4   : > { %13981 = vst [vmem:[#allocation162_spill] sm:$0xff] %v11556_v7  ;;  %v10065_v9 = vpop.eup %10064  ;;  %v2046_v14 = vpop.f32.mrb[228].mxu0  ;;  %v2485_v8 = vpack.c.bf16 %v10063_v63, %v10059_v24 }
 0x2b5   : > { %v11560_v42 = vpop.f32.mrb[113].mxu1  ;;  %v2047_v30 = vadd.f32 %v2046_v14, %v10639_v58  ;;  %v2048_v55 = vpop.f32.mrb[229].mxu0  ;;  %v2486_v29 = vpack.c.bf16 %v10065_v9, %v10061_v40 }
 0x2b6   : > { %13983 = vst [vmem:[#allocation164_spill] sm:$0xff] %v11560_v42  ;;  %v11563_v28 = vpop.f32.mrb[114].mxu1  ;;  %v2049_v44 = vadd.f32 %v2048_v55, %v10644_v60  ;;  %v2050_v20 = vpop.f32.mrb[230].mxu0  ;;  %v906_v42 = vld [vmem:[%s10603_s20 + $0x3c8] sm:$0xff] }
 0x2b7   : > { %13984 = vst [vmem:[#allocation165_spill] sm:$0xff] %v11563_v28  ;;  %v11567_v1 = vpop.f32.mrb[115].mxu1  ;;  %10074 = vtanh.f32 %v2047_v30  ;;  %v2051_v2 = vadd.f32 %v2050_v20, %v10639_v58  ;;  %v2052_v7 = vpop.f32.mrb[231].mxu0  ;;  %3253 = vmatprep.mubr.bf16.mxu1 %v2486_v29  ;;  %3931 = vperm.xlu1 %9379, %v906_v42  }
 0x2b8   : > { %13985 = vst [vmem:[#allocation166_spill] sm:$0xff] %v11567_v1  ;;  %10076 = vtanh.f32 %v2049_v44  ;;  %v2053_v24 = vadd.f32 %v2052_v7, %v10644_v60  ;;  %3254 = vmatmul.mubr.bf16.gmra.mrb[220].mxu1 %v2485_v8  ;;  %v11572_v9 = vpop.permute.xlu0 %3656  ;;  %v11576_v20 = vpop.permute.xlu1 %3661 }
 0x2b9   : > { %v10067_v63 = vpop.eup %10066  ;;  %10078 = vtanh.f32 %v2051_v2  ;;  %13986 = vst [vmem:[#allocation167_spill] sm:$0xff] %v11572_v9  ;;  %13988 = vst [vmem:[#allocation169_spill] sm:$0xff] %v11576_v20 }
 0x2ba   : > { %v10069_v40 = vpop.eup %10068  ;;  %10080 = vtanh.f32 %v2053_v24  ;;  %v907_v24 = vld [vmem:[%s10603_s20 + $0x3d0] sm:$0xff] }
 0x2bb   : > { %v10071_v14 = vpop.eup %10070  ;;  %v11574_v30 = vpop.f32.mrb[116].mxu1  ;;  %3936 = vperm.xlu0 %9378, %v907_v24  }
 0x2bc   : > { %13987 = vst [vmem:[#allocation168_spill] sm:$0xff] %v11574_v30  ;;  %v10073_v55 = vpop.eup %10072  ;;  %v2056_v29 = vpop.f32.mrb[232].mxu0  ;;  %v2487_v7 = vpack.c.bf16 %v10071_v14, %v10067_v63  ;;  %v908_v30 = vld [vmem:[%s10603_s20 + $0x3d8] sm:$0xff] }
 0x2bd   : > { %v11578_v44 = vpop.f32.mrb[117].mxu1  ;;  %v2057_v42 = vadd.f32 %v2056_v29, %v10639_v58  ;;  %v2058_v8 = vpop.f32.mrb[233].mxu0  ;;  %v2488_v2 = vpack.c.bf16 %v10073_v55, %v10069_v40  ;;  %3941 = vperm.xlu1 %9379, %v908_v30  }
 0x2be   : > { %13989 = vst [vmem:[#allocation170_spill] sm:$0xff] %v11578_v44  ;;  %v11581_v17 = vpop.f32.mrb[118].mxu1  ;;  %v2059_v1 = vadd.f32 %v2058_v8, %v10644_v60  ;;  %v2060_v9 = vpop.f32.mrb[234].mxu0 }
 0x2bf   : > { %v11585_v28 = vpop.f32.mrb[119].mxu1  ;;  %10082 = vtanh.f32 %v2057_v42  ;;  %v2061_v20 = vadd.f32 %v2060_v9, %v10639_v58  ;;  %v2062_v12 = vpop.f32.mrb[235].mxu0  ;;  %3263 = vmatprep.mubr.bf16.mxu1 %v2488_v2 }
 0x2c0   : > { %13990 = vst [vmem:[#allocation171_spill] sm:$0xff] %v11585_v28  ;;  %10084 = vtanh.f32 %v2059_v1  ;;  %v2063_v63 = vadd.f32 %v2062_v12, %v10644_v60  ;;  %3264 = vmatmul.mubr.bf16.gmra.mrb[224].mxu1 %v2487_v7  ;;  %v11590_v55 = vpop.permute.xlu0 %3746  ;;  %v11594_v24 = vpop.permute.xlu1 %3751 }
 0x2c1   : > { %v10075_v14 = vpop.eup %10074  ;;  %10086 = vtanh.f32 %v2061_v20  ;;  %13991 = vst [vmem:[#allocation172_spill] sm:$0xff] %v11590_v55  ;;  %13993 = vst [vmem:[#allocation174_spill] sm:$0xff] %v11594_v24 }
 0x2c2   : > { %v10077_v40 = vpop.eup %10076  ;;  %10088 = vtanh.f32 %v2063_v63 }
 0x2c3   : > { %v10079_v29 = vpop.eup %10078  ;;  %v11592_v8 = vpop.f32.mrb[120].mxu1 }
 0x2c4   : > { %13992 = vst [vmem:[#allocation173_spill] sm:$0xff] %v11592_v8  ;;  %v10081_v42 = vpop.eup %10080  ;;  %v2066_v9 = vpop.f32.mrb[236].mxu0  ;;  %v2489_v30 = vpack.c.bf16 %v10079_v29, %v10075_v14 }
 0x2c5   : > { %v11596_v28 = vpop.f32.mrb[121].mxu1  ;;  %v2067_v1 = vadd.f32 %v2066_v9, %v10639_v58  ;;  %v2068_v12 = vpop.f32.mrb[237].mxu0  ;;  %v2490_v20 = vpack.c.bf16 %v10081_v42, %v10077_v40 }
 0x2c6   : > { %13994 = vst [vmem:[#allocation175_spill] sm:$0xff] %v11596_v28  ;;  %v11599_v7 = vpop.f32.mrb[122].mxu1  ;;  %v2069_v2 = vadd.f32 %v2068_v12, %v10644_v60  ;;  %v2070_v63 = vpop.f32.mrb[238].mxu0 }
 0x2c7   : > { %13995 = vst [vmem:[#allocation176_spill] sm:$0xff] %v11599_v7  ;;  %v11602_v44 = vpop.f32.mrb[123].mxu1  ;;  %10090 = vtanh.f32 %v2067_v1  ;;  %v2071_v55 = vadd.f32 %v2070_v63, %v10639_v58  ;;  %v2072_v24 = vpop.f32.mrb[239].mxu0  ;;  %3273 = vmatprep.mubr.bf16.mxu1 %v2490_v20 }
 0x2c8   : > { %13996 = vst [vmem:[#allocation177_spill] sm:$0xff] %v11602_v44  ;;  %10092 = vtanh.f32 %v2069_v2  ;;  %v2073_v28 = vadd.f32 %v2072_v24, %v10644_v60  ;;  %3274 = vmatmul.mubr.bf16.gmra.mrb[228].mxu1 %v2489_v30  ;;  %v11606_v9 = vpop.permute.xlu0 %3666  ;;  %v11610_v12 = vpop.permute.xlu1 %3671 }
 0x2c9   : > { %v10083_v14 = vpop.eup %10082  ;;  %10094 = vtanh.f32 %v2071_v55  ;;  %13997 = vst [vmem:[#allocation178_spill] sm:$0xff] %v11606_v9  ;;  %13998 = vst [vmem:[#allocation179_spill] sm:$0xff] %v11610_v12 }
 0x2ca   : > { %v10085_v29 = vpop.eup %10084  ;;  %10096 = vtanh.f32 %v2073_v28 }
 0x2cb   : > { %v10087_v40 = vpop.eup %10086  ;;  %v11608_v42 = vpop.f32.mrb[124].mxu1 }
 0x2cc   : > { %v10089_v1 = vpop.eup %10088  ;;  %v2076_v44 = vpop.f32.mrb[240].mxu0  ;;  %v2491_v20 = vpack.c.bf16 %v10087_v40, %v10083_v14 }
 0x2cd   : > { %v11612_v63 = vpop.f32.mrb[125].mxu1  ;;  %v2077_v2 = vadd.f32 %v2076_v44, %v10639_v58  ;;  %v2078_v24 = vpop.f32.mrb[241].mxu0  ;;  %v2492_v55 = vpack.c.bf16 %v10089_v1, %v10085_v29 }
 0x2ce   : > { %13999 = vst [vmem:[#allocation180_spill] sm:$0xff] %v11612_v63  ;;  %v11615_v30 = vpop.f32.mrb[126].mxu1  ;;  %v2079_v28 = vadd.f32 %v2078_v24, %v10644_v60  ;;  %v2080_v7 = vpop.f32.mrb[242].mxu0 }
 0x2cf   : > { %14000 = vst [vmem:[#allocation181_spill] sm:$0xff] %v11615_v30  ;;  %v11618_v9 = vpop.f32.mrb[127].mxu1  ;;  %10098 = vtanh.f32 %v2077_v2  ;;  %v2081_v8 = vadd.f32 %v2080_v7, %v10639_v58  ;;  %v2082_v12 = vpop.f32.mrb[243].mxu0  ;;  %3283 = vmatprep.mubr.bf16.mxu1 %v2492_v55 }
 0x2d0   : > { %14001 = vst [vmem:[#allocation182_spill] sm:$0xff] %v11618_v9  ;;  %10100 = vtanh.f32 %v2079_v28  ;;  %v2083_v63 = vadd.f32 %v2082_v12, %v10644_v60  ;;  %3284 = vmatmul.mubr.bf16.gmra.mrb[232].mxu1 %v2491_v20  ;;  %v11622_v40 = vpop.permute.xlu0 %3756  ;;  %v11626_v24 = vpop.permute.xlu1 %3761 }
 0x2d1   : > { %v10091_v14 = vpop.eup %10090  ;;  %10102 = vtanh.f32 %v2081_v8  ;;  %14002 = vst [vmem:[#allocation183_spill] sm:$0xff] %v11622_v40  ;;  %14004 = vst [vmem:[#allocation185_spill] sm:$0xff] %v11626_v24 }
 0x2d2   : > { %v10093_v44 = vpop.eup %10092  ;;  %10104 = vtanh.f32 %v2083_v63 }
 0x2d3   : > { %v10095_v29 = vpop.eup %10094  ;;  %v11624_v1 = vpop.f32.mrb[128].mxu1 }
 0x2d4   : > { %14003 = vst [vmem:[#allocation184_spill] sm:$0xff] %v11624_v1  ;;  %v10097_v2 = vpop.eup %10096  ;;  %v2086_v9 = vpop.f32.mrb[244].mxu0  ;;  %v2493_v55 = vpack.c.bf16 %v10095_v29, %v10091_v14 }
 0x2d5   : > { %v11628_v7 = vpop.f32.mrb[129].mxu1  ;;  %v2087_v28 = vadd.f32 %v2086_v9, %v10639_v58  ;;  %v2088_v12 = vpop.f32.mrb[245].mxu0  ;;  %v2494_v8 = vpack.c.bf16 %v10097_v2, %v10093_v44 }
 0x2d6   : > { %14005 = vst [vmem:[#allocation186_spill] sm:$0xff] %v11628_v7  ;;  %v11631_v20 = vpop.f32.mrb[130].mxu1  ;;  %v2089_v63 = vadd.f32 %v2088_v12, %v10644_v60  ;;  %v2090_v30 = vpop.f32.mrb[246].mxu0 }
 0x2d7   : > { %14006 = vst [vmem:[#allocation187_spill] sm:$0xff] %v11631_v20  ;;  %v11634_v40 = vpop.f32.mrb[131].mxu1  ;;  %10106 = vtanh.f32 %v2087_v28  ;;  %v2091_v1 = vadd.f32 %v2090_v30, %v10639_v58  ;;  %v2092_v24 = vpop.f32.mrb[247].mxu0  ;;  %3293 = vmatprep.mubr.bf16.mxu1 %v2494_v8 }
 0x2d8   : > { %14007 = vst [vmem:[#allocation188_spill] sm:$0xff] %v11634_v40  ;;  %10108 = vtanh.f32 %v2089_v63  ;;  %v2093_v7 = vadd.f32 %v2092_v24, %v10644_v60  ;;  %3294 = vmatmul.mubr.bf16.gmra.mrb[236].mxu1 %v2493_v55  ;;  %v11638_v29 = vpop.permute.xlu0 %3676  ;;  %v11642_v12 = vpop.permute.xlu1 %3681 }
 0x2d9   : > { %v10099_v14 = vpop.eup %10098  ;;  %10110 = vtanh.f32 %v2091_v1  ;;  %14008 = vst [vmem:[#allocation189_spill] sm:$0xff] %v11638_v29  ;;  %14009 = vst [vmem:[#allocation190_spill] sm:$0xff] %v11642_v12 }
 0x2da   : > { %v10101_v9 = vpop.eup %10100  ;;  %10112 = vtanh.f32 %v2093_v7 }
 0x2db   : > { %v10103_v44 = vpop.eup %10102  ;;  %v11640_v2 = vpop.f32.mrb[132].mxu1 }
 0x2dc   : > { %v10105_v28 = vpop.eup %10104  ;;  %v11644_v40 = vpop.f32.mrb[133].mxu1  ;;  %v2495_v30 = vpack.c.bf16 %v10103_v44, %v10099_v14 }
 0x2dd   : > { %14010 = vst [vmem:[#allocation191_spill] sm:$0xff] %v11644_v40  ;;  %v8977_v58 = vpop.f32.mrb[248].mxu0  ;;  %v11646_v8 = vpop.f32.mrb[134].mxu1  ;;  %v2496_v24 = vpack.c.bf16 %v10105_v28, %v10101_v9 }
 0x2de   : > { %v4292_v60 = vpop.f32.mrb[249].mxu0  ;;  %v11648_v55 = vpop.f32.mrb[135].mxu1 }
 0x2df   : > { %14011 = vst [vmem:[#allocation192_spill] sm:$0xff] %v11648_v55  ;;  %v8978_v1 = vpop.f32.mrb[250].mxu0  ;;  %3303 = vmatprep.mubr.bf16.mxu1 %v2496_v24  ;;  %v11650_v40 = vpop.permute.xlu0 %3766  ;;  %v9492_v55 = vld [vmem:[%s10546_s17 + $0x10] sm:$0xff]  }
 0x2e0   : > { %v4308_v7 = vpack.c.bf16 %v8978_v1, %v8977_v58  ;;  %v4295_v63 = vpop.f32.mrb[251].mxu0  ;;  %3304 = vmatmul.mubr.bf16.gmra.mrb[240].mxu1 %v2495_v30  ;;  %14012 = vst [vmem:[#allocation193_spill] sm:$0xff] %v11650_v40  ;;  %v11656_v24 = vpop.permute.xlu1 %3771 }
 0x2e1   : > { %v4307_v29 = vpack.c.bf16 %v4295_v63, %v4292_v60  ;;  %v10107_v20 = vpop.eup %10106  ;;  %14014 = vst [vmem:[#allocation195_spill] sm:$0xff] %v11656_v24  ;;  %v9491_v63 = vld [vmem:[%s10546_s17 + $0x8] sm:$0xff]  }
 0x2e2   : > { %v10109_v12 = vpop.eup %10108  ;;  %v9495_v24 = vld [vmem:[%s10546_s17 + $0x28] sm:$0xff]  }
 0x2e3   : > { %8979 = vmatprep.subr.bf16.mxu0 %v4307_v29  ;;  %v10111_v14 = vpop.eup %10110  ;;  %v11652_v44 = vpop.f32.mrb[136].mxu1 }
 0x2e4   : > { %8980 = vmatpush3.bf16.msra.mxu0 %v4307_v29  ;;  %v10113_v9 = vpop.eup %10112  ;;  %v11654_v28 = vpop.f32.mrb[137].mxu1  ;;  %v2497_v58 = vpack.c.bf16 %v10111_v14, %v10107_v20 }
 0x2e5   : > { %14013 = vst [vmem:[#allocation194_spill] sm:$0xff] %v11654_v28  ;;  %8981 = vmatprep.subr.bf16.mxu0 %v4308_v7  ;;  %v11658_v60 = vpop.f32.mrb[138].mxu1  ;;  %v2498_v30 = vpack.c.bf16 %v10113_v9, %v10109_v12  ;;  %v11664_v29 = vpop.permute.xlu0 %3686 }
 0x2e6   : > { %v11660_v1 = vpop.f32.mrb[139].mxu1  ;;  %14016 = vst [vmem:[#allocation197_spill] sm:$0xff] %v11664_v29  ;;  %v11668_v20 = vpop.permute.xlu1 %3691  ;;  %v9498_v29 = vld [vmem:[%s10546_s17 + $0x40] sm:$0xff]  }
 0x2e7   : > { %14015 = vst [vmem:[#allocation196_spill] sm:$0xff] %v11660_v1  ;;  %3313 = vmatprep.mubr.bf16.mxu1 %v2498_v30  ;;  %14017 = vst [vmem:[#allocation198_spill] sm:$0xff] %v11668_v20  ;;  %v9494_v1 = vld [vmem:[%s10546_s17 + $0x20] sm:$0xff]  }
 0x2e8   : > { %8982 = vmatpush3.bf16.msra.mxu0 %v4308_v7  ;;  %3314 = vmatmul.mubr.bf16.gmra.mrb[244].mxu1 %v2497_v58  ;;  %v9493_v58 = vld [vmem:[%s10546_s17 + $0x18] sm:$0xff]  }
 0x2e9   : > { %6059 = vmatprep.mubr.bf16.mxu1 %v10855_v6  ;;  %v11680_v30 = vpop.permute.xlu0 %3776 }
 0x2ea   : > { %14020 = vst [vmem:[#allocation201_spill] sm:$0xff] %v11680_v30  ;;  %v11683_v28 = vpop.permute.xlu1 %3781 }
 0x2eb   : > { %8984 = vmatmul.mubr.msk.bf16.vlgmr.msra.gmra.mrb[252].mxu0 %vm1255_vm0, %v9491_v63  ;;  %v11670_v14 = vpop.f32.mrb[140].mxu1  ;;  %14021 = vst [vmem:[#allocation202_spill] sm:$0xff] %v11683_v28  ;;  %v9496_v28 = vld [vmem:[%s10546_s17 + $0x30] sm:$0xff]  }
 0x2ec   : > { %8987 = vmatprep.mubr.msk.bf16.mxu0 %vm1255_vm0, %v9492_v55  ;;  %v11673_v12 = vpop.f32.mrb[141].mxu1 }
 0x2ed   : > { %14018 = vst [vmem:[#allocation199_spill] sm:$0xff] %v11673_v12  ;;  %v11675_v9 = vpop.f32.mrb[142].mxu1  ;;  %v11691_v12 = vpop.permute.xlu0 %3696 }
 0x2ee   : > { %v11677_v7 = vpop.f32.mrb[143].mxu1  ;;  %14024 = vst [vmem:[#allocation205_spill] sm:$0xff] %v11691_v12  ;;  %v11698_v40 = vpop.permute.xlu1 %3701 }
 0x2ef   : > { %14019 = vst [vmem:[#allocation200_spill] sm:$0xff] %v11677_v7  ;;  %14027 = vst [vmem:[#allocation208_spill] sm:$0xff] %v11698_v40  ;;  %v9497_v40 = vld [vmem:[%s10546_s17 + $0x38] sm:$0xff]  }
 0x2f3   : > { %8988 = vmatmul.mubr.msk.bf16.gmra.mrb[0].mxu0 %vm1255_vm0, %v9493_v58  ;;  %v11686_v63 = vpop.f32.mrb[144].mxu1  ;;  %v11702_v58 = vpop.permute.xlu0 %3786 }
 0x2f4   : > { %14022 = vst [vmem:[#allocation203_spill] sm:$0xff] %v11686_v63  ;;  %8991 = vmatprep.mubr.msk.bf16.mxu0 %vm1255_vm0, %v9494_v1  ;;  %v11689_v55 = vpop.f32.mrb[145].mxu1  ;;  %14028 = vst [vmem:[#allocation209_spill] sm:$0xff] %v11702_v58 }
 0x2f5   : > { %14023 = vst [vmem:[#allocation204_spill] sm:$0xff] %v11689_v55  ;;  %v11693_v6 = vpop.f32.mrb[146].mxu1  ;;  %v11709_v55 = vpop.permute.xlu1 %3791 }
 0x2f6   : > { %14025 = vst [vmem:[#allocation206_spill] sm:$0xff] %v11693_v6  ;;  %v11695_v7 = vpop.f32.mrb[147].mxu1  ;;  %14030 = vst [vmem:[#allocation211_spill] sm:$0xff] %v11709_v55  ;;  %v9499_v6 = vld [vmem:[%s10546_s17 + $0x48] sm:$0xff]  }
 0x2f7   : > { %14026 = vst [vmem:[#allocation207_spill] sm:$0xff] %v11695_v7  ;;  %v11717_v12 = vpop.permute.xlu0 %3706 }
 0x2f8   : > { %14033 = vst [vmem:[#allocation214_spill] sm:$0xff] %v11717_v12  ;;  %v9500_v12 = vld [vmem:[%s10546_s17 + $0x50] sm:$0xff]  }
 0x2fb   : > { %8992 = vmatmul.mubr.msk.bf16.gmra.mrb[4].mxu0 %vm1255_vm0, %v9495_v24  ;;  %v11704_v30 = vpop.f32.mrb[148].mxu1  ;;  %v11720_v24 = vpop.permute.xlu1 %3711 }
 0x2fc   : > { %8995 = vmatprep.mubr.msk.bf16.mxu0 %vm1255_vm0, %v9496_v28  ;;  %v11707_v1 = vpop.f32.mrb[149].mxu1  ;;  %14034 = vst [vmem:[#allocation215_spill] sm:$0xff] %v11720_v24 }
 0x2fd   : > { %14029 = vst [vmem:[#allocation210_spill] sm:$0xff] %v11707_v1  ;;  %v11711_v20 = vpop.f32.mrb[150].mxu1 }
 0x2fe   : > { %14031 = vst [vmem:[#allocation212_spill] sm:$0xff] %v11711_v20  ;;  %v11713_v7 = vpop.f32.mrb[151].mxu1 }
 0x2ff   : > { %14032 = vst [vmem:[#allocation213_spill] sm:$0xff] %v11713_v7  ;;  %v11731_v7 = vpop.permute.xlu0 %3796  ;;  %v11735_v20 = vpop.permute.xlu1 %3801 }
 0x300   : > { %14039 = vst [vmem:[#allocation220_spill] sm:$0xff] %v11731_v7  ;;  %14040 = vst [vmem:[#allocation221_spill] sm:$0xff] %v11735_v20 }
 0x303   : > { %8996 = vmatmul.mubr.msk.bf16.gmra.mrb[8].mxu0 %vm1255_vm0, %v9497_v40  ;;  %v11722_v58 = vpop.f32.mrb[152].mxu1 }
 0x304   : > { %14035 = vst [vmem:[#allocation216_spill] sm:$0xff] %v11722_v58  ;;  %8999 = vmatprep.mubr.msk.bf16.mxu0 %vm1255_vm0, %v9498_v29  ;;  %v11725_v28 = vpop.f32.mrb[153].mxu1  ;;  %v9501_v58 = vld [vmem:[%s10546_s17 + $0x58] sm:$0xff]  }
 0x305   : > { %14036 = vst [vmem:[#allocation217_spill] sm:$0xff] %v11725_v28  ;;  %v11727_v1 = vpop.f32.mrb[154].mxu1  ;;  %v11741_v28 = vpop.permute.xlu0 %3716 }
 0x306   : > { %14037 = vst [vmem:[#allocation218_spill] sm:$0xff] %v11727_v1  ;;  %v11729_v55 = vpop.f32.mrb[155].mxu1  ;;  %14042 = vst [vmem:[#allocation223_spill] sm:$0xff] %v11741_v28  ;;  %v11746_v1 = vpop.permute.xlu1 %3721 }
 0x307   : > { %14038 = vst [vmem:[#allocation219_spill] sm:$0xff] %v11729_v55  ;;  %14044 = vst [vmem:[#allocation225_spill] sm:$0xff] %v11746_v1 }
 0x30b   : > { %9000 = vmatmul.mubr.msk.bf16.gmra.mrb[12].mxu0 %vm1255_vm0, %v9499_v6  ;;  %v11738_v40 = vpop.f32.mrb[156].mxu1 }
 0x30c   : > { %14041 = vst [vmem:[#allocation222_spill] sm:$0xff] %v11738_v40  ;;  %9003 = vmatprep.mubr.msk.bf16.mxu0 %vm1255_vm0, %v9500_v12  ;;  %v3097_v29 = vpop.f32.mrb[157].mxu1  ;;  %v9502_v40 = vld [vmem:[%s10546_s17 + $0x60] sm:$0xff]  }
 0x30d   : > { %v3098_v24 = vadd.f32 %v3097_v29, %v11198_v3  ;;  %v11744_v55 = vpop.f32.mrb[158].mxu1 }
 0x30e   : > { %14043 = vst [vmem:[#allocation224_spill] sm:$0xff] %v11744_v55  ;;  %v3101_v7 = vpop.f32.mrb[159].mxu1 }
 0x30f   : > { %v11750_v20 = vmul.f32 %v11741_v28, %v3098_v24  ;;  %v3102_v6 = vadd.f32 %v3101_v7, %v11198_v3  ;;  %v9504_v7 = vld [vmem:[%s10546_s17 + $0x70] sm:$0xff]   ;;  %v9506_v3 = vld [vmem:[%s10546_s17 + $0x80] sm:$0xff]  }
 0x310   : > { %v9546_v28 = vld [vmem:[%s10546_s17 + $0x1c0] sm:$0xff]  }
 0x311   : > { %14045 = vst [vmem:[#allocation226_spill] sm:$0xff] %v11750_v20  ;;  %v11755_v12 = vmul.f32 %v11746_v1, %v3102_v6  ;;  %v9503_v20 = vld [vmem:[%s10546_s17 + $0x68] sm:$0xff]   ;;  %v9545_v1 = vld [vmem:[%s10546_s17 + $0x1b8] sm:$0xff]  }
 0x313   : > { %14046 = vst [vmem:[#allocation227_spill] sm:$0xff] %v11755_v12  ;;  %9004 = vmatmul.mubr.msk.bf16.gmra.mrb[16].mxu0 %vm1255_vm0, %v9501_v58  ;;  %v11758_v29 = vpop.f32.mrb[160].mxu1 }
 0x314   : > { %14047 = vst [vmem:[#allocation228_spill] sm:$0xff] %v11758_v29  ;;  %9007 = vmatprep.mubr.msk.bf16.mxu0 %vm1255_vm0, %v9502_v40  ;;  %v11761_v55 = vpop.f32.mrb[161].mxu1  ;;  %v9543_v29 = vld [vmem:[%s10546_s17 + $0x1a8] sm:$0xff]  }
 0x315   : > { %14048 = vst [vmem:[#allocation229_spill] sm:$0xff] %v11761_v55  ;;  %v11763_v63 = vpop.f32.mrb[162].mxu1  ;;  %v9505_v55 = vld [vmem:[%s10546_s17 + $0x78] sm:$0xff]  }
 0x316   : > { %14049 = vst [vmem:[#allocation230_spill] sm:$0xff] %v11763_v63  ;;  %v11765_v24 = vpop.f32.mrb[163].mxu1 }
 0x317   : > { %14050 = vst [vmem:[#allocation231_spill] sm:$0xff] %v11765_v24 }
 0x31b   : > { %9008 = vmatmul.mubr.msk.bf16.gmra.mrb[20].mxu0 %vm1255_vm0, %v9503_v20  ;;  %v11770_v6 = vpop.f32.mrb[164].mxu1 }
 0x31c   : > { %14051 = vst [vmem:[#allocation232_spill] sm:$0xff] %v11770_v6  ;;  %9011 = vmatprep.mubr.msk.bf16.mxu0 %vm1255_vm0, %v9504_v7  ;;  %v11773_v58 = vpop.f32.mrb[165].mxu1 }
 0x31d   : > { %14052 = vst [vmem:[#allocation233_spill] sm:$0xff] %v11773_v58  ;;  %v11775_v12 = vpop.f32.mrb[166].mxu1  ;;  %v9507_v58 = vld [vmem:[%s10546_s17 + $0x88] sm:$0xff]  }
 0x31e   : > { %14053 = vst [vmem:[#allocation234_spill] sm:$0xff] %v11775_v12  ;;  %v11777_v40 = vpop.f32.mrb[167].mxu1  ;;  %v9508_v12 = vld [vmem:[%s10546_s17 + $0x90] sm:$0xff]  }
 0x31f   : > { %14054 = vst [vmem:[#allocation235_spill] sm:$0xff] %v11777_v40 }
 0x323   : > { %9012 = vmatmul.mubr.msk.bf16.gmra.mrb[24].mxu0 %vm1255_vm0, %v9505_v55  ;;  %v11782_v24 = vpop.f32.mrb[168].mxu1 }
 0x324   : > { %14055 = vst [vmem:[#allocation236_spill] sm:$0xff] %v11782_v24  ;;  %9015 = vmatprep.mubr.msk.bf16.mxu0 %vm1255_vm0, %v9506_v3  ;;  %v11785_v20 = vpop.f32.mrb[169].mxu1 }
 0x325   : > { %14056 = vst [vmem:[#allocation237_spill] sm:$0xff] %v11785_v20  ;;  %v11787_v63 = vpop.f32.mrb[170].mxu1  ;;  %v9509_v20 = vld [vmem:[%s10546_s17 + $0x98] sm:$0xff]  }
 0x326   : > { %14057 = vst [vmem:[#allocation238_spill] sm:$0xff] %v11787_v63  ;;  %v11789_v7 = vpop.f32.mrb[171].mxu1  ;;  %v9510_v63 = vld [vmem:[%s10546_s17 + $0xa0] sm:$0xff]  }
 0x327   : > { %14058 = vst [vmem:[#allocation239_spill] sm:$0xff] %v11789_v7 }
 0x32b   : > { %9016 = vmatmul.mubr.msk.bf16.gmra.mrb[28].mxu0 %vm1255_vm0, %v9507_v58  ;;  %v11794_v40 = vpop.f32.mrb[172].mxu1 }
 0x32c   : > { %14059 = vst [vmem:[#allocation240_spill] sm:$0xff] %v11794_v40  ;;  %9019 = vmatprep.mubr.msk.bf16.mxu0 %vm1255_vm0, %v9508_v12  ;;  %v11797_v55 = vpop.f32.mrb[173].mxu1 }
 0x32d   : > { %14060 = vst [vmem:[#allocation241_spill] sm:$0xff] %v11797_v55  ;;  %v11799_v24 = vpop.f32.mrb[174].mxu1  ;;  %v9511_v55 = vld [vmem:[%s10546_s17 + $0xa8] sm:$0xff]  }
 0x32e   : > { %14061 = vst [vmem:[#allocation242_spill] sm:$0xff] %v11799_v24  ;;  %v11801_v3 = vpop.f32.mrb[175].mxu1  ;;  %v9512_v24 = vld [vmem:[%s10546_s17 + $0xb0] sm:$0xff]  }
 0x32f   : > { %14062 = vst [vmem:[#allocation243_spill] sm:$0xff] %v11801_v3 }
 0x333   : > { %9020 = vmatmul.mubr.msk.bf16.gmra.mrb[32].mxu0 %vm1255_vm0, %v9509_v20  ;;  %v11806_v7 = vpop.f32.mrb[176].mxu1 }
 0x334   : > { %14063 = vst [vmem:[#allocation244_spill] sm:$0xff] %v11806_v7  ;;  %9023 = vmatprep.mubr.msk.bf16.mxu0 %vm1255_vm0, %v9510_v63  ;;  %v11809_v58 = vpop.f32.mrb[177].mxu1 }
 0x335   : > { %14064 = vst [vmem:[#allocation245_spill] sm:$0xff] %v11809_v58  ;;  %v11811_v40 = vpop.f32.mrb[178].mxu1  ;;  %v9513_v58 = vld [vmem:[%s10546_s17 + $0xb8] sm:$0xff]  }
 0x336   : > { %14065 = vst [vmem:[#allocation246_spill] sm:$0xff] %v11811_v40  ;;  %v11813_v12 = vpop.f32.mrb[179].mxu1  ;;  %v9514_v40 = vld [vmem:[%s10546_s17 + $0xc0] sm:$0xff]  }
 0x337   : > { %14066 = vst [vmem:[#allocation247_spill] sm:$0xff] %v11813_v12 }
 0x33b   : > { %9024 = vmatmul.mubr.msk.bf16.gmra.mrb[36].mxu0 %vm1255_vm0, %v9511_v55  ;;  %v11818_v3 = vpop.f32.mrb[180].mxu1 }
 0x33c   : > { %14067 = vst [vmem:[#allocation248_spill] sm:$0xff] %v11818_v3  ;;  %9027 = vmatprep.mubr.msk.bf16.mxu0 %vm1255_vm0, %v9512_v24  ;;  %v11821_v20 = vpop.f32.mrb[181].mxu1 }
 0x33d   : > { %14068 = vst [vmem:[#allocation249_spill] sm:$0xff] %v11821_v20  ;;  %v11823_v7 = vpop.f32.mrb[182].mxu1  ;;  %v9515_v20 = vld [vmem:[%s10546_s17 + $0xc8] sm:$0xff]  }
 0x33e   : > { %14069 = vst [vmem:[#allocation250_spill] sm:$0xff] %v11823_v7  ;;  %v11825_v63 = vpop.f32.mrb[183].mxu1  ;;  %v9516_v7 = vld [vmem:[%s10546_s17 + $0xd0] sm:$0xff]  }
 0x33f   : > { %14070 = vst [vmem:[#allocation251_spill] sm:$0xff] %v11825_v63 }
 0x343   : > { %9028 = vmatmul.mubr.msk.bf16.gmra.mrb[40].mxu0 %vm1255_vm0, %v9513_v58  ;;  %v11830_v12 = vpop.f32.mrb[184].mxu1 }
 0x344   : > { %14071 = vst [vmem:[#allocation252_spill] sm:$0xff] %v11830_v12  ;;  %9031 = vmatprep.mubr.msk.bf16.mxu0 %vm1255_vm0, %v9514_v40  ;;  %v11833_v55 = vpop.f32.mrb[185].mxu1 }
 0x345   : > { %14072 = vst [vmem:[#allocation253_spill] sm:$0xff] %v11833_v55  ;;  %v11835_v3 = vpop.f32.mrb[186].mxu1  ;;  %v9517_v55 = vld [vmem:[%s10546_s17 + $0xd8] sm:$0xff]  }
 0x346   : > { %14073 = vst [vmem:[#allocation254_spill] sm:$0xff] %v11835_v3  ;;  %v11837_v24 = vpop.f32.mrb[187].mxu1  ;;  %v9518_v3 = vld [vmem:[%s10546_s17 + $0xe0] sm:$0xff]  }
 0x347   : > { %14074 = vst [vmem:[#allocation255_spill] sm:$0xff] %v11837_v24 }
 0x34b   : > { %9032 = vmatmul.mubr.msk.bf16.gmra.mrb[44].mxu0 %vm1255_vm0, %v9515_v20  ;;  %v11842_v63 = vpop.f32.mrb[188].mxu1 }
 0x34c   : > { %14075 = vst [vmem:[#allocation256_spill] sm:$0xff] %v11842_v63  ;;  %9035 = vmatprep.mubr.msk.bf16.mxu0 %vm1255_vm0, %v9516_v7  ;;  %v11845_v58 = vpop.f32.mrb[189].mxu1 }
 0x34d   : > { %14076 = vst [vmem:[#allocation257_spill] sm:$0xff] %v11845_v58  ;;  %v11847_v12 = vpop.f32.mrb[190].mxu1  ;;  %v9519_v58 = vld [vmem:[%s10546_s17 + $0xe8] sm:$0xff]  }
 0x34e   : > { %14077 = vst [vmem:[#allocation258_spill] sm:$0xff] %v11847_v12  ;;  %v11849_v40 = vpop.f32.mrb[191].mxu1  ;;  %v9520_v12 = vld [vmem:[%s10546_s17 + $0xf0] sm:$0xff]  }
 0x34f   : > { %14078 = vst [vmem:[#allocation259_spill] sm:$0xff] %v11849_v40 }
 0x353   : > { %9036 = vmatmul.mubr.msk.bf16.gmra.mrb[48].mxu0 %vm1255_vm0, %v9517_v55  ;;  %v11854_v24 = vpop.f32.mrb[192].mxu1 }
 0x354   : > { %14079 = vst [vmem:[#allocation260_spill] sm:$0xff] %v11854_v24  ;;  %9039 = vmatprep.mubr.msk.bf16.mxu0 %vm1255_vm0, %v9518_v3  ;;  %v11857_v20 = vpop.f32.mrb[193].mxu1 }
 0x355   : > { %14080 = vst [vmem:[#allocation261_spill] sm:$0xff] %v11857_v20  ;;  %v11859_v63 = vpop.f32.mrb[194].mxu1  ;;  %v9521_v20 = vld [vmem:[%s10546_s17 + $0xf8] sm:$0xff]  }
 0x356   : > { %14081 = vst [vmem:[#allocation262_spill] sm:$0xff] %v11859_v63  ;;  %v11861_v7 = vpop.f32.mrb[195].mxu1  ;;  %v9522_v63 = vld [vmem:[%s10546_s17 + $0x100] sm:$0xff]  }
 0x357   : > { %14082 = vst [vmem:[#allocation263_spill] sm:$0xff] %v11861_v7 }
 0x35b   : > { %9040 = vmatmul.mubr.msk.bf16.gmra.mrb[52].mxu0 %vm1255_vm0, %v9519_v58  ;;  %v11866_v40 = vpop.f32.mrb[196].mxu1 }
 0x35c   : > { %14083 = vst [vmem:[#allocation264_spill] sm:$0xff] %v11866_v40  ;;  %9043 = vmatprep.mubr.msk.bf16.mxu0 %vm1255_vm0, %v9520_v12  ;;  %v11869_v55 = vpop.f32.mrb[197].mxu1 }
 0x35d   : > { %14084 = vst [vmem:[#allocation265_spill] sm:$0xff] %v11869_v55  ;;  %v11871_v24 = vpop.f32.mrb[198].mxu1  ;;  %v9523_v55 = vld [vmem:[%s10546_s17 + $0x108] sm:$0xff]  }
 0x35e   : > { %14085 = vst [vmem:[#allocation266_spill] sm:$0xff] %v11871_v24  ;;  %v11873_v3 = vpop.f32.mrb[199].mxu1  ;;  %v9524_v24 = vld [vmem:[%s10546_s17 + $0x110] sm:$0xff]  }
 0x35f   : > { %14086 = vst [vmem:[#allocation267_spill] sm:$0xff] %v11873_v3 }
 0x363   : > { %9044 = vmatmul.mubr.msk.bf16.gmra.mrb[56].mxu0 %vm1255_vm0, %v9521_v20  ;;  %v11878_v7 = vpop.f32.mrb[200].mxu1 }
 0x364   : > { %14087 = vst [vmem:[#allocation268_spill] sm:$0xff] %v11878_v7  ;;  %9047 = vmatprep.mubr.msk.bf16.mxu0 %vm1255_vm0, %v9522_v63  ;;  %v11881_v58 = vpop.f32.mrb[201].mxu1 }
 0x365   : > { %14088 = vst [vmem:[#allocation269_spill] sm:$0xff] %v11881_v58  ;;  %v11883_v40 = vpop.f32.mrb[202].mxu1  ;;  %v9525_v58 = vld [vmem:[%s10546_s17 + $0x118] sm:$0xff]  }
 0x366   : > { %14089 = vst [vmem:[#allocation270_spill] sm:$0xff] %v11883_v40  ;;  %v11885_v12 = vpop.f32.mrb[203].mxu1  ;;  %v9526_v40 = vld [vmem:[%s10546_s17 + $0x120] sm:$0xff]  }
 0x367   : > { %14090 = vst [vmem:[#allocation271_spill] sm:$0xff] %v11885_v12 }
 0x36b   : > { %9048 = vmatmul.mubr.msk.bf16.gmra.mrb[60].mxu0 %vm1255_vm0, %v9523_v55  ;;  %v11890_v3 = vpop.f32.mrb[204].mxu1 }
 0x36c   : > { %14091 = vst [vmem:[#allocation272_spill] sm:$0xff] %v11890_v3  ;;  %9051 = vmatprep.mubr.msk.bf16.mxu0 %vm1255_vm0, %v9524_v24  ;;  %v11893_v20 = vpop.f32.mrb[205].mxu1 }
 0x36d   : > { %14092 = vst [vmem:[#allocation273_spill] sm:$0xff] %v11893_v20  ;;  %v11895_v7 = vpop.f32.mrb[206].mxu1  ;;  %v9527_v20 = vld [vmem:[%s10546_s17 + $0x128] sm:$0xff]  }
 0x36e   : > { %14093 = vst [vmem:[#allocation274_spill] sm:$0xff] %v11895_v7  ;;  %v11897_v63 = vpop.f32.mrb[207].mxu1  ;;  %v9528_v7 = vld [vmem:[%s10546_s17 + $0x130] sm:$0xff]  }
 0x36f   : > { %14094 = vst [vmem:[#allocation275_spill] sm:$0xff] %v11897_v63 }
 0x373   : > { %9052 = vmatmul.mubr.msk.bf16.gmra.mrb[64].mxu0 %vm1255_vm0, %v9525_v58  ;;  %v11902_v12 = vpop.f32.mrb[208].mxu1 }
 0x374   : > { %14095 = vst [vmem:[#allocation276_spill] sm:$0xff] %v11902_v12  ;;  %9055 = vmatprep.mubr.msk.bf16.mxu0 %vm1255_vm0, %v9526_v40  ;;  %v11905_v55 = vpop.f32.mrb[209].mxu1 }
 0x375   : > { %14096 = vst [vmem:[#allocation277_spill] sm:$0xff] %v11905_v55  ;;  %v11907_v3 = vpop.f32.mrb[210].mxu1  ;;  %v9529_v55 = vld [vmem:[%s10546_s17 + $0x138] sm:$0xff]  }
 0x376   : > { %14097 = vst [vmem:[#allocation278_spill] sm:$0xff] %v11907_v3  ;;  %v11909_v24 = vpop.f32.mrb[211].mxu1  ;;  %v9530_v3 = vld [vmem:[%s10546_s17 + $0x140] sm:$0xff]  }
 0x377   : > { %14098 = vst [vmem:[#allocation279_spill] sm:$0xff] %v11909_v24 }
 0x37b   : > { %9056 = vmatmul.mubr.msk.bf16.gmra.mrb[68].mxu0 %vm1255_vm0, %v9527_v20  ;;  %v11914_v63 = vpop.f32.mrb[212].mxu1 }
 0x37c   : > { %14099 = vst [vmem:[#allocation280_spill] sm:$0xff] %v11914_v63  ;;  %9059 = vmatprep.mubr.msk.bf16.mxu0 %vm1255_vm0, %v9528_v7  ;;  %v11917_v58 = vpop.f32.mrb[213].mxu1 }
 0x37d   : > { %14100 = vst [vmem:[#allocation281_spill] sm:$0xff] %v11917_v58  ;;  %v11919_v12 = vpop.f32.mrb[214].mxu1  ;;  %v9531_v58 = vld [vmem:[%s10546_s17 + $0x148] sm:$0xff]  }
 0x37e   : > { %14101 = vst [vmem:[#allocation282_spill] sm:$0xff] %v11919_v12  ;;  %v11921_v40 = vpop.f32.mrb[215].mxu1  ;;  %v9532_v12 = vld [vmem:[%s10546_s17 + $0x150] sm:$0xff]  }
 0x37f   : > { %14102 = vst [vmem:[#allocation283_spill] sm:$0xff] %v11921_v40 }
 0x383   : > { %9060 = vmatmul.mubr.msk.bf16.gmra.mrb[72].mxu0 %vm1255_vm0, %v9529_v55  ;;  %v11926_v24 = vpop.f32.mrb[216].mxu1 }
 0x384   : > { %14103 = vst [vmem:[#allocation284_spill] sm:$0xff] %v11926_v24  ;;  %9063 = vmatprep.mubr.msk.bf16.mxu0 %vm1255_vm0, %v9530_v3  ;;  %v11929_v20 = vpop.f32.mrb[217].mxu1 }
 0x385   : > { %14104 = vst [vmem:[#allocation285_spill] sm:$0xff] %v11929_v20  ;;  %v11931_v63 = vpop.f32.mrb[218].mxu1  ;;  %v9533_v20 = vld [vmem:[%s10546_s17 + $0x158] sm:$0xff]  }
 0x386   : > { %14105 = vst [vmem:[#allocation286_spill] sm:$0xff] %v11931_v63  ;;  %v11933_v7 = vpop.f32.mrb[219].mxu1  ;;  %v9534_v63 = vld [vmem:[%s10546_s17 + $0x160] sm:$0xff]  }
 0x387   : > { %14106 = vst [vmem:[#allocation287_spill] sm:$0xff] %v11933_v7 }
 0x38b   : > { %9064 = vmatmul.mubr.msk.bf16.gmra.mrb[76].mxu0 %vm1255_vm0, %v9531_v58  ;;  %v11938_v40 = vpop.f32.mrb[220].mxu1 }
 0x38c   : > { %14107 = vst [vmem:[#allocation288_spill] sm:$0xff] %v11938_v40  ;;  %9067 = vmatprep.mubr.msk.bf16.mxu0 %vm1255_vm0, %v9532_v12  ;;  %v11941_v55 = vpop.f32.mrb[221].mxu1 }
 0x38d   : > { %14108 = vst [vmem:[#allocation289_spill] sm:$0xff] %v11941_v55  ;;  %v11943_v24 = vpop.f32.mrb[222].mxu1  ;;  %v9535_v55 = vld [vmem:[%s10546_s17 + $0x168] sm:$0xff]  }
 0x38e   : > { %14109 = vst [vmem:[#allocation290_spill] sm:$0xff] %v11943_v24  ;;  %v11945_v3 = vpop.f32.mrb[223].mxu1  ;;  %v9536_v24 = vld [vmem:[%s10546_s17 + $0x170] sm:$0xff]  }
 0x38f   : > { %14110 = vst [vmem:[#allocation291_spill] sm:$0xff] %v11945_v3 }
 0x393   : > { %9068 = vmatmul.mubr.msk.bf16.gmra.mrb[80].mxu0 %vm1255_vm0, %v9533_v20  ;;  %v11950_v7 = vpop.f32.mrb[224].mxu1 }
 0x394   : > { %14111 = vst [vmem:[#allocation292_spill] sm:$0xff] %v11950_v7  ;;  %9071 = vmatprep.mubr.msk.bf16.mxu0 %vm1255_vm0, %v9534_v63  ;;  %v11953_v58 = vpop.f32.mrb[225].mxu1 }
 0x395   : > { %14112 = vst [vmem:[#allocation293_spill] sm:$0xff] %v11953_v58  ;;  %v11955_v40 = vpop.f32.mrb[226].mxu1  ;;  %v9537_v58 = vld [vmem:[%s10546_s17 + $0x178] sm:$0xff]  }
 0x396   : > { %14113 = vst [vmem:[#allocation294_spill] sm:$0xff] %v11955_v40  ;;  %v11957_v12 = vpop.f32.mrb[227].mxu1  ;;  %v9538_v40 = vld [vmem:[%s10546_s17 + $0x180] sm:$0xff]  }
 0x397   : > { %14114 = vst [vmem:[#allocation295_spill] sm:$0xff] %v11957_v12 }
 0x39b   : > { %9072 = vmatmul.mubr.msk.bf16.gmra.mrb[84].mxu0 %vm1255_vm0, %v9535_v55  ;;  %v11962_v3 = vpop.f32.mrb[228].mxu1 }
 0x39c   : > { %14115 = vst [vmem:[#allocation296_spill] sm:$0xff] %v11962_v3  ;;  %9075 = vmatprep.mubr.msk.bf16.mxu0 %vm1255_vm0, %v9536_v24  ;;  %v11965_v20 = vpop.f32.mrb[229].mxu1 }
 0x39d   : > { %14116 = vst [vmem:[#allocation297_spill] sm:$0xff] %v11965_v20  ;;  %v11967_v7 = vpop.f32.mrb[230].mxu1  ;;  %v9539_v20 = vld [vmem:[%s10546_s17 + $0x188] sm:$0xff]  }
 0x39e   : > { %14117 = vst [vmem:[#allocation298_spill] sm:$0xff] %v11967_v7  ;;  %v11969_v63 = vpop.f32.mrb[231].mxu1  ;;  %v9540_v7 = vld [vmem:[%s10546_s17 + $0x190] sm:$0xff]  }
 0x39f   : > { %14118 = vst [vmem:[#allocation299_spill] sm:$0xff] %v11969_v63 }
 0x3a3   : > { %9076 = vmatmul.mubr.msk.bf16.gmra.mrb[88].mxu0 %vm1255_vm0, %v9537_v58  ;;  %v11974_v12 = vpop.f32.mrb[232].mxu1 }
 0x3a4   : > { %14119 = vst [vmem:[#allocation300_spill] sm:$0xff] %v11974_v12  ;;  %9079 = vmatprep.mubr.msk.bf16.mxu0 %vm1255_vm0, %v9538_v40  ;;  %v11977_v55 = vpop.f32.mrb[233].mxu1 }
 0x3a5   : > { %14120 = vst [vmem:[#allocation301_spill] sm:$0xff] %v11977_v55  ;;  %v11979_v3 = vpop.f32.mrb[234].mxu1  ;;  %v9541_v55 = vld [vmem:[%s10546_s17 + $0x198] sm:$0xff]  }
 0x3a6   : > { %14121 = vst [vmem:[#allocation302_spill] sm:$0xff] %v11979_v3  ;;  %v11981_v24 = vpop.f32.mrb[235].mxu1  ;;  %v9542_v3 = vld [vmem:[%s10546_s17 + $0x1a0] sm:$0xff]  }
 0x3a7   : > { %14122 = vst [vmem:[#allocation303_spill] sm:$0xff] %v11981_v24 }
 0x3ab   : > { %9080 = vmatmul.mubr.msk.bf16.gmra.mrb[92].mxu0 %vm1255_vm0, %v9539_v20  ;;  %v11986_v63 = vpop.f32.mrb[236].mxu1 }
 0x3ac   : > { %14123 = vst [vmem:[#allocation304_spill] sm:$0xff] %v11986_v63  ;;  %9083 = vmatprep.mubr.msk.bf16.mxu0 %vm1255_vm0, %v9540_v7  ;;  %v11989_v58 = vpop.f32.mrb[237].mxu1  ;;  %v10138_v7 = vld [vmem:[%s13677_s8] sm:$0x3] }
 0x3ad   : > { %14124 = vst [vmem:[#allocation305_spill] sm:$0xff] %v11989_v58  ;;  %v11991_v12 = vpop.f32.mrb[238].mxu1  ;;  %v14129_v58 = vsub.s32 0, %v10624_v49 }
 0x3ae   : > { %14125 = vst [vmem:[#allocation306_spill] sm:$0xff] %v11991_v12  ;;  %v11993_v40 = vpop.f32.mrb[239].mxu1 }
 0x3af   : > { %14126 = vst [vmem:[#allocation307_spill] sm:$0xff] %v11993_v40  ;;  %v12008_v63 = vrot.slane %v10138_v7, %v14129_v58 }
 0x3b1   : > { %v2710_v49 = vadd.f32 %v11023_v18, %v12008_v63 }
 0x3b3   : > { %9084 = vmatmul.mubr.msk.bf16.gmra.mrb[96].mxu0 %vm1255_vm0, %v9541_v55  ;;  %v11998_v24 = vpop.f32.mrb[240].mxu1  ;;  %v9544_v55 = vld [vmem:[%s10546_s17 + $0x1b0] sm:$0xff]  }
 0x3b4   : > { %14127 = vst [vmem:[#allocation308_spill] sm:$0xff] %v11998_v24  ;;  %9087 = vmatprep.mubr.msk.bf16.mxu0 %vm1255_vm0, %v9542_v3  ;;  %v12001_v20 = vpop.f32.mrb[241].mxu1  ;;  %v2716_v24 = vadd.f32 %v11039_v52, %v12008_v63  ;;  %v2706_v3 = vadd.f32 %v11015_v61, %v12008_v63 }
 0x3b5   : > { %14128 = vst [vmem:[#allocation309_spill] sm:$0xff] %v12001_v20  ;;  %v12010_v12 = vpop.f32.mrb[242].mxu1  ;;  %v2720_v20 = vadd.f32 %v11047_v21, %v12008_v63 }
 0x3b6   : > { %14130 = vst [vmem:[#allocation310_spill] sm:$0xff] %v12010_v12  ;;  %v12012_v40 = vpop.f32.mrb[243].mxu1  ;;  %v3948_v52 = vmul.f32 %v10960_v51, %v2716_v24  ;;  %v3944_v12 = vmul.f32 %v10934_v57, %v2706_v3  ;;  %v2736_v24 = vadd.f32 %v11087_v41, %v12008_v63  ;;  %v2730_v41 = vadd.f32 %v11071_v43, %v12008_v63 }
 0x3b7   : > { %14131 = vst [vmem:[#allocation311_spill] sm:$0xff] %v12012_v40  ;;  %v3950_v18 = vmul.f32 %v10963_v62, %v2720_v20 }
 0x3b8   : > { %v3954_v43 = vmul.f32 %v10983_v39, %v2730_v41  ;;  %v9550_v41 = vld [vmem:[%s10546_s17 + $0x1e0] sm:$0xff]  }
 0x3bb   : > { %9088 = vmatmul.mubr.msk.bf16.gmra.mrb[100].mxu0 %vm1255_vm0, %v9543_v29  ;;  %v12025_v58 = vpop.f32.mrb[244].mxu1 }
 0x3bc   : > { %14132 = vst [vmem:[#allocation312_spill] sm:$0xff] %v12025_v58  ;;  %9091 = vmatprep.mubr.msk.bf16.mxu0 %vm1255_vm0, %v9544_v55  ;;  %v12028_v7 = vpop.f32.mrb[245].mxu1 }
 0x3bd   : > { %14133 = vst [vmem:[#allocation313_spill] sm:$0xff] %v12028_v7  ;;  %v12031_v40 = vpop.f32.mrb[246].mxu1  ;;  %v3946_v7 = vmul.f32 %v10943_v15, %v2710_v49 }
 0x3be   : > { %v8985_v61 = vpop.f32.mrb[252].mxu0  ;;  %v12036_v29 = vpop.f32.mrb[247].mxu1 }
 0x3bf   : > { %v12034_v21 = vmul.f32 %v8985_v61, %v3948_v52  ;;  %14134 = vst [vmem:[#allocation314_spill] sm:$0xff] %v12036_v29  ;;  %v4839_v6 = vpop.f32.mrb[253].mxu0  ;;  %v2726_v52 = vadd.f32 %v11063_v19, %v12008_v63  ;;  %v3956_v19 = vmul.f32 %v11000_v26, %v2736_v24  ;;  %v9548_v29 = vld [vmem:[%s10546_s17 + $0x1d0] sm:$0xff]  }
 0x3c0   : > { %v12040_v58 = vmul.f32 %v4839_v6, %v3944_v12  ;;  %v8986_v55 = vpop.f32.mrb[254].mxu0  ;;  %v2740_v6 = vadd.f32 %v11095_v25, %v12008_v63 }
 0x3c1   : > { %v12046_v51 = vmul.f32 %v8986_v55, %v3950_v18  ;;  %v4842_v3 = vpop.f32.mrb[255].mxu0 }
 0x3c2   : > { %v12050_v61 = vmul.f32 %v4842_v3, %v3946_v7  ;;  %v3952_v7 = vmul.f32 %v10980_v36, %v2726_v52  ;;  %v3958_v55 = vmul.f32 %v11003_v32, %v2740_v6  ;;  %v9547_v3 = vld [vmem:[%s10546_s17 + $0x1c8] sm:$0xff]   ;;  %v2746_v52 = vadd.f32 %v11111_v34, %v12008_v63 }
 0x3c3   : > { %9092 = vmatmul.mubr.msk.bf16.gmra.mrb[104].mxu0 %vm1255_vm0, %v9545_v1  ;;  %v2760_v6 = vadd.f32 %v11151_v4, %v12008_v63 }
 0x3c4   : > { %9095 = vmatprep.mubr.msk.bf16.mxu0 %vm1255_vm0, %v9546_v28  ;;  %v2756_v28 = vadd.f32 %v11141_v56, %v12008_v63  ;;  %v2750_v56 = vadd.f32 %v11119_v35, %v12008_v63 }
 0x3c6   : > { %v8989_v49 = vpop.f32.mrb[0].mxu0  ;;  %v3964_v34 = vmul.f32 %v11085_v38, %v2756_v28 }
 0x3c7   : > { %v12064_v25 = vmul.f32 %v8989_v49, %v3956_v19  ;;  %v4855_v18 = vpop.f32.mrb[1].mxu0 }
 0x3c8   : > { %v12068_v1 = vmul.f32 %v4855_v18, %v3952_v7  ;;  %v8990_v12 = vpop.f32.mrb[2].mxu0  ;;  %v3960_v7 = vmul.f32 %v11037_v48, %v2746_v52 }
 0x3c9   : > { %v12074_v20 = vmul.f32 %v8990_v12, %v3958_v55  ;;  %v4858_v24 = vpop.f32.mrb[3].mxu0  ;;  %v3966_v55 = vmul.f32 %v11089_v31, %v2760_v6  ;;  %v2780_v6 = vadd.f32 %v11201_v53, %v12008_v63 }
 0x3ca   : > { %v12078_v19 = vmul.f32 %v4858_v24, %v3954_v43  ;;  %v9549_v43 = vld [vmem:[%s10546_s17 + $0x1d8] sm:$0xff]   ;;  %v3962_v24 = vmul.f32 %v11041_v59, %v2750_v56 }
 0x3cb   : > { %9096 = vmatmul.mubr.msk.bf16.gmra.mrb[108].mxu0 %vm1255_vm0, %v9547_v3 }
 0x3cc   : > { %9099 = vmatprep.mubr.msk.bf16.mxu0 %vm1255_vm0, %v9548_v29  ;;  %v2776_v29 = vadd.f32 %v11189_v16, %v12008_v63  ;;  %v2770_v16 = vadd.f32 %v11174_v5, %v12008_v63 }
 0x3ce   : > { %v8993_v49 = vpop.f32.mrb[4].mxu0 }
 0x3cf   : > { %v12092_v4 = vmul.f32 %v8993_v49, %v3964_v34  ;;  %v4871_v18 = vpop.f32.mrb[5].mxu0  ;;  %v2766_v34 = vadd.f32 %v11166_v27, %v12008_v63  ;;  %v9552_v27 = vld [vmem:[%s10460_s27 + $0x1c0] sm:$0xff]  }
 0x3d0   : > { %v12096_v3 = vmul.f32 %v4871_v18, %v3960_v7  ;;  %v8994_v35 = vpop.f32.mrb[6].mxu0  ;;  %v3972_v18 = vmul.f32 %v11187_v22, %v2776_v29  ;;  %6004 = vxpose.xlu0.c.b16.start [1/6] (short) (narrow) %v9552_v27, 32  ;;  %v3970_v7 = vmul.f32 %v11143_v45, %v2770_v16  ;;  %v9554_v29 = vld [vmem:[%s10460_s27 + $0x1c8] sm:$0xff]   ;;  %v2800_v16 = vadd.f32 %v11237_v0, %v12008_v63  ;;  %v9559_v45 = vld [vmem:[%s10460_s27 + $0x198] sm:$0xff]  }
 0x3d1   : > { %v12102_v28 = vmul.f32 %v8994_v35, %v3966_v55  ;;  %v4874_v52 = vpop.f32.mrb[7].mxu0  ;;  %v9553_v55 = vld [vmem:[%s10460_s27 + $0x180] sm:$0xff]   ;;  %v3968_v53 = vmul.f32 %v11139_v50, %v2766_v34  ;;  %v2796_v34 = vadd.f32 %v11230_v10, %v12008_v63  ;;  %v2790_v10 = vadd.f32 %v11221_v47, %v12008_v63 }
 0x3d2   : > { %v12106_v49 = vmul.f32 %v4874_v52, %v3962_v24  ;;  %v9551_v52 = vld [vmem:[%s10546_s17 + $0x1e8] sm:$0xff]   ;;  %5988 = vxpose.xlu1.c.b16.start [1/8] (narrow) %v9553_v55, 32 }
 0x3d3   : > { %9100 = vmatmul.mubr.msk.bf16.gmra.mrb[112].mxu0 %vm1255_vm0, %v9549_v43  ;;  %v3974_v43 = vmul.f32 %v11191_v23, %v2780_v6  ;;  %v9555_v23 = vld [vmem:[%s10460_s27 + $0x188] sm:$0xff]   ;;  %v2786_v6 = vadd.f32 %v11214_v11, %v12008_v63  ;;  %v9556_v11 = vld [vmem:[%s10460_s27 + $0x1d0] sm:$0xff]  }
 0x3d4   : > { %9103 = vmatprep.mubr.msk.bf16.mxu0 %vm1255_vm0, %v9550_v41  ;;  %6005 = vxpose.xlu0.c.b16.cont [2/6] (short) (narrow) %v9554_v29, 32 }
 0x3d5   : > { %v3976_v0 = vmul.f32 %v10932_v54, %v2786_v6  ;;  %v14136_v6 = vld [vmem:[#allocation59_spill] sm:$0xff]  ;;  %v14140_v54 = vld [vmem:[#allocation20_spill] sm:$0xff] }
 0x3d6   : > { %v8997_v35 = vpop.f32.mrb[8].mxu0  ;;  %5989 = vxpose.xlu1.c.b16.cont [2/8] (narrow) %v9555_v23, 32  ;;  %v9558_v23 = vld [vmem:[%s10460_s27 + $0x1d8] sm:$0xff]  }
 0x3d7   : > { %v12123_v24 = vmul.f32 %v8997_v35, %v3972_v18  ;;  %v4887_v5 = vpop.f32.mrb[9].mxu0  ;;  %v9557_v35 = vld [vmem:[%s10460_s27 + $0x190] sm:$0xff]  }
 0x3d8   : > { %v12127_v56 = vmul.f32 %v4887_v5, %v3968_v53  ;;  %v8998_v41 = vpop.f32.mrb[10].mxu0  ;;  %6006 = vxpose.xlu0.c.b16.cont [3/6] (short) (narrow) %v9556_v11, 32  ;;  %v2806_v11 = vadd.f32 %v14136_v6, %v12008_v63 }
 0x3d9   : > { %v12132_v12 = vmul.f32 %v8998_v41, %v3974_v43  ;;  %v4890_v27 = vpop.f32.mrb[11].mxu0 }
 0x3da   : > { %v12137_v18 = vmul.f32 %v4890_v27, %v3970_v7  ;;  %v3980_v7 = vmul.f32 %v10950_v33, %v2796_v34  ;;  %5990 = vxpose.xlu1.c.b16.cont [3/8] (narrow) %v9557_v35, 32  ;;  %v3978_v27 = vmul.f32 %v10940_v13, %v2790_v10  ;;  %v14135_v34 = vld [vmem:[#allocation65_spill] sm:$0xff]  ;;  %v14138_v10 = vld [vmem:[#allocation62_spill] sm:$0xff] }
 0x3db   : > { %9104 = vmatmul.mubr.msk.bf16.gmra.mrb[116].mxu0 %vm1255_vm0, %v9551_v52  ;;  %v3982_v52 = vmul.f32 %v10953_v37, %v2800_v16  ;;  %v2816_v55 = vadd.f32 %v14135_v34, %v12008_v63  ;;  %v14137_v16 = vld [vmem:[#allocation68_spill] sm:$0xff]  ;;  %v9560_v13 = vld [vmem:[%s10460_s27 + $0x1e0] sm:$0xff]  }
 0x3dc   : > { %6007 = vxpose.xlu0.c.b16.cont [4/6] (short) (narrow) %v9558_v23, 32  ;;  %v2820_v35 = vadd.f32 %v14137_v16, %v12008_v63  ;;  %v14139_v37 = vld [vmem:[#allocation22_spill] sm:$0xff]  ;;  %v9562_v16 = vld [vmem:[%s10460_s27 + $0x1e8] sm:$0xff]  }
 0x3de   : > { %v9001_v43 = vpop.f32.mrb[12].mxu0  ;;  %5991 = vxpose.xlu1.c.b16.cont [4/8] (narrow) %v9559_v45, 32  ;;  %v14141_v45 = vpack.c.bf16 %v12050_v61, %v12040_v58 }
 0x3df   : > { %v5352_v5 = vmul.f32 %v9001_v43, %v3980_v7  ;;  %v4903_v41 = vpop.f32.mrb[13].mxu0 }
 0x3e0   : > { %v5350_v29 = vmul.f32 %v4903_v41, %v3976_v0  ;;  %v9002_v47 = vpop.f32.mrb[14].mxu0  ;;  %v2810_v0 = vadd.f32 %v14138_v10, %v12008_v63  ;;  %6008 = vxpose.xlu0.c.b16.cont [5/6] (short) (narrow) %v9560_v13, 32  ;;  %v14144_v10 = vld [vmem:[#allocation77_spill] sm:$0xff] }
 0x3e1   : > { %v5353_v53 = vmul.f32 %v9002_v47, %v3982_v52  ;;  %v4906_v33 = vpop.f32.mrb[15].mxu0  ;;  %v3988_v52 = vmul.f32 %v14139_v37, %v2816_v55  ;;  %v9561_v47 = vld [vmem:[%s10460_s27 + $0x1a0] sm:$0xff]   ;;  %v14143_v55 = vld [vmem:[#allocation21_spill] sm:$0xff] }
 0x3e2   : > { %v5351_v7 = vmul.f32 %v4906_v33, %v3978_v27  ;;  %v3984_v33 = vmul.f32 %v14140_v54, %v2806_v11  ;;  %5992 = vxpose.xlu1.c.b16.cont [5/8] (narrow) %v9561_v47, 32  ;;  %v2836_v11 = vadd.f32 %v14144_v10, %v12008_v63  ;;  %v9564_v10 = vld [vmem:[%s10460_s27 + $0x1b0] sm:$0xff]  }
 0x3e3   : > { %v5467_v43 = vpack.c.bf16 %v5353_v53, %v5352_v5  ;;  %v14142_v53 = vld [vmem:[#allocation23_spill] sm:$0xff] }
 0x3e4   : > { %v5466_v41 = vpack.c.bf16 %v5351_v7, %v5350_v29  ;;  %v3990_v5 = vmul.f32 %v14142_v53, %v2820_v35  ;;  %v3986_v7 = vmul.f32 %v14143_v55, %v2810_v0  ;;  %6009 = vxpose.xlu0.c.b16.end [6/6] (short) (narrow) %v9562_v16, 32  ;;  %v14146_v35 = vld [vmem:[#allocation80_spill] sm:$0xff]  ;;  %v14148_v0 = vld [vmem:[#allocation74_spill] sm:$0xff] }
 0x3e5   : > { %v2840_v47 = vadd.f32 %v14146_v35, %v12008_v63 }
 0x3e6   : > { %v9005_v34 = vpop.f32.mrb[16].mxu0  ;;  %8661 = vmatprep.subr.bf16.mxu1 %v5466_v41 }
 0x3e7   : > { %v5356_v27 = vmul.f32 %v9005_v34, %v3988_v52  ;;  %v4919_v23 = vpop.f32.mrb[17].mxu0  ;;  %8662 = vmatpush3.bf16.msra.mxu1 %v14141_v45  ;;  %v9563_v52 = vld [vmem:[%s10460_s27 + $0x1a8] sm:$0xff]  }
 0x3e8   : > { %v5354_v29 = vmul.f32 %v4919_v23, %v3984_v33  ;;  %v9006_v6 = vpop.f32.mrb[18].mxu0  ;;  %8663 = vmatprep.subr.bf16.mxu1 %v5467_v43  ;;  %v14145_v34 = vld [vmem:[#allocation71_spill] sm:$0xff]  ;;  %v14147_v43 = vpack.c.bf16 %v12046_v51, %v12034_v21  ;;  %5993 = vxpose.xlu1.c.b16.cont [6/8] (narrow) %v9563_v52, 32  ;;  %v2830_v23 = vadd.f32 %v14148_v0, %v12008_v63 }
 0x3e9   : > { %v5357_v13 = vmul.f32 %v9006_v6, %v3990_v5  ;;  %v4922_v41 = vpop.f32.mrb[19].mxu0  ;;  %v2826_v58 = vadd.f32 %v14145_v34, %v12008_v63  ;;  %v14149_v5 = vld [vmem:[#allocation30_spill] sm:$0xff]  ;;  %v14152_v51 = vld [vmem:[#allocation31_spill] sm:$0xff] }
 0x3ea   : > { %v5355_v61 = vmul.f32 %v4922_v41, %v3986_v7  ;;  %v3996_v6 = vmul.f32 %v14149_v5, %v2836_v11  ;;  %v14150_v7 = vld [vmem:[#allocation24_spill] sm:$0xff]  ;;  %v3998_v21 = vmul.f32 %v14152_v51, %v2840_v47  ;;  %v14209_v51 = vld [vmem:[#allocation51_spill] sm:$0xff] }
 0x3eb   : > { %v5469_v33 = vpack.c.bf16 %v5357_v13, %v5356_v27  ;;  %8664 = vmatpush3.bf16.msra.mxu1 %v14147_v43  ;;  %v3992_v16 = vmul.f32 %v14150_v7, %v2826_v58  ;;  %v14151_v27 = vpack.c.bf16 %v12078_v19, %v12068_v1  ;;  %v9565_v58 = vld [vmem:[%s10460_s27 + $0x1b8] sm:$0xff]   ;;  %v14156_v1 = vld [vmem:[#allocation92_spill] sm:$0xff] }
 0x3ec   : > { %v5468_v45 = vpack.c.bf16 %v5355_v61, %v5354_v29  ;;  %5994 = vxpose.xlu1.c.b16.cont [7/8] (narrow) %v9564_v10, 32  ;;  %v14153_v29 = vld [vmem:[#allocation25_spill] sm:$0xff]  ;;  %v2860_v19 = vadd.f32 %v14156_v1, %v12008_v63  ;;  %v14157_v10 = vpack.c.bf16 %v12074_v20, %v12064_v25 }
 0x3ed   : > { %v3994_v11 = vmul.f32 %v14153_v29, %v2830_v23  ;;  %v14154_v61 = vld [vmem:[#allocation89_spill] sm:$0xff] }
 0x3ee   : > { %v9009_v34 = vpop.f32.mrb[20].mxu0  ;;  %8665 = vmatprep.subr.bf16.mxu1 %v5468_v45  ;;  %v2856_v43 = vadd.f32 %v14154_v61, %v12008_v63 }
 0x3ef   : > { %v5360_v41 = vmul.f32 %v9009_v34, %v3996_v6  ;;  %v4935_v35 = vpop.f32.mrb[21].mxu0  ;;  %8666 = vmatpush3.bf16.msra.mxu1 %v14151_v27  ;;  %v14155_v6 = vld [vmem:[#allocation83_spill] sm:$0xff] }
 0x3f0   : > { %v5358_v13 = vmul.f32 %v4935_v35, %v3992_v16  ;;  %v9010_v52 = vpop.f32.mrb[22].mxu0  ;;  %8667 = vmatprep.subr.bf16.mxu1 %v5469_v33  ;;  %v2846_v34 = vadd.f32 %v14155_v6, %v12008_v63  ;;  %5995 = vxpose.xlu1.c.b16.end [8/8] (narrow) %v9565_v58, 32  ;;  %v14158_v33 = vld [vmem:[#allocation86_spill] sm:$0xff]  ;;  %v14159_v35 = vld [vmem:[#allocation43_spill] sm:$0xff]  ;;  %v14163_v6 = vld [vmem:[#allocation37_spill] sm:$0xff] }
 0x3f1   : > { %v5361_v0 = vmul.f32 %v9010_v52, %v3998_v21  ;;  %v4938_v45 = vpop.f32.mrb[23].mxu0  ;;  %v2850_v23 = vadd.f32 %v14158_v33, %v12008_v63  ;;  %v4004_v27 = vmul.f32 %v14159_v35, %v2856_v43  ;;  %v14160_v52 = vld [vmem:[#allocation36_spill] sm:$0xff] }
 0x3f2   : > { %v5359_v7 = vmul.f32 %v4938_v45, %v3994_v11  ;;  %v4000_v61 = vmul.f32 %v14160_v52, %v2846_v34  ;;  %v14165_v34 = vld [vmem:[#allocation95_spill] sm:$0xff] }
 0x3f3   : > { %v5471_v47 = vpack.c.bf16 %v5361_v0, %v5360_v41  ;;  %8668 = vmatpush3.bf16.msra.mxu1 %v14157_v10  ;;  %v14161_v41 = vpack.c.bf16 %v12106_v49, %v12096_v3  ;;  %v14162_v0 = vld [vmem:[#allocation44_spill] sm:$0xff]  ;;  %v4002_v1 = vmul.f32 %v14163_v6, %v2850_v23  ;;  %v2866_v33 = vadd.f32 %v14165_v34, %v12008_v63 }
 0x3f4   : > { %v5470_v16 = vpack.c.bf16 %v5359_v7, %v5358_v13  ;;  %v4006_v20 = vmul.f32 %v14162_v0, %v2860_v19  ;;  %v14164_v7 = vld [vmem:[#allocation101_spill] sm:$0xff]  ;;  %v14167_v19 = vpack.c.bf16 %v12102_v28, %v12092_v4  ;;  %v14173_v4 = vld [vmem:[#allocation55_spill] sm:$0xff] }
 0x3f5   : > { %v2876_v13 = vadd.f32 %v14164_v7, %v12008_v63  ;;  %v14171_v7 = vld [vmem:[#allocation66_spill] sm:$0xff] }
 0x3f6   : > { %v9013_v21 = vpop.f32.mrb[24].mxu0  ;;  %8669 = vmatprep.subr.bf16.mxu1 %v5470_v16 }
 0x3f7   : > { %v5364_v11 = vmul.f32 %v9013_v21, %v4004_v27  ;;  %v4951_v45 = vpop.f32.mrb[25].mxu0  ;;  %8670 = vmatpush3.bf16.msra.mxu1 %v14161_v41  ;;  %v14166_v27 = vld [vmem:[#allocation104_spill] sm:$0xff]  ;;  %v14170_v41 = vld [vmem:[#allocation54_spill] sm:$0xff] }
 0x3f8   : > { %v5362_v25 = vmul.f32 %v4951_v45, %v4000_v61  ;;  %v9014_v58 = vpop.f32.mrb[26].mxu0  ;;  %8671 = vmatprep.subr.bf16.mxu1 %v5471_v47  ;;  %v2880_v3 = vadd.f32 %v14166_v27, %v12008_v63  ;;  %v14168_v47 = vld [vmem:[#allocation98_spill] sm:$0xff]  ;;  %v14169_v61 = vld [vmem:[#allocation64_spill] sm:$0xff] }
 0x3f9   : > { %v5365_v43 = vmul.f32 %v9014_v58, %v4006_v20  ;;  %v4954_v10 = vpop.f32.mrb[27].mxu0  ;;  %v2870_v23 = vadd.f32 %v14168_v47, %v12008_v63  ;;  %v4012_v45 = vmul.f32 %v14169_v61, %v2876_v13  ;;  %v4008_v20 = vmul.f32 %v14170_v41, %v2866_v33  ;;  %v14174_v13 = vld [vmem:[#allocation113_spill] sm:$0xff] }
 0x3fa   : > { %v5363_v16 = vmul.f32 %v4954_v10, %v4002_v1  ;;  %v4014_v1 = vmul.f32 %v14171_v7, %v2880_v3  ;;  %v2896_v33 = vadd.f32 %v14174_v13, %v12008_v63  ;;  %v14175_v3 = vld [vmem:[#allocation107_spill] sm:$0xff]  ;;  %v14182_v13 = vld [vmem:[#allocation90_spill] sm:$0xff] }
 0x3fb   : > { %v5473_v49 = vpack.c.bf16 %v5365_v43, %v5364_v11  ;;  %8672 = vmatpush3.bf16.msra.mxu1 %v14167_v19  ;;  %v14172_v11 = vpack.c.bf16 %v12137_v18, %v12127_v56  ;;  %v4010_v28 = vmul.f32 %v14173_v4, %v2870_v23  ;;  %v2886_v19 = vadd.f32 %v14175_v3, %v12008_v63  ;;  %v14176_v56 = vld [vmem:[#allocation116_spill] sm:$0xff]  ;;  %v14193_v7 = vld [vmem:[#allocation7_spill] sm:$0xff] }
 0x3fc   : > { %v5472_v21 = vpack.c.bf16 %v5363_v16, %v5362_v25  ;;  %v2900_v18 = vadd.f32 %v14176_v56, %v12008_v63 }
 0x3fe   : > { %v9017_v58 = vpop.f32.mrb[28].mxu0  ;;  %8673 = vmatprep.subr.bf16.mxu1 %v5472_v21  ;;  %v14178_v21 = vld [vmem:[#allocation110_spill] sm:$0xff] }
 0x3ff   : > { %v12227_v10 = vmul.f32 %v9017_v58, %v4012_v45  ;;  %v4967_v34 = vpop.f32.mrb[29].mxu0  ;;  %8674 = vmatpush3.bf16.msra.mxu1 %v14172_v11  ;;  %v2890_v45 = vadd.f32 %v14178_v21, %v12008_v63  ;;  %v14179_v58 = vld [vmem:[#allocation88_spill] sm:$0xff] }
 0x400   : > { %v12233_v43 = vmul.f32 %v4967_v34, %v4008_v20  ;;  %v9018_v25 = vpop.f32.mrb[30].mxu0  ;;  %8675 = vmatprep.subr.bf16.mxu1 %v5473_v49  ;;  %v14177_v49 = vpack.c.bf16 %v12132_v12, %v12123_v24  ;;  %v14180_v34 = vld [vmem:[#allocation76_spill] sm:$0xff]  ;;  %v14183_v12 = vld [vmem:[#allocation5_spill] sm:$0xff]  ;;  %v14184_v24 = vld [vmem:[#allocation78_spill] sm:$0xff] }
 0x401   : > { %v12237_v16 = vmul.f32 %v9018_v25, %v4014_v1  ;;  %v4970_v27 = vpop.f32.mrb[31].mxu0  ;;  %v4020_v1 = vmul.f32 %v14179_v58, %v2896_v33  ;;  %v4016_v11 = vmul.f32 %v14180_v34, %v2886_v19  ;;  %v14181_v25 = vld [vmem:[#allocation4_spill] sm:$0xff]  ;;  %v14185_v20 = vld [vmem:[#allocation125_spill] sm:$0xff] }
 0x402   : > { %v12241_v47 = vmul.f32 %v4970_v27, %v4010_v28  ;;  %v4022_v27 = vmul.f32 %v14182_v13, %v2900_v18  ;;  %v2916_v33 = vadd.f32 %v14185_v20, %v12008_v63  ;;  %v14195_v20 = vld [vmem:[#allocation137_spill] sm:$0xff] }
 0x403   : > { %8676 = vmatpush3.bf16.msra.mxu1 %v14177_v49  ;;  %v4018_v49 = vmul.f32 %v14184_v24, %v2890_v45  ;;  %v14190_v24 = vld [vmem:[#allocation100_spill] sm:$0xff]  ;;  %v14194_v45 = vld [vmem:[#allocation102_spill] sm:$0xff] }
 0x406   : > { %v9021_v28 = vpop.f32.mrb[32].mxu0  ;;  %6060 = vmatmul.mubr.bf16.vlgmr.msra.gmra.mrb[248].mxu1 %v14181_v25  ;;  %v14186_v25 = vld [vmem:[#allocation119_spill] sm:$0xff] }
 0x407   : > { %v12258_v3 = vmul.f32 %v9021_v28, %v4020_v1  ;;  %v4983_v56 = vpop.f32.mrb[33].mxu0  ;;  %6067 = vmatprep.mubr.bf16.mxu1 %v14183_v12  ;;  %v2906_v34 = vadd.f32 %v14186_v25, %v12008_v63  ;;  %v14187_v1 = vld [vmem:[#allocation128_spill] sm:$0xff]  ;;  %v14191_v25 = vld [vmem:[#allocation6_spill] sm:$0xff] }
 0x408   : > { %v12262_v21 = vmul.f32 %v4983_v56, %v4016_v11  ;;  %v9022_v23 = vpop.f32.mrb[34].mxu0  ;;  %v2920_v28 = vadd.f32 %v14187_v1, %v12008_v63  ;;  %v14188_v11 = vld [vmem:[#allocation122_spill] sm:$0xff] }
 0x409   : > { %v12266_v58 = vmul.f32 %v9022_v23, %v4022_v27  ;;  %v4986_v19 = vpop.f32.mrb[35].mxu0  ;;  %v2910_v56 = vadd.f32 %v14188_v11, %v12008_v63  ;;  %v14189_v23 = vld [vmem:[#allocation112_spill] sm:$0xff]  ;;  %v4024_v12 = vmul.f32 %v14190_v24, %v2906_v34 }
 0x40a   : > { %v12270_v18 = vmul.f32 %v4986_v19, %v4018_v49  ;;  %v4028_v27 = vmul.f32 %v14189_v23, %v2916_v33  ;;  %v14192_v49 = vld [vmem:[#allocation114_spill] sm:$0xff]  ;;  %v2936_v33 = vadd.f32 %v14195_v20, %v12008_v63 }
 0x40b   : > { %v4030_v19 = vmul.f32 %v14192_v49, %v2920_v28  ;;  %v4026_v41 = vmul.f32 %v14194_v45, %v2910_v56 }
 0x40e   : > { %v9025_v13 = vpop.f32.mrb[36].mxu0  ;;  %6068 = vmatmul.mubr.bf16.gmra.mrb[252].mxu1 %v14191_v25  ;;  %v14196_v25 = vld [vmem:[#allocation131_spill] sm:$0xff] }
 0x40f   : > { %v12284_v4 = vmul.f32 %v9025_v13, %v4028_v27  ;;  %v4999_v1 = vpop.f32.mrb[37].mxu0  ;;  %6108 = vmatprep.mubr.bf16.mxu1 %v14193_v7  ;;  %v2926_v24 = vadd.f32 %v14196_v25, %v12008_v63  ;;  %v2940_v13 = vadd.f32 %v11476_v46, %v12008_v63  ;;  %v14200_v25 = vld [vmem:[#allocation138_spill] sm:$0xff] }
 0x410   : > { %v12288_v11 = vmul.f32 %v4999_v1, %v4024_v12  ;;  %v9026_v61 = vpop.f32.mrb[38].mxu0  ;;  %v14197_v12 = vld [vmem:[#allocation134_spill] sm:$0xff]  ;;  %v14199_v1 = vld [vmem:[#allocation124_spill] sm:$0xff] }
 0x411   : > { %v12292_v23 = vmul.f32 %v9026_v61, %v4030_v19  ;;  %v5002_v34 = vpop.f32.mrb[39].mxu0  ;;  %v2930_v27 = vadd.f32 %v14197_v12, %v12008_v63  ;;  %v14198_v61 = vld [vmem:[#allocation136_spill] sm:$0xff]  ;;  %v4032_v45 = vmul.f32 %v14199_v1, %v2926_v24  ;;  %v14201_v46 = vld [vmem:[#allocation126_spill] sm:$0xff]  ;;  %v14202_v12 = vld [vmem:[#allocation145_spill] sm:$0xff] }
 0x412   : > { %v12296_v28 = vmul.f32 %v5002_v34, %v4026_v41  ;;  %v4036_v19 = vmul.f32 %v14198_v61, %v2936_v33  ;;  %v4038_v41 = vmul.f32 %v14200_v25, %v2940_v13  ;;  %v2956_v52 = vadd.f32 %v14202_v12, %v12008_v63  ;;  %v14203_v33 = vld [vmem:[#allocation141_spill] sm:$0xff]  ;;  %v14207_v12 = vld [vmem:[#allocation50_spill] sm:$0xff] }
 0x413   : > { %v4034_v6 = vmul.f32 %v14201_v46, %v2930_v27  ;;  %v2946_v24 = vadd.f32 %v14203_v33, %v12008_v63  ;;  %v14210_v27 = vld [vmem:[#allocation156_spill] sm:$0xff] }
 0x414   : > { %v2976_v55 = vadd.f32 %v14210_v27, %v12008_v63 }
 0x415   : > { %v4040_v46 = vmul.f32 %v14207_v12, %v2946_v24 }
 0x416   : > { %v9029_v7 = vpop.f32.mrb[40].mxu0 }
 0x417   : > { %v12309_v34 = vmul.f32 %v9029_v7, %v4036_v19  ;;  %v5015_v49 = vpop.f32.mrb[41].mxu0  ;;  %v14204_v7 = vld [vmem:[#allocation147_spill] sm:$0xff]  ;;  %v14211_v19 = vld [vmem:[#allocation150_spill] sm:$0xff] }
 0x418   : > { %v12312_v0 = vmul.f32 %v5015_v49, %v4032_v45  ;;  %v9030_v56 = vpop.f32.mrb[42].mxu0  ;;  %v2960_v13 = vadd.f32 %v14204_v7, %v12008_v63  ;;  %v14205_v45 = vld [vmem:[#allocation143_spill] sm:$0xff]  ;;  %v2966_v54 = vadd.f32 %v14211_v19, %v12008_v63  ;;  %v14216_v19 = vpack.c.bf16 %v12241_v47, %v12233_v43 }
 0x419   : > { %v12316_v35 = vmul.f32 %v9030_v56, %v4038_v41  ;;  %v5018_v20 = vpop.f32.mrb[43].mxu0  ;;  %v2950_v49 = vadd.f32 %v14205_v45, %v12008_v63  ;;  %v14206_v56 = vld [vmem:[#allocation58_spill] sm:$0xff]  ;;  %v3000_v43 = vadd.f32 %v11581_v17, %v12008_v63  ;;  %v14225_v17 = vpack.c.bf16 %v12270_v18, %v12262_v21 }
 0x41a   : > { %v12320_v61 = vmul.f32 %v5018_v20, %v4034_v6  ;;  %v4044_v25 = vmul.f32 %v14206_v56, %v2956_v52  ;;  %v14208_v20 = vld [vmem:[#allocation60_spill] sm:$0xff]  ;;  %v14212_v56 = vld [vmem:[#allocation159_spill] sm:$0xff] }
 0x41b   : > { %v4046_v1 = vmul.f32 %v14208_v20, %v2960_v13  ;;  %v4042_v5 = vmul.f32 %v14209_v51, %v2950_v49  ;;  %v2980_v24 = vadd.f32 %v14212_v56, %v12008_v63  ;;  %v14215_v51 = vld [vmem:[#allocation70_spill] sm:$0xff] }
 0x41c   : > { %v4048_v27 = vmul.f32 %v14215_v51, %v2966_v54  ;;  %v14220_v54 = vld [vmem:[#allocation162_spill] sm:$0xff] }
 0x41e   : > { %v9033_v41 = vpop.f32.mrb[44].mxu0 }
 0x41f   : > { %v5384_v33 = vmul.f32 %v9033_v41, %v4044_v25  ;;  %v5031_v6 = vpop.f32.mrb[45].mxu0  ;;  %v14213_v41 = vld [vmem:[#allocation153_spill] sm:$0xff] }
 0x420   : > { %v5382_v29 = vmul.f32 %v5031_v6, %v4040_v46  ;;  %v9034_v7 = vpop.f32.mrb[46].mxu0  ;;  %v2970_v13 = vadd.f32 %v14213_v41, %v12008_v63  ;;  %v14214_v6 = vld [vmem:[#allocation82_spill] sm:$0xff] }
 0x421   : > { %v5385_v45 = vmul.f32 %v9034_v7, %v4046_v1  ;;  %v5034_v53 = vpop.f32.mrb[47].mxu0  ;;  %v4052_v20 = vmul.f32 %v14214_v6, %v2976_v55 }
 0x422   : > { %v5383_v52 = vmul.f32 %v5034_v53, %v4042_v5  ;;  %v14217_v53 = vld [vmem:[#allocation84_spill] sm:$0xff] }
 0x423   : > { %v5483_v25 = vpack.c.bf16 %v5385_v45, %v5384_v33  ;;  %v4054_v5 = vmul.f32 %v14217_v53, %v2980_v24  ;;  %v14218_v45 = vld [vmem:[#allocation72_spill] sm:$0xff]  ;;  %v14221_v24 = vpack.c.bf16 %v12237_v16, %v12227_v10 }
 0x424   : > { %v5482_v46 = vpack.c.bf16 %v5383_v52, %v5382_v29  ;;  %v4050_v41 = vmul.f32 %v14218_v45, %v2970_v13  ;;  %v14219_v29 = vld [vmem:[#allocation168_spill] sm:$0xff] }
 0x425   : > { %v2996_v55 = vadd.f32 %v14219_v29, %v12008_v63 }
 0x426   : > { %v9037_v49 = vpop.f32.mrb[48].mxu0  ;;  %8689 = vmatprep.subr.bf16.mxu1 %v5482_v46 }
 0x427   : > { %v5388_v1 = vmul.f32 %v9037_v49, %v4052_v20  ;;  %v5047_v7 = vpop.f32.mrb[49].mxu0  ;;  %8690 = vmatpush3.bf16.msra.mxu1 %v14216_v19  ;;  %v2986_v20 = vadd.f32 %v14220_v54, %v12008_v63 }
 0x428   : > { %v5386_v56 = vmul.f32 %v5047_v7, %v4048_v27  ;;  %v9038_v33 = vpop.f32.mrb[50].mxu0  ;;  %8691 = vmatprep.subr.bf16.mxu1 %v5483_v25  ;;  %v14222_v25 = vld [vmem:[#allocation165_spill] sm:$0xff]  ;;  %v14223_v7 = vld [vmem:[#allocation106_spill] sm:$0xff] }
 0x429   : > { %v5389_v52 = vmul.f32 %v9038_v33, %v4054_v5  ;;  %v5050_v46 = vpop.f32.mrb[51].mxu0  ;;  %v2990_v13 = vadd.f32 %v14222_v25, %v12008_v63  ;;  %v4060_v19 = vmul.f32 %v14223_v7, %v2996_v55  ;;  %v14224_v33 = vld [vmem:[#allocation94_spill] sm:$0xff] }
 0x42a   : > { %v5387_v49 = vmul.f32 %v5050_v46, %v4050_v41  ;;  %v4056_v29 = vmul.f32 %v14224_v33, %v2986_v20  ;;  %v14227_v46 = vld [vmem:[#allocation96_spill] sm:$0xff]  ;;  %v14228_v20 = vld [vmem:[#allocation173_spill] sm:$0xff] }
 0x42b   : > { %v5485_v47 = vpack.c.bf16 %v5389_v52, %v5388_v1  ;;  %8692 = vmatpush3.bf16.msra.mxu1 %v14221_v24  ;;  %v14226_v1 = vld [vmem:[#allocation108_spill] sm:$0xff]  ;;  %v4058_v24 = vmul.f32 %v14227_v46, %v2990_v13  ;;  %v3006_v25 = vadd.f32 %v14228_v20, %v12008_v63 }
 0x42c   : > { %v5484_v27 = vpack.c.bf16 %v5387_v49, %v5386_v56  ;;  %v4062_v52 = vmul.f32 %v14226_v1, %v3000_v43  ;;  %v3016_v56 = vadd.f32 %v11608_v42, %v12008_v63  ;;  %v14230_v43 = vpack.c.bf16 %v12266_v58, %v12258_v3  ;;  %v14236_v20 = vld [vmem:[#allocation120_spill] sm:$0xff] }
 0x42e   : > { %v9041_v5 = vpop.f32.mrb[52].mxu0  ;;  %8693 = vmatprep.subr.bf16.mxu1 %v5484_v27 }
 0x42f   : > { %v5392_v54 = vmul.f32 %v9041_v5, %v4060_v19  ;;  %v5063_v41 = vpop.f32.mrb[53].mxu0  ;;  %8694 = vmatpush3.bf16.msra.mxu1 %v14225_v17  ;;  %v14229_v19 = vld [vmem:[#allocation181_spill] sm:$0xff]  ;;  %v14233_v17 = vld [vmem:[#allocation118_spill] sm:$0xff] }
 0x430   : > { %v5390_v10 = vmul.f32 %v5063_v41, %v4056_v29  ;;  %v9042_v16 = vpop.f32.mrb[54].mxu0  ;;  %8695 = vmatprep.subr.bf16.mxu1 %v5485_v47  ;;  %v3020_v21 = vadd.f32 %v14229_v19, %v12008_v63  ;;  %v14231_v47 = vld [vmem:[#allocation176_spill] sm:$0xff]  ;;  %v14232_v29 = vld [vmem:[#allocation130_spill] sm:$0xff] }
 0x431   : > { %v5393_v55 = vmul.f32 %v9042_v16, %v4062_v52  ;;  %v5066_v49 = vpop.f32.mrb[55].mxu0  ;;  %v3010_v13 = vadd.f32 %v14231_v47, %v12008_v63  ;;  %v4068_v42 = vmul.f32 %v14232_v29, %v3016_v56  ;;  %v4064_v52 = vmul.f32 %v14233_v17, %v3006_v25  ;;  %v14237_v25 = vld [vmem:[#allocation184_spill] sm:$0xff]  ;;  %v14277_v17 = vld [vmem:[#allocation151_spill] sm:$0xff] }
 0x432   : > { %v5391_v27 = vmul.f32 %v5066_v49, %v4058_v24  ;;  %v14234_v49 = vpack.c.bf16 %v12296_v28, %v12288_v11  ;;  %v3040_v11 = vadd.f32 %v11646_v8, %v12008_v63  ;;  %v14278_v29 = vld [vmem:[#allocation240_spill] sm:$0xff] }
 0x433   : > { %v5487_v18 = vpack.c.bf16 %v5393_v55, %v5392_v54  ;;  %8696 = vmatpush3.bf16.msra.mxu1 %v14230_v43  ;;  %v14235_v54 = vld [vmem:[#allocation132_spill] sm:$0xff]  ;;  %v4066_v19 = vmul.f32 %v14236_v20, %v3010_v13  ;;  %v3026_v43 = vadd.f32 %v14237_v25, %v12008_v63  ;;  %v3046_v25 = vadd.f32 %v11652_v44, %v12008_v63 }
 0x434   : > { %v5486_v5 = vpack.c.bf16 %v5391_v27, %v5390_v10  ;;  %v4070_v55 = vmul.f32 %v14235_v54, %v3020_v21  ;;  %v3036_v10 = vadd.f32 %v11640_v2, %v12008_v63  ;;  %v14238_v21 = vpack.c.bf16 %v12292_v23, %v12284_v4  ;;  %v14244_v4 = vld [vmem:[#allocation157_spill] sm:$0xff] }
 0x435   : > { %v3136_v46 = vadd.f32 %v14278_v29, %v12008_v63  ;;  %v14283_v29 = vld [vmem:[#allocation172_spill] sm:$0xff] }
 0x436   : > { %v9045_v41 = vpop.f32.mrb[56].mxu0  ;;  %8697 = vmatprep.subr.bf16.mxu1 %v5486_v5 }
 0x437   : > { %v5396_v16 = vmul.f32 %v9045_v41, %v4068_v42  ;;  %v5079_v24 = vpop.f32.mrb[57].mxu0  ;;  %8698 = vmatpush3.bf16.msra.mxu1 %v14234_v49  ;;  %v14240_v42 = vld [vmem:[#allocation167_spill] sm:$0xff]  ;;  %v14242_v49 = vld [vmem:[#allocation169_spill] sm:$0xff] }
 0x438   : > { %v5394_v58 = vmul.f32 %v5079_v24, %v4064_v52  ;;  %v9046_v3 = vpop.f32.mrb[58].mxu0  ;;  %8699 = vmatprep.subr.bf16.mxu1 %v5487_v18  ;;  %v14239_v18 = vld [vmem:[#allocation187_spill] sm:$0xff]  ;;  %v4076_v2 = vmul.f32 %v14240_v42, %v3036_v10  ;;  %v3056_v10 = vadd.f32 %v11670_v14, %v12008_v63  ;;  %v3050_v14 = vadd.f32 %v11658_v60, %v12008_v63 }
 0x439   : > { %v5397_v56 = vmul.f32 %v9046_v3, %v4070_v55  ;;  %v5082_v27 = vpop.f32.mrb[59].mxu0  ;;  %v3030_v13 = vadd.f32 %v14239_v18, %v12008_v63  ;;  %v14241_v41 = vld [vmem:[#allocation155_spill] sm:$0xff]  ;;  %v4078_v55 = vmul.f32 %v14242_v49, %v3040_v11  ;;  %v14269_v49 = vld [vmem:[#allocation232_spill] sm:$0xff] }
 0x43a   : > { %v5395_v47 = vmul.f32 %v5082_v27, %v4066_v19  ;;  %v4072_v52 = vmul.f32 %v14241_v41, %v3026_v43  ;;  %v14276_v42 = vld [vmem:[#allocation163_spill] sm:$0xff] }
 0x43b   : > { %v5489_v28 = vpack.c.bf16 %v5397_v56, %v5396_v16  ;;  %8700 = vmatpush3.bf16.msra.mxu1 %v14238_v21  ;;  %v14243_v16 = vpack.c.bf16 %v12320_v61, %v12312_v0  ;;  %v4074_v23 = vmul.f32 %v14244_v4, %v3030_v13  ;;  %v3060_v0 = vadd.f32 %v11675_v9, %v12008_v63  ;;  %v14247_v21 = vld [vmem:[#allocation178_spill] sm:$0xff] }
 0x43c   : > { %v5488_v5 = vpack.c.bf16 %v5395_v47, %v5394_v58  ;;  %v14245_v47 = vpack.c.bf16 %v12316_v35, %v12309_v34  ;;  %v4080_v18 = vmul.f32 %v14247_v21, %v3046_v25  ;;  %v14249_v9 = vld [vmem:[#allocation190_spill] sm:$0xff]  ;;  %v14250_v35 = vld [vmem:[#allocation9_spill] sm:$0xff]  ;;  %v14251_v34 = vld [vmem:[#allocation179_spill] sm:$0xff] }
 0x43d   : > { %v14268_v21 = vld [vmem:[#allocation215_spill] sm:$0xff] }
 0x43e   : > { %v9049_v24 = vpop.f32.mrb[60].mxu0  ;;  %8701 = vmatprep.subr.bf16.mxu1 %v5488_v5  ;;  %v14248_v5 = vld [vmem:[#allocation8_spill] sm:$0xff] }
 0x43f   : > { %v12399_v3 = vmul.f32 %v9049_v24, %v4076_v2  ;;  %v5095_v8 = vpop.f32.mrb[61].mxu0  ;;  %8702 = vmatpush3.bf16.msra.mxu1 %v14243_v16  ;;  %v4086_v2 = vmul.f32 %v14249_v9, %v3060_v0  ;;  %v3076_v16 = vadd.f32 %v11704_v30, %v12008_v63  ;;  %v14253_v0 = vld [vmem:[#allocation212_spill] sm:$0xff]  ;;  %v14261_v30 = vld [vmem:[#allocation222_spill] sm:$0xff] }
 0x440   : > { %v12405_v19 = vmul.f32 %v5095_v8, %v4072_v52  ;;  %v9050_v58 = vpop.f32.mrb[62].mxu0  ;;  %8703 = vmatprep.subr.bf16.mxu1 %v5489_v28  ;;  %v14246_v28 = vld [vmem:[#allocation189_spill] sm:$0xff] }
 0x441   : > { %v12409_v56 = vmul.f32 %v9050_v58, %v4078_v55  ;;  %v5098_v27 = vpop.f32.mrb[63].mxu0  ;;  %v4084_v44 = vmul.f32 %v14246_v28, %v3056_v10  ;;  %v4082_v55 = vmul.f32 %v14251_v34, %v3050_v14  ;;  %v14252_v10 = vld [vmem:[#allocation203_spill] sm:$0xff]  ;;  %v14260_v14 = vld [vmem:[#allocation198_spill] sm:$0xff] }
 0x442   : > { %v12413_v43 = vmul.f32 %v5098_v27, %v4074_v23  ;;  %v3066_v27 = vadd.f32 %v14252_v10, %v12008_v63  ;;  %v14257_v10 = vld [vmem:[#allocation10_spill] sm:$0xff]  ;;  %v14259_v34 = vld [vmem:[#allocation11_spill] sm:$0xff] }
 0x443   : > { %8704 = vmatpush3.bf16.msra.mxu1 %v14245_v47  ;;  %v3080_v47 = vadd.f32 %v14253_v0, %v12008_v63 }
 0x446   : > { %v9053_v13 = vpop.f32.mrb[64].mxu0  ;;  %6109 = vmatmul.mubr.bf16.vlgmr.msra.gmra.mrb[0].mxu1 %v14248_v5 }
 0x447   : > { %v12430_v52 = vmul.f32 %v9053_v13, %v4084_v44  ;;  %v5111_v24 = vpop.f32.mrb[65].mxu0  ;;  %6116 = vmatprep.mubr.bf16.mxu1 %v14250_v35  ;;  %v14254_v44 = vld [vmem:[#allocation206_spill] sm:$0xff]  ;;  %v14255_v13 = vld [vmem:[#allocation205_spill] sm:$0xff] }
 0x448   : > { %v12434_v60 = vmul.f32 %v5111_v24, %v4080_v18  ;;  %v9054_v8 = vpop.f32.mrb[66].mxu0  ;;  %v3070_v18 = vadd.f32 %v14254_v44, %v12008_v63  ;;  %v14256_v24 = vld [vmem:[#allocation197_spill] sm:$0xff] }
 0x449   : > { %v12438_v23 = vmul.f32 %v9054_v8, %v4086_v2  ;;  %v5114_v58 = vpop.f32.mrb[67].mxu0  ;;  %v4092_v2 = vmul.f32 %v14255_v13, %v3076_v16  ;;  %v4088_v8 = vmul.f32 %v14256_v24, %v3066_v27  ;;  %v3096_v16 = vadd.f32 %v14261_v30, %v12008_v63  ;;  %v14265_v30 = vld [vmem:[#allocation223_spill] sm:$0xff] }
 0x44a   : > { %v12442_v25 = vmul.f32 %v5114_v58, %v4082_v55  ;;  %v14258_v55 = vld [vmem:[#allocation208_spill] sm:$0xff]  ;;  %v4090_v35 = vmul.f32 %v14260_v14, %v3070_v18  ;;  %v12476_v14 = vpop.permute.xlu0 %3806 }
 0x44b   : > { %v4094_v58 = vmul.f32 %v14258_v55, %v3080_v47 }
 0x44e   : > { %v9057_v61 = vpop.f32.mrb[68].mxu0  ;;  %6117 = vmatmul.mubr.bf16.gmra.mrb[4].mxu1 %v14257_v10  ;;  %v14262_v10 = vld [vmem:[#allocation216_spill] sm:$0xff]  ;;  %v12486_v28 = vpop.permute.xlu0 %3816 }
 0x44f   : > { %v12456_v11 = vmul.f32 %v9057_v61, %v4092_v2  ;;  %v5127_v0 = vpop.f32.mrb[69].mxu0  ;;  %6157 = vmatprep.mubr.bf16.mxu1 %v14259_v34  ;;  %v3086_v24 = vadd.f32 %v14262_v10, %v12008_v63  ;;  %v14263_v61 = vld [vmem:[#allocation224_spill] sm:$0xff]  ;;  %v14266_v34 = vld [vmem:[#allocation214_spill] sm:$0xff] }
 0x450   : > { %v12460_v44 = vmul.f32 %v5127_v0, %v4088_v8  ;;  %v9058_v9 = vpop.f32.mrb[70].mxu0  ;;  %v3100_v2 = vadd.f32 %v14263_v61, %v12008_v63  ;;  %v14264_v8 = vld [vmem:[#allocation218_spill] sm:$0xff] }
 0x451   : > { %v12464_v13 = vmul.f32 %v9058_v9, %v4094_v58  ;;  %v5130_v27 = vpop.f32.mrb[71].mxu0  ;;  %v3090_v0 = vadd.f32 %v14264_v8, %v12008_v63  ;;  %v4100_v58 = vmul.f32 %v14265_v30, %v3096_v16  ;;  %v4096_v10 = vmul.f32 %v14266_v34, %v3086_v24  ;;  %v14270_v24 = vld [vmem:[#allocation228_spill] sm:$0xff] }
 0x452   : > { %v12468_v47 = vmul.f32 %v5130_v27, %v4090_v35  ;;  %v14267_v27 = vld [vmem:[#allocation225_spill] sm:$0xff]  ;;  %v3116_v9 = vadd.f32 %v14269_v49, %v12008_v63  ;;  %v3106_v30 = vadd.f32 %v14270_v24, %v12008_v63 }
 0x453   : > { %v4102_v55 = vmul.f32 %v14267_v27, %v3100_v2  ;;  %v4098_v18 = vmul.f32 %v14268_v21, %v3090_v0  ;;  %v14275_v24 = vld [vmem:[#allocation149_spill] sm:$0xff] }
 0x456   : > { %v9061_v35 = vpop.f32.mrb[72].mxu0 }
 0x457   : > { %v12483_v5 = vmul.f32 %v9061_v35, %v4100_v58  ;;  %v5143_v61 = vpop.f32.mrb[73].mxu0  ;;  %v14271_v58 = vld [vmem:[#allocation234_spill] sm:$0xff] }
 0x458   : > { %v12488_v8 = vmul.f32 %v5143_v61, %v4096_v10  ;;  %v9062_v4 = vpop.f32.mrb[74].mxu0  ;;  %v3120_v35 = vadd.f32 %v14271_v58, %v12008_v63  ;;  %v14272_v10 = vld [vmem:[#allocation230_spill] sm:$0xff]  ;;  %v12504_v61 = vpop.permute.xlu0 %3826 }
 0x459   : > { %v12492_v41 = vmul.f32 %v9062_v4, %v4102_v55  ;;  %v5146_v16 = vpop.f32.mrb[75].mxu0  ;;  %v3110_v27 = vadd.f32 %v14272_v10, %v12008_v63  ;;  %14273 = vst [vmem:[#allocation65_spill] sm:$0xff] %v12504_v61  ;;  %v14274_v4 = vld [vmem:[#allocation161_spill] sm:$0xff] }
 0x45a   : > { %v12496_v2 = vmul.f32 %v5146_v16, %v4098_v18  ;;  %v4108_v55 = vmul.f32 %v14274_v4, %v3116_v9  ;;  %v4104_v18 = vmul.f32 %v14275_v24, %v3106_v30  ;;  %v4110_v58 = vmul.f32 %v14276_v42, %v3120_v35  ;;  %v14279_v9 = vld [vmem:[#allocation236_spill] sm:$0xff]  ;;  %v14281_v35 = vld [vmem:[#allocation238_spill] sm:$0xff] }
 0x45b   : > { %v4106_v10 = vmul.f32 %v14277_v17, %v3110_v27  ;;  %v3126_v4 = vadd.f32 %v14279_v9, %v12008_v63  ;;  %v3130_v42 = vadd.f32 %v14281_v35, %v12008_v63  ;;  %v14282_v27 = vld [vmem:[#allocation183_spill] sm:$0xff] }
 0x45c   : > { %v12511_v20 = vpop.permute.xlu0 %3836  ;;  %v4116_v17 = vmul.f32 %v14282_v27, %v3136_v46  ;;  %v14287_v46 = vld [vmem:[#allocation248_spill] sm:$0xff] }
 0x45d   : > { %v3156_v35 = vadd.f32 %v14287_v46, %v12008_v63 }
 0x45e   : > { %v9065_v21 = vpop.f32.mrb[76].mxu0 }
 0x45f   : > { %v5416_v16 = vmul.f32 %v9065_v21, %v4108_v55  ;;  %v5159_v34 = vpop.f32.mrb[77].mxu0  ;;  %v14280_v21 = vld [vmem:[#allocation242_spill] sm:$0xff] }
 0x460   : > { %v5414_v0 = vmul.f32 %v5159_v34, %v4104_v18  ;;  %v9066_v54 = vpop.f32.mrb[78].mxu0  ;;  %v3140_v30 = vadd.f32 %v14280_v21, %v12008_v63  ;;  %v12522_v34 = vpop.permute.xlu0 %3846 }
 0x461   : > { %v5417_v1 = vmul.f32 %v9066_v54, %v4110_v58  ;;  %v5162_v49 = vpop.f32.mrb[79].mxu0  ;;  %v4112_v54 = vmul.f32 %v14283_v29, %v3126_v4 }
 0x462   : > { %v5415_v33 = vmul.f32 %v5162_v49, %v4106_v10  ;;  %v14284_v49 = vpack.c.bf16 %v12413_v43, %v12405_v19  ;;  %v14285_v10 = vld [vmem:[#allocation185_spill] sm:$0xff]  ;;  %v14289_v19 = vld [vmem:[#allocation250_spill] sm:$0xff] }
 0x463   : > { %v5499_v55 = vpack.c.bf16 %v5417_v1, %v5416_v16  ;;  %v4118_v1 = vmul.f32 %v14285_v10, %v3140_v30  ;;  %v3160_v43 = vadd.f32 %v14289_v19, %v12008_v63 }
 0x464   : > { %v5498_v18 = vpack.c.bf16 %v5415_v33, %v5414_v0  ;;  %v12530_v16 = vpop.permute.xlu0 %3856  ;;  %v14286_v33 = vld [vmem:[#allocation174_spill] sm:$0xff] }
 0x465   : > { %v4114_v0 = vmul.f32 %v14286_v33, %v3130_v42 }
 0x466   : > { %v9069_v24 = vpop.f32.mrb[80].mxu0  ;;  %8717 = vmatprep.subr.bf16.mxu1 %v5498_v18 }
 0x467   : > { %v5420_v58 = vmul.f32 %v9069_v24, %v4116_v17  ;;  %v5175_v7 = vpop.f32.mrb[81].mxu0  ;;  %8718 = vmatpush3.bf16.msra.mxu1 %v14284_v49  ;;  %v14288_v17 = vld [vmem:[#allocation244_spill] sm:$0xff] }
 0x468   : > { %v5418_v9 = vmul.f32 %v5175_v7, %v4112_v54  ;;  %v9070_v21 = vpop.f32.mrb[82].mxu0  ;;  %8719 = vmatprep.subr.bf16.mxu1 %v5499_v55  ;;  %v3146_v24 = vadd.f32 %v14288_v17, %v12008_v63  ;;  %v14290_v7 = vpack.c.bf16 %v12409_v56, %v12399_v3  ;;  %v14291_v55 = vld [vmem:[#allocation246_spill] sm:$0xff]  ;;  %v12544_v54 = vpop.permute.xlu0 %3866  ;;  %v14294_v17 = vld [vmem:[#allocation193_spill] sm:$0xff] }
 0x469   : > { %v5421_v18 = vmul.f32 %v9070_v21, %v4118_v1  ;;  %v5178_v4 = vpop.f32.mrb[83].mxu0  ;;  %v3150_v42 = vadd.f32 %v14291_v55, %v12008_v63  ;;  %14292 = vst [vmem:[#allocation59_spill] sm:$0xff] %v12544_v54  ;;  %v14293_v1 = vld [vmem:[#allocation201_spill] sm:$0xff]  ;;  %v14296_v3 = vld [vmem:[#allocation202_spill] sm:$0xff] }
 0x46a   : > { %v5419_v29 = vmul.f32 %v5178_v4, %v4114_v0  ;;  %v4124_v21 = vmul.f32 %v14293_v1, %v3156_v35  ;;  %v4120_v0 = vmul.f32 %v14294_v17, %v3146_v24  ;;  %v4126_v56 = vmul.f32 %v14296_v3, %v3160_v43  ;;  %v14298_v35 = vld [vmem:[#allocation256_spill] sm:$0xff] }
 0x46b   : > { %v5501_v30 = vpack.c.bf16 %v5421_v18, %v5420_v58  ;;  %8720 = vmatpush3.bf16.msra.mxu1 %v14290_v7  ;;  %v14295_v58 = vpack.c.bf16 %v12442_v25, %v12434_v60  ;;  %v3176_v55 = vadd.f32 %v14298_v35, %v12008_v63  ;;  %v14300_v60 = vld [vmem:[#allocation258_spill] sm:$0xff] }
 0x46c   : > { %v5500_v49 = vpack.c.bf16 %v5419_v29, %v5418_v9  ;;  %v12552_v18 = vpop.permute.xlu0 %3876  ;;  %v14297_v29 = vld [vmem:[#allocation195_spill] sm:$0xff]  ;;  %v3180_v25 = vadd.f32 %v14300_v60, %v12008_v63 }
 0x46d   : > { %v4122_v9 = vmul.f32 %v14297_v29, %v3150_v42 }
 0x46e   : > { %v9073_v46 = vpop.f32.mrb[84].mxu0  ;;  %8721 = vmatprep.subr.bf16.mxu1 %v5500_v49 }
 0x46f   : > { %v5424_v4 = vmul.f32 %v9073_v46, %v4124_v21  ;;  %v5191_v33 = vpop.f32.mrb[85].mxu0  ;;  %8722 = vmatpush3.bf16.msra.mxu1 %v14295_v58  ;;  %v14299_v21 = vld [vmem:[#allocation252_spill] sm:$0xff] }
 0x470   : > { %v5422_v19 = vmul.f32 %v5191_v33, %v4120_v0  ;;  %v9074_v7 = vpop.f32.mrb[86].mxu0  ;;  %8723 = vmatprep.subr.bf16.mxu1 %v5501_v30  ;;  %v3166_v46 = vadd.f32 %v14299_v21, %v12008_v63  ;;  %v14301_v33 = vpack.c.bf16 %v12438_v23, %v12430_v52  ;;  %v14302_v30 = vld [vmem:[#allocation254_spill] sm:$0xff]  ;;  %v12566_v0 = vpop.permute.xlu0 %3886  ;;  %v14305_v21 = vld [vmem:[#allocation209_spill] sm:$0xff]  ;;  %v14306_v52 = vpack.c.bf16 %v12468_v47, %v12460_v44 }
 0x471   : > { %v5425_v49 = vmul.f32 %v9074_v7, %v4126_v56  ;;  %v5194_v24 = vpop.f32.mrb[87].mxu0  ;;  %v3170_v42 = vadd.f32 %v14302_v30, %v12008_v63  ;;  %14303 = vst [vmem:[#allocation68_spill] sm:$0xff] %v12566_v0  ;;  %v14304_v56 = vld [vmem:[#allocation220_spill] sm:$0xff]  ;;  %v14307_v23 = vld [vmem:[#allocation221_spill] sm:$0xff]  ;;  %v14311_v44 = vld [vmem:[#allocation266_spill] sm:$0xff] }
 0x472   : > { %v5423_v17 = vmul.f32 %v5194_v24, %v4122_v9  ;;  %v4132_v7 = vmul.f32 %v14304_v56, %v3176_v55  ;;  %v4128_v9 = vmul.f32 %v14305_v21, %v3166_v46  ;;  %v12570_v24 = vpop.permute.xlu1 %3811  ;;  %v3200_v47 = vadd.f32 %v14311_v44, %v12008_v63 }
 0x473   : > { %v5503_v43 = vpack.c.bf16 %v5425_v49, %v5424_v4  ;;  %8724 = vmatpush3.bf16.msra.mxu1 %v14301_v33  ;;  %v4134_v49 = vmul.f32 %v14307_v23, %v3180_v25 }
 0x474   : > { %v5502_v58 = vpack.c.bf16 %v5423_v17, %v5422_v19  ;;  %v12576_v33 = vpop.permute.xlu0 %3896  ;;  %v14308_v19 = vld [vmem:[#allocation211_spill] sm:$0xff] }
 0x475   : > { %v4130_v55 = vmul.f32 %v14308_v19, %v3170_v42  ;;  %v14313_v42 = vld [vmem:[#allocation262_spill] sm:$0xff] }
 0x476   : > { %v9077_v35 = vpop.f32.mrb[88].mxu0  ;;  %8725 = vmatprep.subr.bf16.mxu1 %v5502_v58  ;;  %v14309_v58 = vld [vmem:[#allocation264_spill] sm:$0xff]  ;;  %v12585_v25 = vpop.permute.xlu1 %3821 }
 0x477   : > { %v5428_v60 = vmul.f32 %v9077_v35, %v4132_v7  ;;  %v5207_v4 = vpop.f32.mrb[89].mxu0  ;;  %8726 = vmatpush3.bf16.msra.mxu1 %v14306_v52  ;;  %v3196_v46 = vadd.f32 %v14309_v58, %v12008_v63  ;;  %v14310_v7 = vld [vmem:[#allocation260_spill] sm:$0xff]  ;;  %v4142_v58 = vmul.f32 %v12585_v25, %v3200_v47 }
 0x478   : > { %v5426_v30 = vmul.f32 %v5207_v4, %v4128_v9  ;;  %v9078_v17 = vpop.f32.mrb[90].mxu0  ;;  %8727 = vmatprep.subr.bf16.mxu1 %v5503_v43  ;;  %v3186_v35 = vadd.f32 %v14310_v7, %v12008_v63  ;;  %v14312_v43 = vpack.c.bf16 %v12464_v13, %v12456_v11  ;;  %v3190_v9 = vadd.f32 %v14313_v42, %v12008_v63  ;;  %v12592_v4 = vpop.permute.xlu0 %3906  ;;  %v14319_v42 = vld [vmem:[#allocation268_spill] sm:$0xff] }
 0x479   : > { %v5429_v21 = vmul.f32 %v9078_v17, %v4134_v49  ;;  %v5210_v56 = vpop.f32.mrb[91].mxu0  ;;  %14314 = vst [vmem:[#allocation62_spill] sm:$0xff] %v12592_v4  ;;  %v4140_v17 = vmul.f32 %v12486_v28, %v3196_v46  ;;  %v14316_v11 = vpack.c.bf16 %v12496_v2, %v12488_v8  ;;  %v14318_v46 = vld [vmem:[#allocation272_spill] sm:$0xff] }
 0x47a   : > { %v5427_v29 = vmul.f32 %v5210_v56, %v4130_v55  ;;  %v4136_v56 = vmul.f32 %v12476_v14, %v3186_v35  ;;  %v12597_v7 = vpop.permute.xlu1 %3831  ;;  %v4138_v13 = vmul.f32 %v12570_v24, %v3190_v9  ;;  %v3216_v35 = vadd.f32 %v14318_v46, %v12008_v63 }
 0x47b   : > { %v5505_v52 = vpack.c.bf16 %v5429_v21, %v5428_v60  ;;  %8728 = vmatpush3.bf16.msra.mxu1 %v14312_v43  ;;  %14315 = vst [vmem:[#allocation22_spill] sm:$0xff] %v12597_v7 }
 0x47c   : > { %v5504_v49 = vpack.c.bf16 %v5427_v29, %v5426_v30  ;;  %v12603_v44 = vpop.permute.xlu0 %3916 }
 0x47d   : > { %14317 = vst [vmem:[#allocation77_spill] sm:$0xff] %v12603_v44 }
 0x47e   : > { %v9081_v55 = vpop.f32.mrb[92].mxu0  ;;  %8729 = vmatprep.subr.bf16.mxu1 %v5504_v49  ;;  %v3206_v49 = vadd.f32 %v14319_v42, %v12008_v63  ;;  %v12611_v2 = vpop.permute.xlu1 %3841  ;;  %v14326_v42 = vld [vmem:[#allocation12_spill] sm:$0xff] }
 0x47f   : > { %v5432_v21 = vmul.f32 %v9081_v55, %v4140_v17  ;;  %v5223_v60 = vpop.f32.mrb[93].mxu0  ;;  %8730 = vmatpush3.bf16.msra.mxu1 %v14316_v11  ;;  %v14320_v55 = vld [vmem:[#allocation274_spill] sm:$0xff]  ;;  %14321 = vst [vmem:[#allocation71_spill] sm:$0xff] %v12611_v2 }
 0x480   : > { %v5430_v29 = vmul.f32 %v5223_v60, %v4136_v56  ;;  %v9082_v30 = vpop.f32.mrb[94].mxu0  ;;  %8731 = vmatprep.subr.bf16.mxu1 %v5505_v52  ;;  %v3220_v8 = vadd.f32 %v14320_v55, %v12008_v63  ;;  %v14322_v56 = vpack.c.bf16 %v12492_v41, %v12483_v5  ;;  %v14323_v52 = vld [vmem:[#allocation270_spill] sm:$0xff]  ;;  %v12618_v11 = vpop.permute.xlu0 %3926  ;;  %v4144_v46 = vmul.f32 %v12504_v61, %v3206_v49  ;;  %v14328_v55 = vld [vmem:[#allocation13_spill] sm:$0xff]  ;;  %v14330_v49 = vld [vmem:[#allocation280_spill] sm:$0xff] }
 0x481   : > { %v5433_v43 = vmul.f32 %v9082_v30, %v4142_v58  ;;  %v5226_v47 = vpop.f32.mrb[95].mxu0  ;;  %v3210_v60 = vadd.f32 %v14323_v52, %v12008_v63  ;;  %14324 = vst [vmem:[#allocation80_spill] sm:$0xff] %v12618_v11  ;;  %v14325_v30 = vmov 0   ;;  %v3236_v52 = vadd.f32 %v14330_v49, %v12008_v63 }
 0x482   : > { %v5431_v17 = vmul.f32 %v5226_v47, %v4138_v13  ;;  %v4148_v13 = vmul.f32 %v12511_v20, %v3216_v35 }
 0x483   : > { %v5507_v9 = vpack.c.bf16 %v5433_v43, %v5432_v21  ;;  %8732 = vmatpush3.bf16.msra.mxu1 %v14322_v56  ;;  %v4150_v21 = vmul.f32 %v12611_v2, %v3220_v8  ;;  %v12625_v43 = vpop.permute.xlu1 %3851  ;;  %v14331_v2 = vld [vmem:[#allocation276_spill] sm:$0xff] }
 0x484   : > { %v5506_v58 = vpack.c.bf16 %v5431_v17, %v5430_v29  ;;  %6174 = vmatprep.subr.bf16.mxu1 %v14325_v30  ;;  %14327 = vst [vmem:[#allocation74_spill] sm:$0xff] %v12625_v43  ;;  %v4146_v29 = vmul.f32 %v12597_v7, %v3210_v60  ;;  %v12629_v17 = vpop.permute.xlu0 %3936  ;;  %v14333_v60 = vld [vmem:[#allocation278_spill] sm:$0xff] }
 0x485   : > { %14329 = vst [vmem:[#allocation89_spill] sm:$0xff] %v12629_v17 }
 0x486   : > { %v9085_v47 = vpop.f32.mrb[96].mxu0  ;;  %6158 = vmatmul.mubr.bf16.vlgmr.msra.gmra.mrb[8].mxu1 %v14326_v42 }
 0x487   : > { %v5436_v41 = vmul.f32 %v9085_v47, %v4148_v13  ;;  %v5239_v5 = vpop.f32.mrb[97].mxu0  ;;  %6165 = vmatprep.mubr.bf16.mxu1 %v14328_v55  ;;  %6175 = vmatpush1.bf16.msra.mxu1 %v5506_v58  ;;  %v3226_v13 = vadd.f32 %v14331_v2, %v12008_v63  ;;  %v14332_v55 = vld [vmem:[#allocation282_spill] sm:$0xff] }
 0x488   : > { %v5434_v56 = vmul.f32 %v5239_v5, %v4144_v46  ;;  %v9086_v35 = vpop.f32.mrb[98].mxu0  ;;  %6176 = vmatprep.subr.bf16.mxu1 %v14325_v30  ;;  %v3240_v58 = vadd.f32 %v14332_v55, %v12008_v63  ;;  %v3230_v46 = vadd.f32 %v14333_v60, %v12008_v63  ;;  %v12640_v5 = vpop.permute.xlu1 %3861 }
 0x489   : > { %v5437_v42 = vmul.f32 %v9086_v35, %v4150_v21  ;;  %v5242_v8 = vpop.f32.mrb[99].mxu0  ;;  %14334 = vst [vmem:[#allocation83_spill] sm:$0xff] %v12640_v5  ;;  %v12643_v49 = vpop.trf.xlu0  ;;  %v4156_v21 = vmul.f32 %v12530_v16, %v3236_v52  ;;  %v4152_v2 = vmul.f32 %v12522_v34, %v3226_v13  ;;  %v14336_v35 = vld [vmem:[#allocation14_spill] sm:$0xff]  ;;  %v14338_v52 = vld [vmem:[#allocation288_spill] sm:$0xff] }
 0x48a   : > { %v5435_v47 = vmul.f32 %v5242_v8, %v4146_v29  ;;  %14335 = vst [vmem:[#allocation92_spill] sm:$0xff] %v12643_v49  ;;  %v4154_v55 = vmul.f32 %v12625_v43, %v3230_v46  ;;  %v3256_v13 = vadd.f32 %v14338_v52, %v12008_v63  ;;  %v14341_v46 = vld [vmem:[#allocation286_spill] sm:$0xff] }
 0x48b   : > { %v5509_v61 = vpack.c.bf16 %v5437_v42, %v5436_v41  ;;  %6177 = vmatpush1.bf16.msra.mxu1 %v5507_v9  ;;  %v4158_v9 = vmul.f32 %v12640_v5, %v3240_v58  ;;  %v14339_v58 = vld [vmem:[#allocation284_spill] sm:$0xff] }
 0x48c   : > { %v5508_v7 = vpack.c.bf16 %v5435_v47, %v5434_v56  ;;  %6178 = vmatprep.subr.bf16.mxu1 %v14325_v30  ;;  %v12652_v56 = vpop.permute.xlu1 %3871 }
 0x48d   : > { %14337 = vst [vmem:[#allocation86_spill] sm:$0xff] %v12652_v56 }
 0x48e   : > { %v9089_v29 = vpop.f32.mrb[100].mxu0  ;;  %6166 = vmatmul.mubr.bf16.gmra.mrb[12].mxu1 %v14336_v35 }
 0x48f   : > { %v5440_v42 = vmul.f32 %v9089_v29, %v4156_v21  ;;  %v5255_v41 = vpop.f32.mrb[101].mxu0  ;;  %6179 = vmatpush1.bf16.msra.mxu1 %v5508_v7  ;;  %8408 = vmatprep.mubr.msk.bf16.mxu1 %vm6020_vm1, %v12643_v49  ;;  %v3246_v21 = vadd.f32 %v14339_v58, %v12008_v63  ;;  %v14340_v29 = vld [vmem:[#allocation290_spill] sm:$0xff] }
 0x490   : > { %v5438_v8 = vmul.f32 %v5255_v41, %v4152_v2  ;;  %v9090_v47 = vpop.f32.mrb[102].mxu0  ;;  %6180 = vmatprep.subr.bf16.mxu1 %v14325_v30  ;;  %v3260_v49 = vadd.f32 %v14340_v29, %v12008_v63  ;;  %v3250_v2 = vadd.f32 %v14341_v46, %v12008_v63  ;;  %v12663_v41 = vpop.permute.xlu1 %3881 }
 0x491   : > { %v5441_v60 = vmul.f32 %v9090_v47, %v4158_v9  ;;  %v5258_v35 = vpop.f32.mrb[103].mxu0  ;;  %v4164_v9 = vmul.f32 %v12552_v18, %v3256_v13  ;;  %v4160_v47 = vmul.f32 %v12544_v54, %v3246_v21  ;;  %v14344_v21 = vld [vmem:[#allocation292_spill] sm:$0xff] }
 0x492   : > { %v5439_v7 = vmul.f32 %v5258_v35, %v4154_v55  ;;  %v4166_v35 = vmul.f32 %v12663_v41, %v3260_v49  ;;  %v3266_v54 = vadd.f32 %v14344_v21, %v12008_v63 }
 0x493   : > { %v5511_v5 = vpack.c.bf16 %v5441_v60, %v5440_v42  ;;  %6181 = vmatpush1.bf16.msra.mxu1 %v5509_v61  ;;  %v4162_v61 = vmul.f32 %v12652_v56, %v3250_v2  ;;  %v14346_v2 = vld [vmem:[#allocation294_spill] sm:$0xff] }
 0x494   : > { %v5510_v43 = vpack.c.bf16 %v5439_v7, %v5438_v8  ;;  %6182 = vmatprep.subr.bf16.mxu1 %v14325_v30  ;;  %v12670_v42 = vpop.permute.xlu1 %3891  ;;  %v14343_v8 = vld [vmem:[#allocation296_spill] sm:$0xff] }
 0x495   : > { %14342 = vst [vmem:[#allocation101_spill] sm:$0xff] %v12670_v42  ;;  %v3276_v7 = vadd.f32 %v14343_v8, %v12008_v63 }
 0x496   : > { %v9093_v52 = vpop.f32.mrb[104].mxu0 }
 0x497   : > { %v5444_v55 = vmul.f32 %v9093_v52, %v4164_v9  ;;  %v5271_v58 = vpop.f32.mrb[105].mxu0  ;;  %6183 = vmatpush1.bf16.msra.mxu1 %v5510_v43  ;;  %v14345_v9 = vld [vmem:[#allocation298_spill] sm:$0xff] }
 0x498   : > { %v5442_v60 = vmul.f32 %v5271_v58, %v4160_v47  ;;  %v9094_v29 = vpop.f32.mrb[106].mxu0  ;;  %6184 = vmatprep.subr.bf16.mxu1 %v14325_v30  ;;  %v3280_v43 = vadd.f32 %v14345_v9, %v12008_v63  ;;  %v3270_v47 = vadd.f32 %v14346_v2, %v12008_v63  ;;  %v12681_v58 = vpop.permute.xlu1 %3901 }
 0x499   : > { %v5445_v13 = vmul.f32 %v9094_v29, %v4166_v35  ;;  %v5274_v46 = vpop.f32.mrb[107].mxu0  ;;  %14347 = vst [vmem:[#allocation95_spill] sm:$0xff] %v12681_v58  ;;  %v4172_v35 = vmul.f32 %v12576_v33, %v3276_v7  ;;  %v4168_v29 = vmul.f32 %v12566_v0, %v3266_v54  ;;  %v14350_v54 = vld [vmem:[#allocation300_spill] sm:$0xff] }
 0x49a   : > { %v5443_v49 = vmul.f32 %v5274_v46, %v4162_v61  ;;  %v4174_v61 = vmul.f32 %v12681_v58, %v3280_v43  ;;  %v3286_v0 = vadd.f32 %v14350_v54, %v12008_v63 }
 0x49b   : > { %v5513_v52 = vpack.c.bf16 %v5445_v13, %v5444_v55  ;;  %6185 = vmatpush1.bf16.msra.mxu1 %v5511_v5  ;;  %v4170_v5 = vmul.f32 %v12670_v42, %v3270_v47  ;;  %v14352_v47 = vld [vmem:[#allocation302_spill] sm:$0xff] }
 0x49c   : > { %v5512_v56 = vpack.c.bf16 %v5443_v49, %v5442_v60  ;;  %6186 = vmatprep.subr.bf16.mxu1 %v14325_v30  ;;  %v12688_v55 = vpop.permute.xlu1 %3911  ;;  %v14349_v60 = vld [vmem:[#allocation304_spill] sm:$0xff] }
 0x49d   : > { %14348 = vst [vmem:[#allocation104_spill] sm:$0xff] %v12688_v55  ;;  %v3296_v49 = vadd.f32 %v14349_v60, %v12008_v63 }
 0x49e   : > { %v9097_v8 = vpop.f32.mrb[108].mxu0 }
 0x49f   : > { %v5448_v46 = vmul.f32 %v9097_v8, %v4172_v35  ;;  %v5287_v21 = vpop.f32.mrb[109].mxu0  ;;  %6187 = vmatpush1.bf16.msra.mxu1 %v5512_v56  ;;  %v14351_v35 = vld [vmem:[#allocation306_spill] sm:$0xff] }
 0x4a0   : > { %v5446_v13 = vmul.f32 %v5287_v21, %v4168_v29  ;;  %v9098_v9 = vpop.f32.mrb[110].mxu0  ;;  %6188 = vmatprep.subr.bf16.mxu1 %v14325_v30  ;;  %v3300_v56 = vadd.f32 %v14351_v35, %v12008_v63  ;;  %v3290_v29 = vadd.f32 %v14352_v47, %v12008_v63  ;;  %v12699_v21 = vpop.permute.xlu1 %3921 }
 0x4a1   : > { %v5449_v7 = vmul.f32 %v9098_v9, %v4174_v61  ;;  %v5290_v2 = vpop.f32.mrb[111].mxu0  ;;  %14353 = vst [vmem:[#allocation98_spill] sm:$0xff] %v12699_v21  ;;  %v4180_v61 = vmul.f32 %v12603_v44, %v3296_v49  ;;  %v4176_v9 = vmul.f32 %v12592_v4, %v3286_v0  ;;  %v14356_v0 = vld [vmem:[#allocation308_spill] sm:$0xff] }
 0x4a2   : > { %v5447_v43 = vmul.f32 %v5290_v2, %v4170_v5  ;;  %v4182_v5 = vmul.f32 %v12699_v21, %v3300_v56  ;;  %v3306_v4 = vadd.f32 %v14356_v0, %v12008_v63 }
 0x4a3   : > { %v5515_v8 = vpack.c.bf16 %v5449_v7, %v5448_v46  ;;  %6189 = vmatpush1.bf16.msra.mxu1 %v5513_v52  ;;  %v4178_v52 = vmul.f32 %v12688_v55, %v3290_v29  ;;  %v14357_v29 = vld [vmem:[#allocation310_spill] sm:$0xff] }
 0x4a4   : > { %v5514_v42 = vpack.c.bf16 %v5447_v43, %v5446_v13  ;;  %6190 = vmatprep.subr.bf16.mxu1 %v14325_v30  ;;  %v12706_v46 = vpop.permute.xlu1 %3931  ;;  %v14355_v13 = vld [vmem:[#allocation312_spill] sm:$0xff] }
 0x4a5   : > { %14354 = vst [vmem:[#allocation113_spill] sm:$0xff] %v12706_v46  ;;  %v3316_v43 = vadd.f32 %v14355_v13, %v12008_v63 }
 0x4a6   : > { %v9101_v60 = vpop.f32.mrb[112].mxu0 }
 0x4a7   : > { %v5452_v2 = vmul.f32 %v9101_v60, %v4180_v61  ;;  %v5303_v54 = vpop.f32.mrb[113].mxu0  ;;  %6191 = vmatpush1.bf16.msra.mxu1 %v5514_v42  ;;  %v3320_v42 = vadd.f32 %v12031_v40, %v12008_v63 }
 0x4a8   : > { %v5450_v7 = vmul.f32 %v5303_v54, %v4176_v9  ;;  %v9102_v35 = vpop.f32.mrb[114].mxu0  ;;  %6192 = vmatprep.subr.bf16.mxu1 %v14325_v30  ;;  %v3310_v9 = vadd.f32 %v14357_v29, %v12008_v63  ;;  %v12717_v60 = vpop.permute.xlu1 %3941 }
 0x4a9   : > { %v5453_v49 = vmul.f32 %v9102_v35, %v4182_v5  ;;  %v5306_v47 = vpop.f32.mrb[115].mxu0  ;;  %14358 = vst [vmem:[#allocation107_spill] sm:$0xff] %v12717_v60  ;;  %v4188_v5 = vmul.f32 %v12629_v17, %v3316_v43  ;;  %v4184_v35 = vmul.f32 %v12618_v11, %v3306_v4 }
 0x4aa   : > { %v5451_v56 = vmul.f32 %v5306_v47, %v4178_v52  ;;  %v4190_v52 = vmul.f32 %v12717_v60, %v3320_v42  ;;  %v4186_v40 = vmul.f32 %v12706_v46, %v3310_v9  ;;  %v12729_v42 = vpop.trf.xlu0 }
 0x4ab   : > { %v5517_v61 = vpack.c.bf16 %v5453_v49, %v5452_v2  ;;  %6193 = vmatpush1.bf16.msra.mxu1 %v5515_v8  ;;  %14360 = vst [vmem:[#allocation110_spill] sm:$0xff] %v12729_v42 }
 0x4ac   : > { %v5516_v54 = vpack.c.bf16 %v5451_v56, %v5450_v7  ;;  %6194 = vmatprep.subr.bf16.mxu1 %v14325_v30  ;;  %v12727_v4 = vpop.trf.xlu1 }
 0x4ad   : > { %14359 = vst [vmem:[#allocation116_spill] sm:$0xff] %v12727_v4 }
 0x4ae   : > { %v9105_v13 = vpop.f32.mrb[116].mxu0 }
 0x4af   : > { %v5456_v47 = vmul.f32 %v9105_v13, %v4188_v5  ;;  %v5319_v0 = vpop.f32.mrb[117].mxu0  ;;  %6195 = vmatpush1.bf16.msra.mxu1 %v5516_v54 }
 0x4b0   : > { %v5454_v8 = vmul.f32 %v5319_v0, %v4184_v35  ;;  %v9106_v2 = vpop.f32.mrb[118].mxu0  ;;  %6196 = vmatprep.subr.bf16.mxu1 %v14325_v30  ;;  %v12734_v29 = vpop.trf.xlu1 }
 0x4b1   : > { %v5457_v63 = vmul.f32 %v9106_v2, %v4190_v52  ;;  %v5322_v7 = vpop.f32.mrb[119].mxu0  ;;  %14361 = vst [vmem:[#allocation125_spill] sm:$0xff] %v12734_v29 }
 0x4b2   : > { %v5455_v49 = vmul.f32 %v5322_v7, %v4186_v40  ;;  %v9567_v7 = vld [vmem:[%s13679_s10 + $0x8] sm:$0xff]  }
 0x4b3   : > { %v5519_v56 = vpack.c.bf16 %v5457_v63, %v5456_v47  ;;  %6197 = vmatpush1.bf16.msra.mxu1 %v5517_v61  ;;  %v9566_v63 = vld [vmem:[%s13679_s10] sm:$0xff]  }
 0x4b4   : > { %v5518_v43 = vpack.c.bf16 %v5455_v49, %v5454_v8  ;;  %6198 = vmatprep.subr.bf16.mxu1 %v14325_v30  ;;  %v9568_v49 = vld [vmem:[%s13679_s10 + $0x10] sm:$0xff]  }
 0x4b7   : > { %6199 = vmatpush1.bf16.msra.mxu1 %v5518_v43  ;;  %v9570_v43 = vld [vmem:[%s13679_s10 + $0x20] sm:$0xff]  }
 0x4b8   : > { %6200 = vmatprep.subr.bf16.mxu1 %v14325_v30 }
 0x4bb   : > { %6201 = vmatpush1.bf16.msra.mxu1 %v5519_v56  ;;  %v9569_v56 = vld [vmem:[%s13679_s10 + $0x18] sm:$0xff]  }
 0x4bc   : > { %9107 = vmatprep.subr.bf16.mxu1 %v9566_v63 }
 0x4be   : > { %6207 = vmatmul.mubr.bf16.vlgmr.msra.gmra.mrb[16].mxu1 %v12727_v4 }
 0x4bf   : > { %8409 = vmatprep.mubr.msk.bf16.mxu1 %vm6020_vm1, %v12729_v42  ;;  %9108 = vmatpush3.bf16.msra.mxu1 %v9566_v63 }
 0x4c0   : > { %9109 = vmatprep.subr.bf16.mxu1 %v9567_v7 }
 0x4c3   : > { %9110 = vmatpush3.bf16.msra.mxu1 %v9567_v7 }
 0x4c4   : > { %9111 = vmatprep.subr.bf16.mxu1 %v9568_v49 }
 0x4c6   : > { %6215 = vmatmul.mubr.bf16.gmra.mrb[20].mxu1 %v12734_v29 }
 0x4c7   : > { %9112 = vmatpush3.bf16.msra.mxu1 %v9568_v49 }
 0x4c8   : > { %9113 = vmatprep.subr.bf16.mxu1 %v9569_v56 }
 0x4cb   : > { %9114 = vmatpush3.bf16.msra.mxu1 %v9569_v56  ;;  %v9574_v56 = vld [vmem:[%s13681_s12] sm:$0xff]  }
 0x4cc   : > { %9115 = vmatprep.subr.bf16.mxu1 %v9570_v43 }
 0x4cf   : > { %9116 = vmatpush3.bf16.msra.mxu1 %v9570_v43 }
 0x4d9   : > { %v8677_v61 = vpop.f32.mrb[248].mxu1 }
 0x4da   : > { %v8678_v9 = vpop.f32.mrb[249].mxu1 }
 0x4db   : > { %v8679_v54 = vadd.f32 %v8678_v9, %v8677_v61  ;;  %v8680_v5 = vpop.f32.mrb[250].mxu1  ;;  %v9571_v61 = vld [vmem:[%s13679_s10 + $0x28] sm:$0xff]   ;;  %v9572_v9 = vld [vmem:[%s13679_s10 + $0x30] sm:$0xff]  }
 0x4dc   : > { %v8681_v35 = vpop.f32.mrb[251].mxu1  ;;  %9117 = vmatprep.subr.bf16.mxu1 %v9571_v61 }
 0x4dd   : > { %v8682_v13 = vadd.f32 %v8681_v35, %v8680_v5  ;;  %9118 = vmatpush3.bf16.msra.mxu1 %v9571_v61 }
 0x4de   : > { %9119 = vmatprep.subr.bf16.mxu1 %v9572_v9 }
 0x4e1   : > { %v8683_v52 = vpop.f32.mrb[252].mxu1  ;;  %9120 = vmatpush3.bf16.msra.mxu1 %v9572_v9 }
 0x4e2   : > { %v8684_v47 = vpop.f32.mrb[253].mxu1 }
 0x4e3   : > { %v8685_v0 = vadd.f32 %v8684_v47, %v8683_v52  ;;  %v8686_v40 = vpop.f32.mrb[254].mxu1  ;;  %v9573_v52 = vld [vmem:[%s13679_s10 + $0x38] sm:$0xff]  }
 0x4e4   : > { %v8687_v8 = vpop.f32.mrb[255].mxu1  ;;  %9121 = vmatprep.subr.bf16.mxu1 %v9573_v52 }
 0x4e5   : > { %v8688_v2 = vadd.f32 %v8687_v8, %v8686_v40  ;;  %9122 = vmatpush3.bf16.msra.mxu1 %v9573_v52 }
 0x4e6   : > { %9127 = vmatprep.subr.bf16.mxu1 %v9574_v56 }
 0x519   : > { %v8705_v5 = vpop.f32.mrb[0].mxu1 }
 0x51a   : > { %v8706_v35 = vpop.f32.mrb[1].mxu1 }
 0x51b   : > { %v8707_v47 = vadd.f32 %v8706_v35, %v8705_v5  ;;  %v8708_v40 = vpop.f32.mrb[2].mxu1 }
 0x51c   : > { %v8709_v8 = vpop.f32.mrb[3].mxu1 }
 0x51d   : > { %v6111_v63 = vadd.f32 %v8707_v47, %v8679_v54  ;;  %v8710_v7 = vadd.f32 %v8709_v8, %v8708_v40 }
 0x51f   : > { %v6114_v49 = vadd.f32 %v8710_v7, %v8682_v13 }
 0x521   : > { %v8711_v43 = vpop.f32.mrb[4].mxu1 }
 0x522   : > { %v8712_v61 = vpop.f32.mrb[5].mxu1 }
 0x523   : > { %v8713_v9 = vadd.f32 %v8712_v61, %v8711_v43  ;;  %v8714_v29 = vpop.f32.mrb[6].mxu1 }
 0x524   : > { %v8715_v42 = vpop.f32.mrb[7].mxu1 }
 0x525   : > { %v6119_v4 = vadd.f32 %v8713_v9, %v8685_v0  ;;  %v8716_v46 = vadd.f32 %v8715_v42, %v8714_v29 }
 0x527   : > { %v6122_v5 = vadd.f32 %v8716_v46, %v8688_v2 }
 0x559   : > { %v8733_v35 = vpop.f32.mrb[8].mxu1 }
 0x55a   : > { %v8734_v60 = vpop.f32.mrb[9].mxu1 }
 0x55b   : > { %v8735_v11 = vadd.f32 %v8734_v60, %v8733_v35  ;;  %v8736_v54 = vpop.f32.mrb[10].mxu1 }
 0x55c   : > { %v8737_v47 = vpop.f32.mrb[11].mxu1 }
 0x55d   : > { %v8738_v52 = vadd.f32 %v8737_v47, %v8736_v54  ;;  %v6160_v13 = vadd.f32 %v8735_v11, %v6111_v63 }
 0x55f   : > { %v6163_v40 = vadd.f32 %v8738_v52, %v6114_v49  ;;  %v9583_v52 = vld [vmem:[%s13678_s9 + $0x48] sm:$0xff]  }
 0x561   : > { %v8739_v8 = vpop.f32.mrb[12].mxu1 }
 0x562   : > { %v8740_v7 = vpop.f32.mrb[13].mxu1 }
 0x563   : > { %v8741_v17 = vadd.f32 %v8740_v7, %v8739_v8  ;;  %v8742_v55 = vpop.f32.mrb[14].mxu1  ;;  %v9586_v8 = vld [vmem:[%s13678_s9 + $0x60] sm:$0xff]   ;;  %v9587_v7 = vld [vmem:[%s13678_s9 + $0x68] sm:$0xff]  }
 0x564   : > { %v8743_v21 = vpop.f32.mrb[15].mxu1 }
 0x565   : > { %v8744_v44 = vadd.f32 %v8743_v21, %v8742_v55  ;;  %v6168_v43 = vadd.f32 %v8741_v17, %v6119_v4  ;;  %v9575_v17 = vld [vmem:[%s13681_s12 + $0x8] sm:$0xff]   ;;  %v9578_v55 = vld [vmem:[%s13681_s12 + $0x20] sm:$0xff]   ;;  %v9580_v4 = vld [vmem:[%s13681_s12 + $0x30] sm:$0xff]  }
 0x566   : > { %v9579_v21 = vld [vmem:[%s13681_s12 + $0x28] sm:$0xff]  }
 0x567   : > { %v6171_v61 = vadd.f32 %v8744_v44, %v6122_v5  ;;  %v9576_v44 = vld [vmem:[%s13681_s12 + $0x10] sm:$0xff]   ;;  %v9582_v5 = vld [vmem:[%s13678_s9 + $0x40] sm:$0xff]  }
 0x568   : > { %9147 = vmatprep.subr.bf16.mxu0 %v9582_v5 }
 0x569   : > { %9148 = vmatpush3.bf16.msra.mxu0 %v9582_v5 }
 0x56a   : > { %9149 = vmatprep.subr.bf16.mxu0 %v9583_v52 }
 0x56d   : > { %9150 = vmatpush3.bf16.msra.mxu0 %v9583_v52 }
 0x591   : > { %v6208_v58 = vpop.f32.mrb[16].mxu1 }
 0x592   : > { %v6209_v0 = vadd.f32 %v6208_v58, %v6160_v13  ;;  %v6210_v42 = vpop.f32.mrb[17].mxu1  ;;  %v9577_v58 = vld [vmem:[%s13681_s12 + $0x18] sm:$0xff]   ;;  %v9584_v13 = vld [vmem:[%s13678_s9 + $0x50] sm:$0xff]  }
 0x593   : > { %v6211_v46 = vpop.f32.mrb[18].mxu1  ;;  %9151 = vmatprep.subr.bf16.mxu0 %v9584_v13 }
 0x594   : > { %v6212_v29 = vadd.f32 %v6211_v46, %v6163_v40  ;;  %v6213_v2 = vpop.f32.mrb[19].mxu1  ;;  %v9585_v40 = vld [vmem:[%s13678_s9 + $0x58] sm:$0xff]   ;;  %9152 = vmatpush3.bf16.msra.mxu0 %v9584_v13 }
 0x595   : > { %9153 = vmatprep.subr.bf16.mxu0 %v9585_v40 }
 0x596   : > { %v6239_v60 = vpack.c.bf16 %v6212_v29, %v6209_v0 }
 0x598   : > { %9123 = vmatprep.mubr.bf16.mxu1 %v6239_v60  ;;  %9154 = vmatpush3.bf16.msra.mxu0 %v9585_v40 }
 0x599   : > { %v6216_v9 = vpop.f32.mrb[20].mxu1  ;;  %9155 = vmatprep.subr.bf16.mxu0 %v9586_v8 }
 0x59a   : > { %v6217_v35 = vadd.f32 %v6216_v9, %v6168_v43  ;;  %v6218_v11 = vpop.f32.mrb[21].mxu1  ;;  %v8410_v43 = vld [vmem:[%s13680_s11] ss:$0 sm:$0xff] }
 0x59b   : > { %v6219_v63 = vpop.f32.mrb[22].mxu1 }
 0x59c   : > { %v6220_v49 = vadd.f32 %v6219_v63, %v6171_v61  ;;  %v6221_v54 = vpop.f32.mrb[23].mxu1  ;;  %9156 = vmatpush3.bf16.msra.mxu0 %v9586_v8 }
 0x59d   : > { %9157 = vmatprep.subr.bf16.mxu0 %v9587_v7 }
 0x59e   : > { %v6240_v47 = vpack.c.bf16 %v6220_v49, %v6217_v35 }
 0x5a0   : > { %9124 = vmatmul.mubr.bf16.vlgmr.msra.gmra.mrb[24].mxu1 %v6240_v47  ;;  %9158 = vmatpush3.bf16.msra.mxu0 %v9587_v7  ;;  %v10140_v7 = vld [vmem:[%s11132_s2 + $0x18] sm:$0xff] }
 0x5a1   : > { %9128 = vmatpush3.bf16.msra.mxu1 %v9574_v56  ;;  %v9581_v56 = vld [vmem:[%s13681_s12 + $0x38] sm:$0xff]  }
 0x5a2   : > { %9129 = vmatprep.subr.bf16.mxu1 %v9575_v17 }
 0x5a5   : > { %9130 = vmatpush3.bf16.msra.mxu1 %v9575_v17  ;;  %v10139_v17 = vld [vmem:[%s10546_s17] sm:$0xff]  }
 0x5a6   : > { %9131 = vmatprep.subr.bf16.mxu1 %v9576_v44 }
 0x5a9   : > { %9132 = vmatpush3.bf16.msra.mxu1 %v9576_v44  ;;  %v9588_v44 = vld [vmem:[%s13678_s9 + $0x70] sm:$0xff]  }
 0x5aa   : > { %9133 = vmatprep.subr.bf16.mxu1 %v9577_v58  ;;  %9159 = vmatprep.subr.bf16.mxu0 %v9588_v44 }
 0x5ab   : > { %9160 = vmatpush3.bf16.msra.mxu0 %v9588_v44  ;;  %v10144_v44 = vld [vmem:[%s10546_s17 + $0x8] sm:$0xff]  }
 0x5ad   : > { %9134 = vmatpush3.bf16.msra.mxu1 %v9577_v58  ;;  %v9589_v58 = vld [vmem:[%s13678_s9 + $0x78] sm:$0xff]  }
 0x5ae   : > { %9135 = vmatprep.subr.bf16.mxu1 %v9578_v55  ;;  %9161 = vmatprep.subr.bf16.mxu0 %v9589_v58 }
 0x5af   : > { %9162 = vmatpush3.bf16.msra.mxu0 %v9589_v58  ;;  %v10145_v58 = vld [vmem:[%s10546_s17 + $0x10] sm:$0xff]  }
 0x5b1   : > { %9136 = vmatpush3.bf16.msra.mxu1 %v9578_v55  ;;  %v8419_v55 = vld [vmem:[%s13682_s13] ss:$0 sm:$0xff] }
 0x5b2   : > { %9137 = vmatprep.subr.bf16.mxu1 %v9579_v21 }
 0x5b5   : > { %9138 = vmatpush3.bf16.msra.mxu1 %v9579_v21 }
 0x5b6   : > { %9139 = vmatprep.subr.bf16.mxu1 %v9580_v4 }
 0x5b9   : > { %9140 = vmatpush3.bf16.msra.mxu1 %v9580_v4 }
 0x5ba   : > { %9141 = vmatprep.subr.bf16.mxu1 %v9581_v56 }
 0x5bd   : > { %9142 = vmatpush3.bf16.msra.mxu1 %v9581_v56 }
 0x673   : > { %v9125_v61 = vpop.f32.mrb[24].mxu1 }
 0x674   : > { %v6339_v0 = vadd.f32 %v9125_v61, %v8410_v43  ;;  %v6330_v42 = vpop.f32.mrb[25].mxu1  ;;  %v10141_v61 = vld [vmem:[%s11132_s2] sm:$0xff] }
 0x675   : > { %v6331_v46 = vadd.f32 %v8410_v43, %v6330_v42  ;;  %v9126_v29 = vpop.f32.mrb[26].mxu1  ;;  %v10142_v42 = vld [vmem:[%s11132_s2 + $0x8] sm:$0xff] }
 0x676   : > { %10114 = vtanh.f32 %v6339_v0  ;;  %v6342_v2 = vadd.f32 %v9126_v29, %v8410_v43  ;;  %v6333_v60 = vpop.f32.mrb[27].mxu1  ;;  %v10143_v29 = vld [vmem:[%s11132_s2 + $0x10] sm:$0xff] }
 0x677   : > { %10116 = vtanh.f32 %v6331_v46  ;;  %v6334_v9 = vadd.f32 %v8410_v43, %v6333_v60 }
 0x678   : > { %10118 = vtanh.f32 %v6342_v2 }
 0x679   : > { %10120 = vtanh.f32 %v6334_v9 }
 0x680   : > { %v10115_v35 = vpop.eup %10114 }
 0x681   : > { %v10117_v11 = vpop.eup %10116 }
 0x682   : > { %v10119_v63 = vpop.eup %10118 }
 0x683   : > { %v10121_v49 = vpop.eup %10120  ;;  %v6366_v54 = vpack.c.bf16 %v10119_v63, %v10115_v35  ;;  %v14365_v35 = vld [vmem:[#allocation3_spill] sm:$0xff] }
 0x684   : > { %v6365_v47 = vpack.c.bf16 %v10121_v49, %v10117_v11 }
 0x686   : > { %9143 = vmatprep.mubr.bf16.mxu1 %v6365_v47 }
 0x687   : > { %9144 = vmatmul.mubr.bf16.vlgmr.msra.gmra.mrb[28].mxu1 %v6366_v54 }
 0x688   : > { %9171 = vmatprep.mubr.msk.bf16.mxu1 %vm1255_vm0, %v10139_v17 }
 0x75a   : > { %v9145_v21 = vpop.f32.mrb[28].mxu1 }
 0x75b   : > { %v6456_v4 = vpop.f32.mrb[29].mxu1  ;;  %v6465_v52 = vadd.f32 %v9145_v21, %v8419_v55  ;;  %v10147_v21 = vld [vmem:[%s10546_s17 + $0x20] sm:$0xff]  }
 0x75c   : > { %v6457_v56 = vadd.f32 %v8419_v55, %v6456_v4  ;;  %v9146_v5 = vpop.f32.mrb[30].mxu1  ;;  %v10148_v4 = vld [vmem:[%s10546_s17 + $0x28] sm:$0xff]  }
 0x75d   : > { %v6468_v13 = vadd.f32 %v9146_v5, %v8419_v55  ;;  %v6459_v40 = vpop.f32.mrb[31].mxu1  ;;  %v12827_v2 = vadd.f32 %v10143_v29, %v6465_v52  ;;  %v10150_v5 = vld [vmem:[%s10546_s17 + $0x38] sm:$0xff]   ;;  %v10151_v52 = vld [vmem:[%s10546_s17 + $0x40] sm:$0xff]  }
 0x75e   : > { %v6460_v8 = vadd.f32 %v8419_v55, %v6459_v40  ;;  %v12821_v0 = vadd.f32 %v10141_v61, %v6457_v56  ;;  %v10146_v55 = vld [vmem:[%s10546_s17 + $0x18] sm:$0xff]   ;;  %v10149_v56 = vld [vmem:[%s10546_s17 + $0x30] sm:$0xff]   ;;  %v10156_v61 = vld [vmem:[%s10546_s17 + $0x68] sm:$0xff]  }
 0x75f   : > { %v12818_v43 = vadd.f32 %v10140_v7, %v6468_v13  ;;  %v10152_v13 = vld [vmem:[%s10546_s17 + $0x48] sm:$0xff]   ;;  %v10153_v40 = vld [vmem:[%s10546_s17 + $0x50] sm:$0xff]   ;;  %v10155_v7 = vld [vmem:[%s10546_s17 + $0x60] sm:$0xff]  }
 0x760   : > { %14363 = vst [vmem:[#allocation128_spill] sm:$0xff] %v12821_v0  ;;  %v12824_v46 = vadd.f32 %v10142_v42, %v6460_v8  ;;  %v10154_v8 = vld [vmem:[%s10546_s17 + $0x58] sm:$0xff]   ;;  %v10157_v42 = vld [vmem:[%s10546_s17 + $0x70] sm:$0xff]  }
 0x761   : > { %14362 = vst [vmem:[#allocation119_spill] sm:$0xff] %v12818_v43  ;;  %v6493_v9 = vpack.c.bf16 %v12818_v43, %v12827_v2  ;;  %v10158_v29 = vld [vmem:[%s10546_s17 + $0x78] sm:$0xff]  }
 0x762   : > { %14364 = vst [vmem:[#allocation122_spill] sm:$0xff] %v12824_v46  ;;  %v6492_v60 = vpack.c.bf16 %v12824_v46, %v12821_v0 }
 0x764   : > { %9163 = vmatprep.mubr.bf16.mxu0 %v6492_v60  ;;  %v10159_v60 = vld [vmem:[%s10546_s17 + $0x80] sm:$0xff]  }
 0x765   : > { %9164 = vmatmul.mubr.bf16.vlgmr.msra.gmra.mrb[120].mxu0 %v6493_v9  ;;  %v10160_v9 = vld [vmem:[%s10546_s17 + $0x88] sm:$0xff]  }
 0x766   : > { %7340 = vmatprep.mubr.bf16.mxu0 %v14365_v35  ;;  %v10161_v35 = vld [vmem:[%s10546_s17 + $0x90] sm:$0xff]  }
 0x838   : > { %v9165_v11 = vpop.f32.mrb[120].mxu0 }
 0x839   : > { %v6576_v63 = vpop.f32.mrb[121].mxu0 }
 0x83a   : > { %v9166_v49 = vpop.f32.mrb[122].mxu0 }
 0x83b   : > { %v6592_v54 = vpack.c.bf16 %v9166_v49, %v9165_v11  ;;  %v6579_v47 = vpop.f32.mrb[123].mxu0  ;;  %v10162_v11 = vld [vmem:[%s10546_s17 + $0x98] sm:$0xff]   ;;  %v10164_v49 = vld [vmem:[%s10546_s17 + $0xa8] sm:$0xff]  }
 0x83c   : > { %v6591_v17 = vpack.c.bf16 %v6579_v47, %v6576_v63  ;;  %v10163_v63 = vld [vmem:[%s10546_s17 + $0xa0] sm:$0xff]   ;;  %v10166_v47 = vld [vmem:[%s10546_s17 + $0xb8] sm:$0xff]  }
 0x83e   : > { %9167 = vmatprep.subr.bf16.mxu1 %v6591_v17 }
 0x83f   : > { %9168 = vmatpush3.bf16.msra.mxu1 %v6591_v17  ;;  %v10167_v17 = vld [vmem:[%s10546_s17 + $0xc0] sm:$0xff]  }
 0x840   : > { %9169 = vmatprep.subr.bf16.mxu1 %v6592_v54 }
 0x843   : > { %9170 = vmatpush3.bf16.msra.mxu1 %v6592_v54  ;;  %v10165_v54 = vld [vmem:[%s10546_s17 + $0xb0] sm:$0xff]  }
 0x846   : > { %9172 = vmatmul.mubr.msk.bf16.vlgmr.msra.gmra.mrb[32].mxu1 %vm1255_vm0, %v10144_v44  ;;  %v10168_v44 = vld [vmem:[%s10546_s17 + $0xc8] sm:$0xff]  }
 0x847   : > { %9175 = vmatprep.mubr.msk.bf16.mxu1 %vm1255_vm0, %v10145_v58  ;;  %v10169_v58 = vld [vmem:[%s10546_s17 + $0xd0] sm:$0xff]  }
 0x84e   : > { %9176 = vmatmul.mubr.msk.bf16.gmra.mrb[36].mxu1 %vm1255_vm0, %v10146_v55  ;;  %v10170_v55 = vld [vmem:[%s10546_s17 + $0xd8] sm:$0xff]  }
 0x84f   : > { %9179 = vmatprep.mubr.msk.bf16.mxu1 %vm1255_vm0, %v10147_v21  ;;  %v10171_v21 = vld [vmem:[%s10546_s17 + $0xe0] sm:$0xff]  }
 0x856   : > { %9180 = vmatmul.mubr.msk.bf16.gmra.mrb[40].mxu1 %vm1255_vm0, %v10148_v4  ;;  %v10172_v4 = vld [vmem:[%s10546_s17 + $0xe8] sm:$0xff]  }
 0x857   : > { %9183 = vmatprep.mubr.msk.bf16.mxu1 %vm1255_vm0, %v10149_v56  ;;  %v10173_v56 = vld [vmem:[%s10546_s17 + $0xf0] sm:$0xff]  }
 0x85e   : > { %9184 = vmatmul.mubr.msk.bf16.gmra.mrb[44].mxu1 %vm1255_vm0, %v10150_v5  ;;  %v10174_v5 = vld [vmem:[%s10546_s17 + $0xf8] sm:$0xff]  }
 0x85f   : > { %9187 = vmatprep.mubr.msk.bf16.mxu1 %vm1255_vm0, %v10151_v52  ;;  %v10175_v52 = vld [vmem:[%s10546_s17 + $0x100] sm:$0xff]  }
 0x866   : > { %9188 = vmatmul.mubr.msk.bf16.gmra.mrb[48].mxu1 %vm1255_vm0, %v10152_v13  ;;  %v10176_v13 = vld [vmem:[%s10546_s17 + $0x108] sm:$0xff]  }
 0x867   : > { %9191 = vmatprep.mubr.msk.bf16.mxu1 %vm1255_vm0, %v10153_v40  ;;  %v10177_v40 = vld [vmem:[%s10546_s17 + $0x110] sm:$0xff]  }
 0x86e   : > { %9192 = vmatmul.mubr.msk.bf16.gmra.mrb[52].mxu1 %vm1255_vm0, %v10154_v8  ;;  %v10178_v8 = vld [vmem:[%s10546_s17 + $0x118] sm:$0xff]  }
 0x86f   : > { %9195 = vmatprep.mubr.msk.bf16.mxu1 %vm1255_vm0, %v10155_v7  ;;  %v10179_v7 = vld [vmem:[%s10546_s17 + $0x120] sm:$0xff]  }
 0x876   : > { %9196 = vmatmul.mubr.msk.bf16.gmra.mrb[56].mxu1 %vm1255_vm0, %v10156_v61  ;;  %v10180_v61 = vld [vmem:[%s10546_s17 + $0x128] sm:$0xff]  }
 0x877   : > { %9199 = vmatprep.mubr.msk.bf16.mxu1 %vm1255_vm0, %v10157_v42  ;;  %v10181_v42 = vld [vmem:[%s10546_s17 + $0x130] sm:$0xff]  }
 0x87e   : > { %9200 = vmatmul.mubr.msk.bf16.gmra.mrb[60].mxu1 %vm1255_vm0, %v10158_v29  ;;  %v10182_v29 = vld [vmem:[%s10546_s17 + $0x138] sm:$0xff]  }
 0x87f   : > { %9203 = vmatprep.mubr.msk.bf16.mxu1 %vm1255_vm0, %v10159_v60  ;;  %v10183_v60 = vld [vmem:[%s10546_s17 + $0x140] sm:$0xff]  }
 0x886   : > { %9204 = vmatmul.mubr.msk.bf16.gmra.mrb[64].mxu1 %vm1255_vm0, %v10160_v9  ;;  %v10184_v9 = vld [vmem:[%s10546_s17 + $0x148] sm:$0xff]  }
 0x887   : > { %9207 = vmatprep.mubr.msk.bf16.mxu1 %vm1255_vm0, %v10161_v35  ;;  %v10185_v35 = vld [vmem:[%s10546_s17 + $0x150] sm:$0xff]  }
 0x88e   : > { %9208 = vmatmul.mubr.msk.bf16.gmra.mrb[68].mxu1 %vm1255_vm0, %v10162_v11  ;;  %v10186_v11 = vld [vmem:[%s10546_s17 + $0x158] sm:$0xff]  }
 0x88f   : > { %9211 = vmatprep.mubr.msk.bf16.mxu1 %vm1255_vm0, %v10163_v63  ;;  %v10187_v63 = vld [vmem:[%s10546_s17 + $0x160] sm:$0xff]  }
 0x896   : > { %9212 = vmatmul.mubr.msk.bf16.gmra.mrb[72].mxu1 %vm1255_vm0, %v10164_v49  ;;  %v10188_v49 = vld [vmem:[%s10546_s17 + $0x168] sm:$0xff]  }
 0x897   : > { %9215 = vmatprep.mubr.msk.bf16.mxu1 %vm1255_vm0, %v10165_v54  ;;  %v10189_v54 = vld [vmem:[%s10546_s17 + $0x170] sm:$0xff]  }
 0x89e   : > { %9216 = vmatmul.mubr.msk.bf16.gmra.mrb[76].mxu1 %vm1255_vm0, %v10166_v47  ;;  %v10190_v47 = vld [vmem:[%s10546_s17 + $0x178] sm:$0xff]  }
 0x89f   : > { %9219 = vmatprep.mubr.msk.bf16.mxu1 %vm1255_vm0, %v10167_v17  ;;  %v10191_v17 = vld [vmem:[%s10546_s17 + $0x180] sm:$0xff]  }
 0x8a6   : > { %9220 = vmatmul.mubr.msk.bf16.gmra.mrb[80].mxu1 %vm1255_vm0, %v10168_v44  ;;  %v10192_v44 = vld [vmem:[%s10546_s17 + $0x188] sm:$0xff]  }
 0x8a7   : > { %9223 = vmatprep.mubr.msk.bf16.mxu1 %vm1255_vm0, %v10169_v58  ;;  %v10193_v58 = vld [vmem:[%s10546_s17 + $0x190] sm:$0xff]  }
 0x8ae   : > { %9224 = vmatmul.mubr.msk.bf16.gmra.mrb[84].mxu1 %vm1255_vm0, %v10170_v55  ;;  %v10194_v55 = vld [vmem:[%s10546_s17 + $0x198] sm:$0xff]  }
 0x8af   : > { %9227 = vmatprep.mubr.msk.bf16.mxu1 %vm1255_vm0, %v10171_v21  ;;  %v10195_v21 = vld [vmem:[%s10546_s17 + $0x1a0] sm:$0xff]  }
 0x8b6   : > { %9228 = vmatmul.mubr.msk.bf16.gmra.mrb[88].mxu1 %vm1255_vm0, %v10172_v4  ;;  %v14366_v4 = vld [vmem:[#allocation48_spill] sm:$0xff] }
 0x8b7   : > { %9231 = vmatprep.mubr.msk.bf16.mxu1 %vm1255_vm0, %v10173_v56  ;;  %v14367_v56 = vld [vmem:[#allocation28_spill] sm:$0xff] }
 0x8be   : > { %9232 = vmatmul.mubr.msk.bf16.gmra.mrb[92].mxu1 %vm1255_vm0, %v10174_v5  ;;  %v2718_v5 = vadd.f32 %v14367_v56, %v14366_v4 }
 0x8bf   : > { %9235 = vmatprep.mubr.msk.bf16.mxu1 %vm1255_vm0, %v10175_v52  ;;  %v14368_v52 = vld [vmem:[#allocation26_spill] sm:$0xff] }
 0x8c6   : > { %9236 = vmatmul.mubr.msk.bf16.gmra.mrb[96].mxu1 %vm1255_vm0, %v10176_v13  ;;  %v2708_v13 = vadd.f32 %v14368_v52, %v14366_v4 }
 0x8c7   : > { %9239 = vmatprep.mubr.msk.bf16.mxu1 %vm1255_vm0, %v10177_v40  ;;  %v14369_v40 = vld [vmem:[#allocation29_spill] sm:$0xff] }
 0x8ce   : > { %9240 = vmatmul.mubr.msk.bf16.gmra.mrb[100].mxu1 %vm1255_vm0, %v10178_v8  ;;  %v2722_v8 = vadd.f32 %v14369_v40, %v14366_v4 }
 0x8cf   : > { %9243 = vmatprep.mubr.msk.bf16.mxu1 %vm1255_vm0, %v10179_v7  ;;  %v10196_v7 = vld [vmem:[%s10546_s17 + $0x1a8] sm:$0xff]  }
 0x8d6   : > { %9244 = vmatmul.mubr.msk.bf16.gmra.mrb[104].mxu1 %vm1255_vm0, %v10180_v61  ;;  %v14370_v61 = vld [vmem:[#allocation27_spill] sm:$0xff] }
 0x8d7   : > { %9247 = vmatprep.mubr.msk.bf16.mxu1 %vm1255_vm0, %v10181_v42  ;;  %v2712_v42 = vadd.f32 %v14370_v61, %v14366_v4 }
 0x8de   : > { %9248 = vmatmul.mubr.msk.bf16.gmra.mrb[108].mxu1 %vm1255_vm0, %v10182_v29  ;;  %v10197_v29 = vld [vmem:[%s10546_s17 + $0x1b0] sm:$0xff]  }
 0x8df   : > { %9251 = vmatprep.mubr.msk.bf16.mxu1 %vm1255_vm0, %v10183_v60  ;;  %v14371_v60 = vld [vmem:[#allocation19_spill] sm:$0xff] }
 0x8e6   : > { %9252 = vmatmul.mubr.msk.bf16.gmra.mrb[112].mxu1 %vm1255_vm0, %v10184_v9  ;;  %v3949_v9 = vmul.f32 %v14371_v60, %v2718_v5  ;;  %v14373_v5 = vld [vmem:[#allocation32_spill] sm:$0xff] }
 0x8e7   : > { %9255 = vmatprep.mubr.msk.bf16.mxu1 %vm1255_vm0, %v10185_v35 }
 0x8ee   : > { %9256 = vmatmul.mubr.msk.bf16.gmra.mrb[116].mxu1 %vm1255_vm0, %v10186_v11  ;;  %v3945_v11 = vmul.f32 %v10934_v57, %v2708_v13  ;;  %v2728_v57 = vadd.f32 %v14373_v5, %v14366_v4  ;;  %v14374_v13 = vld [vmem:[#allocation35_spill] sm:$0xff] }
 0x8ef   : > { %9259 = vmatprep.mubr.msk.bf16.mxu1 %vm1255_vm0, %v10187_v63  ;;  %v2742_v40 = vadd.f32 %v14374_v13, %v14366_v4  ;;  %v14378_v13 = vld [vmem:[#allocation42_spill] sm:$0xff] }
 0x8f6   : > { %9260 = vmatmul.mubr.msk.bf16.gmra.mrb[120].mxu1 %vm1255_vm0, %v10188_v49 }
 0x8f7   : > { %9263 = vmatprep.mubr.msk.bf16.mxu1 %vm1255_vm0, %v10189_v54  ;;  %v3951_v54 = vmul.f32 %v10963_v62, %v2722_v8  ;;  %v10198_v8 = vld [vmem:[%s10546_s17 + $0x1b8] sm:$0xff]   ;;  %v14392_v62 = vld [vmem:[#allocation16_spill] sm:$0xff] }
 0x8fe   : > { %9264 = vmatmul.mubr.msk.bf16.gmra.mrb[124].mxu1 %vm1255_vm0, %v10190_v47 }
 0x8ff   : > { %9267 = vmatprep.mubr.msk.bf16.mxu1 %vm1255_vm0, %v10191_v17 }
 0x906   : > { %9268 = vmatmul.mubr.msk.bf16.gmra.mrb[128].mxu1 %vm1255_vm0, %v10192_v44  ;;  %v3947_v44 = vmul.f32 %v10943_v15, %v2712_v42  ;;  %v14375_v15 = vld [vmem:[#allocation33_spill] sm:$0xff]  ;;  %v10199_v42 = vld [vmem:[%s10546_s17 + $0x1c0] sm:$0xff]  }
 0x907   : > { %9271 = vmatprep.mubr.msk.bf16.mxu1 %vm1255_vm0, %v10193_v58  ;;  %v14372_v58 = vld [vmem:[#allocation34_spill] sm:$0xff] }
 0x90e   : > { %9272 = vmatmul.mubr.msk.bf16.gmra.mrb[132].mxu1 %vm1255_vm0, %v10194_v55  ;;  %v2738_v55 = vadd.f32 %v14372_v58, %v14366_v4  ;;  %v14376_v58 = vld [vmem:[#allocation41_spill] sm:$0xff] }
 0x90f   : > { %9275 = vmatprep.mubr.msk.bf16.mxu1 %vm1255_vm0, %v10195_v21 }
 0x916   : > { %9276 = vmatmul.mubr.msk.bf16.gmra.mrb[136].mxu1 %vm1255_vm0, %v10196_v7  ;;  %v2732_v7 = vadd.f32 %v14375_v15, %v14366_v4 }
 0x917   : > { %9279 = vmatprep.mubr.msk.bf16.mxu1 %vm1255_vm0, %v10197_v29  ;;  %v3957_v29 = vmul.f32 %v11000_v26, %v2738_v55  ;;  %v14377_v55 = vld [vmem:[#allocation38_spill] sm:$0xff] }
 0x919   : > { %v9173_v35 = vpop.f32.mrb[32].mxu1 }
 0x91a   : > { %v12952_v63 = vmul.f32 %v9173_v35, %v3949_v9  ;;  %v6627_v49 = vpop.f32.mrb[33].mxu1  ;;  %v3953_v9 = vmul.f32 %v10980_v36, %v2728_v57  ;;  %v2748_v36 = vadd.f32 %v14377_v55, %v14366_v4  ;;  %v14380_v55 = vld [vmem:[#allocation47_spill] sm:$0xff] }
 0x91b   : > { %v12955_v47 = vmul.f32 %v6627_v49, %v3945_v11  ;;  %v9174_v17 = vpop.f32.mrb[34].mxu1  ;;  %v3959_v49 = vmul.f32 %v11003_v32, %v2742_v40  ;;  %v10200_v40 = vld [vmem:[%s10546_s17 + $0x1c8] sm:$0xff]  }
 0x91c   : > { %v12960_v21 = vmul.f32 %v9174_v17, %v3951_v54  ;;  %v6630_v56 = vpop.f32.mrb[35].mxu1 }
 0x91d   : > { %v12964_v52 = vmul.f32 %v6630_v56, %v3947_v44  ;;  %v3955_v44 = vmul.f32 %v10983_v39, %v2732_v7  ;;  %v2758_v56 = vadd.f32 %v14376_v58, %v14366_v4  ;;  %v14379_v39 = vld [vmem:[#allocation39_spill] sm:$0xff] }
 0x91e   : > { %9280 = vmatmul.mubr.msk.bf16.gmra.mrb[140].mxu1 %vm1255_vm0, %v10198_v8  ;;  %v2762_v8 = vadd.f32 %v14378_v13, %v14366_v4  ;;  %v2752_v15 = vadd.f32 %v14379_v39, %v14366_v4  ;;  %v2778_v13 = vadd.f32 %v14380_v55, %v14366_v4 }
 0x91f   : > { %9283 = vmatprep.mubr.msk.bf16.mxu1 %vm1255_vm0, %v10199_v42  ;;  %v10201_v42 = vld [vmem:[%s10546_s17 + $0x1d0] sm:$0xff]  }
 0x921   : > { %v9177_v60 = vpop.f32.mrb[36].mxu1 }
 0x922   : > { %v12980_v35 = vmul.f32 %v9177_v60, %v3957_v29  ;;  %v6643_v11 = vpop.f32.mrb[37].mxu1  ;;  %v3965_v29 = vmul.f32 %v11085_v38, %v2758_v56  ;;  %v14381_v56 = vld [vmem:[#allocation45_spill] sm:$0xff] }
 0x923   : > { %v12983_v54 = vmul.f32 %v6643_v11, %v3953_v9  ;;  %v9178_v17 = vpop.f32.mrb[38].mxu1  ;;  %v3961_v9 = vmul.f32 %v11037_v48, %v2748_v36  ;;  %v2768_v48 = vadd.f32 %v14381_v56, %v14366_v4  ;;  %v14384_v56 = vld [vmem:[#allocation56_spill] sm:$0xff] }
 0x924   : > { %v12988_v5 = vmul.f32 %v9178_v17, %v3959_v49  ;;  %v6646_v26 = vpop.f32.mrb[39].mxu1  ;;  %v3967_v17 = vmul.f32 %v11089_v31, %v2762_v8  ;;  %v10202_v31 = vld [vmem:[%s10546_s17 + $0x1d8] sm:$0xff]  }
 0x925   : > { %v12992_v57 = vmul.f32 %v6646_v26, %v3955_v44  ;;  %v3963_v26 = vmul.f32 %v11041_v59, %v2752_v15  ;;  %v14382_v8 = vld [vmem:[#allocation46_spill] sm:$0xff] }
 0x926   : > { %9284 = vmatmul.mubr.msk.bf16.gmra.mrb[144].mxu1 %vm1255_vm0, %v10200_v40  ;;  %v2772_v59 = vadd.f32 %v14382_v8, %v14366_v4  ;;  %v14385_v8 = vld [vmem:[#allocation49_spill] sm:$0xff] }
 0x927   : > { %9287 = vmatprep.mubr.msk.bf16.mxu1 %vm1255_vm0, %v10201_v42  ;;  %v10203_v42 = vld [vmem:[%s10546_s17 + $0x1e0] sm:$0xff]  }
 0x929   : > { %v9181_v60 = vpop.f32.mrb[40].mxu1 }
 0x92a   : > { %v13008_v11 = vmul.f32 %v9181_v60, %v3965_v29  ;;  %v6659_v49 = vpop.f32.mrb[41].mxu1  ;;  %v3973_v29 = vmul.f32 %v11187_v22, %v2778_v13  ;;  %v3969_v60 = vmul.f32 %v11139_v50, %v2768_v48  ;;  %v14386_v22 = vld [vmem:[#allocation52_spill] sm:$0xff]  ;;  %v14387_v48 = vld [vmem:[#allocation57_spill] sm:$0xff] }
 0x92b   : > { %v13011_v44 = vmul.f32 %v6659_v49, %v3961_v9  ;;  %v9182_v58 = vpop.f32.mrb[42].mxu1  ;;  %v2788_v13 = vadd.f32 %v14386_v22, %v14366_v4 }
 0x92c   : > { %v13016_v40 = vmul.f32 %v9182_v58, %v3967_v17  ;;  %v6662_v38 = vpop.f32.mrb[43].mxu1  ;;  %v14383_v58 = vld [vmem:[#allocation40_spill] sm:$0xff] }
 0x92d   : > { %v13020_v36 = vmul.f32 %v6662_v38, %v3963_v26  ;;  %v3971_v26 = vmul.f32 %v14383_v58, %v2772_v59  ;;  %v14394_v58 = vld [vmem:[#allocation61_spill] sm:$0xff] }
 0x92e   : > { %9288 = vmatmul.mubr.msk.bf16.gmra.mrb[148].mxu1 %vm1255_vm0, %v10202_v31  ;;  %v2798_v31 = vadd.f32 %v14384_v56, %v14366_v4  ;;  %v2808_v43 = vadd.f32 %v14394_v58, %v14366_v4  ;;  %v14398_v58 = vpack.c.bf16 %v12964_v52, %v12955_v47 }
 0x92f   : > { %9291 = vmatprep.mubr.msk.bf16.mxu1 %vm1255_vm0, %v10203_v42 }
 0x931   : > { %v9185_v9 = vpop.f32.mrb[44].mxu1 }
 0x932   : > { %v13034_v49 = vmul.f32 %v9185_v9, %v3973_v29  ;;  %v6675_v17 = vpop.f32.mrb[45].mxu1  ;;  %v2802_v29 = vadd.f32 %v14387_v48, %v14366_v4  ;;  %v14388_v9 = vld [vmem:[#allocation53_spill] sm:$0xff]  ;;  %v14391_v48 = vld [vmem:[#allocation18_spill] sm:$0xff] }
 0x933   : > { %v13037_v55 = vmul.f32 %v6675_v17, %v3969_v60  ;;  %v9186_v38 = vpop.f32.mrb[46].mxu1  ;;  %v10204_v60 = vld [vmem:[%s10546_s17 + $0x1e8] sm:$0xff]   ;;  %v2792_v17 = vadd.f32 %v14388_v9, %v14366_v4 }
 0x934   : > { %v13042_v39 = vmul.f32 %v9186_v38, %v14385_v8  ;;  %v6678_v42 = vpop.f32.mrb[47].mxu1  ;;  %v14389_v38 = vld [vmem:[#allocation17_spill] sm:$0xff]  ;;  %v3983_v32 = vmul.f32 %v14391_v48, %v2802_v29 }
 0x935   : > { %v13046_v50 = vmul.f32 %v6678_v42, %v3971_v26  ;;  %v3981_v56 = vmul.f32 %v14389_v38, %v2798_v31  ;;  %v14390_v26 = vld [vmem:[#allocation15_spill] sm:$0xff]  ;;  %v3979_v61 = vmul.f32 %v14392_v62, %v2792_v17  ;;  %v14395_v38 = vld [vmem:[#allocation69_spill] sm:$0xff]  ;;  %v14397_v17 = vld [vmem:[#allocation20_spill] sm:$0xff] }
 0x936   : > { %9292 = vmatmul.mubr.msk.bf16.gmra.mrb[152].mxu1 %vm1255_vm0, %v10204_v60  ;;  %v3977_v42 = vmul.f32 %v14390_v26, %v2788_v13  ;;  %v14393_v60 = vld [vmem:[#allocation67_spill] sm:$0xff]  ;;  %v2822_v13 = vadd.f32 %v14395_v38, %v14366_v4 }
 0x937   : > { %v2818_v46 = vadd.f32 %v14393_v60, %v14366_v4  ;;  %v14400_v60 = vld [vmem:[#allocation21_spill] sm:$0xff] }
 0x939   : > { %v9189_v8 = vpop.f32.mrb[48].mxu1  ;;  %v3989_v26 = vmul.f32 %v14139_v37, %v2818_v46 }
 0x93a   : > { %v7140_v22 = vmul.f32 %v9189_v8, %v3981_v56  ;;  %v6691_v15 = vpop.f32.mrb[49].mxu1  ;;  %v14396_v8 = vld [vmem:[#allocation63_spill] sm:$0xff] }
 0x93b   : > { %v7138_v7 = vmul.f32 %v6691_v15, %v3977_v42  ;;  %v9190_v59 = vpop.f32.mrb[50].mxu1  ;;  %v2812_v29 = vadd.f32 %v14396_v8, %v14366_v4  ;;  %v3985_v42 = vmul.f32 %v14397_v17, %v2808_v43  ;;  %v14402_v43 = vld [vmem:[#allocation73_spill] sm:$0xff] }
 0x93c   : > { %v7141_v9 = vmul.f32 %v9190_v59, %v3983_v32  ;;  %v6694_v0 = vpop.f32.mrb[51].mxu1  ;;  %v2828_v38 = vadd.f32 %v14402_v43, %v14366_v4  ;;  %v14412_v43 = vld [vmem:[#allocation85_spill] sm:$0xff] }
 0x93d   : > { %v7139_v31 = vmul.f32 %v6694_v0, %v3979_v61  ;;  %v14399_v0 = vld [vmem:[#allocation23_spill] sm:$0xff] }
 0x93e   : > { %v7255_v56 = vpack.c.bf16 %v7141_v9, %v7140_v22  ;;  %v3991_v61 = vmul.f32 %v14399_v0, %v2822_v13  ;;  %v3987_v9 = vmul.f32 %v14400_v60, %v2812_v29  ;;  %v14404_v13 = vpack.c.bf16 %v12960_v21, %v12952_v63 }
 0x93f   : > { %v7254_v15 = vpack.c.bf16 %v7139_v31, %v7138_v7  ;;  %v14401_v7 = vld [vmem:[#allocation79_spill] sm:$0xff] }
 0x940   : > { %v2838_v37 = vadd.f32 %v14401_v7, %v14366_v4 }
 0x941   : > { %v9193_v62 = vpop.f32.mrb[52].mxu1  ;;  %8839 = vmatprep.subr.bf16.mxu0 %v7254_v15  ;;  %v14403_v15 = vld [vmem:[#allocation81_spill] sm:$0xff] }
 0x942   : > { %v7144_v32 = vmul.f32 %v9193_v62, %v3989_v26  ;;  %v6707_v59 = vpop.f32.mrb[53].mxu1  ;;  %8840 = vmatpush3.bf16.msra.mxu0 %v14398_v58  ;;  %v2842_v47 = vadd.f32 %v14403_v15, %v14366_v4  ;;  %v14406_v62 = vld [vmem:[#allocation30_spill] sm:$0xff]  ;;  %v14413_v15 = vld [vmem:[#allocation93_spill] sm:$0xff] }
 0x943   : > { %v7142_v48 = vmul.f32 %v6707_v59, %v3985_v42  ;;  %v9194_v22 = vpop.f32.mrb[54].mxu1  ;;  %8841 = vmatprep.subr.bf16.mxu0 %v7255_v56  ;;  %v14405_v56 = vld [vmem:[#allocation75_spill] sm:$0xff]  ;;  %v3997_v17 = vmul.f32 %v14406_v62, %v2838_v37  ;;  %v14407_v59 = vld [vmem:[#allocation24_spill] sm:$0xff] }
 0x944   : > { %v7145_v46 = vmul.f32 %v9194_v22, %v3991_v61  ;;  %v6710_v31 = vpop.f32.mrb[55].mxu1  ;;  %v2832_v29 = vadd.f32 %v14405_v56, %v14366_v4  ;;  %v3993_v58 = vmul.f32 %v14407_v59, %v2828_v38  ;;  %v14408_v22 = vpack.c.bf16 %v12992_v57, %v12983_v54 }
 0x945   : > { %v7143_v8 = vmul.f32 %v6710_v31, %v3987_v9  ;;  %v14410_v9 = vld [vmem:[#allocation25_spill] sm:$0xff]  ;;  %v2848_v38 = vadd.f32 %v14412_v43, %v14366_v4  ;;  %v2862_v54 = vadd.f32 %v14413_v15, %v14366_v4  ;;  %v14424_v43 = vpack.c.bf16 %v13016_v40, %v13008_v11  ;;  %v14430_v11 = vld [vmem:[#allocation55_spill] sm:$0xff] }
 0x946   : > { %v7257_v52 = vpack.c.bf16 %v7145_v46, %v7144_v32  ;;  %8842 = vmatpush3.bf16.msra.mxu0 %v14404_v13  ;;  %v14409_v32 = vld [vmem:[#allocation31_spill] sm:$0xff]  ;;  %v3995_v7 = vmul.f32 %v14410_v9, %v2832_v29 }
 0x947   : > { %v7256_v26 = vpack.c.bf16 %v7143_v8, %v7142_v48  ;;  %v3999_v60 = vmul.f32 %v14409_v32, %v2842_v47  ;;  %v14411_v48 = vld [vmem:[#allocation91_spill] sm:$0xff]  ;;  %v14414_v47 = vpack.c.bf16 %v12988_v5, %v12980_v35  ;;  %v14420_v32 = vld [vmem:[#allocation37_spill] sm:$0xff] }
 0x948   : > { %v2858_v37 = vadd.f32 %v14411_v48, %v14366_v4  ;;  %v14416_v29 = vld [vmem:[#allocation43_spill] sm:$0xff]  ;;  %v14422_v48 = vld [vmem:[#allocation97_spill] sm:$0xff] }
 0x949   : > { %v9197_v42 = vpop.f32.mrb[56].mxu1  ;;  %8843 = vmatprep.subr.bf16.mxu0 %v7256_v26 }
 0x94a   : > { %v7148_v0 = vmul.f32 %v9197_v42, %v3997_v17  ;;  %v6723_v61 = vpop.f32.mrb[57].mxu1  ;;  %8844 = vmatpush3.bf16.msra.mxu0 %v14408_v22  ;;  %v4005_v26 = vmul.f32 %v14416_v29, %v2858_v37  ;;  %v14417_v17 = vld [vmem:[#allocation36_spill] sm:$0xff]  ;;  %v2868_v37 = vadd.f32 %v14422_v48, %v14366_v4 }
 0x94b   : > { %v7146_v63 = vmul.f32 %v6723_v61, %v3993_v58  ;;  %v9198_v21 = vpop.f32.mrb[58].mxu1  ;;  %8845 = vmatprep.subr.bf16.mxu0 %v7257_v52  ;;  %v14415_v52 = vld [vmem:[#allocation87_spill] sm:$0xff]  ;;  %v4001_v42 = vmul.f32 %v14417_v17, %v2848_v38  ;;  %v14418_v61 = vpack.c.bf16 %v13020_v36, %v13011_v44  ;;  %v14429_v17 = vpack.c.bf16 %v13046_v50, %v13037_v55  ;;  %v14433_v55 = vld [vmem:[#allocation117_spill] sm:$0xff]  ;;  %v14436_v48 = vld [vmem:[#allocation88_spill] sm:$0xff] }
 0x94c   : > { %v7149_v46 = vmul.f32 %v9198_v21, %v3999_v60  ;;  %v6726_v31 = vpop.f32.mrb[59].mxu1  ;;  %v2852_v13 = vadd.f32 %v14415_v52, %v14366_v4  ;;  %v14425_v38 = vld [vmem:[#allocation99_spill] sm:$0xff]  ;;  %v2902_v50 = vadd.f32 %v14433_v55, %v14366_v4 }
 0x94d   : > { %v7147_v8 = vmul.f32 %v6726_v31, %v3995_v7  ;;  %v14423_v31 = vld [vmem:[#allocation105_spill] sm:$0xff] }
 0x94e   : > { %v7259_v57 = vpack.c.bf16 %v7149_v46, %v7148_v0  ;;  %8846 = vmatpush3.bf16.msra.mxu0 %v14414_v47  ;;  %v14419_v0 = vld [vmem:[#allocation44_spill] sm:$0xff]  ;;  %v4003_v60 = vmul.f32 %v14420_v32, %v2852_v13  ;;  %v2882_v44 = vadd.f32 %v14423_v31, %v14366_v4  ;;  %v14427_v47 = vld [vmem:[#allocation54_spill] sm:$0xff] }
 0x94f   : > { %v7258_v56 = vpack.c.bf16 %v7147_v8, %v7146_v63  ;;  %v4007_v22 = vmul.f32 %v14419_v0, %v2862_v54  ;;  %v14421_v63 = vld [vmem:[#allocation103_spill] sm:$0xff]  ;;  %v2872_v8 = vadd.f32 %v14425_v38, %v14366_v4  ;;  %v14426_v54 = vld [vmem:[#allocation64_spill] sm:$0xff]  ;;  %v4009_v52 = vmul.f32 %v14427_v47, %v2868_v37 }
 0x950   : > { %v2878_v21 = vadd.f32 %v14421_v63, %v14366_v4  ;;  %v14434_v63 = vpack.c.bf16 %v13042_v39, %v13034_v49  ;;  %v14440_v39 = vld [vmem:[#allocation5_spill] sm:$0xff]  ;;  %v14441_v49 = vld [vmem:[#allocation78_spill] sm:$0xff] }
 0x951   : > { %v9201_v62 = vpop.f32.mrb[60].mxu1  ;;  %8847 = vmatprep.subr.bf16.mxu0 %v7258_v56  ;;  %v14428_v56 = vld [vmem:[#allocation66_spill] sm:$0xff]  ;;  %v4011_v40 = vmul.f32 %v14430_v11, %v2872_v8 }
 0x952   : > { %v7152_v59 = vmul.f32 %v9201_v62, %v4005_v26  ;;  %v6739_v58 = vpop.f32.mrb[61].mxu1  ;;  %8848 = vmatpush3.bf16.msra.mxu0 %v14418_v61  ;;  %v4015_v29 = vmul.f32 %v14428_v56, %v2882_v44 }
 0x953   : > { %v7150_v35 = vmul.f32 %v6739_v58, %v4001_v42  ;;  %v9202_v5 = vpop.f32.mrb[62].mxu1  ;;  %8849 = vmatprep.subr.bf16.mxu0 %v7259_v57  ;;  %v4013_v57 = vmul.f32 %v14426_v54, %v2878_v21  ;;  %v14431_v58 = vld [vmem:[#allocation115_spill] sm:$0xff] }
 0x954   : > { %v7153_v9 = vmul.f32 %v9202_v5, %v4007_v22  ;;  %v6742_v7 = vpop.f32.mrb[63].mxu1  ;;  %v2898_v61 = vadd.f32 %v14431_v58, %v14366_v4  ;;  %v14435_v21 = vld [vmem:[#allocation111_spill] sm:$0xff] }
 0x955   : > { %v7151_v46 = vmul.f32 %v6742_v7, %v4003_v60 }
 0x956   : > { %v7261_v36 = vpack.c.bf16 %v7153_v9, %v7152_v59  ;;  %8850 = vmatpush3.bf16.msra.mxu0 %v14424_v43  ;;  %v2892_v9 = vadd.f32 %v14435_v21, %v14366_v4  ;;  %v4021_v37 = vmul.f32 %v14436_v48, %v2898_v61  ;;  %v14439_v43 = vld [vmem:[#allocation90_spill] sm:$0xff]  ;;  %v14445_v61 = vld [vmem:[#allocation123_spill] sm:$0xff] }
 0x957   : > { %v7260_v15 = vpack.c.bf16 %v7151_v46, %v7150_v35  ;;  %v14432_v35 = vld [vmem:[#allocation109_spill] sm:$0xff]  ;;  %v14437_v46 = vld [vmem:[#allocation76_spill] sm:$0xff]  ;;  %v4023_v38 = vmul.f32 %v14439_v43, %v2902_v50  ;;  %v14449_v48 = vld [vmem:[#allocation114_spill] sm:$0xff] }
 0x958   : > { %v2888_v5 = vadd.f32 %v14432_v35, %v14366_v4  ;;  %v4019_v54 = vmul.f32 %v14441_v49, %v2892_v9  ;;  %v14447_v50 = vld [vmem:[#allocation100_spill] sm:$0xff]  ;;  %v14448_v9 = vld [vmem:[#allocation6_spill] sm:$0xff] }
 0x959   : > { %v9205_v13 = vpop.f32.mrb[64].mxu1  ;;  %8851 = vmatprep.subr.bf16.mxu0 %v7260_v15 }
 0x95a   : > { %v13127_v26 = vmul.f32 %v9205_v13, %v4013_v57  ;;  %v6755_v62 = vpop.f32.mrb[65].mxu1  ;;  %8852 = vmatpush3.bf16.msra.mxu0 %v14429_v17  ;;  %v4017_v31 = vmul.f32 %v14437_v46, %v2888_v5  ;;  %v14446_v5 = vld [vmem:[#allocation112_spill] sm:$0xff] }
 0x95b   : > { %v13133_v42 = vmul.f32 %v6755_v62, %v4009_v52  ;;  %v9206_v59 = vpop.f32.mrb[66].mxu1  ;;  %8853 = vmatprep.subr.bf16.mxu0 %v7261_v36  ;;  %v14438_v36 = vld [vmem:[#allocation4_spill] sm:$0xff]  ;;  %v14442_v52 = vld [vmem:[#allocation127_spill] sm:$0xff]  ;;  %v14443_v62 = vld [vmem:[#allocation121_spill] sm:$0xff] }
 0x95c   : > { %v13137_v0 = vmul.f32 %v9206_v59, %v4015_v29  ;;  %v6758_v22 = vpop.f32.mrb[67].mxu1  ;;  %v2918_v13 = vadd.f32 %v14442_v52, %v14366_v4  ;;  %v2908_v17 = vadd.f32 %v14443_v62, %v14366_v4 }
 0x95d   : > { %v13141_v32 = vmul.f32 %v6758_v22, %v4011_v40  ;;  %v14444_v40 = vld [vmem:[#allocation129_spill] sm:$0xff]  ;;  %v2912_v22 = vadd.f32 %v14445_v61, %v14366_v4 }
 0x95e   : > { %v7263_v60 = vpack.c.bf16 %v13137_v0, %v13127_v26  ;;  %8854 = vmatpush3.bf16.msra.mxu0 %v14434_v63  ;;  %v2922_v59 = vadd.f32 %v14444_v40, %v14366_v4  ;;  %v4029_v55 = vmul.f32 %v14446_v5, %v2918_v13  ;;  %v4025_v63 = vmul.f32 %v14447_v50, %v2908_v17  ;;  %v14454_v40 = vld [vmem:[#allocation124_spill] sm:$0xff]  ;;  %v14456_v50 = vld [vmem:[#allocation126_spill] sm:$0xff] }
 0x95f   : > { %v7262_v7 = vpack.c.bf16 %v13141_v32, %v13133_v42 }
 0x961   : > { %v9209_v44 = vpop.f32.mrb[68].mxu1  ;;  %7341 = vmatmul.mubr.bf16.vlgmr.msra.gmra.mrb[124].mxu0 %v14438_v36  ;;  %v14451_v36 = vld [vmem:[#allocation102_spill] sm:$0xff] }
 0x962   : > { %v13158_v8 = vmul.f32 %v9209_v44, %v4021_v37  ;;  %v6771_v15 = vpop.f32.mrb[69].mxu1  ;;  %7348 = vmatprep.mubr.bf16.mxu0 %v14440_v39  ;;  %v4031_v37 = vmul.f32 %v14449_v48, %v2922_v59  ;;  %v14450_v44 = vld [vmem:[#allocation7_spill] sm:$0xff]  ;;  %v4027_v43 = vmul.f32 %v14451_v36, %v2912_v22  ;;  %v14457_v48 = vld [vmem:[#allocation146_spill] sm:$0xff] }
 0x963   : > { %v13162_v57 = vmul.f32 %v6771_v15, %v4017_v31  ;;  %v9210_v47 = vpop.f32.mrb[70].mxu1  ;;  %v14455_v22 = vld [vmem:[#allocation139_spill] sm:$0xff] }
 0x964   : > { %v13166_v56 = vmul.f32 %v9210_v47, %v4023_v38  ;;  %v6774_v29 = vpop.f32.mrb[71].mxu1 }
 0x965   : > { %v13170_v11 = vmul.f32 %v6774_v29, %v4019_v54  ;;  %v14452_v54 = vld [vmem:[#allocation133_spill] sm:$0xff]  ;;  %v14453_v29 = vld [vmem:[#allocation135_spill] sm:$0xff] }
 0x966   : > { %v2928_v47 = vadd.f32 %v14452_v54, %v14366_v4  ;;  %v2932_v62 = vadd.f32 %v14453_v29, %v14366_v4  ;;  %v14460_v54 = vld [vmem:[#allocation148_spill] sm:$0xff]  ;;  %v14465_v29 = vld [vmem:[#allocation158_spill] sm:$0xff] }
 0x967   : > { %v2978_v17 = vadd.f32 %v14465_v29, %v14366_v4 }
 0x968   : > { %v4033_v59 = vmul.f32 %v14454_v40, %v2928_v47  ;;  %v2962_v47 = vadd.f32 %v14460_v54, %v14366_v4  ;;  %v14464_v54 = vld [vmem:[#allocation51_spill] sm:$0xff] }
 0x969   : > { %v9213_v21 = vpop.f32.mrb[72].mxu1  ;;  %7349 = vmatmul.mubr.bf16.gmra.mrb[128].mxu0 %v14448_v9 }
 0x96a   : > { %v13184_v46 = vmul.f32 %v9213_v21, %v4029_v55  ;;  %v6787_v31 = vpop.f32.mrb[73].mxu1  ;;  %7389 = vmatprep.mubr.bf16.mxu0 %v14450_v44 }
 0x96b   : > { %v13188_v38 = vmul.f32 %v6787_v31, %v4025_v63  ;;  %v9214_v15 = vpop.f32.mrb[74].mxu1  ;;  %v4035_v63 = vmul.f32 %v14456_v50, %v2932_v62  ;;  %v14458_v31 = vld [vmem:[#allocation140_spill] sm:$0xff] }
 0x96c   : > { %v13190_v39 = vmul.f32 %v9214_v15, %v4031_v37  ;;  %v6790_v49 = vpop.f32.mrb[75].mxu1  ;;  %v2958_v37 = vadd.f32 %v14457_v48, %v14366_v4  ;;  %v14461_v62 = vld [vmem:[#allocation144_spill] sm:$0xff] }
 0x96d   : > { %v13194_v52 = vmul.f32 %v6790_v49, %v4027_v43  ;;  %v14459_v43 = vld [vmem:[#allocation142_spill] sm:$0xff]  ;;  %v2952_v40 = vadd.f32 %v14461_v62, %v14366_v4  ;;  %v14463_v48 = vld [vmem:[#allocation60_spill] sm:$0xff] }
 0x96e   : > { %v2948_v15 = vadd.f32 %v14459_v43, %v14366_v4 }
 0x96f   : > { %v4043_v13 = vmul.f32 %v14464_v54, %v2952_v40  ;;  %v14471_v54 = vld [vmem:[#allocation171_spill] sm:$0xff] }
 0x970   : > { %v4041_v50 = vmul.f32 %v14207_v12, %v2948_v15  ;;  %v3002_v42 = vadd.f32 %v14471_v54, %v14366_v4 }
 0x971   : > { %v9217_v61 = vpop.f32.mrb[76].mxu1 }
 0x972   : > { %v13204_v5 = vmul.f32 %v9217_v61, %v14455_v22  ;;  %v6803_v55 = vpop.f32.mrb[77].mxu1  ;;  %v14462_v61 = vld [vmem:[#allocation58_spill] sm:$0xff] }
 0x973   : > { %v13207_v21 = vmul.f32 %v6803_v55, %v4033_v59  ;;  %v9218_v9 = vpop.f32.mrb[78].mxu1  ;;  %v4045_v22 = vmul.f32 %v14462_v61, %v2958_v37  ;;  %v14466_v59 = vld [vmem:[#allocation152_spill] sm:$0xff] }
 0x974   : > { %v13212_v44 = vmul.f32 %v9218_v9, %v14458_v31  ;;  %v6806_v36 = vpop.f32.mrb[79].mxu1  ;;  %v4047_v31 = vmul.f32 %v14463_v48, %v2962_v47  ;;  %v2968_v35 = vadd.f32 %v14466_v59, %v14366_v4  ;;  %v14467_v61 = vld [vmem:[#allocation160_spill] sm:$0xff] }
 0x975   : > { %v13216_v49 = vmul.f32 %v6806_v36, %v4035_v63  ;;  %v2982_v12 = vadd.f32 %v14467_v61, %v14366_v4 }
 0x976   : > { %v4049_v29 = vmul.f32 %v14215_v51, %v2968_v35  ;;  %v14470_v51 = vld [vmem:[#allocation164_spill] sm:$0xff] }
 0x977   : > { %v2988_v35 = vadd.f32 %v14470_v51, %v14366_v4 }
 0x979   : > { %v9221_v55 = vpop.f32.mrb[80].mxu1 }
 0x97a   : > { %v7172_v9 = vmul.f32 %v9221_v55, %v4045_v22  ;;  %v6819_v63 = vpop.f32.mrb[81].mxu1  ;;  %v14468_v22 = vld [vmem:[#allocation154_spill] sm:$0xff] }
 0x97b   : > { %v7170_v36 = vmul.f32 %v6819_v63, %v4041_v50  ;;  %v9222_v43 = vpop.f32.mrb[82].mxu1  ;;  %v2972_v47 = vadd.f32 %v14468_v22, %v14366_v4  ;;  %v4053_v50 = vmul.f32 %v14214_v6, %v2978_v17 }
 0x97c   : > { %v7173_v62 = vmul.f32 %v9222_v43, %v4047_v31  ;;  %v6822_v58 = vpop.f32.mrb[83].mxu1  ;;  %v14469_v31 = vld [vmem:[#allocation170_spill] sm:$0xff] }
 0x97d   : > { %v7171_v37 = vmul.f32 %v6822_v58, %v4043_v13  ;;  %v4055_v58 = vmul.f32 %v14217_v53, %v2982_v12  ;;  %v2998_v6 = vadd.f32 %v14469_v31, %v14366_v4  ;;  %v14472_v53 = vld [vmem:[#allocation166_spill] sm:$0xff] }
 0x97e   : > { %v7271_v15 = vpack.c.bf16 %v7173_v62, %v7172_v9  ;;  %v4051_v9 = vmul.f32 %v14218_v45, %v2972_v47  ;;  %v2992_v45 = vadd.f32 %v14472_v53, %v14366_v4  ;;  %v14473_v62 = vld [vmem:[#allocation106_spill] sm:$0xff] }
 0x97f   : > { %v7270_v55 = vpack.c.bf16 %v7171_v37, %v7170_v36  ;;  %v4061_v37 = vmul.f32 %v14473_v62, %v2998_v6  ;;  %v14474_v12 = vld [vmem:[#allocation94_spill] sm:$0xff]  ;;  %v14485_v62 = vpack.c.bf16 %v13194_v52, %v13188_v38 }
 0x980   : > { %v14480_v6 = vld [vmem:[#allocation182_spill] sm:$0xff] }
 0x981   : > { %v9225_v40 = vpop.f32.mrb[84].mxu1  ;;  %8867 = vmatprep.subr.bf16.mxu0 %v7270_v55  ;;  %v14475_v55 = vpack.c.bf16 %v13170_v11, %v13162_v57  ;;  %v3022_v57 = vadd.f32 %v14480_v6, %v14366_v4 }
 0x982   : > { %v7176_v63 = vmul.f32 %v9225_v40, %v4053_v50  ;;  %v6835_v48 = vpop.f32.mrb[85].mxu1  ;;  %8868 = vmatpush3.bf16.msra.mxu0 %v7262_v7  ;;  %v14476_v50 = vld [vmem:[#allocation108_spill] sm:$0xff] }
 0x983   : > { %v7174_v13 = vmul.f32 %v6835_v48, %v4049_v29  ;;  %v9226_v59 = vpop.f32.mrb[86].mxu1  ;;  %8869 = vmatprep.subr.bf16.mxu0 %v7271_v15  ;;  %v4057_v15 = vmul.f32 %v14474_v12, %v2988_v35  ;;  %v4063_v40 = vmul.f32 %v14476_v50, %v3002_v42  ;;  %v14487_v12 = vld [vmem:[#allocation120_spill] sm:$0xff] }
 0x984   : > { %v7177_v17 = vmul.f32 %v9226_v59, %v4055_v58  ;;  %v6838_v36 = vpop.f32.mrb[87].mxu1  ;;  %v14479_v59 = vld [vmem:[#allocation175_spill] sm:$0xff] }
 0x985   : > { %v7175_v43 = vmul.f32 %v6838_v36, %v4051_v9  ;;  %v3008_v9 = vadd.f32 %v14479_v59, %v14366_v4  ;;  %v14482_v36 = vld [vmem:[#allocation177_spill] sm:$0xff] }
 0x986   : > { %v7273_v32 = vpack.c.bf16 %v7177_v17, %v7176_v63  ;;  %8870 = vmatpush3.bf16.msra.mxu0 %v7263_v60  ;;  %v14477_v60 = vld [vmem:[#allocation96_spill] sm:$0xff]  ;;  %v14481_v17 = vpack.c.bf16 %v13166_v56, %v13158_v8  ;;  %v3012_v51 = vadd.f32 %v14482_v36, %v14366_v4 }
 0x987   : > { %v7272_v7 = vpack.c.bf16 %v7175_v43, %v7174_v13  ;;  %v4059_v29 = vmul.f32 %v14477_v60, %v2992_v45  ;;  %v14478_v63 = vld [vmem:[#allocation180_spill] sm:$0xff]  ;;  %v14483_v43 = vld [vmem:[#allocation130_spill] sm:$0xff] }
 0x988   : > { %v3018_v48 = vadd.f32 %v14478_v63, %v14366_v4  ;;  %v14490_v60 = vld [vmem:[#allocation192_spill] sm:$0xff] }
 0x989   : > { %v9229_v61 = vpop.f32.mrb[88].mxu1  ;;  %8871 = vmatprep.subr.bf16.mxu0 %v7272_v7  ;;  %v3042_v38 = vadd.f32 %v14490_v60, %v14366_v4  ;;  %v14492_v63 = vld [vmem:[#allocation188_spill] sm:$0xff] }
 0x98a   : > { %v7180_v22 = vmul.f32 %v9229_v61, %v4061_v37  ;;  %v6851_v47 = vpop.f32.mrb[89].mxu1  ;;  %8872 = vmatpush3.bf16.msra.mxu0 %v14475_v55  ;;  %v4069_v54 = vmul.f32 %v14483_v43, %v3018_v48  ;;  %v14486_v37 = vld [vmem:[#allocation132_spill] sm:$0xff]  ;;  %v3032_v48 = vadd.f32 %v14492_v63, %v14366_v4 }
 0x98b   : > { %v7178_v26 = vmul.f32 %v6851_v47, %v4057_v15  ;;  %v9230_v0 = vpop.f32.mrb[90].mxu1  ;;  %8873 = vmatprep.subr.bf16.mxu0 %v7273_v32  ;;  %v14484_v32 = vld [vmem:[#allocation118_spill] sm:$0xff]  ;;  %v4071_v61 = vmul.f32 %v14486_v37, %v3022_v57  ;;  %v4067_v15 = vmul.f32 %v14487_v12, %v3012_v51  ;;  %v14495_v57 = vld [vmem:[#allocation169_spill] sm:$0xff]  ;;  %v14496_v51 = vpack.c.bf16 %v13216_v49, %v13207_v21  ;;  %v14500_v21 = vld [vmem:[#allocation200_spill] sm:$0xff] }
 0x98c   : > { %v7181_v58 = vmul.f32 %v9230_v0, %v4063_v40  ;;  %v6854_v13 = vpop.f32.mrb[91].mxu1  ;;  %v4065_v53 = vmul.f32 %v14484_v32, %v3008_v9  ;;  %v14489_v40 = vld [vmem:[#allocation186_spill] sm:$0xff]  ;;  %v14494_v9 = vld [vmem:[#allocation155_spill] sm:$0xff]  ;;  %v3062_v49 = vadd.f32 %v14500_v21, %v14366_v4  ;;  %v14516_v21 = vld [vmem:[#allocation208_spill] sm:$0xff] }
 0x98d   : > { %v7179_v31 = vmul.f32 %v6854_v13, %v4059_v29  ;;  %v14491_v29 = vpack.c.bf16 %v13190_v39, %v13184_v46  ;;  %v14493_v13 = vld [vmem:[#allocation167_spill] sm:$0xff]  ;;  %v14497_v46 = vld [vmem:[#allocation157_spill] sm:$0xff] }
 0x98e   : > { %v7275_v11 = vpack.c.bf16 %v7181_v58, %v7180_v22  ;;  %8874 = vmatpush3.bf16.msra.mxu0 %v14481_v17  ;;  %v14488_v22 = vld [vmem:[#allocation191_spill] sm:$0xff]  ;;  %v4075_v39 = vmul.f32 %v14497_v46, %v3032_v48  ;;  %v14509_v48 = vld [vmem:[#allocation210_spill] sm:$0xff] }
 0x98f   : > { %v7274_v35 = vpack.c.bf16 %v7179_v31, %v7178_v26  ;;  %v3038_v47 = vadd.f32 %v14488_v22, %v14366_v4  ;;  %v3028_v26 = vadd.f32 %v14489_v40, %v14366_v4  ;;  %v14505_v40 = vld [vmem:[#allocation8_spill] sm:$0xff] }
 0x991   : > { %v9233_v42 = vpop.f32.mrb[92].mxu1  ;;  %8875 = vmatprep.subr.bf16.mxu0 %v7274_v35  ;;  %v4077_v59 = vmul.f32 %v14493_v13, %v3038_v47  ;;  %v4073_v31 = vmul.f32 %v14494_v9, %v3028_v26  ;;  %v14504_v47 = vld [vmem:[#allocation178_spill] sm:$0xff]  ;;  %v14510_v9 = vld [vmem:[#allocation204_spill] sm:$0xff] }
 0x992   : > { %v7184_v45 = vmul.f32 %v9233_v42, %v4069_v54  ;;  %v6867_v7 = vpop.f32.mrb[93].mxu1  ;;  %8876 = vmatpush3.bf16.msra.mxu0 %v14485_v62  ;;  %v14498_v54 = vld [vmem:[#allocation199_spill] sm:$0xff]  ;;  %v14506_v26 = vld [vmem:[#allocation190_spill] sm:$0xff] }
 0x993   : > { %v7182_v8 = vmul.f32 %v6867_v7, %v4065_v53  ;;  %v9234_v56 = vpop.f32.mrb[94].mxu1  ;;  %8877 = vmatprep.subr.bf16.mxu0 %v7275_v11  ;;  %v4079_v11 = vmul.f32 %v14495_v57, %v3042_v38  ;;  %v3058_v42 = vadd.f32 %v14498_v54, %v14366_v4  ;;  %v14511_v57 = vld [vmem:[#allocation213_spill] sm:$0xff] }
 0x994   : > { %v7185_v55 = vmul.f32 %v9234_v56, %v4071_v61  ;;  %v6870_v50 = vpop.f32.mrb[95].mxu1  ;;  %v14501_v61 = vpack.c.bf16 %v13212_v44, %v13204_v5  ;;  %v14507_v5 = vld [vmem:[#allocation9_spill] sm:$0xff]  ;;  %v14508_v44 = vld [vmem:[#allocation179_spill] sm:$0xff] }
 0x995   : > { %v7183_v0 = vmul.f32 %v6870_v50, %v4067_v15  ;;  %v14503_v15 = vld [vmem:[#allocation189_spill] sm:$0xff] }
 0x996   : > { %v7277_v52 = vpack.c.bf16 %v7185_v55, %v7184_v45  ;;  %8878 = vmatpush3.bf16.msra.mxu0 %v14491_v29  ;;  %v14499_v45 = vld [vmem:[#allocation194_spill] sm:$0xff]  ;;  %v4085_v22 = vmul.f32 %v14503_v15, %v3058_v42  ;;  %v14514_v42 = vld [vmem:[#allocation197_spill] sm:$0xff] }
 0x997   : > { %v7276_v58 = vpack.c.bf16 %v7183_v0, %v7182_v8  ;;  %v3048_v7 = vadd.f32 %v14499_v45, %v14366_v4  ;;  %v14502_v8 = vld [vmem:[#allocation196_spill] sm:$0xff]  ;;  %v4087_v0 = vmul.f32 %v14506_v26, %v3062_v49  ;;  %v14518_v15 = vld [vmem:[#allocation198_spill] sm:$0xff]  ;;  %v14519_v26 = vld [vmem:[#allocation217_spill] sm:$0xff] }
 0x998   : > { %v3052_v56 = vadd.f32 %v14502_v8, %v14366_v4 }
 0x999   : > { %v9237_v6 = vpop.f32.mrb[96].mxu1  ;;  %8879 = vmatprep.subr.bf16.mxu0 %v7276_v58  ;;  %v4081_v55 = vmul.f32 %v14504_v47, %v3048_v7  ;;  %v3078_v58 = vadd.f32 %v14509_v48, %v14366_v4  ;;  %v14515_v7 = vld [vmem:[#allocation10_spill] sm:$0xff] }
 0x99a   : > { %v13295_v17 = vmul.f32 %v9237_v6, %v4077_v59  ;;  %v6883_v36 = vpop.f32.mrb[97].mxu1  ;;  %8880 = vmatpush3.bf16.msra.mxu0 %v14496_v51  ;;  %v14512_v51 = vld [vmem:[#allocation207_spill] sm:$0xff]  ;;  %v14521_v48 = vld [vmem:[#allocation214_spill] sm:$0xff] }
 0x99b   : > { %v13301_v35 = vmul.f32 %v6883_v36, %v4073_v31  ;;  %v9238_v43 = vpop.f32.mrb[98].mxu1  ;;  %8881 = vmatprep.subr.bf16.mxu0 %v7277_v52  ;;  %v4083_v52 = vmul.f32 %v14508_v44, %v3052_v56  ;;  %v3068_v31 = vadd.f32 %v14510_v9, %v14366_v4  ;;  %v3072_v46 = vadd.f32 %v14512_v51, %v14366_v4  ;;  %v14517_v56 = vld [vmem:[#allocation11_spill] sm:$0xff]  ;;  %v14522_v9 = vld [vmem:[#allocation226_spill] sm:$0xff] }
 0x99c   : > { %v13305_v32 = vmul.f32 %v9238_v43, %v4079_v11  ;;  %v6886_v53 = vpop.f32.mrb[99].mxu1  ;;  %v3082_v11 = vadd.f32 %v14511_v57, %v14366_v4  ;;  %v14513_v43 = vld [vmem:[#allocation205_spill] sm:$0xff]  ;;  %v14520_v44 = vld [vmem:[#allocation219_spill] sm:$0xff] }
 0x99d   : > { %v13309_v62 = vmul.f32 %v6886_v53, %v4075_v39  ;;  %v4093_v54 = vmul.f32 %v14513_v43, %v3078_v58  ;;  %v4089_v53 = vmul.f32 %v14514_v42, %v3068_v31 }
 0x99e   : > { %v7279_v37 = vpack.c.bf16 %v13305_v32, %v13295_v17  ;;  %8882 = vmatpush3.bf16.msra.mxu0 %v14501_v61  ;;  %v4095_v49 = vmul.f32 %v14516_v21, %v3082_v11  ;;  %v14523_v11 = vld [vmem:[#allocation215_spill] sm:$0xff]  ;;  %v14526_v21 = vld [vmem:[#allocation229_spill] sm:$0xff] }
 0x99f   : > { %v7278_v12 = vpack.c.bf16 %v13309_v62, %v13301_v35 }
 0x9a1   : > { %v9241_v50 = vpop.f32.mrb[100].mxu1  ;;  %7390 = vmatmul.mubr.bf16.vlgmr.msra.gmra.mrb[132].mxu0 %v14505_v40 }
 0x9a2   : > { %v13326_v60 = vmul.f32 %v9241_v50, %v4085_v22  ;;  %v6899_v38 = vpop.f32.mrb[101].mxu1  ;;  %7397 = vmatprep.mubr.bf16.mxu0 %v14507_v5  ;;  %v4091_v22 = vmul.f32 %v14518_v15, %v3072_v46 }
 0x9a3   : > { %v13330_v29 = vmul.f32 %v6899_v38, %v4081_v55  ;;  %v9242_v63 = vpop.f32.mrb[102].mxu1 }
 0x9a4   : > { %v13334_v13 = vmul.f32 %v9242_v63, %v4087_v0  ;;  %v6902_v59 = vpop.f32.mrb[103].mxu1  ;;  %v3088_v0 = vadd.f32 %v14519_v26, %v14366_v4 }
 0x9a5   : > { %v13338_v6 = vmul.f32 %v6902_v59, %v4083_v52  ;;  %v3092_v52 = vadd.f32 %v14520_v44, %v14366_v4 }
 0x9a6   : > { %v7281_v36 = vpack.c.bf16 %v13334_v13, %v13326_v60  ;;  %v4097_v58 = vmul.f32 %v14521_v48, %v3088_v0  ;;  %v14529_v0 = vld [vmem:[#allocation161_spill] sm:$0xff] }
 0x9a7   : > { %v7280_v39 = vpack.c.bf16 %v13338_v6, %v13330_v29  ;;  %v4099_v51 = vmul.f32 %v14523_v11, %v3092_v52  ;;  %v14530_v48 = vld [vmem:[#allocation149_spill] sm:$0xff] }
 0x9a9   : > { %v9245_v45 = vpop.f32.mrb[104].mxu1  ;;  %7398 = vmatmul.mubr.bf16.gmra.mrb[136].mxu0 %v14515_v7 }
 0x9aa   : > { %v13352_v61 = vmul.f32 %v9245_v45, %v4093_v54  ;;  %v6915_v8 = vpop.f32.mrb[105].mxu1  ;;  %7438 = vmatprep.mubr.bf16.mxu0 %v14517_v56  ;;  %v14524_v54 = vld [vmem:[#allocation233_spill] sm:$0xff]  ;;  %v14527_v56 = vld [vmem:[#allocation235_spill] sm:$0xff] }
 0x9ab   : > { %v13356_v47 = vmul.f32 %v6915_v8, %v4089_v53  ;;  %v9246_v55 = vpop.f32.mrb[106].mxu1  ;;  %v3118_v42 = vadd.f32 %v14524_v54, %v14366_v4  ;;  %v14525_v53 = vld [vmem:[#allocation227_spill] sm:$0xff]  ;;  %v3122_v15 = vadd.f32 %v14527_v56, %v14366_v4 }
 0x9ac   : > { %v13358_v50 = vmul.f32 %v9246_v55, %v4095_v49  ;;  %v6918_v40 = vpop.f32.mrb[107].mxu1  ;;  %v3108_v49 = vadd.f32 %v14526_v21, %v14366_v4  ;;  %v14528_v55 = vld [vmem:[#allocation231_spill] sm:$0xff] }
 0x9ad   : > { %v13362_v38 = vmul.f32 %v6918_v40, %v4091_v22  ;;  %v3112_v40 = vadd.f32 %v14528_v55, %v14366_v4  ;;  %v4109_v44 = vmul.f32 %v14529_v0, %v3118_v42  ;;  %v14532_v54 = vld [vmem:[#allocation151_spill] sm:$0xff]  ;;  %v14534_v22 = vld [vmem:[#allocation237_spill] sm:$0xff] }
 0x9ae   : > { %v7283_v5 = vpack.c.bf16 %v13358_v50, %v13352_v61  ;;  %v3128_v26 = vadd.f32 %v14534_v22, %v14366_v4  ;;  %v14535_v0 = vld [vmem:[#allocation243_spill] sm:$0xff] }
 0x9af   : > { %v7282_v63 = vpack.c.bf16 %v13362_v38, %v13356_v47 }
 0x9b1   : > { %v9249_v59 = vpop.f32.mrb[108].mxu1 }
 0x9b2   : > { %v13372_v31 = vmul.f32 %v9249_v59, %v14522_v9  ;;  %v6931_v57 = vpop.f32.mrb[109].mxu1 }
 0x9b3   : > { %v13375_v46 = vmul.f32 %v6931_v57, %v4097_v58  ;;  %v9250_v43 = vpop.f32.mrb[110].mxu1  ;;  %v4105_v58 = vmul.f32 %v14530_v48, %v3108_v49  ;;  %v14531_v57 = vld [vmem:[#allocation163_spill] sm:$0xff]  ;;  %v3142_v49 = vadd.f32 %v14535_v0, %v14366_v4 }
 0x9b4   : > { %v13380_v45 = vmul.f32 %v9250_v43, %v14525_v53  ;;  %v6934_v7 = vpop.f32.mrb[111].mxu1  ;;  %v4111_v11 = vmul.f32 %v14531_v57, %v3122_v15  ;;  %v4107_v53 = vmul.f32 %v14532_v54, %v3112_v40  ;;  %v14541_v0 = vld [vmem:[#allocation251_spill] sm:$0xff] }
 0x9b5   : > { %v13384_v8 = vmul.f32 %v6934_v7, %v4099_v51  ;;  %v14533_v7 = vld [vmem:[#allocation241_spill] sm:$0xff]  ;;  %v4119_v22 = vmul.f32 %v14285_v10, %v3142_v49  ;;  %v3162_v35 = vadd.f32 %v14541_v0, %v14366_v4  ;;  %v14542_v10 = vld [vmem:[#allocation247_spill] sm:$0xff] }
 0x9b6   : > { %v3138_v21 = vadd.f32 %v14533_v7, %v14366_v4 }
 0x9b9   : > { %v9253_v52 = vpop.f32.mrb[112].mxu1 }
 0x9ba   : > { %v7204_v59 = vmul.f32 %v9253_v52, %v4109_v44  ;;  %v6947_v9 = vpop.f32.mrb[113].mxu1  ;;  %v14536_v52 = vld [vmem:[#allocation239_spill] sm:$0xff] }
 0x9bb   : > { %v7202_v51 = vmul.f32 %v6947_v9, %v4105_v58  ;;  %v9254_v43 = vpop.f32.mrb[114].mxu1  ;;  %v3132_v15 = vadd.f32 %v14536_v52, %v14366_v4  ;;  %v4117_v58 = vmul.f32 %v14282_v27, %v3138_v21  ;;  %v14537_v9 = vld [vmem:[#allocation172_spill] sm:$0xff] }
 0x9bc   : > { %v7205_v56 = vmul.f32 %v9254_v43, %v4111_v11  ;;  %v6950_v55 = vpop.f32.mrb[115].mxu1  ;;  %v4113_v57 = vmul.f32 %v14537_v9, %v3128_v26  ;;  %v14540_v26 = vld [vmem:[#allocation245_spill] sm:$0xff]  ;;  %v4127_v9 = vmul.f32 %v14296_v3, %v3162_v35  ;;  %v14548_v3 = vld [vmem:[#allocation255_spill] sm:$0xff] }
 0x9bd   : > { %v7203_v42 = vmul.f32 %v6950_v55, %v4107_v53  ;;  %v14538_v53 = vld [vmem:[#allocation174_spill] sm:$0xff]  ;;  %v3148_v55 = vadd.f32 %v14540_v26, %v14366_v4  ;;  %v14550_v26 = vld [vmem:[#allocation209_spill] sm:$0xff] }
 0x9be   : > { %v7287_v44 = vpack.c.bf16 %v7205_v56, %v7204_v59  ;;  %v4115_v7 = vmul.f32 %v14538_v53, %v3132_v15  ;;  %v14543_v15 = vld [vmem:[#allocation193_spill] sm:$0xff] }
 0x9bf   : > { %v7286_v48 = vpack.c.bf16 %v7203_v42, %v7202_v51  ;;  %v14539_v51 = vld [vmem:[#allocation249_spill] sm:$0xff] }
 0x9c0   : > { %v3158_v27 = vadd.f32 %v14539_v51, %v14366_v4 }
 0x9c1   : > { %v9257_v40 = vpop.f32.mrb[116].mxu1  ;;  %8895 = vmatprep.subr.bf16.mxu0 %v7286_v48  ;;  %v4121_v48 = vmul.f32 %v14543_v15, %v3148_v55 }
 0x9c2   : > { %v7208_v11 = vmul.f32 %v9257_v40, %v4117_v58  ;;  %v6963_v43 = vpop.f32.mrb[117].mxu1  ;;  %8896 = vmatpush3.bf16.msra.mxu0 %v7278_v12  ;;  %v3152_v12 = vadd.f32 %v14542_v10, %v14366_v4 }
 0x9c3   : > { %v7206_v54 = vmul.f32 %v6963_v43, %v4113_v57  ;;  %v9258_v59 = vpop.f32.mrb[118].mxu1  ;;  %8897 = vmatprep.subr.bf16.mxu0 %v7287_v44  ;;  %v4125_v44 = vmul.f32 %v14293_v1, %v3158_v27  ;;  %v14549_v27 = vld [vmem:[#allocation220_spill] sm:$0xff] }
 0x9c4   : > { %v7209_v21 = vmul.f32 %v9258_v59, %v4119_v22  ;;  %v6966_v56 = vpop.f32.mrb[119].mxu1 }
 0x9c5   : > { %v7207_v42 = vmul.f32 %v6966_v56, %v4115_v7  ;;  %v14547_v7 = vld [vmem:[#allocation259_spill] sm:$0xff] }
 0x9c6   : > { %v7289_v62 = vpack.c.bf16 %v7209_v21, %v7208_v11  ;;  %8898 = vmatpush3.bf16.msra.mxu0 %v7279_v37  ;;  %v14544_v37 = vld [vmem:[#allocation195_spill] sm:$0xff]  ;;  %v14545_v11 = vld [vmem:[#allocation257_spill] sm:$0xff]  ;;  %v3182_v29 = vadd.f32 %v14547_v7, %v14366_v4 }
 0x9c7   : > { %v7288_v49 = vpack.c.bf16 %v7207_v42, %v7206_v54  ;;  %v4123_v57 = vmul.f32 %v14544_v37, %v3152_v12  ;;  %v3178_v1 = vadd.f32 %v14545_v11, %v14366_v4  ;;  %v14546_v54 = vld [vmem:[#allocation253_spill] sm:$0xff] }
 0x9c8   : > { %v3168_v59 = vadd.f32 %v14546_v54, %v14366_v4  ;;  %v4135_v35 = vmul.f32 %v14307_v23, %v3182_v29  ;;  %v14554_v23 = vld [vmem:[#allocation263_spill] sm:$0xff]  ;;  %v14556_v11 = vld [vmem:[#allocation273_spill] sm:$0xff] }
 0x9c9   : > { %v9261_v52 = vpop.f32.mrb[120].mxu1  ;;  %8899 = vmatprep.subr.bf16.mxu0 %v7288_v49  ;;  %v4133_v21 = vmul.f32 %v14549_v27, %v3178_v1  ;;  %v14558_v54 = vld [vmem:[#allocation275_spill] sm:$0xff] }
 0x9ca   : > { %v7212_v58 = vmul.f32 %v9261_v52, %v4125_v44  ;;  %v6979_v40 = vpop.f32.mrb[121].mxu1  ;;  %8900 = vmatpush3.bf16.msra.mxu0 %v7280_v39  ;;  %v3172_v39 = vadd.f32 %v14548_v3, %v14366_v4  ;;  %v4129_v55 = vmul.f32 %v14550_v26, %v3168_v59  ;;  %v14552_v44 = vld [vmem:[#allocation261_spill] sm:$0xff]  ;;  %v3222_v59 = vadd.f32 %v14558_v54, %v14366_v4  ;;  %v14563_v27 = vld [vmem:[#allocation71_spill] sm:$0xff] }
 0x9cb   : > { %v7210_v17 = vmul.f32 %v6979_v40, %v4121_v48  ;;  %v9262_v32 = vpop.f32.mrb[122].mxu1  ;;  %8901 = vmatprep.subr.bf16.mxu0 %v7289_v62  ;;  %v14551_v62 = vld [vmem:[#allocation265_spill] sm:$0xff]  ;;  %v3188_v52 = vadd.f32 %v14552_v44, %v14366_v4  ;;  %v14553_v48 = vld [vmem:[#allocation267_spill] sm:$0xff] }
 0x9cc   : > { %v7213_v43 = vmul.f32 %v9262_v32, %v4127_v9  ;;  %v6982_v22 = vpop.f32.mrb[123].mxu1  ;;  %v3198_v10 = vadd.f32 %v14551_v62, %v14366_v4  ;;  %v3202_v47 = vadd.f32 %v14553_v48, %v14366_v4 }
 0x9cd   : > { %v7211_v53 = vmul.f32 %v6982_v22, %v4123_v57  ;;  %v4137_v40 = vmul.f32 %v12476_v14, %v3188_v52  ;;  %v14555_v57 = vpack.c.bf16 %v13384_v8, %v13375_v46  ;;  %v14559_v46 = vpack.c.bf16 %v13380_v45, %v13372_v31  ;;  %v14565_v31 = vld [vmem:[#allocation22_spill] sm:$0xff]  ;;  %v14569_v52 = vld [vmem:[#allocation279_spill] sm:$0xff] }
 0x9ce   : > { %v7291_v6 = vpack.c.bf16 %v7213_v43, %v7212_v58  ;;  %8902 = vmatpush3.bf16.msra.mxu0 %v7281_v36  ;;  %v4131_v36 = vmul.f32 %v14308_v19, %v3172_v39  ;;  %v3192_v19 = vadd.f32 %v14554_v23, %v14366_v4  ;;  %v4141_v58 = vmul.f32 %v12486_v28, %v3198_v10  ;;  %v14557_v43 = vld [vmem:[#allocation269_spill] sm:$0xff] }
 0x9cf   : > { %v7290_v51 = vpack.c.bf16 %v7211_v53, %v7210_v17  ;;  %v4143_v17 = vmul.f32 %v12585_v25, %v3202_v47  ;;  %v3218_v28 = vadd.f32 %v14556_v11, %v14366_v4  ;;  %v3208_v22 = vadd.f32 %v14557_v43, %v14366_v4  ;;  %v14575_v11 = vld [vmem:[#allocation285_spill] sm:$0xff] }
 0x9d0   : > { %v4139_v61 = vmul.f32 %v12570_v24, %v3192_v19  ;;  %v14560_v24 = vld [vmem:[#allocation271_spill] sm:$0xff]  ;;  %v14570_v19 = vld [vmem:[#allocation14_spill] sm:$0xff] }
 0x9d1   : > { %v9265_v56 = vpop.f32.mrb[124].mxu1  ;;  %8903 = vmatprep.subr.bf16.mxu0 %v7290_v51  ;;  %v3212_v8 = vadd.f32 %v14560_v24, %v14366_v4  ;;  %v4149_v29 = vmul.f32 %v12511_v20, %v3218_v28  ;;  %v14562_v51 = vld [vmem:[#allocation12_spill] sm:$0xff]  ;;  %v14566_v20 = vld [vmem:[#allocation281_spill] sm:$0xff]  ;;  %v3248_v28 = vadd.f32 %v14575_v11, %v14366_v4 }
 0x9d2   : > { %v7216_v42 = vmul.f32 %v9265_v56, %v4133_v21  ;;  %v6995_v0 = vpop.f32.mrb[125].mxu1  ;;  %8904 = vmatpush3.bf16.msra.mxu0 %v7282_v63  ;;  %v4151_v21 = vmul.f32 %v14563_v27, %v3222_v59 }
 0x9d3   : > { %v7214_v60 = vmul.f32 %v6995_v0, %v4129_v55  ;;  %v9266_v13 = vpop.f32.mrb[126].mxu1  ;;  %8905 = vmatprep.subr.bf16.mxu0 %v7291_v6  ;;  %v14561_v6 = vld [vmem:[#allocation65_spill] sm:$0xff]  ;;  %v4147_v45 = vmul.f32 %v14565_v31, %v3212_v8 }
 0x9d4   : > { %v7217_v12 = vmul.f32 %v9266_v13, %v4135_v35  ;;  %v6998_v49 = vpop.f32.mrb[127].mxu1  ;;  %v4145_v3 = vmul.f32 %v14561_v6, %v3208_v22  ;;  %v14564_v55 = vld [vmem:[#allocation13_spill] sm:$0xff]  ;;  %v3238_v35 = vadd.f32 %v14566_v20, %v14366_v4  ;;  %v14583_v20 = vld [vmem:[#allocation295_spill] sm:$0xff] }
 0x9d5   : > { %v7215_v15 = vmul.f32 %v6998_v49, %v4131_v36  ;;  %v14567_v36 = vld [vmem:[#allocation277_spill] sm:$0xff] }
 0x9d6   : > { %v7293_v38 = vpack.c.bf16 %v7217_v12, %v7216_v42  ;;  %8906 = vmatpush3.bf16.msra.mxu0 %v7283_v5  ;;  %v3228_v62 = vadd.f32 %v14567_v36, %v14366_v4  ;;  %v14568_v12 = vld [vmem:[#allocation283_spill] sm:$0xff]  ;;  %v4157_v47 = vmul.f32 %v12530_v16, %v3238_v35  ;;  %v14574_v16 = vld [vmem:[#allocation289_spill] sm:$0xff]  ;;  %v3272_v35 = vadd.f32 %v14583_v20, %v14366_v4  ;;  %v14584_v36 = vld [vmem:[#allocation68_spill] sm:$0xff] }
 0x9d7   : > { %v7292_v63 = vpack.c.bf16 %v7215_v15, %v7214_v60  ;;  %v3242_v49 = vadd.f32 %v14568_v12, %v14366_v4  ;;  %v3232_v15 = vadd.f32 %v14569_v52, %v14366_v4  ;;  %v14585_v12 = vld [vmem:[#allocation95_spill] sm:$0xff] }
 0x9d9   : > { %v9269_v9 = vpop.f32.mrb[128].mxu1  ;;  %8907 = vmatprep.subr.bf16.mxu0 %v7292_v63  ;;  %v14571_v63 = vld [vmem:[#allocation83_spill] sm:$0xff] }
 0x9da   : > { %v7220_v32 = vmul.f32 %v9269_v9, %v4141_v58  ;;  %v7011_v37 = vpop.f32.mrb[129].mxu1  ;;  %8908 = vmatpush3.bf16.msra.mxu0 %v14555_v57  ;;  %v4159_v58 = vmul.f32 %v14571_v63, %v3242_v49 }
 0x9db   : > { %v7218_v50 = vmul.f32 %v7011_v37, %v4137_v40  ;;  %v9270_v5 = vpop.f32.mrb[130].mxu1  ;;  %8909 = vmatprep.subr.bf16.mxu0 %v7293_v38  ;;  %v4153_v38 = vmul.f32 %v12522_v34, %v3228_v62  ;;  %v3258_v34 = vadd.f32 %v14574_v16, %v14366_v4 }
 0x9dc   : > { %v7221_v1 = vmul.f32 %v9270_v5, %v4143_v17  ;;  %v7014_v14 = vpop.f32.mrb[131].mxu1  ;;  %v14572_v17 = vld [vmem:[#allocation92_spill] sm:$0xff] }
 0x9dd   : > { %v7219_v25 = vmul.f32 %v7014_v14, %v4139_v61  ;;  %v14576_v14 = vld [vmem:[#allocation291_spill] sm:$0xff] }
 0x9de   : > { %v7295_v53 = vpack.c.bf16 %v7221_v1, %v7220_v32  ;;  %8910 = vmatpush3.bf16.msra.mxu0 %v14559_v46  ;;  %v14573_v32 = vld [vmem:[#allocation74_spill] sm:$0xff]  ;;  %v3262_v43 = vadd.f32 %v14576_v14, %v14366_v4  ;;  %v14578_v46 = vld [vmem:[#allocation59_spill] sm:$0xff] }
 0x9df   : > { %v7294_v7 = vpack.c.bf16 %v7219_v25, %v7218_v50  ;;  %7455 = vmatprep.subr.bf16.mxu0 %v14325_v30  ;;  %v4155_v37 = vmul.f32 %v14573_v32, %v3232_v15  ;;  %v14577_v25 = vld [vmem:[#allocation287_spill] sm:$0xff]  ;;  %v4161_v24 = vmul.f32 %v14578_v46, %v3248_v28  ;;  %v14586_v15 = vld [vmem:[#allocation101_spill] sm:$0xff] }
 0x9e0   : > { %v3252_v54 = vadd.f32 %v14577_v25, %v14366_v4  ;;  %v14594_v25 = vld [vmem:[#allocation104_spill] sm:$0xff]  ;;  %v14595_v46 = vld [vmem:[#allocation313_spill] sm:$0xff] }
 0x9e1   : > { %v9273_v39 = vpop.f32.mrb[132].mxu1  ;;  %7439 = vmatmul.mubr.bf16.vlgmr.msra.gmra.mrb[140].mxu0 %v14562_v51 }
 0x9e2   : > { %v7224_v56 = vmul.f32 %v9273_v39, %v4149_v29  ;;  %v7027_v26 = vpop.f32.mrb[133].mxu1  ;;  %7446 = vmatprep.mubr.bf16.mxu0 %v14564_v55  ;;  %7456 = vmatpush1.bf16.msra.mxu0 %v7294_v7  ;;  %v4167_v7 = vmul.f32 %v12663_v41, %v3262_v43  ;;  %v14582_v41 = vld [vmem:[#allocation299_spill] sm:$0xff] }
 0x9e3   : > { %v7222_v42 = vmul.f32 %v7027_v26, %v4145_v3  ;;  %v9274_v0 = vpop.f32.mrb[134].mxu1  ;;  %7457 = vmatprep.subr.bf16.mxu0 %v14325_v30  ;;  %v14579_v3 = vld [vmem:[#allocation86_spill] sm:$0xff] }
 0x9e4   : > { %v7225_v60 = vmul.f32 %v9274_v0, %v4151_v21  ;;  %v7030_v13 = vpop.f32.mrb[135].mxu1  ;;  %v4163_v39 = vmul.f32 %v14579_v3, %v3252_v54  ;;  %v14580_v21 = vld [vmem:[#allocation297_spill] sm:$0xff] }
 0x9e5   : > { %v7223_v10 = vmul.f32 %v7030_v13, %v4147_v45 }
 0x9e6   : > { %v7297_v44 = vpack.c.bf16 %v7225_v60, %v7224_v56  ;;  %7458 = vmatpush1.bf16.msra.mxu0 %v7295_v53  ;;  %v4165_v53 = vmul.f32 %v12552_v18, %v3258_v34  ;;  %v3278_v56 = vadd.f32 %v14580_v21, %v14366_v4  ;;  %v14581_v18 = vld [vmem:[#allocation293_spill] sm:$0xff]  ;;  %v14598_v21 = vld [vmem:[#allocation311_spill] sm:$0xff] }
 0x9e7   : > { %v7296_v48 = vpack.c.bf16 %v7223_v10, %v7222_v42  ;;  %7459 = vmatprep.subr.bf16.mxu0 %v14325_v30  ;;  %v3268_v31 = vadd.f32 %v14581_v18, %v14366_v4  ;;  %v3282_v42 = vadd.f32 %v14582_v41, %v14366_v4  ;;  %v14591_v34 = vld [vmem:[#allocation77_spill] sm:$0xff] }
 0x9e8   : > { %v4173_v13 = vmul.f32 %v12576_v33, %v3278_v56  ;;  %v14588_v33 = vld [vmem:[#allocation301_spill] sm:$0xff]  ;;  %v3312_v56 = vadd.f32 %v14598_v21, %v14366_v4 }
 0x9e9   : > { %v9277_v23 = vpop.f32.mrb[136].mxu1  ;;  %7447 = vmatmul.mubr.bf16.gmra.mrb[144].mxu0 %v14570_v19  ;;  %v4169_v62 = vmul.f32 %v14584_v36, %v3268_v31  ;;  %v4175_v49 = vmul.f32 %v14585_v12, %v3282_v42  ;;  %v14600_v31 = vld [vmem:[#allocation80_spill] sm:$0xff]  ;;  %v14601_v42 = vld [vmem:[#allocation107_spill] sm:$0xff] }
 0x9ea   : > { %v7228_v40 = vmul.f32 %v9277_v23, %v4157_v47  ;;  %v7043_v9 = vpop.f32.mrb[137].mxu1  ;;  %7460 = vmatpush1.bf16.msra.mxu0 %v7296_v48  ;;  %8514 = vmatprep.mubr.msk.bf16.mxu0 %vm6020_vm1, %v14572_v17  ;;  %v4171_v48 = vmul.f32 %v14586_v15, %v3272_v35  ;;  %v14587_v23 = vld [vmem:[#allocation305_spill] sm:$0xff]  ;;  %v14589_v17 = vld [vmem:[#allocation307_spill] sm:$0xff]  ;;  %v14604_v15 = vld [vmem:[#allocation110_spill] sm:$0xff] }
 0x9eb   : > { %v7226_v57 = vmul.f32 %v7043_v9, %v4153_v38  ;;  %v9278_v61 = vpop.f32.mrb[138].mxu1  ;;  %7461 = vmatprep.subr.bf16.mxu0 %v14325_v30  ;;  %v3298_v19 = vadd.f32 %v14587_v23, %v14366_v4  ;;  %v3302_v32 = vadd.f32 %v14589_v17, %v14366_v4 }
 0x9ec   : > { %v7229_v50 = vmul.f32 %v9278_v61, %v4159_v58  ;;  %v7046_v5 = vpop.f32.mrb[139].mxu1 }
 0x9ed   : > { %v7227_v1 = vmul.f32 %v7046_v5, %v4155_v37  ;;  %v14592_v5 = vld [vmem:[#allocation62_spill] sm:$0xff] }
 0x9ee   : > { %v7299_v22 = vpack.c.bf16 %v7229_v50, %v7228_v40  ;;  %7462 = vmatpush1.bf16.msra.mxu0 %v7297_v44  ;;  %v3288_v40 = vadd.f32 %v14588_v33, %v14366_v4  ;;  %v4181_v50 = vmul.f32 %v14591_v34, %v3298_v19  ;;  %v9594_v34 = vld [vmem:[%s13679_s10 + $0x60] sm:$0xff]  }
 0x9ef   : > { %v7298_v59 = vpack.c.bf16 %v7227_v1, %v7226_v57  ;;  %7463 = vmatprep.subr.bf16.mxu0 %v14325_v30  ;;  %v14590_v57 = vld [vmem:[#allocation303_spill] sm:$0xff]  ;;  %v14593_v1 = vld [vmem:[#allocation98_spill] sm:$0xff] }
 0x9f0   : > { %v3292_v61 = vadd.f32 %v14590_v57, %v14366_v4  ;;  %v4177_v11 = vmul.f32 %v14592_v5, %v3288_v40  ;;  %v4183_v14 = vmul.f32 %v14593_v1, %v3302_v32  ;;  %v9591_v57 = vld [vmem:[%s13679_s10 + $0x48] sm:$0xff]   ;;  %v9596_v5 = vld [vmem:[%s13679_s10 + $0x70] sm:$0xff]   ;;  %v9597_v1 = vld [vmem:[%s13679_s10 + $0x78] sm:$0xff]  }
 0x9f1   : > { %v9281_v8 = vpop.f32.mrb[140].mxu1 }
 0x9f2   : > { %v7232_v29 = vmul.f32 %v9281_v8, %v4165_v53  ;;  %v7059_v6 = vpop.f32.mrb[141].mxu1  ;;  %7464 = vmatpush1.bf16.msra.mxu0 %v7298_v59  ;;  %v4179_v54 = vmul.f32 %v14594_v25, %v3292_v61  ;;  %v9592_v61 = vld [vmem:[%s13679_s10 + $0x50] sm:$0xff]  }
 0x9f3   : > { %v7230_v51 = vmul.f32 %v7059_v6, %v4161_v24  ;;  %v9282_v27 = vpop.f32.mrb[142].mxu1  ;;  %7465 = vmatprep.subr.bf16.mxu0 %v14325_v30  ;;  %v3318_v24 = vadd.f32 %v14595_v46, %v14366_v4 }
 0x9f4   : > { %v7233_v26 = vmul.f32 %v9282_v27, %v4167_v7  ;;  %v7062_v55 = vpop.f32.mrb[143].mxu1 }
 0x9f5   : > { %v7231_v45 = vmul.f32 %v7062_v55, %v4163_v39  ;;  %v14597_v39 = vld [vmem:[#allocation314_spill] sm:$0xff]  ;;  %v14599_v55 = vld [vmem:[#allocation89_spill] sm:$0xff] }
 0x9f6   : > { %v7301_v0 = vpack.c.bf16 %v7233_v26, %v7232_v29  ;;  %7466 = vmatpush1.bf16.msra.mxu0 %v7299_v22  ;;  %v14596_v29 = vld [vmem:[#allocation309_spill] sm:$0xff]  ;;  %v4189_v18 = vmul.f32 %v14599_v55, %v3318_v24 }
 0x9f7   : > { %v7300_v60 = vpack.c.bf16 %v7231_v45, %v7230_v51  ;;  %7467 = vmatprep.subr.bf16.mxu0 %v14325_v30  ;;  %v3308_v6 = vadd.f32 %v14596_v29, %v14366_v4  ;;  %v3322_v51 = vadd.f32 %v14597_v39, %v14366_v4 }
 0x9f9   : > { %v9285_v10 = vpop.f32.mrb[144].mxu1  ;;  %v4185_v45 = vmul.f32 %v14600_v31, %v3308_v6 }
 0x9fa   : > { %v7236_v44 = vmul.f32 %v9285_v10, %v4173_v13  ;;  %v7075_v52 = vpop.f32.mrb[145].mxu1  ;;  %7468 = vmatpush1.bf16.msra.mxu0 %v7300_v60  ;;  %v14602_v60 = vld [vmem:[#allocation113_spill] sm:$0xff] }
 0x9fb   : > { %v7234_v47 = vmul.f32 %v7075_v52, %v4169_v62  ;;  %v9286_v38 = vpop.f32.mrb[146].mxu1  ;;  %7469 = vmatprep.subr.bf16.mxu0 %v14325_v30  ;;  %v4187_v13 = vmul.f32 %v14602_v60, %v3312_v56  ;;  %v14603_v52 = vld [vmem:[#allocation116_spill] sm:$0xff] }
 0x9fc   : > { %v7237_v63 = vmul.f32 %v9286_v38, %v4175_v49  ;;  %v7078_v58 = vpop.f32.mrb[147].mxu1 }
 0x9fd   : > { %v7235_v9 = vmul.f32 %v7078_v58, %v4171_v48  ;;  %v14605_v48 = vld [vmem:[#allocation125_spill] sm:$0xff] }
 0x9fe   : > { %v7303_v37 = vpack.c.bf16 %v7237_v63, %v7236_v44  ;;  %7470 = vmatpush1.bf16.msra.mxu0 %v7301_v0  ;;  %v4191_v0 = vmul.f32 %v14601_v42, %v3322_v51 }
 0x9ff   : > { %v7302_v16 = vpack.c.bf16 %v7235_v9, %v7234_v47  ;;  %7471 = vmatprep.subr.bf16.mxu0 %v14325_v30 }
 0xa01   : > { %v9289_v28 = vpop.f32.mrb[148].mxu1 }
 0xa02   : > { %v7240_v43 = vmul.f32 %v9289_v28, %v4181_v50  ;;  %v7091_v22 = vpop.f32.mrb[149].mxu1  ;;  %7472 = vmatpush1.bf16.msra.mxu0 %v7302_v16  ;;  %v9593_v16 = vld [vmem:[%s13679_s10 + $0x58] sm:$0xff]   ;;  %v9595_v50 = vld [vmem:[%s13679_s10 + $0x68] sm:$0xff]  }
 0xa03   : > { %v7238_v59 = vmul.f32 %v7091_v22, %v4177_v11  ;;  %v9290_v53 = vpop.f32.mrb[150].mxu1  ;;  %7473 = vmatprep.subr.bf16.mxu0 %v14325_v30 }
 0xa04   : > { %v7241_v8 = vmul.f32 %v9290_v53, %v4183_v14  ;;  %v7094_v7 = vpop.f32.mrb[151].mxu1  ;;  %v9598_v53 = vld [vmem:[%s13681_s12 + $0x40] sm:$0xff]  }
 0xa05   : > { %v7239_v3 = vmul.f32 %v7094_v7, %v4179_v54 }
 0xa06   : > { %v7305_v27 = vpack.c.bf16 %v7241_v8, %v7240_v43  ;;  %7474 = vmatpush1.bf16.msra.mxu0 %v7303_v37  ;;  %v9590_v37 = vld [vmem:[%s13679_s10 + $0x40] sm:$0xff]  }
 0xa07   : > { %v7304_v26 = vpack.c.bf16 %v7239_v3, %v7238_v59  ;;  %7475 = vmatprep.subr.bf16.mxu0 %v14325_v30 }
 0xa09   : > { %v9293_v41 = vpop.f32.mrb[152].mxu1 }
 0xa0a   : > { %v7244_v20 = vmul.f32 %v9293_v41, %v4189_v18  ;;  %v7107_v35 = vpop.f32.mrb[153].mxu1  ;;  %7476 = vmatpush1.bf16.msra.mxu0 %v7304_v26 }
 0xa0b   : > { %v7242_v36 = vmul.f32 %v7107_v35, %v4185_v45  ;;  %v9294_v62 = vpop.f32.mrb[154].mxu1  ;;  %7477 = vmatprep.subr.bf16.mxu0 %v14325_v30 }
 0xa0c   : > { %v7245_v4 = vmul.f32 %v9294_v62, %v4191_v0  ;;  %v7110_v10 = vpop.f32.mrb[155].mxu1 }
 0xa0d   : > { %v7243_v12 = vmul.f32 %v7110_v10, %v4187_v13 }
 0xa0e   : > { %v7307_v49 = vpack.c.bf16 %v7245_v4, %v7244_v20  ;;  %7478 = vmatpush1.bf16.msra.mxu0 %v7305_v27 }
 0xa0f   : > { %v7306_v44 = vpack.c.bf16 %v7243_v12, %v7242_v36  ;;  %7479 = vmatprep.subr.bf16.mxu0 %v14325_v30 }
 0xa12   : > { %7480 = vmatpush1.bf16.msra.mxu0 %v7306_v44 }
 0xa13   : > { %7481 = vmatprep.subr.bf16.mxu0 %v14325_v30 }
 0xa16   : > { %7482 = vmatpush1.bf16.msra.mxu0 %v7307_v49 }
 0xa17   : > { %9295 = vmatprep.subr.bf16.mxu0 %v9590_v37 }
 0xa19   : > { %7488 = vmatmul.mubr.bf16.vlgmr.msra.gmra.mrb[148].mxu0 %v14603_v52 }
 0xa1a   : > { %8515 = vmatprep.mubr.msk.bf16.mxu0 %vm6020_vm1, %v14604_v15  ;;  %9296 = vmatpush3.bf16.msra.mxu0 %v9590_v37  ;;  %v9607_v37 = vld [vmem:[%s13683_s14 + $0x8] sm:$0xff]  }
 0xa1b   : > { %9297 = vmatprep.subr.bf16.mxu0 %v9591_v57 }
 0xa1e   : > { %9298 = vmatpush3.bf16.msra.mxu0 %v9591_v57  ;;  %v9608_v57 = vld [vmem:[%s13683_s14 + $0x10] sm:$0xff]  }
 0xa1f   : > { %9299 = vmatprep.subr.bf16.mxu0 %v9592_v61 }
 0xa21   : > { %7496 = vmatmul.mubr.bf16.gmra.mrb[152].mxu0 %v14605_v48 }
 0xa22   : > { %9300 = vmatpush3.bf16.msra.mxu0 %v9592_v61  ;;  %v9609_v61 = vld [vmem:[%s13683_s14 + $0x18] sm:$0xff]  }
 0xa23   : > { %9301 = vmatprep.subr.bf16.mxu0 %v9593_v16 }
 0xa26   : > { %9302 = vmatpush3.bf16.msra.mxu0 %v9593_v16  ;;  %v9610_v16 = vld [vmem:[%s13683_s14 + $0x20] sm:$0xff]  }
 0xa27   : > { %9303 = vmatprep.subr.bf16.mxu0 %v9594_v34 }
 0xa2a   : > { %9304 = vmatpush3.bf16.msra.mxu0 %v9594_v34  ;;  %v9611_v34 = vld [vmem:[%s13683_s14 + $0x28] sm:$0xff]  }
 0xa2b   : > { %9305 = vmatprep.subr.bf16.mxu0 %v9595_v50 }
 0xa2e   : > { %9306 = vmatpush3.bf16.msra.mxu0 %v9595_v50  ;;  %v8533_v50 = vld [vmem:[%s13680_s11 + $0x1] ss:$0 sm:$0xff] }
 0xa2f   : > { %9307 = vmatprep.subr.bf16.mxu0 %v9596_v5 }
 0xa32   : > { %9308 = vmatpush3.bf16.msra.mxu0 %v9596_v5 }
 0xa33   : > { %9309 = vmatprep.subr.bf16.mxu0 %v9597_v1 }
 0xa34   : > { %v8855_v47 = vpop.f32.mrb[124].mxu0 }
 0xa35   : > { %v8856_v38 = vpop.f32.mrb[125].mxu0 }
 0xa36   : > { %v8857_v23 = vadd.f32 %v8856_v38, %v8855_v47  ;;  %v8858_v19 = vpop.f32.mrb[126].mxu0  ;;  %9310 = vmatpush3.bf16.msra.mxu0 %v9597_v1 }
 0xa37   : > { %v8859_v63 = vpop.f32.mrb[127].mxu0  ;;  %9315 = vmatprep.subr.bf16.mxu0 %v9598_v53 }
 0xa38   : > { %v8860_v58 = vadd.f32 %v8859_v63, %v8858_v19  ;;  %v9599_v63 = vld [vmem:[%s13681_s12 + $0x48] sm:$0xff]  }
 0xa3c   : > { %v8861_v33 = vpop.f32.mrb[128].mxu0 }
 0xa3d   : > { %v8862_v40 = vpop.f32.mrb[129].mxu0 }
 0xa3e   : > { %v8863_v9 = vadd.f32 %v8862_v40, %v8861_v33  ;;  %v8864_v17 = vpop.f32.mrb[130].mxu0  ;;  %v9601_v33 = vld [vmem:[%s13681_s12 + $0x58] sm:$0xff]   ;;  %v9602_v40 = vld [vmem:[%s13681_s12 + $0x60] sm:$0xff]  }
 0xa3f   : > { %v8865_v32 = vpop.f32.mrb[131].mxu0 }
 0xa40   : > { %v8866_v30 = vadd.f32 %v8865_v32, %v8864_v17  ;;  %v9604_v17 = vld [vmem:[%s13681_s12 + $0x70] sm:$0xff]   ;;  %v9605_v32 = vld [vmem:[%s13681_s12 + $0x78] sm:$0xff]  }
 0xa74   : > { %v8883_v11 = vpop.f32.mrb[132].mxu0 }
 0xa75   : > { %v8884_v28 = vpop.f32.mrb[133].mxu0 }
 0xa76   : > { %v8885_v14 = vadd.f32 %v8884_v28, %v8883_v11  ;;  %v8886_v43 = vpop.f32.mrb[134].mxu0 }
 0xa77   : > { %v8887_v22 = vpop.f32.mrb[135].mxu0 }
 0xa78   : > { %v7392_v25 = vadd.f32 %v8885_v14, %v8857_v23  ;;  %v8888_v54 = vadd.f32 %v8887_v22, %v8886_v43 }
 0xa7a   : > { %v7395_v59 = vadd.f32 %v8888_v54, %v8860_v58  ;;  %v9600_v58 = vld [vmem:[%s13681_s12 + $0x50] sm:$0xff]  }
 0xa7c   : > { %v8889_v46 = vpop.f32.mrb[136].mxu0 }
 0xa7d   : > { %v8890_v24 = vpop.f32.mrb[137].mxu0 }
 0xa7e   : > { %v8891_v8 = vadd.f32 %v8890_v24, %v8889_v46  ;;  %v8892_v7 = vpop.f32.mrb[138].mxu0 }
 0xa7f   : > { %v8893_v29 = vpop.f32.mrb[139].mxu0 }
 0xa80   : > { %v7400_v6 = vadd.f32 %v8891_v8, %v8863_v9  ;;  %v8894_v3 = vadd.f32 %v8893_v29, %v8892_v7  ;;  %v9603_v9 = vld [vmem:[%s13681_s12 + $0x68] sm:$0xff]   ;;  %v9612_v7 = vld [vmem:[%s13683_s14 + $0x30] sm:$0xff]   ;;  %v9613_v29 = vld [vmem:[%s13683_s14 + $0x38] sm:$0xff]  }
 0xa82   : > { %v7403_v39 = vadd.f32 %v8894_v3, %v8866_v30  ;;  %v9606_v30 = vld [vmem:[%s13683_s14] sm:$0xff]  }
 0xa83   : > { %9335 = vmatprep.subr.bf16.mxu1 %v9606_v30 }
 0xa84   : > { %9336 = vmatpush3.bf16.msra.mxu1 %v9606_v30 }
 0xa85   : > { %9337 = vmatprep.subr.bf16.mxu1 %v9607_v37 }
 0xa88   : > { %9338 = vmatpush3.bf16.msra.mxu1 %v9607_v37 }
 0xa89   : > { %9339 = vmatprep.subr.bf16.mxu1 %v9608_v57 }
 0xa8c   : > { %9340 = vmatpush3.bf16.msra.mxu1 %v9608_v57 }
 0xa8d   : > { %9341 = vmatprep.subr.bf16.mxu1 %v9609_v61 }
 0xa90   : > { %9342 = vmatpush3.bf16.msra.mxu1 %v9609_v61 }
 0xa91   : > { %9343 = vmatprep.subr.bf16.mxu1 %v9610_v16 }
 0xa94   : > { %9344 = vmatpush3.bf16.msra.mxu1 %v9610_v16 }
 0xa95   : > { %9345 = vmatprep.subr.bf16.mxu1 %v9611_v34 }
 0xa98   : > { %9346 = vmatpush3.bf16.msra.mxu1 %v9611_v34 }
 0xa99   : > { %9347 = vmatprep.subr.bf16.mxu1 %v9612_v7 }
 0xa9c   : > { %9348 = vmatpush3.bf16.msra.mxu1 %v9612_v7 }
 0xa9d   : > { %9349 = vmatprep.subr.bf16.mxu1 %v9613_v29 }
 0xaa0   : > { %9350 = vmatpush3.bf16.msra.mxu1 %v9613_v29 }
 0xab4   : > { %v8911_v51 = vpop.f32.mrb[140].mxu0 }
 0xab5   : > { %v8912_v27 = vpop.f32.mrb[141].mxu0 }
 0xab6   : > { %v8913_v21 = vadd.f32 %v8912_v27, %v8911_v51  ;;  %v8914_v56 = vpop.f32.mrb[142].mxu0 }
 0xab7   : > { %v8915_v26 = vpop.f32.mrb[143].mxu0 }
 0xab8   : > { %v8916_v55 = vadd.f32 %v8915_v26, %v8914_v56  ;;  %v7441_v18 = vadd.f32 %v8913_v21, %v7392_v25 }
 0xaba   : > { %v7444_v31 = vadd.f32 %v8916_v55, %v7395_v59 }
 0xabc   : > { %v8917_v45 = vpop.f32.mrb[144].mxu0 }
 0xabd   : > { %v8918_v41 = vpop.f32.mrb[145].mxu0 }
 0xabe   : > { %v8919_v42 = vadd.f32 %v8918_v41, %v8917_v45  ;;  %v8920_v0 = vpop.f32.mrb[146].mxu0  ;;  %v14607_v41 = vld [vmem:[#allocation128_spill] sm:$0xff] }
 0xabf   : > { %v8921_v20 = vpop.f32.mrb[147].mxu0 }
 0xac0   : > { %v8922_v35 = vadd.f32 %v8921_v20, %v8920_v0  ;;  %v7449_v60 = vadd.f32 %v8919_v42, %v7400_v6  ;;  %v8559_v6 = vld [vmem:[%s13682_s13 + $0x1] ss:$0 sm:$0xff]  ;;  %v14608_v0 = vld [vmem:[#allocation122_spill] sm:$0xff] }
 0xac2   : > { %v7452_v13 = vadd.f32 %v8922_v35, %v7403_v39 }
 0xaec   : > { %v7489_v36 = vpop.f32.mrb[148].mxu0 }
 0xaed   : > { %v7490_v62 = vadd.f32 %v7489_v36, %v7441_v18  ;;  %v7491_v4 = vpop.f32.mrb[149].mxu0  ;;  %v9616_v36 = vld [vmem:[%s13685_s16 + $0x10] sm:$0xff]  }
 0xaee   : > { %v7492_v10 = vpop.f32.mrb[150].mxu0  ;;  %v8568_v4 = vld [vmem:[%s13684_s15] ss:$0 sm:$0xff] }
 0xaef   : > { %v7493_v12 = vadd.f32 %v7492_v10, %v7444_v31  ;;  %v7494_v49 = vpop.f32.mrb[151].mxu0  ;;  %v14606_v31 = vld [vmem:[#allocation119_spill] sm:$0xff] }
 0xaf1   : > { %v7521_v44 = vpack.c.bf16 %v7493_v12, %v7490_v62  ;;  %v9617_v62 = vld [vmem:[%s13685_s16 + $0x18] sm:$0xff]  }
 0xaf3   : > { %9311 = vmatprep.mubr.bf16.mxu0 %v7521_v44 }
 0xaf4   : > { %v7497_v52 = vpop.f32.mrb[152].mxu0 }
 0xaf5   : > { %v7498_v15 = vadd.f32 %v7497_v52, %v7449_v60  ;;  %v7499_v48 = vpop.f32.mrb[153].mxu0 }
 0xaf6   : > { %v7500_v47 = vpop.f32.mrb[154].mxu0 }
 0xaf7   : > { %v7501_v38 = vadd.f32 %v7500_v47, %v7452_v13  ;;  %v7502_v23 = vpop.f32.mrb[155].mxu0  ;;  %v9614_v13 = vld [vmem:[%s13685_s16] sm:$0xff]  }
 0xaf9   : > { %v7522_v19 = vpack.c.bf16 %v7501_v38, %v7498_v15 }
 0xafb   : > { %9312 = vmatmul.mubr.bf16.vlgmr.msra.gmra.mrb[156].mxu0 %v7522_v19 }
 0xafc   : > { %9316 = vmatpush3.bf16.msra.mxu0 %v9598_v53 }
 0xafd   : > { %9317 = vmatprep.subr.bf16.mxu0 %v9599_v63 }
 0xb00   : > { %9318 = vmatpush3.bf16.msra.mxu0 %v9599_v63 }
 0xb01   : > { %9319 = vmatprep.subr.bf16.mxu0 %v9600_v58 }
 0xb04   : > { %9320 = vmatpush3.bf16.msra.mxu0 %v9600_v58 }
 0xb05   : > { %9321 = vmatprep.subr.bf16.mxu0 %v9601_v33 }
 0xb08   : > { %9322 = vmatpush3.bf16.msra.mxu0 %v9601_v33 }
 0xb09   : > { %9323 = vmatprep.subr.bf16.mxu0 %v9602_v40 }
 0xb0c   : > { %9324 = vmatpush3.bf16.msra.mxu0 %v9602_v40  ;;  %v8577_v40 = vld [vmem:[#allocation2] ss:$0 sm:$0xff] }
 0xb0d   : > { %9325 = vmatprep.subr.bf16.mxu0 %v9603_v9 }
 0xb10   : > { %9326 = vmatpush3.bf16.msra.mxu0 %v9603_v9 }
 0xb11   : > { %9327 = vmatprep.subr.bf16.mxu0 %v9604_v17 }
 0xb14   : > { %9328 = vmatpush3.bf16.msra.mxu0 %v9604_v17 }
 0xb15   : > { %9329 = vmatprep.subr.bf16.mxu0 %v9605_v32 }
 0xb18   : > { %9330 = vmatpush3.bf16.msra.mxu0 %v9605_v32 }
 0xb19   : > { %9355 = vmatprep.subr.bf16.mxu0 %v9614_v13 }
 0xbce   : > { %v9313_v5 = vpop.f32.mrb[156].mxu0 }
 0xbcf   : > { %v7622_v11 = vadd.f32 %v9313_v5, %v8533_v50  ;;  %v7613_v28 = vpop.f32.mrb[157].mxu0 }
 0xbd0   : > { %v7614_v1 = vadd.f32 %v8533_v50, %v7613_v28  ;;  %v9314_v14 = vpop.f32.mrb[158].mxu0 }
 0xbd1   : > { %10122 = vtanh.f32 %v7622_v11  ;;  %v7625_v43 = vadd.f32 %v9314_v14, %v8533_v50  ;;  %v7616_v22 = vpop.f32.mrb[159].mxu0 }
 0xbd2   : > { %10124 = vtanh.f32 %v7614_v1  ;;  %v7617_v25 = vadd.f32 %v8533_v50, %v7616_v22 }
 0xbd3   : > { %10126 = vtanh.f32 %v7625_v43 }
 0xbd4   : > { %10128 = vtanh.f32 %v7617_v25 }
 0xbdb   : > { %v10123_v54 = vpop.eup %10122 }
 0xbdc   : > { %v10125_v59 = vpop.eup %10124 }
 0xbdd   : > { %v10127_v53 = vpop.eup %10126 }
 0xbde   : > { %v10129_v46 = vpop.eup %10128  ;;  %v7650_v24 = vpack.c.bf16 %v10127_v53, %v10123_v54 }
 0xbdf   : > { %v7649_v8 = vpack.c.bf16 %v10129_v46, %v10125_v59 }
 0xbe1   : > { %9331 = vmatprep.mubr.bf16.mxu0 %v7649_v8 }
 0xbe2   : > { %9332 = vmatmul.mubr.bf16.vlgmr.msra.gmra.mrb[160].mxu0 %v7650_v24 }
 0xbe3   : > { %9356 = vmatpush3.bf16.msra.mxu0 %v9614_v13 }
 0xcb5   : > { %v9333_v3 = vpop.f32.mrb[160].mxu0 }
 0xcb6   : > { %v7750_v39 = vadd.f32 %v9333_v3, %v8559_v6  ;;  %v7741_v51 = vpop.f32.mrb[161].mxu0 }
 0xcb7   : > { %v7742_v27 = vadd.f32 %v8559_v6, %v7741_v51  ;;  %v9334_v21 = vpop.f32.mrb[162].mxu0 }
 0xcb8   : > { %v7753_v56 = vadd.f32 %v9334_v21, %v8559_v6  ;;  %v7744_v26 = vpop.f32.mrb[163].mxu0  ;;  %v7758_v18 = vadd.f32 %v7750_v39, %v12827_v2  ;;  %v9615_v2 = vld [vmem:[%s13685_s16 + $0x8] sm:$0xff]  }
 0xcb9   : > { %v7745_v55 = vadd.f32 %v8559_v6, %v7744_v26  ;;  %v7756_v42 = vadd.f32 %v7742_v27, %v14607_v41  ;;  %9357 = vmatprep.subr.bf16.mxu0 %v9615_v2 }
 0xcba   : > { %v7759_v45 = vadd.f32 %v7753_v56, %v14606_v31  ;;  %9358 = vmatpush3.bf16.msra.mxu0 %v9615_v2 }
 0xcbb   : > { %v7757_v20 = vadd.f32 %v7745_v55, %v14608_v0  ;;  %9359 = vmatprep.subr.bf16.mxu0 %v9616_v36 }
 0xcbc   : > { %v7777_v35 = vpack.c.bf16 %v7759_v45, %v7758_v18 }
 0xcbd   : > { %v7776_v60 = vpack.c.bf16 %v7757_v20, %v7756_v42 }
 0xcbe   : > { %9360 = vmatpush3.bf16.msra.mxu0 %v9616_v36 }
 0xcbf   : > { %9351 = vmatprep.mubr.bf16.mxu1 %v7776_v60  ;;  %9361 = vmatprep.subr.bf16.mxu0 %v9617_v62 }
 0xcc0   : > { %9352 = vmatmul.mubr.bf16.vlgmr.msra.gmra.mrb[156].mxu1 %v7777_v35 }
 0xcc2   : > { %9362 = vmatpush3.bf16.msra.mxu0 %v9617_v62 }
 0xd93   : > { %v9353_v10 = vpop.f32.mrb[156].mxu1 }
 0xd94   : > { %v7876_v12 = vadd.f32 %v9353_v10, %v8568_v4  ;;  %v7867_v49 = vpop.f32.mrb[157].mxu1 }
 0xd95   : > { %v7868_v44 = vadd.f32 %v8568_v4, %v7867_v49  ;;  %v9354_v52 = vpop.f32.mrb[158].mxu1 }
 0xd96   : > { %10130 = vtanh.f32 %v7876_v12  ;;  %v7879_v15 = vadd.f32 %v9354_v52, %v8568_v4  ;;  %v7870_v48 = vpop.f32.mrb[159].mxu1 }
 0xd97   : > { %10132 = vtanh.f32 %v7868_v44  ;;  %v7871_v47 = vadd.f32 %v8568_v4, %v7870_v48 }
 0xd98   : > { %10134 = vtanh.f32 %v7879_v15 }
 0xd99   : > { %10136 = vtanh.f32 %v7871_v47 }
 0xda0   : > { %v10131_v38 = vpop.eup %10130 }
 0xda1   : > { %v10133_v23 = vpop.eup %10132 }
 0xda2   : > { %v10135_v19 = vpop.eup %10134 }
 0xda3   : > { %v10137_v63 = vpop.eup %10136  ;;  %v7895_v58 = vpack.c.bf16 %v10135_v19, %v10131_v38 }
 0xda4   : > { %v7894_v33 = vpack.c.bf16 %v10137_v63, %v10133_v23 }
 0xda6   : > { %9363 = vmatprep.mubr.msk.bf16.mxu0 %vm7927_vm2, %v7894_v33 }
 0xda7   : > { %9364 = vmatmul.mubr.msk.bf16.vlgmr.msra.gmra.mrb[164].mxu0 %vm7927_vm2, %v7895_v58 }
 0xe7a   : > { %v9365_v9 = vpop.f32.mrb[164].mxu0 }
 0xe7b   : > { %v7968_v17 = vpop.f32.mrb[165].mxu0  ;;  %v7977_v57 = vadd.f32 %v9365_v9, %v8577_v40 }
 0xe7c   : > { %v7969_v32 = vadd.f32 %v8577_v40, %v7968_v17  ;;  %v9366_v30 = vpop.f32.mrb[166].mxu0 }
 0xe7d   : > { %v7971_v37 = vpop.f32.mrb[167].mxu0  ;;  %v7980_v34 = vadd.f32 %v9366_v30, %v8577_v40  ;;  %v7987_v11 = vsel %vm7983_vm3, %v7977_v57, 0.0 }
 0xe7e   : > { %v7972_v61 = vadd.f32 %v8577_v40, %v7971_v37  ;;  %v7984_v16 = vsel %vm7983_vm3, %v7969_v32, 0.0 }
 0xe7f   : > { %v7989_v1 = vsel %vm7983_vm3, %v7980_v34, 0.0 }
 0xe80   : > { %v7985_v50 = vsel %vm7983_vm3, %v7972_v61, 0.0 }
 0xe81   : > { %v7986_v5 = vadd.f32 %v7985_v50, %v7984_v16 }
 0xe83   : > { %v7988_v28 = vadd.f32 %v7987_v11, %v7986_v5 }
 0xe85   : > { %v7990_v14 = vadd.f32 %v7989_v1, %v7988_v28 }
 0xe87   : > { %v7991_v43 = vrot.slane %v7990_v14, 4 }
 0xe89   : > { %v7992_v22 = vadd.f32 %v7991_v43, %v7990_v14 }
 0xe8b   : > { %v7993_v25 = vrot.slane %v7992_v22, 2 }
 0xe8d   : > { %v7994_v54 = vadd.f32 %v7993_v25, %v7992_v22 }
 0xe8f   : > { %v7995_v59 = vrot.slane %v7994_v54, 1 }
 0xe91   : > { %v7996_v53 = vadd.f32 %v7995_v59, %v7994_v54 }
 0xe93   : > { %7999 = vperm.xlu0 %9378, %v7996_v53  }
 0xf12   : > { %v8000_v46 = vpop.permute.xlu0 %7999 }
 0xf13   : > { %8002 = vst [vmem:[%s655_s25] sm:$0xff] %v8000_v46 }
 0xf14 PF: > { %s30_s29 = sadd.s32 1, %s10211_s29  }
 0xf15   : > { %p27_p4 = scmp.ge.s32.totalorder %s30_s29, 6  }
 0xf17   :  { %29 = sbr.rel (!%p27_p4) target bundleno = 4 (0x4), region = 139 }

</bundles_post_ra>
